<compile_context>
chip_gen: v6e
topology: v6e:2x2x1
jax: 0.10.0
libtpu: 0.0.40
codegen_flags: <defaults>
</compile_context>

<pallas_src>
import jax
import jax.numpy as jnp
from jax.experimental import pallas as pl
from jax.experimental.pallas import tpu as pltpu

# Logical / lane-padded dimensions.
D_IN, D_IN_P = 784, 896      # input / reconstruction width
H1, H1_P = 400, 512          # encoder hidden 1 (= decoder hidden 2)
H2, H2_P = 200, 256          # encoder hidden 2 (= decoder hidden 1)
LAT_P = 128                  # padded latent width; fused mu|lv output is 2*LAT_P


def _vae_kernel(x_ref, eps_ref,
                w1, b1, w2, b2, wmv, bmv,
                wd1, bd1, wd2, bd2, wd3, bd3,
                xr_ref, mulv_ref):
    # Operands enter the MXU in bf16; accumulate + do elementwise math in f32.
    def lin(a, w_ref, b_ref):
        return jnp.dot(a.astype(jnp.bfloat16), w_ref[...],
                       preferred_element_type=jnp.float32) + b_ref[...]

    x = x_ref[...]                                   # (TB, 896) f32

    # ---- encoder ----
    h = jnp.maximum(lin(x, w1, b1), 0.0)             # (TB, 512)
    h = jnp.maximum(lin(h, w2, b2), 0.0)             # (TB, 256)

    # ---- fused mu | log_var projection (single 256-lane-wide matmul) ----
    mulv = lin(h, wmv, bmv)                          # (TB, 256) = [mu | lv]
    mu = mulv[:, :LAT_P]
    lv = mulv[:, LAT_P:]

    # ---- reparameterize: z = mu + eps * exp(0.5 * log_var) ----
    std = jnp.exp(0.5 * lv)
    z = mu + eps_ref[...] * std                      # (TB, 128) f32

    # ---- decoder ----
    d = jnp.maximum(lin(z, wd1, bd1), 0.0)           # (TB, 256)
    d = jnp.maximum(lin(d, wd2, bd2), 0.0)           # (TB, 512)
    logits = lin(d, wd3, bd3)                        # (TB, 896)

    xr_ref[...] = jax.nn.sigmoid(logits).astype(xr_ref.dtype)
    mulv_ref[...] = mulv.astype(mulv_ref.dtype)


def _round_up(n, m):
    return (n + m - 1) // m * m


def _pad2(a, rows, cols):
    return jnp.pad(a, ((0, rows - a.shape[0]), (0, cols - a.shape[1])))


def init_params(key, latent_dim):
    """Unpadded f32 params, weights stored [in, out], biases [1, out]."""
    dims = [
        (D_IN, H1), (H1, H2),                  # encoder
        (H2, latent_dim), (H2, latent_dim),    # fc_mu, fc_var
        (latent_dim, H2), (H2, H1), (H1, D_IN)  # decoder
    ]
    params = []
    for (din, dout) in dims:
        key, kw, kb = jax.random.split(key, 3)
        scale = 1.0 / jnp.sqrt(din)
        w = jax.random.uniform(kw, (din, dout), jnp.float32, -scale, scale)
        b = jax.random.uniform(kb, (1, dout), jnp.float32, -scale, scale)
        params += [w, b]
    return params


def prepare_params(params, latent_dim):
    """Zero-pad every dim to a 128 multiple, fuse fc_mu|fc_var, cast weights
    to bfloat16 (biases stay f32). Padding is exact (padded rows/cols are 0)."""
    (w1, b1, w2, b2, wmu, bmu, wvar, bvar,
     wd1, bd1, wd2, bd2, wd3, bd3) = params

    wmv = jnp.zeros((H2, 2 * LAT_P), jnp.float32)
    wmv = wmv.at[:, :latent_dim].set(wmu).at[:, LAT_P:LAT_P + latent_dim].set(wvar)
    bmv = jnp.zeros((1, 2 * LAT_P), jnp.float32)
    bmv = bmv.at[:, :latent_dim].set(bmu).at[:, LAT_P:LAT_P + latent_dim].set(bvar)

    def wpad(w, r, c):
        return _pad2(w, r, c).astype(jnp.bfloat16)

    return (
        wpad(w1, D_IN_P, H1_P),      _pad2(b1, 1, H1_P),
        wpad(w2, H1_P, H2_P),        _pad2(b2, 1, H2_P),
        wpad(wmv, H2_P, 2 * LAT_P),  _pad2(bmv, 1, 2 * LAT_P),
        wpad(wd1, LAT_P, H2_P),      _pad2(bd1, 1, H2_P),
        wpad(wd2, H2_P, H1_P),       _pad2(bd2, 1, H1_P),
        wpad(wd3, H1_P, D_IN_P),     _pad2(bd3, 1, D_IN_P),
    )


def vae_forward(x, eps, kparams, latent_dim, *, block_b=128):
    """x: (B, 784) f32, eps: (B, latent) f32. Returns (x_reconst, mu, log_var)."""
    B = x.shape[0]
    Bp = _round_up(B, block_b)

    xp = _pad2(x.astype(jnp.float32), Bp, D_IN_P)
    epsp = _pad2(eps.astype(jnp.float32), Bp, LAT_P)

    grid = (Bp // block_b,)

    def tiled(cols):                    # batch-tiled, pipelined per grid step
        return pl.BlockSpec((block_b, cols), lambda i: (i, 0))

    def resident(arr):                  # constant block index -> fetched once
        return pl.BlockSpec(arr.shape, lambda i: (0, 0))

    in_specs = [tiled(D_IN_P), tiled(LAT_P)] + [resident(p) for p in kparams]

    xr, mulv = pl.pallas_call(
        _vae_kernel,
        grid=grid,
        out_shape=(
            jax.ShapeDtypeStruct((Bp, D_IN_P), jnp.float32),
            jax.ShapeDtypeStruct((Bp, 2 * LAT_P), jnp.float32),
        ),
        in_specs=in_specs,
        out_specs=(tiled(D_IN_P), tiled(2 * LAT_P)),
        compiler_params=pltpu.CompilerParams(
            dimension_semantics=("parallel",),   # megacore-shard batch on v7x
            vmem_limit_bytes=16 << 20,           # ~7 MiB actual; v7x-safe
        ),
    )(xp, epsp, *kparams)

    x_reconst = xr[:B, :D_IN]
    mu = mulv[:B, :latent_dim]
    log_var = mulv[:B, LAT_P:LAT_P + latent_dim]
    return x_reconst, mu, log_var


def vae_forward_ref(x, eps, params):
    """Pure-JAX reference using the same bf16-operand / f32-accumulate math."""
    (w1, b1, w2, b2, wmu, bmu, wvar, bvar,
     wd1, bd1, wd2, bd2, wd3, bd3) = params

    def lin(a, w, b):
        return jnp.dot(a.astype(jnp.bfloat16), w.astype(jnp.bfloat16),
                       preferred_element_type=jnp.float32) + b

    h = jnp.maximum(lin(x, w1, b1), 0.0)
    h = jnp.maximum(lin(h, w2, b2), 0.0)
    mu = lin(h, wmu, bmu)
    lv = lin(h, wvar, bvar)
    z = mu + eps * jnp.exp(0.5 * lv)
    d = jnp.maximum(lin(z, wd1, bd1), 0.0)
    d = jnp.maximum(lin(d, wd2, bd2), 0.0)
    return jax.nn.sigmoid(lin(d, wd3, bd3)), mu, lv


if __name__ == "__main__":
    latent_dim = 32
    batch = 8

    key = jax.random.PRNGKey(0)
    kx, keps, kp = jax.random.split(key, 3)

    # input in [0, 1] like MNIST pixels, flattened to (B, 784)
    x = jax.random.uniform(kx, (batch, 784), jnp.float32)
    # eps drawn outside the kernel so the forward pass is deterministic
    eps = jax.random.normal(keps, (batch, latent_dim), jnp.float32)

    params = init_params(kp, latent_dim)
    kparams = prepare_params(params, latent_dim)

    x_reconst, mu, log_var = vae_forward(x, eps, kparams, latent_dim)
    jax.block_until_ready((x_reconst, mu, log_var))

    # sanity check against a plain-JAX reference (same bf16 matmul rounding)
    xr_ref, mu_ref, lv_ref = vae_forward_ref(x, eps, params)
    assert x_reconst.shape == (batch, 784)
    assert mu.shape == (batch, latent_dim) and log_var.shape == (batch, latent_dim)
    assert jnp.allclose(x_reconst, xr_ref, atol=2e-3, rtol=2e-3)
    assert jnp.allclose(mu, mu_ref, atol=2e-3, rtol=2e-3)
    assert jnp.allclose(log_var, lv_ref, atol=2e-3, rtol=2e-3)

    print("KERNEL_OK")
</pallas_src>

<mosaic_0001>
module attributes {stable_mosaic.version = 11 : i64} {
  func.func @_vae_kernel(%arg0: i32, %arg1: memref<128x896xf32, #tpu.memory_space<vmem>>, %arg2: memref<128x128xf32, #tpu.memory_space<vmem>>, %arg3: memref<896x512xbf16, #tpu.memory_space<vmem>>, %arg4: memref<1x512xf32, #tpu.memory_space<vmem>>, %arg5: memref<512x256xbf16, #tpu.memory_space<vmem>>, %arg6: memref<1x256xf32, #tpu.memory_space<vmem>>, %arg7: memref<256x256xbf16, #tpu.memory_space<vmem>>, %arg8: memref<1x256xf32, #tpu.memory_space<vmem>>, %arg9: memref<128x256xbf16, #tpu.memory_space<vmem>>, %arg10: memref<1x256xf32, #tpu.memory_space<vmem>>, %arg11: memref<256x512xbf16, #tpu.memory_space<vmem>>, %arg12: memref<1x512xf32, #tpu.memory_space<vmem>>, %arg13: memref<512x896xbf16, #tpu.memory_space<vmem>>, %arg14: memref<1x896xf32, #tpu.memory_space<vmem>>, %arg15: memref<128x896xf32, #tpu.memory_space<vmem>>, %arg16: memref<128x256xf32, #tpu.memory_space<vmem>>) attributes {dimension_semantics = [#tpu.dimension_semantics<parallel>], iteration_bounds = array<i64: 1>, scalar_prefetch = 0 : i64, scratch_operands = 0 : i64, tpu.core_type = #tpu.core_type<tc>, window_params = [{transform_indices = @transform_0, window_bounds = array<i64: 128, 896>}, {transform_indices = @transform_1, window_bounds = array<i64: 128, 128>}, {pipeline_mode = #tpu.pipeline_mode<synchronous>, transform_indices = @transform_2, window_bounds = array<i64: 896, 512>}, {pipeline_mode = #tpu.pipeline_mode<synchronous>, transform_indices = @transform_3, window_bounds = array<i64: 1, 512>}, {pipeline_mode = #tpu.pipeline_mode<synchronous>, transform_indices = @transform_4, window_bounds = array<i64: 512, 256>}, {pipeline_mode = #tpu.pipeline_mode<synchronous>, transform_indices = @transform_5, window_bounds = array<i64: 1, 256>}, {pipeline_mode = #tpu.pipeline_mode<synchronous>, transform_indices = @transform_6, window_bounds = array<i64: 256, 256>}, {pipeline_mode = #tpu.pipeline_mode<synchronous>, transform_indices = @transform_7, window_bounds = array<i64: 1, 256>}, {pipeline_mode = #tpu.pipeline_mode<synchronous>, transform_indices = @transform_8, window_bounds = array<i64: 128, 256>}, {pipeline_mode = #tpu.pipeline_mode<synchronous>, transform_indices = @transform_9, window_bounds = array<i64: 1, 256>}, {pipeline_mode = #tpu.pipeline_mode<synchronous>, transform_indices = @transform_10, window_bounds = array<i64: 256, 512>}, {pipeline_mode = #tpu.pipeline_mode<synchronous>, transform_indices = @transform_11, window_bounds = array<i64: 1, 512>}, {pipeline_mode = #tpu.pipeline_mode<synchronous>, transform_indices = @transform_12, window_bounds = array<i64: 512, 896>}, {pipeline_mode = #tpu.pipeline_mode<synchronous>, transform_indices = @transform_13, window_bounds = array<i64: 1, 896>}, {transform_indices = @transform_14, window_bounds = array<i64: 128, 896>}, {transform_indices = @transform_15, window_bounds = array<i64: 128, 256>}]} {
    %c0 = arith.constant 0 : index
    %c0_0 = arith.constant 0 : index
    %0 = vector.load %arg1[%c0, %c0_0] : memref<128x896xf32, #tpu.memory_space<vmem>>, vector<128x896xf32>
    %1 = arith.truncf %0 : vector<128x896xf32> to vector<128x896xbf16>
    %c0_1 = arith.constant 0 : index
    %c0_2 = arith.constant 0 : index
    %2 = vector.load %arg3[%c0_1, %c0_2] : memref<896x512xbf16, #tpu.memory_space<vmem>>, vector<896x512xbf16>
    %cst = arith.constant dense<0.000000e+00> : vector<128x512xf32>
    %3 = tpu.matmul %1, %2, %cst {dimension_numbers = #tpu.dot_dimension_numbers<[1], [0], [0], [1], [0, 0, 1, 1], [], []>} : vector<128x896xbf16>, vector<896x512xbf16>, vector<128x512xf32> -> vector<128x512xf32>
    %c0_3 = arith.constant 0 : index
    %c0_4 = arith.constant 0 : index
    %4 = vector.load %arg4[%c0_3, %c0_4] : memref<1x512xf32, #tpu.memory_space<vmem>>, vector<1x512xf32>
    %5 = vector.broadcast %4 : vector<1x512xf32> to vector<128x512xf32>
    %6 = arith.addf %3, %5 : vector<128x512xf32>
    %cst_5 = arith.constant 0.000000e+00 : f32
    %7 = vector.broadcast %cst_5 : f32 to vector<128x512xf32>
    %8 = arith.maximumf %6, %7 : vector<128x512xf32>
    %9 = arith.truncf %8 : vector<128x512xf32> to vector<128x512xbf16>
    %c0_6 = arith.constant 0 : index
    %c0_7 = arith.constant 0 : index
    %10 = vector.load %arg5[%c0_6, %c0_7] : memref<512x256xbf16, #tpu.memory_space<vmem>>, vector<512x256xbf16>
    %cst_8 = arith.constant dense<0.000000e+00> : vector<128x256xf32>
    %11 = tpu.matmul %9, %10, %cst_8 {dimension_numbers = #tpu.dot_dimension_numbers<[1], [0], [0], [1], [0, 0, 1, 1], [], []>} : vector<128x512xbf16>, vector<512x256xbf16>, vector<128x256xf32> -> vector<128x256xf32>
    %c0_9 = arith.constant 0 : index
    %c0_10 = arith.constant 0 : index
    %12 = vector.load %arg6[%c0_9, %c0_10] : memref<1x256xf32, #tpu.memory_space<vmem>>, vector<1x256xf32>
    %13 = vector.broadcast %12 : vector<1x256xf32> to vector<128x256xf32>
    %14 = arith.addf %11, %13 : vector<128x256xf32>
    %cst_11 = arith.constant 0.000000e+00 : f32
    %15 = vector.broadcast %cst_11 : f32 to vector<128x256xf32>
    %16 = arith.maximumf %14, %15 : vector<128x256xf32>
    %17 = arith.truncf %16 : vector<128x256xf32> to vector<128x256xbf16>
    %c0_12 = arith.constant 0 : index
    %c0_13 = arith.constant 0 : index
    %18 = vector.load %arg7[%c0_12, %c0_13] : memref<256x256xbf16, #tpu.memory_space<vmem>>, vector<256x256xbf16>
    %cst_14 = arith.constant dense<0.000000e+00> : vector<128x256xf32>
    %19 = tpu.matmul %17, %18, %cst_14 {dimension_numbers = #tpu.dot_dimension_numbers<[1], [0], [0], [1], [0, 0, 1, 1], [], []>} : vector<128x256xbf16>, vector<256x256xbf16>, vector<128x256xf32> -> vector<128x256xf32>
    %c0_15 = arith.constant 0 : index
    %c0_16 = arith.constant 0 : index
    %20 = vector.load %arg8[%c0_15, %c0_16] : memref<1x256xf32, #tpu.memory_space<vmem>>, vector<1x256xf32>
    %21 = vector.broadcast %20 : vector<1x256xf32> to vector<128x256xf32>
    %22 = arith.addf %19, %21 : vector<128x256xf32>
    %23 = vector.extract_strided_slice %22 {offsets = [0, 0], sizes = [128, 128], strides = [1, 1]} : vector<128x256xf32> to vector<128x128xf32>
    %24 = vector.extract_strided_slice %22 {offsets = [0, 128], sizes = [128, 128], strides = [1, 1]} : vector<128x256xf32> to vector<128x128xf32>
    %cst_17 = arith.constant 5.000000e-01 : f32
    %25 = vector.broadcast %cst_17 : f32 to vector<128x128xf32>
    %26 = arith.mulf %25, %24 : vector<128x128xf32>
    %27 = math.exp %26 : vector<128x128xf32>
    %c0_18 = arith.constant 0 : index
    %c0_19 = arith.constant 0 : index
    %28 = vector.load %arg2[%c0_18, %c0_19] : memref<128x128xf32, #tpu.memory_space<vmem>>, vector<128x128xf32>
    %29 = arith.mulf %28, %27 : vector<128x128xf32>
    %30 = arith.addf %23, %29 : vector<128x128xf32>
    %31 = arith.truncf %30 : vector<128x128xf32> to vector<128x128xbf16>
    %c0_20 = arith.constant 0 : index
    %c0_21 = arith.constant 0 : index
    %32 = vector.load %arg9[%c0_20, %c0_21] : memref<128x256xbf16, #tpu.memory_space<vmem>>, vector<128x256xbf16>
    %cst_22 = arith.constant dense<0.000000e+00> : vector<128x256xf32>
    %33 = tpu.matmul %31, %32, %cst_22 {dimension_numbers = #tpu.dot_dimension_numbers<[1], [0], [0], [1], [0, 0, 1, 1], [], []>} : vector<128x128xbf16>, vector<128x256xbf16>, vector<128x256xf32> -> vector<128x256xf32>
    %c0_23 = arith.constant 0 : index
    %c0_24 = arith.constant 0 : index
    %34 = vector.load %arg10[%c0_23, %c0_24] : memref<1x256xf32, #tpu.memory_space<vmem>>, vector<1x256xf32>
    %35 = vector.broadcast %34 : vector<1x256xf32> to vector<128x256xf32>
    %36 = arith.addf %33, %35 : vector<128x256xf32>
    %cst_25 = arith.constant 0.000000e+00 : f32
    %37 = vector.broadcast %cst_25 : f32 to vector<128x256xf32>
    %38 = arith.maximumf %36, %37 : vector<128x256xf32>
    %39 = arith.truncf %38 : vector<128x256xf32> to vector<128x256xbf16>
    %c0_26 = arith.constant 0 : index
    %c0_27 = arith.constant 0 : index
    %40 = vector.load %arg11[%c0_26, %c0_27] : memref<256x512xbf16, #tpu.memory_space<vmem>>, vector<256x512xbf16>
    %cst_28 = arith.constant dense<0.000000e+00> : vector<128x512xf32>
    %41 = tpu.matmul %39, %40, %cst_28 {dimension_numbers = #tpu.dot_dimension_numbers<[1], [0], [0], [1], [0, 0, 1, 1], [], []>} : vector<128x256xbf16>, vector<256x512xbf16>, vector<128x512xf32> -> vector<128x512xf32>
    %c0_29 = arith.constant 0 : index
    %c0_30 = arith.constant 0 : index
    %42 = vector.load %arg12[%c0_29, %c0_30] : memref<1x512xf32, #tpu.memory_space<vmem>>, vector<1x512xf32>
    %43 = vector.broadcast %42 : vector<1x512xf32> to vector<128x512xf32>
    %44 = arith.addf %41, %43 : vector<128x512xf32>
    %cst_31 = arith.constant 0.000000e+00 : f32
    %45 = vector.broadcast %cst_31 : f32 to vector<128x512xf32>
    %46 = arith.maximumf %44, %45 : vector<128x512xf32>
    %47 = arith.truncf %46 : vector<128x512xf32> to vector<128x512xbf16>
    %c0_32 = arith.constant 0 : index
    %c0_33 = arith.constant 0 : index
    %48 = vector.load %arg13[%c0_32, %c0_33] : memref<512x896xbf16, #tpu.memory_space<vmem>>, vector<512x896xbf16>
    %cst_34 = arith.constant dense<0.000000e+00> : vector<128x896xf32>
    %49 = tpu.matmul %47, %48, %cst_34 {dimension_numbers = #tpu.dot_dimension_numbers<[1], [0], [0], [1], [0, 0, 1, 1], [], []>} : vector<128x512xbf16>, vector<512x896xbf16>, vector<128x896xf32> -> vector<128x896xf32>
    %c0_35 = arith.constant 0 : index
    %c0_36 = arith.constant 0 : index
    %50 = vector.load %arg14[%c0_35, %c0_36] : memref<1x896xf32, #tpu.memory_space<vmem>>, vector<1x896xf32>
    %51 = vector.broadcast %50 : vector<1x896xf32> to vector<128x896xf32>
    %52 = arith.addf %49, %51 : vector<128x896xf32>
    %53 = arith.negf %52 : vector<128x896xf32>
    %54 = math.exp %53 : vector<128x896xf32>
    %cst_37 = arith.constant 1.000000e+00 : f32
    %55 = vector.broadcast %cst_37 : f32 to vector<128x896xf32>
    %56 = arith.addf %55, %54 : vector<128x896xf32>
    %57 = arith.divf %55, %56 : vector<128x896xf32>
    %c0_38 = arith.constant 0 : index
    %c0_39 = arith.constant 0 : index
    %58 = vector.load %arg15[%c0_38, %c0_39] : memref<128x896xf32, #tpu.memory_space<vmem>>, vector<128x896xf32>
    tpu.vector_store %arg15[%c0_38, %c0_39], %57 {strides = array<i32>} : memref<128x896xf32, #tpu.memory_space<vmem>>, vector<128x896xf32>,
    %c0_40 = arith.constant 0 : index
    %c0_41 = arith.constant 0 : index
    %59 = vector.load %arg16[%c0_40, %c0_41] : memref<128x256xf32, #tpu.memory_space<vmem>>, vector<128x256xf32>
    tpu.vector_store %arg16[%c0_40, %c0_41], %22 {strides = array<i32>} : memref<128x256xf32, #tpu.memory_space<vmem>>, vector<128x256xf32>,
    return
  }
  func.func @transform_0(%arg0: i32) -> (i32, i32) {
    %c0_i32 = arith.constant 0 : i32
    %c0_i32_0 = arith.constant 0 : i32
    return %arg0, %c0_i32 : i32, i32
  }
  func.func @transform_1(%arg0: i32) -> (i32, i32) {
    %c0_i32 = arith.constant 0 : i32
    %c0_i32_0 = arith.constant 0 : i32
    return %arg0, %c0_i32 : i32, i32
  }
  func.func @transform_2(%arg0: i32) -> (i32, i32) {
    %c0_i32 = arith.constant 0 : i32
    %c0_i32_0 = arith.constant 0 : i32
    %c0_i32_1 = arith.constant 0 : i32
    return %c0_i32, %c0_i32_0 : i32, i32
  }
  func.func @transform_3(%arg0: i32) -> (i32, i32) {
    %c0_i32 = arith.constant 0 : i32
    %c0_i32_0 = arith.constant 0 : i32
    %c0_i32_1 = arith.constant 0 : i32
    return %c0_i32, %c0_i32_0 : i32, i32
  }
  func.func @transform_4(%arg0: i32) -> (i32, i32) {
    %c0_i32 = arith.constant 0 : i32
    %c0_i32_0 = arith.constant 0 : i32
    %c0_i32_1 = arith.constant 0 : i32
    return %c0_i32, %c0_i32_0 : i32, i32
  }
  func.func @transform_5(%arg0: i32) -> (i32, i32) {
    %c0_i32 = arith.constant 0 : i32
    %c0_i32_0 = arith.constant 0 : i32
    %c0_i32_1 = arith.constant 0 : i32
    return %c0_i32, %c0_i32_0 : i32, i32
  }
  func.func @transform_6(%arg0: i32) -> (i32, i32) {
    %c0_i32 = arith.constant 0 : i32
    %c0_i32_0 = arith.constant 0 : i32
    %c0_i32_1 = arith.constant 0 : i32
    return %c0_i32, %c0_i32_0 : i32, i32
  }
  func.func @transform_7(%arg0: i32) -> (i32, i32) {
    %c0_i32 = arith.constant 0 : i32
    %c0_i32_0 = arith.constant 0 : i32
    %c0_i32_1 = arith.constant 0 : i32
    return %c0_i32, %c0_i32_0 : i32, i32
  }
  func.func @transform_8(%arg0: i32) -> (i32, i32) {
    %c0_i32 = arith.constant 0 : i32
    %c0_i32_0 = arith.constant 0 : i32
    %c0_i32_1 = arith.constant 0 : i32
    return %c0_i32, %c0_i32_0 : i32, i32
  }
  func.func @transform_9(%arg0: i32) -> (i32, i32) {
    %c0_i32 = arith.constant 0 : i32
    %c0_i32_0 = arith.constant 0 : i32
    %c0_i32_1 = arith.constant 0 : i32
    return %c0_i32, %c0_i32_0 : i32, i32
  }
  func.func @transform_10(%arg0: i32) -> (i32, i32) {
    %c0_i32 = arith.constant 0 : i32
    %c0_i32_0 = arith.constant 0 : i32
    %c0_i32_1 = arith.constant 0 : i32
    return %c0_i32, %c0_i32_0 : i32, i32
  }
  func.func @transform_11(%arg0: i32) -> (i32, i32) {
    %c0_i32 = arith.constant 0 : i32
    %c0_i32_0 = arith.constant 0 : i32
    %c0_i32_1 = arith.constant 0 : i32
    return %c0_i32, %c0_i32_0 : i32, i32
  }
  func.func @transform_12(%arg0: i32) -> (i32, i32) {
    %c0_i32 = arith.constant 0 : i32
    %c0_i32_0 = arith.constant 0 : i32
    %c0_i32_1 = arith.constant 0 : i32
    return %c0_i32, %c0_i32_0 : i32, i32
  }
  func.func @transform_13(%arg0: i32) -> (i32, i32) {
    %c0_i32 = arith.constant 0 : i32
    %c0_i32_0 = arith.constant 0 : i32
    %c0_i32_1 = arith.constant 0 : i32
    return %c0_i32, %c0_i32_0 : i32, i32
  }
  func.func @transform_14(%arg0: i32) -> (i32, i32) {
    %c0_i32 = arith.constant 0 : i32
    %c0_i32_0 = arith.constant 0 : i32
    return %arg0, %c0_i32 : i32, i32
  }
  func.func @transform_15(%arg0: i32) -> (i32, i32) {
    %c0_i32 = arith.constant 0 : i32
    %c0_i32_0 = arith.constant 0 : i32
    return %arg0, %c0_i32 : i32, i32
  }
}

</mosaic_0001>

<bundles_post_ra>
// kernel: tpu_custom_call.1
= control target key start
LH: loop header
LB: loop body
LE: loop exit
PB: predicated region body
PF: predicated region fallthrough
CT: control target
= control target key end

     0   :  { %21 = vsyncpa [#allocation3], 0  ;;  %s11981_s0 = inlined_call_operand.hbm [shape: f32[128,896], index: 0, kind: input, shape index: {}]   ;;  %s11982_s1 = inlined_call_operand.hbm [shape: f32[128,128], index: 1, kind: input, shape index: {}]   ;;  %s11983_s2 = inlined_call_operand.hbm [shape: bf16[896,512], index: 2, kind: input, shape index: {}]   ;;  %s11984_s3 = inlined_call_operand.vmem [shape: f32[1,512], index: 3, kind: input, shape index: {}]   ;;  %s11985_s4 = inlined_call_operand.hbm [shape: bf16[512,256], index: 4, kind: input, shape index: {}]   ;;  %s11986_s5 = inlined_call_operand.hbm [shape: f32[1,256], index: 5, kind: input, shape index: {}]   ;;  %s11987_s6 = inlined_call_operand.hbm [shape: bf16[256,256], index: 6, kind: input, shape index: {}]   ;;  %s11988_s7 = inlined_call_operand.hbm [shape: f32[1,256], index: 7, kind: input, shape index: {}]   ;;  %s11989_s8 = inlined_call_operand.hbm [shape: bf16[128,256], index: 8, kind: input, shape index: {}]   ;;  %s11990_s9 = inlined_call_operand.hbm [shape: f32[1,256], index: 9, kind: input, shape index: {}]   ;;  %s11991_s10 = inlined_call_operand.hbm [shape: bf16[256,512], index: 10, kind: input, shape index: {}]   ;;  %s11992_s11 = inlined_call_operand.vmem [shape: f32[1,512], index: 11, kind: input, shape index: {}]   ;;  %s11993_s12 = inlined_call_operand.hbm [shape: bf16[512,896], index: 12, kind: input, shape index: {}]   ;;  %s11994_s13 = inlined_call_operand.vmem [shape: f32[1,896], index: 13, kind: input, shape index: {}]   ;;  %s11995_s14 = inlined_call_operand.hbm [shape: f32[128,896], index: 14, kind: output, shape index: {0}]   ;;  %s11996_s15 = inlined_call_operand.hbm [shape: f32[128,256], index: 15, kind: output, shape index: {1}]  }
   0x1   :  { %22 = vsyncpa [#allocation6], 0 }
   0x2   :  { %23 = vsyncpa [#allocation9], 0 }
   0x3   :  { %24 = vsyncpa [#allocation12], 0 }
   0x4   :  { %25 = vsyncpa [#allocation15], 0 }
   0x5   :  { %26 = vsyncpa [#allocation18], 0 }
   0x6   :  { %27 = vsyncpa [#allocation4], 0 }
   0x7   :  { %28 = vsyncpa [#allocation22], 0  ;;  %s10552_s18 = smov [#allocation5]  }
   0x8   :  { %s46_s19 = sshll.u32 %s10552_s18, 4  ;;  %s47_s19 = int_to_ptr.vmem [resolvable:$true] %s46_s19 }
   0x9   :  { %s10284_s20 = scalar_lea.vmem %s47_s19, 2048  ;;  %p10289_p1 = scmp.lt.s32.totalorder %s47_s19, %s47_s19 }
   0xa   :  { %p10285_p0 = scmp.ne.s32.totalorder %s47_s19, %s10284_s20  ;;  %p10290_p2 = scmp.lt.s32.totalorder %s10284_s20, %s10284_s20 }
   0xc   :  { %p10291_p3 = por %p10290_p2, %p10289_p1 }
   0xe   :  { %p10292_p4 = pnand %p10291_p3, %p10285_p0 }
  0x10   :  { %10295 = shalt.err (!%p10292_p4)
}
  0x11   :  { %s10553_s21 = smov 128   ;;  %s10554_s22 = smov 8  }
  0x12   :  { %52 = dma.hbm_to_vmem [thread:$0]  %s11982_s1, 2048, %s47_s19, [#allocation6], %s10553_s21, %s10553_s21, %s10554_s22  }
  0x13   :  { %s10555_s25 = smov [#allocation8]   ;;  %s10556_s27 = smov [#allocation11]  }
  0x14   :  { %s72_s26 = sshll.u32 %s10555_s25, 4  ;;  %s94_s28 = sshll.u32 %s10556_s27, 4  ;;  %s73_s26 = int_to_ptr.vmem [resolvable:$true] %s72_s26  ;;  %s95_s28 = int_to_ptr.vmem [resolvable:$true] %s94_s28 }
  0x15   :  { %s10304_s29 = scalar_lea.vmem %s73_s26, 8192  ;;  %p10309_p6 = scmp.lt.s32.totalorder %s73_s26, %s73_s26 }
  0x16   :  { %p10305_p5 = scmp.ne.s32.totalorder %s73_s26, %s10304_s29  ;;  %p10310_p7 = scmp.lt.s32.totalorder %s10304_s29, %s10304_s29 }
  0x18   :  { %p10311_p8 = por %p10310_p7, %p10309_p6 }
  0x1a   :  { %p10312_p9 = pnand %p10311_p8, %p10305_p5 }
  0x1c   :  { %10315 = shalt.err (!%p10312_p9)
}
  0x1d   :  { %78 = dma.hbm_to_vmem [thread:$0]  %s11985_s4, 8192, %s73_s26, [#allocation9], %s10553_s21, %s10553_s21, %s10554_s22  }
  0x1e   :  { %s10324_s1 = scalar_lea.vmem %s95_s28, 4096  ;;  %p10329_p11 = scmp.lt.s32.totalorder %s95_s28, %s95_s28 }
  0x1f   :  { %p10325_p10 = scmp.ne.s32.totalorder %s95_s28, %s10324_s1  ;;  %p10330_p12 = scmp.lt.s32.totalorder %s10324_s1, %s10324_s1 }
  0x21   :  { %p10331_p13 = por %p10330_p12, %p10329_p11 }
  0x23   :  { %p10332_p0 = pnand %p10331_p13, %p10325_p10 }
  0x25   :  { %10335 = shalt.err (!%p10332_p0)
}
  0x26   :  { %100 = dma.hbm_to_vmem [thread:$0]  %s11987_s6, 4096, %s95_s28, [#allocation12], %s10553_s21, %s10553_s21, %s10554_s22  }
  0x27   :  { %s10557_s19 = smov [#allocation14]  }
  0x28   :  { %s116_s20 = sshll.u32 %s10557_s19, 4  ;;  %s117_s20 = int_to_ptr.vmem [resolvable:$true] %s116_s20 }
  0x29   :  { %s10344_s23 = scalar_lea.vmem %s117_s20, 2048  ;;  %p10349_p2 = scmp.lt.s32.totalorder %s117_s20, %s117_s20 }
  0x2a   :  { %p10345_p1 = scmp.ne.s32.totalorder %s117_s20, %s10344_s23  ;;  %p10350_p3 = scmp.lt.s32.totalorder %s10344_s23, %s10344_s23 }
  0x2c   :  { %p10351_p4 = por %p10350_p3, %p10349_p2 }
  0x2e   :  { %p10352_p5 = pnand %p10351_p4, %p10345_p1 }
  0x30   :  { %10355 = shalt.err (!%p10352_p5)
}
  0x31   :  { %122 = dma.hbm_to_vmem [thread:$0]  %s11989_s8, 2048, %s117_s20, [#allocation15], %s10553_s21, %s10553_s21, %s10554_s22  }
  0x32   :  { %s10558_s25 = smov [#allocation17]   ;;  %s10559_s6 = smov [#allocation2]  }
  0x33   :  { %s138_s26 = sshll.u32 %s10558_s25, 4  ;;  %s34_s27 = sshll.u32 %s10559_s6, 4  ;;  %s139_s26 = int_to_ptr.vmem [resolvable:$true] %s138_s26  ;;  %s35_s27 = int_to_ptr.vmem [resolvable:$true] %s34_s27 }
  0x34   :  { %s10364_s28 = scalar_lea.vmem %s139_s26, 8192  ;;  %p10369_p7 = scmp.lt.s32.totalorder %s139_s26, %s139_s26 }
  0x35   :  { %p10365_p6 = scmp.ne.s32.totalorder %s139_s26, %s10364_s28  ;;  %p10370_p8 = scmp.lt.s32.totalorder %s10364_s28, %s10364_s28 }
  0x37   :  { %p10371_p9 = por %p10370_p8, %p10369_p7 }
  0x39   :  { %p10372_p10 = pnand %p10371_p9, %p10365_p6 }
  0x3b   :  { %10375 = shalt.err (!%p10372_p10)
}
  0x3c   :  { %s10560_s29 = smov 256   ;;  %s10561_s30 = smov 16  }
  0x3d   :  { %144 = dma.hbm_to_vmem [thread:$0]  %s11991_s10, 8192, %s139_s26, [#allocation18], %s10560_s29, %s10560_s29, %s10561_s30  }
  0x3e   :  { %s10384_s21 = scalar_lea.vmem %s35_s27, 14336  ;;  %p10389_p12 = scmp.lt.s32.totalorder %s35_s27, %s35_s27 }
  0x3f   :  { %p10385_p11 = scmp.ne.s32.totalorder %s35_s27, %s10384_s21  ;;  %p10390_p13 = scmp.lt.s32.totalorder %s10384_s21, %s10384_s21 }
  0x41   :  { %p10391_p0 = por %p10390_p13, %p10389_p12 }
  0x43   :  { %p10392_p1 = pnand %p10391_p0, %p10385_p11 }
  0x45   :  { %10395 = shalt.err (!%p10392_p1)
}
  0x46   :  { %s10562_s22 = smov 896   ;;  %s10563_s1 = smov 56  }
  0x47   :  { %40 = dma.hbm_to_vmem [thread:$0]  %s11981_s0, 14336, %s35_s27, [#allocation3], %s10562_s22, %s10562_s22, %s10563_s1  }
  0x48   :  { %s10564_s19 = smov [#allocation7]   ;;  %s10565_s23 = smov [#allocation10]  }
  0x49   :  { %s58_s20 = sshll.u32 %s10564_s19, 4  ;;  %s85_s10 = sshll.u32 %s10565_s23, 4  ;;  %s59_s20 = int_to_ptr.vmem [resolvable:$true] %s58_s20  ;;  %s86_s10 = int_to_ptr.vmem [resolvable:$true] %s85_s10 }
  0x4a   :  { %s10404_s4 = scalar_lea.vmem %s59_s20, 28672  ;;  %p10409_p3 = scmp.lt.s32.totalorder %s59_s20, %s59_s20 }
  0x4b   :  { %p10405_p2 = scmp.ne.s32.totalorder %s59_s20, %s10404_s4  ;;  %p10410_p4 = scmp.lt.s32.totalorder %s10404_s4, %s10404_s4 }
  0x4d   :  { %p10411_p5 = por %p10410_p4, %p10409_p3 }
  0x4f   :  { %p10412_p6 = pnand %p10411_p5, %p10405_p2 }
  0x51   :  { %10415 = shalt.err (!%p10412_p6)
}
  0x52   :  { %64 = dma.hbm_to_vmem [thread:$0]  %s11983_s2, 28672, %s59_s20, [#allocation6], %s10560_s29, %s10560_s29, %s10561_s30  }
  0x53   :  { %s10424_s0 = scalar_lea.vmem %s86_s10, 32  ;;  %p10429_p8 = scmp.lt.s32.totalorder %s86_s10, %s86_s10 }
  0x54   :  { %p10425_p7 = scmp.ne.s32.totalorder %s86_s10, %s10424_s0  ;;  %p10430_p9 = scmp.lt.s32.totalorder %s10424_s0, %s10424_s0 }
  0x56   :  { %p10431_p10 = por %p10430_p9, %p10429_p8 }
  0x58   :  { %p10432_p11 = pnand %p10431_p10, %p10425_p7 }
  0x5a   :  { %10435 = shalt.err (!%p10432_p11)
}
  0x5b   :  { %88 = dma.hbm_to_vmem [thread:$0]  %s11986_s5, 32, %s86_s10, [#allocation9]  }
  0x5c   :  { %s10566_s27 = smov [#allocation13]   ;;  %s10567_s16 = smov [#allocation16]  }
  0x5d   :  { %s107_s28 = sshll.u32 %s10566_s27, 4  ;;  %s129_s8 = sshll.u32 %s10567_s16, 4  ;;  %s108_s28 = int_to_ptr.vmem [resolvable:$true] %s107_s28  ;;  %s130_s8 = int_to_ptr.vmem [resolvable:$true] %s129_s8 }
  0x5e   :  { %s10444_s21 = scalar_lea.vmem %s108_s28, 32  ;;  %p10449_p13 = scmp.lt.s32.totalorder %s108_s28, %s108_s28 }
  0x5f   :  { %p10445_p12 = scmp.ne.s32.totalorder %s108_s28, %s10444_s21  ;;  %p10450_p0 = scmp.lt.s32.totalorder %s10444_s21, %s10444_s21 }
  0x61   :  { %p10451_p1 = por %p10450_p0, %p10449_p13 }
  0x63   :  { %p10452_p2 = pnand %p10451_p1, %p10445_p12 }
  0x65   :  { %10455 = shalt.err (!%p10452_p2)
}
  0x66   :  { %110 = dma.hbm_to_vmem [thread:$0]  %s11988_s7, 32, %s108_s28, [#allocation12]  }
  0x67   :  { %s10464_s18 = scalar_lea.vmem %s130_s8, 32  ;;  %p10469_p4 = scmp.lt.s32.totalorder %s130_s8, %s130_s8 }
  0x68   :  { %p10465_p3 = scmp.ne.s32.totalorder %s130_s8, %s10464_s18  ;;  %p10470_p5 = scmp.lt.s32.totalorder %s10464_s18, %s10464_s18 }
  0x6a   :  { %p10471_p6 = por %p10470_p5, %p10469_p4 }
  0x6c   :  { %p10472_p7 = pnand %p10471_p6, %p10465_p3 }
  0x6e   :  { %10475 = shalt.err (!%p10472_p7)
}
  0x6f   :  { %132 = dma.hbm_to_vmem [thread:$0]  %s11990_s9, 32, %s130_s8, [#allocation15]  }
  0x70   :  { %s10568_s20 = smov [#allocation19]  }
  0x71   :  { %s152_s23 = sshll.u32 %s10568_s20, 4  ;;  %s153_s23 = int_to_ptr.vmem [resolvable:$true] %s152_s23 }
  0x72   :  { %s10484_s10 = scalar_lea.vmem %s153_s23, 28672  ;;  %p10489_p9 = scmp.lt.s32.totalorder %s153_s23, %s153_s23 }
  0x73   :  { %p10485_p8 = scmp.ne.s32.totalorder %s153_s23, %s10484_s10  ;;  %p10490_p10 = scmp.lt.s32.totalorder %s10484_s10, %s10484_s10 }
  0x75   :  { %p10491_p11 = por %p10490_p10, %p10489_p9 }
  0x77   :  { %p10492_p12 = pnand %p10491_p11, %p10485_p8 }
  0x79   :  { %10495 = shalt.err (!%p10492_p12)
}
  0x7a   :  { %s10569_s7 = smov 448   ;;  %s10570_s4 = smov 28  }
  0x7b   :  { %158 = dma.hbm_to_vmem [thread:$0]  %s11993_s12, 28672, %s153_s23, [#allocation18], %s10569_s7, %s10569_s7, %s10570_s4  }
  0x7c   :  { %10536 = dma.done.wait [#allocation3], 14336  }
  0x7d   :  { %10537 = vsyncadd [#allocation3], 4294952960 }
  0x7e   :  { %10538 = dma.done.wait [#allocation6], 30720  }
  0x7f   :  { %10539 = vsyncadd [#allocation6], 4294936576 }
  0x80   :  { %10540 = dma.done.wait [#allocation9], 8224  }
  0x81   :  { %10541 = vsyncadd [#allocation9], 4294959072 }
  0x82   :  { %10542 = dma.done.wait [#allocation12], 4128  }
  0x83   :  { %10543 = vsyncadd [#allocation12], 4294963168 }
  0x84   :  { %10544 = dma.done.wait [#allocation15], 2080  }
  0x85   :  { %10545 = vsyncadd [#allocation15], 4294965216 }
  0x86   :  { %10546 = dma.done.wait [#allocation18], 36864  }
  0x87   :  { %10547 = vsyncadd [#allocation18], 4294930432  ;;  %v8874_v0 = vld [vmem:[#allocation7 + $0xe4] ss:$16 sps:$4 sm:$0xff]   ;;  %v8878_v2 = vld [vmem:[#allocation7 + $0xe0] ss:$16 sps:$4 sm:$0xff]  }
  0x88   :  { %v8876_v1 = vld [vmem:[#allocation7 + $0x2e4] ss:$16 sps:$4 sm:$0xff]   ;;  %1729 = vmatprep.subr.bf16.mxu0 %v8874_v0  ;;  %v8879_v3 = vld [vmem:[#allocation7 + $0x2e0] ss:$16 sps:$4 sm:$0xff]   ;;  %v196_v46 = vld [vmem:[#allocation2 + $0x8] sm:$0xff] }
  0x89   :  { %1842 = vmatprep.subr.bf16.mxu1 %v8876_v1  ;;  %v8880_v4 = vld [vmem:[#allocation7 + $0xc4] ss:$16 sps:$4 sm:$0xff]   ;;  %1730 = vmatpush1.bf16.msra.mxu0 %v8878_v2  ;;  %v8884_v6 = vld [vmem:[#allocation7 + $0xc0] ss:$16 sps:$4 sm:$0xff]   ;;  %v198_v48 = vld [vmem:[#allocation2 + $0x18] sm:$0xff] }
  0x8a   :  { %1843 = vmatpush1.bf16.msra.mxu1 %v8879_v3  ;;  %v8882_v5 = vld [vmem:[#allocation7 + $0x2c4] ss:$16 sps:$4 sm:$0xff]   ;;  %1731 = vmatprep.subr.bf16.mxu0 %v8880_v4  ;;  %v8885_v7 = vld [vmem:[#allocation7 + $0x2c0] ss:$16 sps:$4 sm:$0xff]  }
  0x8b   :  { %1844 = vmatprep.subr.bf16.mxu1 %v8882_v5  ;;  %v8886_v8 = vld [vmem:[#allocation7 + $0xa4] ss:$16 sps:$4 sm:$0xff]   ;;  %v8890_v10 = vld [vmem:[#allocation7 + $0xa0] ss:$16 sps:$4 sm:$0xff]  }
  0x8c   :  { %v8888_v9 = vld [vmem:[#allocation7 + $0x2a4] ss:$16 sps:$4 sm:$0xff]   ;;  %v8891_v11 = vld [vmem:[#allocation7 + $0x2a0] ss:$16 sps:$4 sm:$0xff]  }
  0x8d   :  { %1732 = vmatpush1.bf16.msra.mxu0 %v8884_v6  ;;  %v8892_v12 = vld [vmem:[#allocation7 + $0x84] ss:$16 sps:$4 sm:$0xff]   ;;  %v8896_v14 = vld [vmem:[#allocation7 + $0x80] ss:$16 sps:$4 sm:$0xff]  }
  0x8e   :  { %1845 = vmatpush1.bf16.msra.mxu1 %v8885_v7  ;;  %1733 = vmatprep.subr.bf16.mxu0 %v8886_v8  ;;  %v8894_v13 = vld [vmem:[#allocation7 + $0x284] ss:$16 sps:$4 sm:$0xff]   ;;  %v8897_v15 = vld [vmem:[#allocation7 + $0x280] ss:$16 sps:$4 sm:$0xff]   ;;  %v202_v7 = vld [vmem:[#allocation2 + $0x38] sm:$0xff] }
  0x8f   :  { %1846 = vmatprep.subr.bf16.mxu1 %v8888_v9  ;;  %v8898_v16 = vld [vmem:[#allocation7 + $0x64] ss:$16 sps:$4 sm:$0xff]   ;;  %v8902_v18 = vld [vmem:[#allocation7 + $0x60] ss:$16 sps:$4 sm:$0xff]   ;;  %v204_v9 = vld [vmem:[#allocation2 + $0x48] sm:$0xff] }
  0x90   :  { %v8900_v17 = vld [vmem:[#allocation7 + $0x264] ss:$16 sps:$4 sm:$0xff]   ;;  %v8903_v19 = vld [vmem:[#allocation7 + $0x260] ss:$16 sps:$4 sm:$0xff]  }
  0x91   :  { %1734 = vmatpush1.bf16.msra.mxu0 %v8890_v10  ;;  %v8904_v20 = vld [vmem:[#allocation7 + $0x44] ss:$16 sps:$4 sm:$0xff]   ;;  %v8908_v22 = vld [vmem:[#allocation7 + $0x40] ss:$16 sps:$4 sm:$0xff]  }
  0x92   :  { %1847 = vmatpush1.bf16.msra.mxu1 %v8891_v11  ;;  %1735 = vmatprep.subr.bf16.mxu0 %v8892_v12  ;;  %v8906_v21 = vld [vmem:[#allocation7 + $0x244] ss:$16 sps:$4 sm:$0xff]   ;;  %v8909_v23 = vld [vmem:[#allocation7 + $0x240] ss:$16 sps:$4 sm:$0xff]   ;;  %v210_v12 = vld [vmem:[#allocation2 + $0x78] sm:$0xff] }
  0x93   :  { %1848 = vmatprep.subr.bf16.mxu1 %v8894_v13  ;;  %v8910_v24 = vld [vmem:[#allocation7 + $0x24] ss:$16 sps:$4 sm:$0xff]   ;;  %v8914_v26 = vld [vmem:[#allocation7 + $0x20] ss:$16 sps:$4 sm:$0xff]  }
  0x94   :  { %v8912_v25 = vld [vmem:[#allocation7 + $0x224] ss:$16 sps:$4 sm:$0xff]   ;;  %v8915_v27 = vld [vmem:[#allocation7 + $0x220] ss:$16 sps:$4 sm:$0xff]  }
  0x95   :  { %1736 = vmatpush1.bf16.msra.mxu0 %v8896_v14  ;;  %v8916_v28 = vld [vmem:[#allocation7 + $0x4] ss:$16 sps:$4 sm:$0xff]   ;;  %v8920_v30 = vld [vmem:[#allocation7] ss:$16 sps:$4 sm:$0xff]  }
  0x96   :  { %1849 = vmatpush1.bf16.msra.mxu1 %v8897_v15  ;;  %1737 = vmatprep.subr.bf16.mxu0 %v8898_v16  ;;  %v8918_v29 = vld [vmem:[#allocation7 + $0x204] ss:$16 sps:$4 sm:$0xff]   ;;  %v8921_v31 = vld [vmem:[#allocation7 + $0x200] ss:$16 sps:$4 sm:$0xff]   ;;  %v212_v16 = vld [vmem:[#allocation2 + $0x88] sm:$0xff] }
  0x97   :  { %1850 = vmatprep.subr.bf16.mxu1 %v8900_v17  ;;  %v8922_v32 = vld [vmem:[#allocation7 + $0x1e4] ss:$16 sps:$4 sm:$0xff]   ;;  %v8926_v34 = vld [vmem:[#allocation7 + $0x1e0] ss:$16 sps:$4 sm:$0xff]  }
  0x98   :  { %v8924_v33 = vld [vmem:[#allocation7 + $0x3e4] ss:$16 sps:$4 sm:$0xff]   ;;  %v8927_v35 = vld [vmem:[#allocation7 + $0x3e0] ss:$16 sps:$4 sm:$0xff]  }
  0x99   :  { %1738 = vmatpush1.bf16.msra.mxu0 %v8902_v18  ;;  %v8928_v36 = vld [vmem:[#allocation7 + $0x1c4] ss:$16 sps:$4 sm:$0xff]   ;;  %v8932_v38 = vld [vmem:[#allocation7 + $0x1c0] ss:$16 sps:$4 sm:$0xff]  }
  0x9a   :  { %1851 = vmatpush1.bf16.msra.mxu1 %v8903_v19  ;;  %1739 = vmatprep.subr.bf16.mxu0 %v8904_v20  ;;  %v8930_v37 = vld [vmem:[#allocation7 + $0x3c4] ss:$16 sps:$4 sm:$0xff]   ;;  %v8933_v39 = vld [vmem:[#allocation7 + $0x3c0] ss:$16 sps:$4 sm:$0xff]  }
  0x9b   :  { %1852 = vmatprep.subr.bf16.mxu1 %v8906_v21  ;;  %v8934_v40 = vld [vmem:[#allocation7 + $0x1a4] ss:$16 sps:$4 sm:$0xff]   ;;  %v8938_v42 = vld [vmem:[#allocation7 + $0x1a0] ss:$16 sps:$4 sm:$0xff]  }
  0x9c   :  { %v8936_v41 = vld [vmem:[#allocation7 + $0x3a4] ss:$16 sps:$4 sm:$0xff]   ;;  %v8939_v43 = vld [vmem:[#allocation7 + $0x3a0] ss:$16 sps:$4 sm:$0xff]  }
  0x9d   :  { %1740 = vmatpush1.bf16.msra.mxu0 %v8908_v22  ;;  %v8940_v44 = vld [vmem:[#allocation7 + $0x184] ss:$16 sps:$4 sm:$0xff]   ;;  %v8944_v50 = vld [vmem:[#allocation7 + $0x180] ss:$16 sps:$4 sm:$0xff]  }
  0x9e   :  { %1853 = vmatpush1.bf16.msra.mxu1 %v8909_v23  ;;  %1741 = vmatprep.subr.bf16.mxu0 %v8910_v24  ;;  %v8942_v45 = vld [vmem:[#allocation7 + $0x384] ss:$16 sps:$4 sm:$0xff]   ;;  %v8945_v51 = vld [vmem:[#allocation7 + $0x380] ss:$16 sps:$4 sm:$0xff]  }
  0x9f   :  { %1854 = vmatprep.subr.bf16.mxu1 %v8912_v25  ;;  %v203_v47 = vld [vmem:[#allocation2 + $0x40] sm:$0xff]  ;;  %v205_v49 = vld [vmem:[#allocation2 + $0x50] sm:$0xff]  ;;  %v216_v25 = vld [vmem:[#allocation2 + $0xa8] sm:$0xff] }
  0xa0   :  { %v8946_v52 = vld [vmem:[#allocation7 + $0x164] ss:$16 sps:$4 sm:$0xff]   ;;  %v10708_v53 = vpack.c.bf16 %v203_v47, %v196_v46  ;;  %v10710_v54 = vpack.c.bf16 %v205_v49, %v198_v48  ;;  %v8950_v56 = vld [vmem:[#allocation7 + $0x160] ss:$16 sps:$4 sm:$0xff]   ;;  %v232_v48 = vld [vmem:[#allocation2 + $0x128] sm:$0xff] }
  0xa1   :  { %1742 = vmatpush1.bf16.msra.mxu0 %v8914_v26  ;;  %v8948_v55 = vld [vmem:[#allocation7 + $0x364] ss:$16 sps:$4 sm:$0xff]   ;;  %v8951_v57 = vld [vmem:[#allocation7 + $0x360] ss:$16 sps:$4 sm:$0xff]  }
  0xa2   :  { %1855 = vmatpush1.bf16.msra.mxu1 %v8915_v27  ;;  %1743 = vmatprep.subr.bf16.mxu0 %v8916_v28  ;;  %v8952_v58 = vld [vmem:[#allocation7 + $0x144] ss:$16 sps:$4 sm:$0xff]   ;;  %v8956_v60 = vld [vmem:[#allocation7 + $0x140] ss:$16 sps:$4 sm:$0xff]   ;;  %v218_v28 = vld [vmem:[#allocation2 + $0xb8] sm:$0xff] }
  0xa3   :  { %1856 = vmatprep.subr.bf16.mxu1 %v8918_v29  ;;  %1761 = vmatprep.mubr.bf16.mxu0 %v10708_v53  ;;  %v8954_v59 = vld [vmem:[#allocation7 + $0x344] ss:$16 sps:$4 sm:$0xff]   ;;  %v8957_v61 = vld [vmem:[#allocation7 + $0x340] ss:$16 sps:$4 sm:$0xff]  }
  0xa4   :  { %1874 = vmatprep.mubr.bf16.mxu1 %v10710_v54  ;;  %v8958_v62 = vld [vmem:[#allocation7 + $0x124] ss:$16 sps:$4 sm:$0xff]   ;;  %v8962_v0 = vld [vmem:[#allocation7 + $0x120] ss:$16 sps:$4 sm:$0xff]  }
  0xa5   :  { %1744 = vmatpush1.bf16.msra.mxu0 %v8920_v30  ;;  %v8960_v63 = vld [vmem:[#allocation7 + $0x324] ss:$16 sps:$4 sm:$0xff]   ;;  %v8963_v1 = vld [vmem:[#allocation7 + $0x320] ss:$16 sps:$4 sm:$0xff]  }
  0xa6   :  { %1857 = vmatpush1.bf16.msra.mxu1 %v8921_v31  ;;  %1745 = vmatprep.subr.bf16.mxu0 %v8922_v32  ;;  %v8964_v2 = vld [vmem:[#allocation7 + $0x104] ss:$16 sps:$4 sm:$0xff]   ;;  %v8968_v4 = vld [vmem:[#allocation7 + $0x100] ss:$16 sps:$4 sm:$0xff]   ;;  %v224_v31 = vld [vmem:[#allocation2 + $0xe8] sm:$0xff] }
  0xa7   :  { %1858 = vmatprep.subr.bf16.mxu1 %v8924_v33  ;;  %v8966_v3 = vld [vmem:[#allocation7 + $0x304] ss:$16 sps:$4 sm:$0xff]   ;;  %v8969_v5 = vld [vmem:[#allocation7 + $0x300] ss:$16 sps:$4 sm:$0xff]  }
  0xa8   :  { %v195_v6 = vld [vmem:[#allocation2] sm:$0xff]  ;;  %v197_v8 = vld [vmem:[#allocation2 + $0x10] sm:$0xff] }
  0xa9   :  { %1746 = vmatpush2.bf16.msra.mxu0 %v8926_v34  ;;  %v8972_v10 = vld [vmem:[#allocation7 + $0x4e4] ss:$16 sps:$4 sm:$0xff]   ;;  %v10714_v14 = vpack.c.bf16 %v202_v7, %v195_v6  ;;  %v10716_v15 = vpack.c.bf16 %v204_v9, %v197_v8  ;;  %v8970_v18 = vld [vmem:[#allocation7 + $0x4e0] ss:$16 sps:$4 sm:$0xff]   ;;  %v226_v34 = vld [vmem:[#allocation2 + $0xf8] sm:$0xff] }
  0xaa   :  { %1859 = vmatpush2.bf16.msra.mxu1 %v8927_v35  ;;  %1747 = vmatprep.subr.bf16.mxu0 %v8928_v36  ;;  %v8975_v11 = vld [vmem:[#allocation7 + $0x6e4] ss:$16 sps:$4 sm:$0xff]   ;;  %v8973_v19 = vld [vmem:[#allocation7 + $0x6e0] ss:$16 sps:$4 sm:$0xff]   ;;  %v252_v7 = vld [vmem:[#allocation2 + $0x1c8] sm:$0xff] }
  0xab   :  { %1860 = vmatprep.subr.bf16.mxu1 %v8930_v37  ;;  %v217_v13 = vld [vmem:[#allocation2 + $0xb0] sm:$0xff]  ;;  %v219_v17 = vld [vmem:[#allocation2 + $0xc0] sm:$0xff] }
  0xac   :  { %v8978_v20 = vld [vmem:[#allocation7 + $0x4c4] ss:$16 sps:$4 sm:$0xff]   ;;  %v10718_v21 = vpack.c.bf16 %v217_v13, %v210_v12  ;;  %v8976_v22 = vld [vmem:[#allocation7 + $0x4c0] ss:$16 sps:$4 sm:$0xff]   ;;  %v10720_v23 = vpack.c.bf16 %v219_v17, %v212_v16 }
  0xad   :  { %1748 = vmatpush2.bf16.msra.mxu0 %v8932_v38  ;;  %v209_v24 = vld [vmem:[#allocation2 + $0x70] sm:$0xff]  ;;  %v211_v26 = vld [vmem:[#allocation2 + $0x80] sm:$0xff] }
  0xae   :  { %1861 = vmatpush2.bf16.msra.mxu1 %v8933_v39  ;;  %1749 = vmatprep.subr.bf16.mxu0 %v8934_v40  ;;  %v8984_v27 = vld [vmem:[#allocation7 + $0x6c4] ss:$16 sps:$4 sm:$0xff]   ;;  %v8982_v30 = vld [vmem:[#allocation7 + $0x6c0] ss:$16 sps:$4 sm:$0xff]   ;;  %v10726_v36 = vpack.c.bf16 %v216_v25, %v209_v24  ;;  %v10728_v37 = vpack.c.bf16 %v218_v28, %v211_v26  ;;  %v258_v24 = vld [vmem:[#allocation2 + $0x1f8] sm:$0xff] }
  0xaf   :  { %1862 = vmatprep.subr.bf16.mxu1 %v8936_v41  ;;  %v8981_v29 = vld [vmem:[#allocation7 + $0x4a4] ss:$16 sps:$4 sm:$0xff]   ;;  %v8979_v38 = vld [vmem:[#allocation7 + $0x4a0] ss:$16 sps:$4 sm:$0xff]   ;;  %v260_v26 = vld [vmem:[#allocation2 + $0x208] sm:$0xff] }
  0xb0   :  { %v231_v32 = vld [vmem:[#allocation2 + $0x120] sm:$0xff]  ;;  %v233_v35 = vld [vmem:[#allocation2 + $0x130] sm:$0xff] }
  0xb1   :  { %1750 = vmatpush2.bf16.msra.mxu0 %v8938_v42  ;;  %v8993_v33 = vld [vmem:[#allocation7 + $0x6a4] ss:$16 sps:$4 sm:$0xff]   ;;  %v10730_v39 = vpack.c.bf16 %v231_v32, %v224_v31  ;;  %v10732_v41 = vpack.c.bf16 %v233_v35, %v226_v34  ;;  %v8985_v42 = vld [vmem:[#allocation7 + $0x480] ss:$16 sps:$4 sm:$0xff]   ;;  %v268_v32 = vld [vmem:[#allocation2 + $0x248] sm:$0xff] }
  0xb2   :  { %1863 = vmatpush2.bf16.msra.mxu1 %v8939_v43  ;;  %1751 = vmatprep.subr.bf16.mxu0 %v8940_v44  ;;  %v8987_v40 = vld [vmem:[#allocation7 + $0x484] ss:$16 sps:$4 sm:$0xff]   ;;  %v8991_v44 = vld [vmem:[#allocation7 + $0x6a0] ss:$16 sps:$4 sm:$0xff]  }
  0xb3   :  { %1864 = vmatprep.subr.bf16.mxu1 %v8942_v45  ;;  %v223_v43 = vld [vmem:[#allocation2 + $0xe0] sm:$0xff]  ;;  %v230_v45 = vld [vmem:[#allocation2 + $0x118] sm:$0xff]  ;;  %v225_v47 = vld [vmem:[#allocation2 + $0xf0] sm:$0xff] }
  0xb4   :  { %v9002_v46 = vld [vmem:[#allocation7 + $0x684] ss:$16 sps:$4 sm:$0xff]   ;;  %v8997_v16 = vld [vmem:[#allocation7 + $0x420] ss:$16 sps:$4 sm:$0xff]  }
  0xb5   :  { %1752 = vmatpush2.bf16.msra.mxu0 %v8944_v50  ;;  %v8990_v49 = vld [vmem:[#allocation7 + $0x464] ss:$16 sps:$4 sm:$0xff]   ;;  %v238_v50 = vld [vmem:[#allocation2 + $0x158] sm:$0xff]  ;;  %v9027_v34 = vld [vmem:[#allocation7 + $0x620] ss:$16 sps:$4 sm:$0xff]  }
  0xb6   :  { %1865 = vmatpush2.bf16.msra.mxu1 %v8945_v51  ;;  %1753 = vmatprep.subr.bf16.mxu0 %v8946_v52  ;;  %v245_v51 = vld [vmem:[#allocation2 + $0x190] sm:$0xff]  ;;  %v240_v52 = vld [vmem:[#allocation2 + $0x168] sm:$0xff]  ;;  %v259_v9 = vld [vmem:[#allocation2 + $0x200] sm:$0xff] }
  0xb7   :  { %1866 = vmatprep.subr.bf16.mxu1 %v8948_v55  ;;  %v247_v55 = vld [vmem:[#allocation2 + $0x1a0] sm:$0xff]  ;;  %v10754_v17 = vpack.c.bf16 %v259_v9, %v252_v7  ;;  %v253_v25 = vld [vmem:[#allocation2 + $0x1d0] sm:$0xff] }
  0xb8   :  { %v8999_v6 = vld [vmem:[#allocation7 + $0x424] ss:$16 sps:$4 sm:$0xff]  }
  0xb9   :  { %1754 = vmatpush2.bf16.msra.mxu0 %v8950_v56  ;;  %v9000_v56 = vld [vmem:[#allocation7 + $0x680] ss:$16 sps:$4 sm:$0xff]   ;;  %v9020_v8 = vld [vmem:[#allocation7 + $0x644] ss:$16 sps:$4 sm:$0xff]  }
  0xba   :  { %1867 = vmatpush2.bf16.msra.mxu1 %v8951_v57  ;;  %1755 = vmatprep.subr.bf16.mxu0 %v8952_v58  ;;  %v10738_v57 = vpack.c.bf16 %v230_v45, %v223_v43  ;;  %v10740_v58 = vpack.c.bf16 %v232_v48, %v225_v47  ;;  %v9008_v28 = vld [vmem:[#allocation7 + $0x5e4] ss:$16 sps:$4 sm:$0xff]   ;;  %v9012_v45 = vld [vmem:[#allocation7 + $0x5c0] ss:$16 sps:$4 sm:$0xff]   ;;  %v272_v47 = vld [vmem:[#allocation2 + $0x268] sm:$0xff] }
  0xbb   :  { %1868 = vmatprep.subr.bf16.mxu1 %v8954_v59  ;;  %v8988_v59 = vld [vmem:[#allocation7 + $0x460] ss:$16 sps:$4 sm:$0xff]   ;;  %v9014_v43 = vld [vmem:[#allocation7 + $0x5c4] ss:$16 sps:$4 sm:$0xff]  }
  0xbc   :  { %v273_v31 = vld [vmem:[#allocation2 + $0x270] sm:$0xff]  ;;  %v267_v48 = vld [vmem:[#allocation2 + $0x240] sm:$0xff] }
  0xbd   :  { %1756 = vmatpush2.bf16.msra.mxu0 %v8956_v60  ;;  %v10742_v60 = vpack.c.bf16 %v245_v51, %v238_v50  ;;  %v9038_v50 = vld [vmem:[#allocation7 + $0x604] ss:$16 sps:$4 sm:$0xff]  }
  0xbe   :  { %1869 = vmatpush2.bf16.msra.mxu1 %v8957_v61  ;;  %1757 = vmatprep.subr.bf16.mxu0 %v8958_v62  ;;  %v8996_v61 = vld [vmem:[#allocation7 + $0x444] ss:$16 sps:$4 sm:$0xff]   ;;  %v10744_v62 = vpack.c.bf16 %v247_v55, %v240_v52  ;;  %v9036_v52 = vld [vmem:[#allocation7 + $0x600] ss:$16 sps:$4 sm:$0xff]   ;;  %v280_v55 = vld [vmem:[#allocation2 + $0x2a8] sm:$0xff] }
  0xbf   :  { %1870 = vmatprep.subr.bf16.mxu1 %v8960_v63  ;;  %v8994_v63 = vld [vmem:[#allocation7 + $0x440] ss:$16 sps:$4 sm:$0xff]   ;;  %v9017_v51 = vld [vmem:[#allocation7 + $0x5a4] ss:$16 sps:$4 sm:$0xff]  }
  0xc0   :  { %v279_v7 = vld [vmem:[#allocation2 + $0x2a0] sm:$0xff]  ;;  %v281_v9 = vld [vmem:[#allocation2 + $0x2b0] sm:$0xff] }
  0xc1   :  { %1758 = vmatpush2.bf16.msra.mxu0 %v8962_v0  ;;  %v237_v0 = vld [vmem:[#allocation2 + $0x150] sm:$0xff] }
  0xc2   :  { %1871 = vmatpush2.bf16.msra.mxu1 %v8963_v1  ;;  %1759 = vmatprep.subr.bf16.mxu0 %v8964_v2  ;;  %v244_v1 = vld [vmem:[#allocation2 + $0x188] sm:$0xff]  ;;  %v9011_v2 = vld [vmem:[#allocation7 + $0x664] ss:$16 sps:$4 sm:$0xff]  }
  0xc3   :  { %1872 = vmatprep.subr.bf16.mxu1 %v8966_v3  ;;  %v239_v3 = vld [vmem:[#allocation2 + $0x160] sm:$0xff]  ;;  %v10750_v12 = vpack.c.bf16 %v244_v1, %v237_v0 }
  0xc5   :  { %1760 = vmatpush2.bf16.msra.mxu0 %v8968_v4  ;;  %v246_v4 = vld [vmem:[#allocation2 + $0x198] sm:$0xff] }
  0xc6   :  { %1873 = vmatpush2.bf16.msra.mxu1 %v8969_v5  ;;  %1955 = vmatprep.subr.bf16.mxu0 %v8972_v10  ;;  %v9009_v5 = vld [vmem:[#allocation7 + $0x660] ss:$16 sps:$4 sm:$0xff]   ;;  %v254_v10 = vld [vmem:[#allocation2 + $0x1d8] sm:$0xff]  ;;  %v10752_v13 = vpack.c.bf16 %v246_v4, %v239_v3  ;;  %v9023_v4 = vld [vmem:[#allocation7 + $0x584] ss:$16 sps:$4 sm:$0xff]  }
  0xc7   :  { %2068 = vmatprep.subr.bf16.mxu1 %v8975_v11  ;;  %v261_v11 = vld [vmem:[#allocation2 + $0x210] sm:$0xff] }
  0xc8   :  { %1762 = vmatmul.mubr.bf16.vlgmr.msra.gmra.mxu0 %v10714_v14 }
  0xc9   :  { %1875 = vmatmul.mubr.bf16.vlgmr.msra.gmra.mxu1 %v10716_v15  ;;  %1956 = vmatpush1.bf16.msra.mxu0 %v8970_v18  ;;  %v9005_v18 = vld [vmem:[#allocation7 + $0x404] ss:$16 sps:$4 sm:$0xff]  }
  0xca   :  { %2069 = vmatpush1.bf16.msra.mxu1 %v8973_v19  ;;  %1957 = vmatprep.subr.bf16.mxu0 %v8978_v20  ;;  %v10756_v19 = vpack.c.bf16 %v261_v11, %v254_v10  ;;  %v9003_v20 = vld [vmem:[#allocation7 + $0x400] ss:$16 sps:$4 sm:$0xff]   ;;  %v288_v10 = vld [vmem:[#allocation2 + $0x2e8] sm:$0xff]  ;;  %v9026_v11 = vld [vmem:[#allocation7 + $0x564] ss:$16 sps:$4 sm:$0xff]  }
  0xcb   :  { %1771 = vmatprep.mubr.bf16.mxu0 %v10718_v21  ;;  %1884 = vmatprep.mubr.bf16.mxu1 %v10720_v23 }
  0xcc   :  { %2070 = vmatprep.subr.bf16.mxu1 %v8984_v27  ;;  %v9018_v27 = vld [vmem:[#allocation7 + $0x640] ss:$16 sps:$4 sm:$0xff]  }
  0xcd   :  { %1958 = vmatpush1.bf16.msra.mxu0 %v8976_v22  ;;  %v251_v22 = vld [vmem:[#allocation2 + $0x1c0] sm:$0xff] }
  0xce   :  { %2071 = vmatpush1.bf16.msra.mxu1 %v8982_v30  ;;  %1959 = vmatprep.subr.bf16.mxu0 %v8981_v29  ;;  %v266_v29 = vld [vmem:[#allocation2 + $0x238] sm:$0xff]  ;;  %v9029_v30 = vld [vmem:[#allocation7 + $0x624] ss:$16 sps:$4 sm:$0xff]   ;;  %v10762_v35 = vpack.c.bf16 %v258_v24, %v251_v22 }
  0xcf   :  { %2072 = vmatprep.subr.bf16.mxu1 %v8993_v33  ;;  %v275_v33 = vld [vmem:[#allocation2 + $0x280] sm:$0xff] }
  0xd0   :  { %1772 = vmatmul.mubr.bf16.gmra.mxu0 %v10726_v36  ;;  %v303_v22 = vld [vmem:[#allocation2 + $0x360] sm:$0xff] }
  0xd1   :  { %1885 = vmatmul.mubr.bf16.gmra.mxu1 %v10728_v37  ;;  %1960 = vmatpush1.bf16.msra.mxu0 %v8979_v38  ;;  %v10764_v38 = vpack.c.bf16 %v260_v26, %v253_v25  ;;  %v10788_v25 = vpack.c.bf16 %v288_v10, %v281_v9  ;;  %v9024_v26 = vld [vmem:[#allocation7 + $0x560] ss:$16 sps:$4 sm:$0xff]   ;;  %v9045_v9 = vld [vmem:[#allocation7 + $0x2e8] ss:$16 sps:$4 sm:$0xff]   ;;  %v9050_v10 = vld [vmem:[#allocation7 + $0xcc] ss:$16 sps:$4 sm:$0xff]  }
  0xd2   :  { %1781 = vmatprep.mubr.bf16.mxu0 %v10730_v39  ;;  %1961 = vmatprep.subr.bf16.mxu0 %v8987_v40  ;;  %v9006_v40 = vld [vmem:[#allocation7 + $0x5e0] ss:$16 sps:$4 sm:$0xff]  }
  0xd3   :  { %1894 = vmatprep.mubr.bf16.mxu1 %v10732_v41  ;;  %2073 = vmatpush1.bf16.msra.mxu1 %v8991_v44  ;;  %v10768_v44 = vpack.c.bf16 %v275_v33, %v268_v32  ;;  %v300_v32 = vld [vmem:[#allocation2 + $0x348] sm:$0xff]  ;;  %v295_v33 = vld [vmem:[#allocation2 + $0x320] sm:$0xff] }
  0xd4   :  { %2074 = vmatprep.subr.bf16.mxu1 %v9002_v46  ;;  %v265_v46 = vld [vmem:[#allocation2 + $0x230] sm:$0xff] }
  0xd5   :  { %1962 = vmatpush1.bf16.msra.mxu0 %v8985_v42  ;;  %v10766_v42 = vpack.c.bf16 %v273_v31, %v266_v29  ;;  %v10774_v0 = vpack.c.bf16 %v272_v47, %v265_v46  ;;  %v293_v31 = vld [vmem:[#allocation2 + $0x310] sm:$0xff] }
  0xd6   :  { %1963 = vmatprep.subr.bf16.mxu0 %v8990_v49  ;;  %v274_v49 = vld [vmem:[#allocation2 + $0x278] sm:$0xff]  ;;  %v10798_v46 = vpack.c.bf16 %v300_v32, %v293_v31 }
  0xd7   :  { %2075 = vmatpush1.bf16.msra.mxu1 %v9000_v56  ;;  %v9047_v56 = vld [vmem:[#allocation7 + $0x2ec] ss:$16 sps:$4 sm:$0xff]   ;;  %v10776_v1 = vpack.c.bf16 %v274_v49, %v267_v48  ;;  %v9033_v48 = vld [vmem:[#allocation7 + $0x520] ss:$16 sps:$4 sm:$0xff]  }
  0xd8   :  { %1782 = vmatmul.mubr.bf16.gmra.mxu0 %v10738_v57  ;;  %2076 = vmatprep.subr.bf16.mxu1 %v9011_v2  ;;  %v9015_v2 = vld [vmem:[#allocation7 + $0x5a0] ss:$16 sps:$4 sm:$0xff]   ;;  %v9056_v31 = vld [vmem:[#allocation7 + $0xac] ss:$16 sps:$4 sm:$0xff]  }
  0xd9   :  { %1895 = vmatmul.mubr.bf16.gmra.mxu1 %v10740_v58  ;;  %1964 = vmatpush1.bf16.msra.mxu0 %v8988_v59  ;;  %v287_v59 = vld [vmem:[#allocation2 + $0x2e0] sm:$0xff]  ;;  %v9059_v32 = vld [vmem:[#allocation7 + $0x2ac] ss:$16 sps:$4 sm:$0xff]  }
  0xda   :  { %1791 = vmatprep.mubr.bf16.mxu0 %v10742_v60  ;;  %1965 = vmatprep.subr.bf16.mxu0 %v8996_v61  ;;  %v282_v61 = vld [vmem:[#allocation2 + $0x2b8] sm:$0xff]  ;;  %v10778_v3 = vpack.c.bf16 %v287_v59, %v280_v55  ;;  %v208_v59 = vld [vmem:[#allocation2 + $0x68] sm:$0xff] }
  0xdb   :  { %1904 = vmatprep.mubr.bf16.mxu1 %v10744_v62  ;;  %2077 = vmatpush1.bf16.msra.mxu1 %v9009_v5  ;;  %v206_v55 = vld [vmem:[#allocation2 + $0x58] sm:$0xff] }
  0xdc   :  { %2078 = vmatprep.subr.bf16.mxu1 %v9020_v8  ;;  %v286_v8 = vld [vmem:[#allocation2 + $0x2d8] sm:$0xff] }
  0xdd   :  { %1966 = vmatpush1.bf16.msra.mxu0 %v8994_v63  ;;  %v289_v63 = vld [vmem:[#allocation2 + $0x2f0] sm:$0xff]  ;;  %v10786_v24 = vpack.c.bf16 %v286_v8, %v279_v7  ;;  %v9042_v8 = vld [vmem:[#allocation7 + $0xe8] ss:$16 sps:$4 sm:$0xff]  }
  0xde   :  { %1967 = vmatprep.subr.bf16.mxu0 %v8999_v6  ;;  %v10780_v5 = vpack.c.bf16 %v289_v63, %v282_v61  ;;  %v9021_v6 = vld [vmem:[#allocation7 + $0x580] ss:$16 sps:$4 sm:$0xff]   ;;  %v11999_v61 = vmov 0   ;;  %v9044_v63 = vld [vmem:[#allocation7 + $0xec] ss:$16 sps:$4 sm:$0xff]  }
  0xdf   :  { %2079 = vmatpush1.bf16.msra.mxu1 %v9018_v27  ;;  %v221_v7 = vld [vmem:[#allocation2 + $0xd0] sm:$0xff] }
  0xe0   :  { %1792 = vmatmul.mubr.bf16.gmra.mxu0 %v10750_v12  ;;  %2080 = vmatprep.subr.bf16.mxu1 %v9029_v30  ;;  %v9030_v30 = vld [vmem:[#allocation7 + $0x540] ss:$16 sps:$4 sm:$0xff]  }
  0xe1   :  { %1905 = vmatmul.mubr.bf16.gmra.mxu1 %v10752_v13  ;;  %1968 = vmatpush1.bf16.msra.mxu0 %v8997_v16  ;;  %v294_v16 = vld [vmem:[#allocation2 + $0x318] sm:$0xff] }
  0xe2   :  { %1801 = vmatprep.mubr.bf16.mxu0 %v10754_v17  ;;  %1969 = vmatprep.subr.bf16.mxu0 %v9005_v18  ;;  %v301_v18 = vld [vmem:[#allocation2 + $0x350] sm:$0xff] }
  0xe3   :  { %1914 = vmatprep.mubr.bf16.mxu1 %v10756_v19  ;;  %2081 = vmatpush1.bf16.msra.mxu1 %v9027_v34  ;;  %v10790_v27 = vpack.c.bf16 %v301_v18, %v294_v16  ;;  %v302_v34 = vld [vmem:[#allocation2 + $0x358] sm:$0xff] }
  0xe4   :  { %2082 = vmatprep.subr.bf16.mxu1 %v9038_v50  ;;  %v10800_v47 = vpack.c.bf16 %v302_v34, %v295_v33  ;;  %v9041_v50 = vld [vmem:[#allocation7 + $0x504] ss:$16 sps:$4 sm:$0xff]   ;;  %v9048_v16 = vld [vmem:[#allocation7 + $0xc8] ss:$16 sps:$4 sm:$0xff]  }
  0xe5   :  { %1970 = vmatpush1.bf16.msra.mxu0 %v9003_v20  ;;  %v296_v20 = vld [vmem:[#allocation2 + $0x328] sm:$0xff] }
  0xe6   :  { %1971 = vmatprep.subr.bf16.mxu0 %v9008_v28  ;;  %v9032_v28 = vld [vmem:[#allocation7 + $0x544] ss:$16 sps:$4 sm:$0xff]   ;;  %v10792_v29 = vpack.c.bf16 %v303_v22, %v296_v20  ;;  %v9051_v18 = vld [vmem:[#allocation7 + $0x2c8] ss:$16 sps:$4 sm:$0xff]  }
  0xe7   :  { %2083 = vmatpush1.bf16.msra.mxu1 %v9036_v52  ;;  %v199_v52 = vld [vmem:[#allocation2 + $0x20] sm:$0xff]  ;;  %v213_v22 = vld [vmem:[#allocation2 + $0x90] sm:$0xff]  ;;  %v9054_v33 = vld [vmem:[#allocation7 + $0xa8] ss:$16 sps:$4 sm:$0xff]  }
  0xe8   :  { %1802 = vmatmul.mubr.bf16.gmra.mxu0 %v10762_v35  ;;  %2294 = vmatprep.subr.bf16.mxu1 %v9047_v56  ;;  %v201_v56 = vld [vmem:[#allocation2 + $0x30] sm:$0xff]  ;;  %v9057_v34 = vld [vmem:[#allocation7 + $0x2a8] ss:$16 sps:$4 sm:$0xff]  }
  0xe9   :  { %1915 = vmatmul.mubr.bf16.gmra.mxu1 %v10764_v38  ;;  %1972 = vmatpush2.bf16.msra.mxu0 %v9006_v40  ;;  %v9035_v40 = vld [vmem:[#allocation7 + $0x524] ss:$16 sps:$4 sm:$0xff]  }
  0xea   :  { %1811 = vmatprep.mubr.bf16.mxu0 %v10766_v42  ;;  %1973 = vmatprep.subr.bf16.mxu0 %v9014_v43  ;;  %v200_v43 = vld [vmem:[#allocation2 + $0x28] sm:$0xff] }
  0xeb   :  { %1924 = vmatprep.mubr.bf16.mxu1 %v10768_v44 }
  0xed   :  { %1974 = vmatpush2.bf16.msra.mxu0 %v9012_v45  ;;  %v207_v45 = vld [vmem:[#allocation2 + $0x60] sm:$0xff] }
  0xee   :  { %1975 = vmatprep.subr.bf16.mxu0 %v9017_v51  ;;  %v10802_v49 = vpack.c.bf16 %v207_v45, %v200_v43  ;;  %v9039_v51 = vld [vmem:[#allocation7 + $0x500] ss:$16 sps:$4 sm:$0xff]   ;;  %v228_v45 = vld [vmem:[#allocation2 + $0x108] sm:$0xff] }
  0xf0   :  { %1812 = vmatmul.mubr.bf16.gmra.mxu0 %v10774_v0 }
  0xf1   :  { %1925 = vmatmul.mubr.bf16.gmra.mxu1 %v10776_v1  ;;  %1976 = vmatpush2.bf16.msra.mxu0 %v9015_v2  ;;  %v214_v2 = vld [vmem:[#allocation2 + $0x98] sm:$0xff] }
  0xf2   :  { %1821 = vmatprep.mubr.bf16.mxu0 %v10778_v3  ;;  %1977 = vmatprep.subr.bf16.mxu0 %v9023_v4  ;;  %v10808_v4 = vpack.c.bf16 %v206_v55, %v199_v52  ;;  %v10812_v20 = vpack.c.bf16 %v221_v7, %v214_v2  ;;  %v9060_v52 = vld [vmem:[#allocation7 + $0x88] ss:$16 sps:$4 sm:$0xff]   ;;  %v229_v2 = vld [vmem:[#allocation2 + $0x110] sm:$0xff] }
  0xf3   :  { %1934 = vmatprep.mubr.bf16.mxu1 %v10780_v5  ;;  %v236_v7 = vld [vmem:[#allocation2 + $0x148] sm:$0xff] }
  0xf5   :  { %1978 = vmatpush2.bf16.msra.mxu0 %v9021_v6  ;;  %v10810_v6 = vpack.c.bf16 %v208_v59, %v201_v56  ;;  %v9063_v56 = vld [vmem:[#allocation7 + $0x288] ss:$16 sps:$4 sm:$0xff]   ;;  %v227_v59 = vld [vmem:[#allocation2 + $0x100] sm:$0xff] }
  0xf6   :  { %1979 = vmatprep.subr.bf16.mxu0 %v9026_v11  ;;  %v9053_v11 = vld [vmem:[#allocation7 + $0x2cc] ss:$16 sps:$4 sm:$0xff]  }
  0xf8   :  { %1822 = vmatmul.mubr.bf16.gmra.mxu0 %v10786_v24 }
  0xf9   :  { %1935 = vmatmul.mubr.bf16.gmra.mxu1 %v10788_v25  ;;  %1980 = vmatpush2.bf16.msra.mxu0 %v9024_v26  ;;  %v220_v26 = vld [vmem:[#allocation2 + $0xc8] sm:$0xff] }
  0xfa   :  { %1831 = vmatprep.mubr.bf16.mxu0 %v10790_v27  ;;  %1981 = vmatprep.subr.bf16.mxu0 %v9032_v28  ;;  %v215_v28 = vld [vmem:[#allocation2 + $0xa0] sm:$0xff] }
  0xfb   :  { %1944 = vmatprep.mubr.bf16.mxu1 %v10792_v29 }
  0xfd   :  { %1982 = vmatpush2.bf16.msra.mxu0 %v9030_v30  ;;  %v222_v30 = vld [vmem:[#allocation2 + $0xd8] sm:$0xff] }
  0xfe   :  { %1983 = vmatprep.subr.bf16.mxu0 %v9035_v40  ;;  %v10818_v40 = vpack.c.bf16 %v220_v26, %v213_v22  ;;  %v10820_v43 = vpack.c.bf16 %v222_v30, %v215_v28  ;;  %v9066_v22 = vld [vmem:[#allocation7 + $0x68] ss:$16 sps:$4 sm:$0xff]   ;;  %v9074_v28 = vld [vmem:[#allocation7 + $0x4c] ss:$16 sps:$4 sm:$0xff]  }
  0xff   :  { %v9069_v26 = vld [vmem:[#allocation7 + $0x268] ss:$16 sps:$4 sm:$0xff]   ;;  %v9077_v30 = vld [vmem:[#allocation7 + $0x24c] ss:$16 sps:$4 sm:$0xff]  }
 0x100   :  { %1832 = vmatmul.mubr.bf16.gmra.mxu0 %v10798_v46 }
 0x101   :  { %1945 = vmatmul.mubr.bf16.gmra.mxu1 %v10800_v47  ;;  %1984 = vmatpush2.bf16.msra.mxu0 %v9033_v48  ;;  %v235_v48 = vld [vmem:[#allocation2 + $0x140] sm:$0xff] }
 0x102   :  { %1987 = vmatprep.mubr.bf16.mxu0 %v10802_v49  ;;  %1985 = vmatprep.subr.bf16.mxu0 %v9041_v50  ;;  %v9062_v50 = vld [vmem:[#allocation7 + $0x8c] ss:$16 sps:$4 sm:$0xff]   ;;  %v10822_v55 = vpack.c.bf16 %v235_v48, %v228_v45  ;;  %v243_v48 = vld [vmem:[#allocation2 + $0x180] sm:$0xff] }
 0x103   :  { %2100 = vmatprep.mubr.bf16.mxu1 %v11999_v61  ;;  %v248_v45 = vld [vmem:[#allocation2 + $0x1a8] sm:$0xff] }
 0x105   :  { %1986 = vmatpush2.bf16.msra.mxu0 %v9039_v51  ;;  %v9065_v51 = vld [vmem:[#allocation7 + $0x28c] ss:$16 sps:$4 sm:$0xff]  }
 0x106   :  { %2181 = vmatprep.subr.bf16.mxu0 %v9044_v63  ;;  %v234_v63 = vld [vmem:[#allocation2 + $0x138] sm:$0xff] }
 0x108   :  { %1988 = vmatmul.mubr.bf16.vlgmr.msra.gmra.mxu0 %v10808_v4 }
 0x109   :  { %2101 = vmatmul.mubr.bf16.vlgmr.msra.gmra.mxu1 %v10810_v6  ;;  %2182 = vmatpush1.bf16.msra.mxu0 %v9042_v8  ;;  %v9068_v8 = vld [vmem:[#allocation7 + $0x6c] ss:$16 sps:$4 sm:$0xff]  }
 0x10a   :  { %2295 = vmatpush1.bf16.msra.mxu1 %v9045_v9  ;;  %2183 = vmatprep.subr.bf16.mxu0 %v9050_v10  ;;  %v9071_v9 = vld [vmem:[#allocation7 + $0x26c] ss:$16 sps:$4 sm:$0xff]  }
 0x10b   :  { %2296 = vmatprep.subr.bf16.mxu1 %v9053_v11  ;;  %1997 = vmatprep.mubr.bf16.mxu0 %v10812_v20  ;;  %v242_v10 = vld [vmem:[#allocation2 + $0x178] sm:$0xff]  ;;  %v10828_v11 = vpack.c.bf16 %v234_v63, %v227_v59 }
 0x10c   :  { %2110 = vmatprep.mubr.bf16.mxu1 %v11999_v61  ;;  %v9081_v59 = vld [vmem:[#allocation7 + $0x228] ss:$16 sps:$4 sm:$0xff]  }
 0x10d   :  { %2184 = vmatpush1.bf16.msra.mxu0 %v9048_v16  ;;  %v10830_v16 = vpack.c.bf16 %v236_v7, %v229_v2  ;;  %v256_v7 = vld [vmem:[#allocation2 + $0x1e8] sm:$0xff] }
 0x10e   :  { %2297 = vmatpush1.bf16.msra.mxu1 %v9051_v18  ;;  %2185 = vmatprep.subr.bf16.mxu0 %v9056_v31  ;;  %v249_v18 = vld [vmem:[#allocation2 + $0x1b0] sm:$0xff]  ;;  %v9072_v31 = vld [vmem:[#allocation7 + $0x48] ss:$16 sps:$4 sm:$0xff]  }
 0x10f   :  { %2298 = vmatprep.subr.bf16.mxu1 %v9059_v32  ;;  %v10832_v32 = vpack.c.bf16 %v249_v18, %v242_v10  ;;  %v9089_v10 = vld [vmem:[#allocation7 + $0x20c] ss:$16 sps:$4 sm:$0xff]   ;;  %v9084_v18 = vld [vmem:[#allocation7 + $0x8] ss:$16 sps:$4 sm:$0xff]  }
 0x110   :  { %1998 = vmatmul.mubr.bf16.gmra.mxu0 %v10818_v40 }
 0x111   :  { %2111 = vmatmul.mubr.bf16.gmra.mxu1 %v10820_v43  ;;  %2186 = vmatpush1.bf16.msra.mxu0 %v9054_v33  ;;  %v9075_v33 = vld [vmem:[#allocation7 + $0x248] ss:$16 sps:$4 sm:$0xff]  }
 0x112   :  { %2299 = vmatpush1.bf16.msra.mxu1 %v9057_v34  ;;  %2187 = vmatprep.subr.bf16.mxu0 %v9062_v50  ;;  %v241_v34 = vld [vmem:[#allocation2 + $0x170] sm:$0xff]  ;;  %v250_v50 = vld [vmem:[#allocation2 + $0x1b8] sm:$0xff] }
 0x113   :  { %2300 = vmatprep.subr.bf16.mxu1 %v9065_v51  ;;  %2007 = vmatprep.mubr.bf16.mxu0 %v10822_v55  ;;  %v9080_v51 = vld [vmem:[#allocation7 + $0x2c] ss:$16 sps:$4 sm:$0xff]   ;;  %v10838_v63 = vpack.c.bf16 %v248_v45, %v241_v34  ;;  %v10840_v2 = vpack.c.bf16 %v250_v50, %v243_v48  ;;  %v257_v34 = vld [vmem:[#allocation2 + $0x1f0] sm:$0xff]  ;;  %v9090_v48 = vld [vmem:[#allocation7 + $0x1e8] ss:$16 sps:$4 sm:$0xff]  }
 0x114   :  { %2120 = vmatprep.mubr.bf16.mxu1 %v11999_v61  ;;  %v264_v45 = vld [vmem:[#allocation2 + $0x228] sm:$0xff] }
 0x115   :  { %2188 = vmatpush1.bf16.msra.mxu0 %v9060_v52  ;;  %v9083_v52 = vld [vmem:[#allocation7 + $0x22c] ss:$16 sps:$4 sm:$0xff]   ;;  %12020 = vst [vmem:[#allocation31_spill] sm:$0xff] %v10838_v63  ;;  %12021 = vst [vmem:[#allocation32_spill] sm:$0xff] %v10840_v2  ;;  %v9093_v50 = vld [vmem:[#allocation7 + $0x3e8] ss:$16 sps:$4 sm:$0xff]  }
 0x116   :  { %2301 = vmatpush1.bf16.msra.mxu1 %v9063_v56  ;;  %2189 = vmatprep.subr.bf16.mxu0 %v9068_v8  ;;  %v9078_v56 = vld [vmem:[#allocation7 + $0x28] ss:$16 sps:$4 sm:$0xff]   ;;  %v263_v8 = vld [vmem:[#allocation2 + $0x220] sm:$0xff] }
 0x117   :  { %2302 = vmatprep.subr.bf16.mxu1 %v9071_v9  ;;  %v9086_v9 = vld [vmem:[#allocation7 + $0xc] ss:$16 sps:$4 sm:$0xff]  }
 0x118   :  { %2008 = vmatmul.mubr.bf16.gmra.mxu0 %v10828_v11 }
 0x119   :  { %2121 = vmatmul.mubr.bf16.gmra.mxu1 %v10830_v16  ;;  %2190 = vmatpush1.bf16.msra.mxu0 %v9066_v22  ;;  %v9087_v22 = vld [vmem:[#allocation7 + $0x208] ss:$16 sps:$4 sm:$0xff]  }
 0x11a   :  { %2303 = vmatpush1.bf16.msra.mxu1 %v9069_v26  ;;  %2191 = vmatprep.subr.bf16.mxu0 %v9074_v28  ;;  %v10842_v26 = vpack.c.bf16 %v263_v8, %v256_v7  ;;  %v255_v28 = vld [vmem:[#allocation2 + $0x1e0] sm:$0xff]  ;;  %v270_v7 = vld [vmem:[#allocation2 + $0x258] sm:$0xff]  ;;  %v277_v8 = vld [vmem:[#allocation2 + $0x290] sm:$0xff] }
 0x11b   :  { %2304 = vmatprep.subr.bf16.mxu1 %v9077_v30  ;;  %2017 = vmatprep.mubr.bf16.mxu0 %v10832_v32  ;;  %v262_v30 = vld [vmem:[#allocation2 + $0x218] sm:$0xff] }
 0x11c   :  { %2130 = vmatprep.mubr.bf16.mxu1 %v11999_v61  ;;  %12022 = vst [vmem:[#allocation33_spill] sm:$0xff] %v10842_v26 }
 0x11d   :  { %2192 = vmatpush1.bf16.msra.mxu0 %v9072_v31  ;;  %v9092_v31 = vld [vmem:[#allocation7 + $0x1ec] ss:$16 sps:$4 sm:$0xff]  }
 0x11e   :  { %2305 = vmatpush1.bf16.msra.mxu1 %v9075_v33  ;;  %2193 = vmatprep.subr.bf16.mxu0 %v9080_v51  ;;  %v9095_v33 = vld [vmem:[#allocation7 + $0x3ec] ss:$16 sps:$4 sm:$0xff]   ;;  %v10848_v51 = vpack.c.bf16 %v262_v30, %v255_v28  ;;  %v271_v28 = vld [vmem:[#allocation2 + $0x260] sm:$0xff] }
 0x11f   :  { %2306 = vmatprep.subr.bf16.mxu1 %v9083_v52  ;;  %v10850_v52 = vpack.c.bf16 %v264_v45, %v257_v34  ;;  %v278_v30 = vld [vmem:[#allocation2 + $0x298] sm:$0xff]  ;;  %v12026_v34 = vmov 0  }
 0x120   :  { %2018 = vmatmul.mubr.bf16.gmra.mxu0 %v10838_v63  ;;  %12023 = vst [vmem:[#allocation34_spill] sm:$0xff] %v10848_v51  ;;  %v9102_v45 = vld [vmem:[#allocation7 + $0x1a8] ss:$16 sps:$4 sm:$0xff]  }
 0x121   :  { %2131 = vmatmul.mubr.bf16.gmra.mxu1 %v10840_v2  ;;  %2194 = vmatpush1.bf16.msra.mxu0 %v9078_v56  ;;  %12024 = vst [vmem:[#allocation35_spill] sm:$0xff] %v10850_v52  ;;  %v9098_v56 = vld [vmem:[#allocation7 + $0x1cc] ss:$16 sps:$4 sm:$0xff]   ;;  %v10852_v2 = vpack.c.bf16 %v277_v8, %v270_v7  ;;  %v10860_v7 = vpack.c.bf16 %v278_v30, %v271_v28  ;;  %v9117_v28 = vld [vmem:[#allocation7 + $0x368] ss:$16 sps:$4 sm:$0xff]  }
 0x122   :  { %2307 = vmatpush1.bf16.msra.mxu1 %v9081_v59  ;;  %2195 = vmatprep.subr.bf16.mxu0 %v9086_v9  ;;  %v9101_v59 = vld [vmem:[#allocation7 + $0x3cc] ss:$16 sps:$4 sm:$0xff]   ;;  %v9096_v9 = vld [vmem:[#allocation7 + $0x1c8] ss:$16 sps:$4 sm:$0xff]  }
 0x123   :  { %2308 = vmatprep.subr.bf16.mxu1 %v9089_v10  ;;  %2027 = vmatprep.mubr.bf16.mxu0 %v10842_v26  ;;  %v9099_v10 = vld [vmem:[#allocation7 + $0x3c8] ss:$16 sps:$4 sm:$0xff]   ;;  %12025 = vst [vmem:[#allocation36_spill] sm:$0xff] %v10852_v2  ;;  %v269_v26 = vld [vmem:[#allocation2 + $0x250] sm:$0xff]  ;;  %12028 = vst [vmem:[#allocation38_spill] sm:$0xff] %v10860_v7 }
 0x124   :  { %2140 = vmatprep.mubr.bf16.mxu1 %v11999_v61  ;;  %v276_v61 = vld [vmem:[#allocation2 + $0x288] sm:$0xff]  ;;  %v290_v63 = vld [vmem:[#allocation2 + $0x2f8] sm:$0xff] }
 0x125   :  { %2196 = vmatpush1.bf16.msra.mxu0 %v9084_v18  ;;  %v9104_v18 = vld [vmem:[#allocation7 + $0x1ac] ss:$16 sps:$4 sm:$0xff]  }
 0x126   :  { %2309 = vmatpush1.bf16.msra.mxu1 %v9087_v22  ;;  %2197 = vmatprep.subr.bf16.mxu0 %v9092_v31  ;;  %v9107_v22 = vld [vmem:[#allocation7 + $0x3ac] ss:$16 sps:$4 sm:$0xff]   ;;  %v9105_v31 = vld [vmem:[#allocation7 + $0x3a8] ss:$16 sps:$4 sm:$0xff]  }
 0x127   :  { %2310 = vmatprep.subr.bf16.mxu1 %v9095_v33  ;;  %v10858_v33 = vpack.c.bf16 %v276_v61, %v269_v26  ;;  %v284_v8 = vld [vmem:[#allocation2 + $0x2c8] sm:$0xff]  ;;  %v285_v61 = vld [vmem:[#allocation2 + $0x2d0] sm:$0xff] }
 0x128   :  { %2028 = vmatmul.mubr.bf16.gmra.mxu0 %v10848_v51  ;;  %v292_v26 = vld [vmem:[#allocation2 + $0x308] sm:$0xff] }
 0x129   :  { %2141 = vmatmul.mubr.bf16.gmra.mxu1 %v10850_v52  ;;  %2198 = vmatpush2.bf16.msra.mxu0 %v9090_v48  ;;  %12027 = vst [vmem:[#allocation37_spill] sm:$0xff] %v10858_v33  ;;  %v291_v52 = vld [vmem:[#allocation2 + $0x300] sm:$0xff]  ;;  %v9110_v48 = vld [vmem:[#allocation7 + $0x18c] ss:$16 sps:$4 sm:$0xff]  }
 0x12a   :  { %2311 = vmatpush2.bf16.msra.mxu1 %v9093_v50  ;;  %2199 = vmatprep.subr.bf16.mxu0 %v9098_v56  ;;  %v9113_v50 = vld [vmem:[#allocation7 + $0x38c] ss:$16 sps:$4 sm:$0xff]   ;;  %v9108_v56 = vld [vmem:[#allocation7 + $0x188] ss:$16 sps:$4 sm:$0xff]   ;;  %v10862_v51 = vpack.c.bf16 %v291_v52, %v284_v8  ;;  %v305_v8 = vld [vmem:[#allocation2 + $0x370] sm:$0xff] }
 0x12b   :  { %2312 = vmatprep.subr.bf16.mxu1 %v9101_v59  ;;  %2037 = vmatprep.mubr.bf16.mxu0 %v10852_v2  ;;  %v9111_v59 = vld [vmem:[#allocation7 + $0x388] ss:$16 sps:$4 sm:$0xff]   ;;  %v283_v2 = vld [vmem:[#allocation2 + $0x2c0] sm:$0xff] }
 0x12c   :  { %2150 = vmatprep.mubr.bf16.mxu1 %v12026_v34  ;;  %12029 = vst [vmem:[#allocation39_spill] sm:$0xff] %v10862_v51  ;;  %v9114_v52 = vld [vmem:[#allocation7 + $0x168] ss:$16 sps:$4 sm:$0xff]   ;;  %v10868_v30 = vpack.c.bf16 %v290_v63, %v283_v2  ;;  %v299_v63 = vld [vmem:[#allocation2 + $0x340] sm:$0xff] }
 0x12d   :  { %2200 = vmatpush2.bf16.msra.mxu0 %v9096_v9  ;;  %v9116_v9 = vld [vmem:[#allocation7 + $0x16c] ss:$16 sps:$4 sm:$0xff]  }
 0x12e   :  { %2313 = vmatpush2.bf16.msra.mxu1 %v9099_v10  ;;  %2201 = vmatprep.subr.bf16.mxu0 %v9104_v18  ;;  %v9119_v10 = vld [vmem:[#allocation7 + $0x36c] ss:$16 sps:$4 sm:$0xff]   ;;  %v10870_v18 = vpack.c.bf16 %v292_v26, %v285_v61 }
 0x12f   :  { %2314 = vmatprep.subr.bf16.mxu1 %v9107_v22  ;;  %v298_v22 = vld [vmem:[#allocation2 + $0x338] sm:$0xff] }
 0x130   :  { %2038 = vmatmul.mubr.bf16.gmra.mxu0 %v10858_v33  ;;  %v304_v33 = vld [vmem:[#allocation2 + $0x368] sm:$0xff]  ;;  %v306_v2 = vld [vmem:[#allocation2 + $0x378] sm:$0xff] }
 0x131   :  { %2151 = vmatmul.mubr.bf16.gmra.mxu1 %v10860_v7  ;;  %2202 = vmatpush2.bf16.msra.mxu0 %v9102_v45  ;;  %v9122_v45 = vld [vmem:[#allocation7 + $0x14c] ss:$16 sps:$4 sm:$0xff]   ;;  %v10872_v7 = vpack.c.bf16 %v305_v8, %v298_v22  ;;  %v10880_v26 = vpack.c.bf16 %v306_v2, %v299_v63  ;;  %v9135_v8 = vld [vmem:[#allocation7 + $0x308] ss:$16 sps:$4 sm:$0xff]  }
 0x132   :  { %2315 = vmatpush2.bf16.msra.mxu1 %v9105_v31  ;;  %2203 = vmatprep.subr.bf16.mxu0 %v9110_v48  ;;  %v9125_v31 = vld [vmem:[#allocation7 + $0x34c] ss:$16 sps:$4 sm:$0xff]   ;;  %v9120_v48 = vld [vmem:[#allocation7 + $0x148] ss:$16 sps:$4 sm:$0xff]  }
 0x133   :  { %2316 = vmatprep.subr.bf16.mxu1 %v9113_v50  ;;  %2047 = vmatprep.mubr.bf16.mxu0 %v10862_v51  ;;  %v9123_v50 = vld [vmem:[#allocation7 + $0x348] ss:$16 sps:$4 sm:$0xff]   ;;  %v297_v51 = vld [vmem:[#allocation2 + $0x330] sm:$0xff]  ;;  %v9134_v22 = vld [vmem:[#allocation7 + $0x10c] ss:$16 sps:$4 sm:$0xff]  }
 0x134   :  { %2160 = vmatprep.mubr.bf16.mxu1 %v12026_v34  ;;  %v10878_v61 = vpack.c.bf16 %v304_v33, %v297_v51  ;;  %v9140_v51 = vld [vmem:[#allocation7 + $0x4ec] ss:$16 sps:$4 sm:$0xff]   ;;  %v9144_v63 = vld [vmem:[#allocation7 + $0x4c8] ss:$16 sps:$4 sm:$0xff]  }
 0x135   :  { %2204 = vmatpush2.bf16.msra.mxu0 %v9108_v56  ;;  %v9128_v56 = vld [vmem:[#allocation7 + $0x12c] ss:$16 sps:$4 sm:$0xff]   ;;  %v9150_v2 = vld [vmem:[#allocation7 + $0x6c8] ss:$16 sps:$4 sm:$0xff]  }
 0x136   :  { %2317 = vmatpush2.bf16.msra.mxu1 %v9111_v59  ;;  %2205 = vmatprep.subr.bf16.mxu0 %v9116_v9  ;;  %v9131_v59 = vld [vmem:[#allocation7 + $0x32c] ss:$16 sps:$4 sm:$0xff]   ;;  %v9126_v9 = vld [vmem:[#allocation7 + $0x128] ss:$16 sps:$4 sm:$0xff]  }
 0x137   :  { %2318 = vmatprep.subr.bf16.mxu1 %v9119_v10  ;;  %v9129_v10 = vld [vmem:[#allocation7 + $0x328] ss:$16 sps:$4 sm:$0xff]   ;;  %v9143_v33 = vld [vmem:[#allocation7 + $0x6ec] ss:$16 sps:$4 sm:$0xff]  }
 0x138   :  { %2048 = vmatmul.mubr.bf16.gmra.mxu0 %v10868_v30 }
 0x139   :  { %2161 = vmatmul.mubr.bf16.gmra.mxu1 %v10870_v18  ;;  %2206 = vmatpush2.bf16.msra.mxu0 %v9114_v52  ;;  %v9137_v52 = vld [vmem:[#allocation7 + $0x30c] ss:$16 sps:$4 sm:$0xff]  }
 0x13a   :  { %2319 = vmatpush2.bf16.msra.mxu1 %v9117_v28  ;;  %2207 = vmatprep.subr.bf16.mxu0 %v9122_v45  ;;  %v9132_v28 = vld [vmem:[#allocation7 + $0x108] ss:$16 sps:$4 sm:$0xff]  }
 0x13b   :  { %2320 = vmatprep.subr.bf16.mxu1 %v9125_v31  ;;  %2057 = vmatprep.mubr.bf16.mxu0 %v10872_v7  ;;  %v9138_v45 = vld [vmem:[#allocation7 + $0x4e8] ss:$16 sps:$4 sm:$0xff]  }
 0x13c   :  { %2170 = vmatprep.mubr.bf16.mxu1 %v12026_v34  ;;  %v9141_v31 = vld [vmem:[#allocation7 + $0x6e8] ss:$16 sps:$4 sm:$0xff]  }
 0x13d   :  { %2208 = vmatpush2.bf16.msra.mxu0 %v9120_v48  ;;  %v9146_v48 = vld [vmem:[#allocation7 + $0x4cc] ss:$16 sps:$4 sm:$0xff]  }
 0x13e   :  { %2321 = vmatpush2.bf16.msra.mxu1 %v9123_v50  ;;  %2209 = vmatprep.subr.bf16.mxu0 %v9128_v56  ;;  %v9152_v50 = vld [vmem:[#allocation7 + $0x6cc] ss:$16 sps:$4 sm:$0xff]   ;;  %v9147_v56 = vld [vmem:[#allocation7 + $0x4a8] ss:$16 sps:$4 sm:$0xff]  }
 0x13f   :  { %2322 = vmatprep.subr.bf16.mxu1 %v9131_v59  ;;  %v9155_v59 = vld [vmem:[#allocation7 + $0x48c] ss:$16 sps:$4 sm:$0xff]  }
 0x140   :  { %2058 = vmatmul.mubr.bf16.gmra.mxu0 %v10878_v61 }
 0x141   :  { %2171 = vmatmul.mubr.bf16.gmra.mxu1 %v10880_v26  ;;  %2210 = vmatpush2.bf16.msra.mxu0 %v9126_v9  ;;  %v9153_v9 = vld [vmem:[#allocation7 + $0x488] ss:$16 sps:$4 sm:$0xff]  }
 0x142   :  { %2323 = vmatpush2.bf16.msra.mxu1 %v9129_v10  ;;  %2211 = vmatprep.subr.bf16.mxu0 %v9134_v22  ;;  %v9168_v10 = vld [vmem:[#allocation7 + $0x688] ss:$16 sps:$4 sm:$0xff]   ;;  %v9164_v22 = vld [vmem:[#allocation7 + $0x44c] ss:$16 sps:$4 sm:$0xff]  }
 0x143   :  { %2324 = vmatprep.subr.bf16.mxu1 %v9137_v52  ;;  %2213 = vmatprep.mubr.bf16.mxu0 %v10708_v53  ;;  %v9149_v53 = vld [vmem:[#allocation7 + $0x4ac] ss:$16 sps:$4 sm:$0xff]  }
 0x144   :  { %2326 = vmatprep.mubr.bf16.mxu1 %v10710_v54  ;;  %v9161_v54 = vld [vmem:[#allocation7 + $0x6ac] ss:$16 sps:$4 sm:$0xff]  }
 0x145   :  { %2212 = vmatpush2.bf16.msra.mxu0 %v9132_v28  ;;  %v9179_v52 = vld [vmem:[#allocation7 + $0x66c] ss:$16 sps:$4 sm:$0xff]   ;;  %v9162_v28 = vld [vmem:[#allocation7 + $0x448] ss:$16 sps:$4 sm:$0xff]  }
 0x146   :  { %2325 = vmatpush2.bf16.msra.mxu1 %v9135_v8  ;;  %2407 = vmatprep.subr.bf16.mxu0 %v9140_v51  ;;  %v9173_v8 = vld [vmem:[#allocation7 + $0x40c] ss:$16 sps:$4 sm:$0xff]   ;;  %v9186_v51 = vld [vmem:[#allocation7 + $0x648] ss:$16 sps:$4 sm:$0xff]  }
 0x147   :  { %2520 = vmatprep.subr.bf16.mxu1 %v9143_v33  ;;  %v9197_v33 = vld [vmem:[#allocation7 + $0x62c] ss:$16 sps:$4 sm:$0xff]  }
 0x148   :  { %2214 = vmatmul.mubr.bf16.vlgmr.msra.gmra.mxu0 %v10714_v14  ;;  %v9159_v14 = vld [vmem:[#allocation7 + $0x6a8] ss:$16 sps:$4 sm:$0xff]  }
 0x149   :  { %2327 = vmatmul.mubr.bf16.vlgmr.msra.gmra.mxu1 %v10716_v15  ;;  %2408 = vmatpush1.bf16.msra.mxu0 %v9138_v45  ;;  %v9170_v15 = vld [vmem:[#allocation7 + $0x68c] ss:$16 sps:$4 sm:$0xff]   ;;  %v9171_v45 = vld [vmem:[#allocation7 + $0x408] ss:$16 sps:$4 sm:$0xff]  }
 0x14a   :  { %2521 = vmatpush1.bf16.msra.mxu1 %v9141_v31  ;;  %2409 = vmatprep.subr.bf16.mxu0 %v9146_v48  ;;  %v9206_v31 = vld [vmem:[#allocation7 + $0x60c] ss:$16 sps:$4 sm:$0xff]   ;;  %v9204_v48 = vld [vmem:[#allocation7 + $0x608] ss:$16 sps:$4 sm:$0xff]  }
 0x14b   :  { %2223 = vmatprep.mubr.bf16.mxu0 %v10718_v21  ;;  %2336 = vmatprep.mubr.bf16.mxu1 %v10720_v23  ;;  %v9158_v21 = vld [vmem:[#allocation7 + $0x46c] ss:$16 sps:$4 sm:$0xff]   ;;  %v9156_v23 = vld [vmem:[#allocation7 + $0x468] ss:$16 sps:$4 sm:$0xff]  }
 0x14c   :  { %2522 = vmatprep.subr.bf16.mxu1 %v9152_v50  ;;  %v9180_v50 = vld [vmem:[#allocation7 + $0x5c8] ss:$16 sps:$4 sm:$0xff]  }
 0x14d   :  { %2410 = vmatpush1.bf16.msra.mxu0 %v9144_v63  ;;  %v9203_v63 = vld [vmem:[#allocation7 + $0x52c] ss:$16 sps:$4 sm:$0xff]  }
 0x14e   :  { %2523 = vmatpush1.bf16.msra.mxu1 %v9150_v2  ;;  %2411 = vmatprep.subr.bf16.mxu0 %v9149_v53  ;;  %v9207_v2 = vld [vmem:[#allocation7 + $0x508] ss:$16 sps:$4 sm:$0xff]   ;;  %v9215_v53 = vld [vmem:[#allocation8 + $0x64] ss:$8 sps:$4 sm:$0xff]  }
 0x14f   :  { %2524 = vmatprep.subr.bf16.mxu1 %v9161_v54 }
 0x150   :  { %2224 = vmatmul.mubr.bf16.gmra.mxu0 %v10726_v36  ;;  %v9177_v36 = vld [vmem:[#allocation7 + $0x668] ss:$16 sps:$4 sm:$0xff]  }
 0x151   :  { %2337 = vmatmul.mubr.bf16.gmra.mxu1 %v10728_v37  ;;  %2412 = vmatpush1.bf16.msra.mxu0 %v9147_v56  ;;  %v9188_v37 = vld [vmem:[#allocation7 + $0x64c] ss:$16 sps:$4 sm:$0xff]  }
 0x152   :  { %2233 = vmatprep.mubr.bf16.mxu0 %v10730_v39  ;;  %2413 = vmatprep.subr.bf16.mxu0 %v9155_v59  ;;  %v9167_v39 = vld [vmem:[#allocation7 + $0x42c] ss:$16 sps:$4 sm:$0xff]   ;;  %v9213_v59 = vld [vmem:[#allocation8 + $0x60] ss:$8 sps:$4 sm:$0xff]  }
 0x153   :  { %2346 = vmatprep.mubr.bf16.mxu1 %v10732_v41  ;;  %2525 = vmatpush1.bf16.msra.mxu1 %v9159_v14  ;;  %v9165_v41 = vld [vmem:[#allocation7 + $0x428] ss:$16 sps:$4 sm:$0xff]  }
 0x154   :  { %2526 = vmatprep.subr.bf16.mxu1 %v9170_v15  ;;  %v9218_v15 = vld [vmem:[#allocation8 + $0x54] ss:$8 sps:$4 sm:$0xff]  }
 0x155   :  { %2414 = vmatpush1.bf16.msra.mxu0 %v9153_v9 }
 0x156   :  { %2415 = vmatprep.subr.bf16.mxu0 %v9158_v21 }
 0x157   :  { %2527 = vmatpush1.bf16.msra.mxu1 %v9168_v10 }
 0x158   :  { %2234 = vmatmul.mubr.bf16.gmra.mxu0 %v10738_v57  ;;  %2528 = vmatprep.subr.bf16.mxu1 %v9179_v52  ;;  %v9176_v57 = vld [vmem:[#allocation7 + $0x5ec] ss:$16 sps:$4 sm:$0xff]  }
 0x159   :  { %2347 = vmatmul.mubr.bf16.gmra.mxu1 %v10740_v58  ;;  %2416 = vmatpush1.bf16.msra.mxu0 %v9156_v23  ;;  %v9195_v58 = vld [vmem:[#allocation7 + $0x628] ss:$16 sps:$4 sm:$0xff]  }
 0x15a   :  { %2243 = vmatprep.mubr.bf16.mxu0 %v10742_v60  ;;  %2417 = vmatprep.subr.bf16.mxu0 %v9164_v22  ;;  %v9174_v60 = vld [vmem:[#allocation7 + $0x5e8] ss:$16 sps:$4 sm:$0xff]  }
 0x15b   :  { %2356 = vmatprep.mubr.bf16.mxu1 %v10744_v62  ;;  %2529 = vmatpush1.bf16.msra.mxu1 %v9177_v36  ;;  %v9182_v62 = vld [vmem:[#allocation7 + $0x5cc] ss:$16 sps:$4 sm:$0xff]  }
 0x15c   :  { %2530 = vmatprep.subr.bf16.mxu1 %v9188_v37  ;;  %v9221_v36 = vld [vmem:[#allocation8 + $0x44] ss:$8 sps:$4 sm:$0xff]  }
 0x15d   :  { %2418 = vmatpush1.bf16.msra.mxu0 %v9162_v28 }
 0x15e   :  { %2419 = vmatprep.subr.bf16.mxu0 %v9167_v39 }
 0x15f   :  { %2531 = vmatpush1.bf16.msra.mxu1 %v9186_v51  ;;  %v9224_v51 = vld [vmem:[#allocation8 + $0x34] ss:$8 sps:$4 sm:$0xff]  }
 0x160   :  { %2244 = vmatmul.mubr.bf16.gmra.mxu0 %v10750_v12  ;;  %2532 = vmatprep.subr.bf16.mxu1 %v9197_v33  ;;  %v9185_v12 = vld [vmem:[#allocation7 + $0x5ac] ss:$16 sps:$4 sm:$0xff]  }
 0x161   :  { %2357 = vmatmul.mubr.bf16.gmra.mxu1 %v10752_v13  ;;  %2420 = vmatpush1.bf16.msra.mxu0 %v9165_v41  ;;  %v9183_v13 = vld [vmem:[#allocation7 + $0x5a8] ss:$16 sps:$4 sm:$0xff]  }
 0x162   :  { %2253 = vmatprep.mubr.bf16.mxu0 %v10754_v17  ;;  %2421 = vmatprep.subr.bf16.mxu0 %v9173_v8  ;;  %v9191_v17 = vld [vmem:[#allocation7 + $0x58c] ss:$16 sps:$4 sm:$0xff]   ;;  %v9219_v41 = vld [vmem:[#allocation8 + $0x40] ss:$8 sps:$4 sm:$0xff]  }
 0x163   :  { %2366 = vmatprep.mubr.bf16.mxu1 %v10756_v19  ;;  %2533 = vmatpush1.bf16.msra.mxu1 %v9195_v58  ;;  %v9189_v19 = vld [vmem:[#allocation7 + $0x588] ss:$16 sps:$4 sm:$0xff]  }
 0x164   :  { %2534 = vmatprep.subr.bf16.mxu1 %v9206_v31  ;;  %v9227_v31 = vld [vmem:[#allocation8 + $0x24] ss:$8 sps:$4 sm:$0xff]  }
 0x165   :  { %2422 = vmatpush1.bf16.msra.mxu0 %v9171_v45 }
 0x166   :  { %2423 = vmatprep.subr.bf16.mxu0 %v9176_v57 }
 0x167   :  { %2535 = vmatpush1.bf16.msra.mxu1 %v9204_v48 }
 0x168   :  { %2254 = vmatmul.mubr.bf16.gmra.mxu0 %v10762_v35  ;;  %v9194_v35 = vld [vmem:[#allocation7 + $0x56c] ss:$16 sps:$4 sm:$0xff]  }
 0x169   :  { %2367 = vmatmul.mubr.bf16.gmra.mxu1 %v10764_v38  ;;  %2424 = vmatpush2.bf16.msra.mxu0 %v9174_v60  ;;  %v9192_v38 = vld [vmem:[#allocation7 + $0x568] ss:$16 sps:$4 sm:$0xff]  }
 0x16a   :  { %2263 = vmatprep.mubr.bf16.mxu0 %v10766_v42  ;;  %2425 = vmatprep.subr.bf16.mxu0 %v9182_v62  ;;  %v9200_v42 = vld [vmem:[#allocation7 + $0x54c] ss:$16 sps:$4 sm:$0xff]  }
 0x16b   :  { %2376 = vmatprep.mubr.bf16.mxu1 %v10768_v44  ;;  %v9198_v44 = vld [vmem:[#allocation7 + $0x548] ss:$16 sps:$4 sm:$0xff]  }
 0x16d   :  { %2426 = vmatpush2.bf16.msra.mxu0 %v9180_v50  ;;  %v9260_v50 = vld [vmem:[#allocation8 + $0x174] ss:$8 sps:$4 sm:$0xff]  }
 0x16e   :  { %2427 = vmatprep.subr.bf16.mxu0 %v9185_v12  ;;  %v9258_v12 = vld [vmem:[#allocation8 + $0x170] ss:$8 sps:$4 sm:$0xff]   ;;  %3238 = vmatprep.subr.bf16.mxu1 %v9260_v50 }
 0x170   :  { %2264 = vmatmul.mubr.bf16.gmra.mxu0 %v10774_v0  ;;  %v589_v0 = vlaneseq }
 0x171   :  { %2377 = vmatmul.mubr.bf16.gmra.mxu1 %v10776_v1  ;;  %2428 = vmatpush2.bf16.msra.mxu0 %v9183_v13  ;;  %v9201_v1 = vld [vmem:[#allocation7 + $0x528] ss:$16 sps:$4 sm:$0xff]  }
 0x172   :  { %2273 = vmatprep.mubr.bf16.mxu0 %v10778_v3  ;;  %2429 = vmatprep.subr.bf16.mxu0 %v9191_v17  ;;  %v9209_v3 = vld [vmem:[#allocation7 + $0x50c] ss:$16 sps:$4 sm:$0xff]  }
 0x173   :  { %2386 = vmatprep.mubr.bf16.mxu1 %v10780_v5  ;;  %v10914_v5 = vshrl.u32 %v589_v0, 7 }
 0x175   :  { %2430 = vmatpush2.bf16.msra.mxu0 %v9189_v19  ;;  %12030 = vst [vmem:[#allocation40_spill] sm:$0xff] %v10914_v5  ;;  %v9225_v19 = vld [vmem:[#allocation8 + $0x20] ss:$8 sps:$4 sm:$0xff]  }
 0x176   :  { %2431 = vmatprep.subr.bf16.mxu0 %v9194_v35 }
 0x178   :  { %2274 = vmatmul.mubr.bf16.gmra.mxu0 %v10786_v24  ;;  %v587_v24 = vld [vmem:[%s11984_s3] sm:$0xf] }
 0x179   :  { %2387 = vmatmul.mubr.bf16.gmra.mxu1 %v10788_v25  ;;  %2432 = vmatpush2.bf16.msra.mxu0 %v9192_v38  ;;  %v9212_v25 = vld [vmem:[#allocation8 + $0x74] ss:$8 sps:$4 sm:$0xff]  }
 0x17a   :  { %2283 = vmatprep.mubr.bf16.mxu0 %v10790_v27  ;;  %2433 = vmatprep.subr.bf16.mxu0 %v9200_v42  ;;  %v10923_v27 = vsub.s32 0, %v10914_v5  ;;  %v9230_v38 = vld [vmem:[#allocation8 + $0x14] ss:$8 sps:$4 sm:$0xff]  }
 0x17b   :  { %2396 = vmatprep.mubr.bf16.mxu1 %v10792_v29  ;;  %v10927_v29 = vsub.s32 1, %v10914_v5  ;;  %v9302_v5 = vld [vmem:[#allocation8 + $0x194] ss:$8 sps:$4 sm:$0xff]  }
 0x17c   :  { %12031 = vst [vmem:[#allocation41_spill] sm:$0xff] %v10923_v27 }
 0x17d   :  { %2434 = vmatpush2.bf16.msra.mxu0 %v9198_v44  ;;  %12032 = vst [vmem:[#allocation42_spill] sm:$0xff] %v10927_v29  ;;  %v10933_v54 = vrot.slane %v587_v24, %v10927_v29  ;;  %v9299_v29 = vld [vmem:[#allocation8 + $0x1a4] ss:$8 sps:$4 sm:$0xff]  }
 0x17e   :  { %2435 = vmatprep.subr.bf16.mxu0 %v9203_v63  ;;  %v9263_v63 = vld [vmem:[#allocation8 + $0x164] ss:$8 sps:$4 sm:$0xff]  }
 0x180   :  { %2284 = vmatmul.mubr.bf16.gmra.mxu0 %v10798_v46  ;;  %v9210_v46 = vld [vmem:[#allocation8 + $0x70] ss:$8 sps:$4 sm:$0xff]  }
 0x181   :  { %2397 = vmatmul.mubr.bf16.gmra.mxu1 %v10800_v47  ;;  %2436 = vmatpush2.bf16.msra.mxu0 %v9201_v1  ;;  %v10930_v47 = vrot.slane %v587_v24, %v10923_v27  ;;  %v9233_v24 = vld [vmem:[#allocation8 + $0x4] ss:$8 sps:$4 sm:$0xff]  }
 0x182   :  { %2439 = vmatprep.mubr.bf16.mxu0 %v10802_v49  ;;  %2437 = vmatprep.subr.bf16.mxu0 %v9209_v3 }
 0x183   :  { %2552 = vmatprep.mubr.bf16.mxu1 %v12026_v34 }
 0x185   :  { %2438 = vmatpush2.bf16.msra.mxu0 %v9207_v2 }
 0x186   :  { %3125 = vmatprep.subr.bf16.mxu0 %v9212_v25 }
 0x188   :  { %v1763_v49 = vpop.f32.mrf.mxu0  ;;  %2440 = vmatmul.mubr.bf16.vlgmr.msra.gmra.mxu0 %v10808_v4 }
 0x189   :  { %v1876_v56 = vpop.f32.mrf.mxu1  ;;  %2553 = vmatmul.mubr.bf16.vlgmr.msra.gmra.mxu1 %v10810_v6  ;;  %v1764_v14 = vadd.f32 %v1763_v49, %v10930_v47  ;;  %2449 = vmatprep.mubr.bf16.mxu0 %v10812_v20  ;;  %v9216_v6 = vld [vmem:[#allocation8 + $0x50] ss:$8 sps:$4 sm:$0xff]  }
 0x18a   :  { %2562 = vmatprep.mubr.bf16.mxu1 %v12026_v34  ;;  %v1765_v9 = vpop.f32.mrf.mxu0  ;;  %3126 = vmatpush1.bf16.msra.mxu0 %v9210_v46  ;;  %v9264_v49 = vld [vmem:[#allocation8 + $0x150] ss:$8 sps:$4 sm:$0xff]  }
 0x18b   :  { %v1878_v21 = vpop.f32.mrf.mxu1  ;;  %v10940_v23 = vadd.f32 %v1876_v56, %v1764_v14  ;;  %v1766_v10 = vadd.f32 %v1765_v9, %v10933_v54  ;;  %3127 = vmatprep.subr.bf16.mxu0 %v9215_v53  ;;  %3239 = vmatpush1.bf16.msra.mxu1 %v9258_v12  ;;  %v9266_v53 = vld [vmem:[#allocation8 + $0x154] ss:$8 sps:$4 sm:$0xff]   ;;  %v12033_v14 = vld [vmem:[#allocation31_spill] sm:$0xff] }
 0x18c   :  { %v10943_v22 = vpop.f32.mrf.mxu0  ;;  %3240 = vmatprep.subr.bf16.mxu1 %v9263_v63  ;;  %v9231_v9 = vld [vmem:[#allocation8] ss:$8 sps:$4 sm:$0xff]  }
 0x18d   :  { %v10945_v4 = vpop.f32.mrf.mxu1  ;;  %v10947_v52 = vadd.f32 %v1878_v21, %v1766_v10  ;;  %v12035_v10 = vld [vmem:[#allocation33_spill] sm:$0xff] }
 0x18e   :  { %v10949_v20 = vpop.f32.mrf.mxu0  ;;  %3128 = vmatpush1.bf16.msra.mxu0 %v9213_v59 }
 0x18f   :  { %v10951_v28 = vpop.f32.mrf.mxu1  ;;  %3129 = vmatprep.subr.bf16.mxu0 %v9218_v15  ;;  %v12034_v15 = vld [vmem:[#allocation32_spill] sm:$0xff] }
 0x190   :  { %v1773_v37 = vpop.f32.mrf.mxu0  ;;  %2450 = vmatmul.mubr.bf16.gmra.mxu0 %v10818_v40 }
 0x191   :  { %v1886_v39 = vpop.f32.mrf.mxu1  ;;  %2563 = vmatmul.mubr.bf16.gmra.mxu1 %v10820_v43  ;;  %v1774_v8 = vadd.f32 %v1773_v37, %v10930_v47  ;;  %2459 = vmatprep.mubr.bf16.mxu0 %v10822_v55  ;;  %v9222_v43 = vld [vmem:[#allocation8 + $0x30] ss:$8 sps:$4 sm:$0xff]  }
 0x192   :  { %2572 = vmatprep.mubr.bf16.mxu1 %v12026_v34  ;;  %v1775_v33 = vpop.f32.mrf.mxu0  ;;  %3130 = vmatpush1.bf16.msra.mxu0 %v9216_v6  ;;  %v9236_v6 = vld [vmem:[#allocation8 + $0xf4] ss:$8 sps:$4 sm:$0xff]  }
 0x193   :  { %v1888_v45 = vpop.f32.mrf.mxu1  ;;  %v10958_v57 = vadd.f32 %v1886_v39, %v1774_v8  ;;  %v1776_v58 = vadd.f32 %v1775_v33, %v10933_v54  ;;  %3131 = vmatprep.subr.bf16.mxu0 %v9221_v36  ;;  %v9269_v39 = vld [vmem:[#allocation8 + $0x144] ss:$8 sps:$4 sm:$0xff]  }
 0x194   :  { %v10961_v60 = vpop.f32.mrf.mxu0 }
 0x195   :  { %v10963_v40 = vpop.f32.mrf.mxu1  ;;  %v10965_v62 = vadd.f32 %v1888_v45, %v1776_v58  ;;  %v9234_v58 = vld [vmem:[#allocation8 + $0xf0] ss:$8 sps:$4 sm:$0xff]  }
 0x196   :  { %v10967_v55 = vpop.f32.mrf.mxu0  ;;  %3132 = vmatpush1.bf16.msra.mxu0 %v9219_v41 }
 0x197   :  { %v10969_v48 = vpop.f32.mrf.mxu1  ;;  %3133 = vmatprep.subr.bf16.mxu0 %v9224_v51  ;;  %v9267_v51 = vld [vmem:[#allocation8 + $0x140] ss:$8 sps:$4 sm:$0xff]  }
 0x198   :  { %v1783_v13 = vpop.f32.mrf.mxu0  ;;  %2460 = vmatmul.mubr.bf16.gmra.mxu0 %v10828_v11  ;;  %v9261_v11 = vld [vmem:[#allocation8 + $0x160] ss:$8 sps:$4 sm:$0xff]  }
 0x199   :  { %v1896_v17 = vpop.f32.mrf.mxu1  ;;  %2573 = vmatmul.mubr.bf16.gmra.mxu1 %v10830_v16  ;;  %v1784_v35 = vadd.f32 %v1783_v13, %v10930_v47  ;;  %2469 = vmatprep.mubr.bf16.mxu0 %v10832_v32  ;;  %v9228_v32 = vld [vmem:[#allocation8 + $0x10] ss:$8 sps:$4 sm:$0xff]   ;;  %v9272_v13 = vld [vmem:[#allocation8 + $0x134] ss:$8 sps:$4 sm:$0xff]  }
 0x19a   :  { %2582 = vmatprep.mubr.bf16.mxu1 %v12026_v34  ;;  %v1785_v42 = vpop.f32.mrf.mxu0  ;;  %3134 = vmatpush1.bf16.msra.mxu0 %v9222_v43 }
 0x19b   :  { %v1898_v44 = vpop.f32.mrf.mxu1  ;;  %v10976_v0 = vadd.f32 %v1896_v17, %v1784_v35  ;;  %v1786_v1 = vadd.f32 %v1785_v42, %v10933_v54  ;;  %3135 = vmatprep.subr.bf16.mxu0 %v9227_v31  ;;  %3241 = vmatpush1.bf16.msra.mxu1 %v9261_v11  ;;  %v9239_v31 = vld [vmem:[#allocation8 + $0xe4] ss:$8 sps:$4 sm:$0xff]   ;;  %v9270_v17 = vld [vmem:[#allocation8 + $0x130] ss:$8 sps:$4 sm:$0xff]   ;;  %v9242_v11 = vld [vmem:[#allocation8 + $0xd4] ss:$8 sps:$4 sm:$0xff]  }
 0x19c   :  { %v10979_v16 = vpop.f32.mrf.mxu0  ;;  %3242 = vmatprep.subr.bf16.mxu1 %v9266_v53  ;;  %v12037_v42 = vld [vmem:[#allocation35_spill] sm:$0xff] }
 0x19d   :  { %v10981_v3 = vpop.f32.mrf.mxu1  ;;  %v10983_v2 = vadd.f32 %v1898_v44, %v1786_v1  ;;  %v9237_v44 = vld [vmem:[#allocation8 + $0xe0] ss:$8 sps:$4 sm:$0xff]   ;;  %v12038_v1 = vld [vmem:[#allocation36_spill] sm:$0xff] }
 0x19e   :  { %v10985_v25 = vpop.f32.mrf.mxu0  ;;  %3136 = vmatpush1.bf16.msra.mxu0 %v9225_v19  ;;  %v9275_v53 = vld [vmem:[#allocation8 + $0x124] ss:$8 sps:$4 sm:$0xff]  }
 0x19f   :  { %v10987_v46 = vpop.f32.mrf.mxu1  ;;  %3137 = vmatprep.subr.bf16.mxu0 %v9230_v38  ;;  %3243 = vmatpush1.bf16.msra.mxu1 %v9264_v49  ;;  %v12036_v38 = vld [vmem:[#allocation34_spill] sm:$0xff] }
 0x1a0   :  { %v1793_v56 = vpop.f32.mrf.mxu0  ;;  %2470 = vmatmul.mubr.bf16.gmra.mxu0 %v12033_v14  ;;  %3244 = vmatprep.subr.bf16.mxu1 %v9269_v39  ;;  %v9276_v39 = vld [vmem:[#allocation8 + $0x110] ss:$8 sps:$4 sm:$0xff]  }
 0x1a1   :  { %v1906_v59 = vpop.f32.mrf.mxu1  ;;  %2583 = vmatmul.mubr.bf16.gmra.mxu1 %v12034_v15  ;;  %v1794_v21 = vadd.f32 %v1793_v56, %v10930_v47  ;;  %2479 = vmatprep.mubr.bf16.mxu0 %v12035_v10  ;;  %v9245_v10 = vld [vmem:[#allocation8 + $0xc4] ss:$8 sps:$4 sm:$0xff]  }
 0x1a2   :  { %2592 = vmatprep.mubr.bf16.mxu1 %v12026_v34  ;;  %v1795_v36 = vpop.f32.mrf.mxu0  ;;  %3138 = vmatpush1.bf16.msra.mxu0 %v9228_v32 }
 0x1a3   :  { %v1908_v37 = vpop.f32.mrf.mxu1  ;;  %v10994_v41 = vadd.f32 %v1906_v59, %v1794_v21  ;;  %v1796_v8 = vadd.f32 %v1795_v36, %v10933_v54  ;;  %3139 = vmatprep.subr.bf16.mxu0 %v9233_v24  ;;  %3245 = vmatpush1.bf16.msra.mxu1 %v9267_v51  ;;  %v9273_v59 = vld [vmem:[#allocation8 + $0x120] ss:$8 sps:$4 sm:$0xff]  }
 0x1a4   :  { %v10997_v33 = vpop.f32.mrf.mxu0  ;;  %3246 = vmatprep.subr.bf16.mxu1 %v9272_v13  ;;  %v9243_v13 = vld [vmem:[#allocation8 + $0xc0] ss:$8 sps:$4 sm:$0xff]  }
 0x1a5   :  { %v10999_v45 = vpop.f32.mrf.mxu1  ;;  %v11001_v43 = vadd.f32 %v1908_v37, %v1796_v8  ;;  %v9278_v37 = vld [vmem:[#allocation8 + $0x114] ss:$8 sps:$4 sm:$0xff]  }
 0x1a6   :  { %v11003_v50 = vpop.f32.mrf.mxu0  ;;  %3140 = vmatpush1.bf16.msra.mxu0 %v9231_v9  ;;  %v9240_v9 = vld [vmem:[#allocation8 + $0xd0] ss:$8 sps:$4 sm:$0xff]  }
 0x1a7   :  { %v11005_v12 = vpop.f32.mrf.mxu1  ;;  %3141 = vmatprep.subr.bf16.mxu0 %v9236_v6  ;;  %3247 = vmatpush1.bf16.msra.mxu1 %v9270_v17 }
 0x1a8   :  { %v1803_v19 = vpop.f32.mrf.mxu0  ;;  %2480 = vmatmul.mubr.bf16.gmra.mxu0 %v12036_v38  ;;  %3248 = vmatprep.subr.bf16.mxu1 %v9275_v53  ;;  %v9246_v53 = vld [vmem:[#allocation8 + $0xb0] ss:$8 sps:$4 sm:$0xff]  }
 0x1a9   :  { %v1916_v35 = vpop.f32.mrf.mxu1  ;;  %2593 = vmatmul.mubr.bf16.gmra.mxu1 %v12037_v42  ;;  %v1804_v63 = vadd.f32 %v1803_v19, %v10930_v47  ;;  %2489 = vmatprep.mubr.bf16.mxu0 %v12038_v1  ;;  %v12041_v19 = vld [vmem:[#allocation39_spill] sm:$0xff] }
 0x1aa   :  { %2602 = vmatprep.mubr.bf16.mxu1 %v12026_v34  ;;  %v1805_v32 = vpop.f32.mrf.mxu0  ;;  %3142 = vmatpush2.bf16.msra.mxu0 %v9234_v58  ;;  %v12039_v58 = vld [vmem:[#allocation37_spill] sm:$0xff] }
 0x1ab   :  { %v1918_v24 = vpop.f32.mrf.mxu1  ;;  %v11012_v49 = vadd.f32 %v1916_v35, %v1804_v63  ;;  %v1806_v56 = vadd.f32 %v1805_v32, %v10933_v54  ;;  %3143 = vmatprep.subr.bf16.mxu0 %v9239_v31  ;;  %3249 = vmatpush1.bf16.msra.mxu1 %v9273_v59  ;;  %v12040_v31 = vld [vmem:[#allocation38_spill] sm:$0xff] }
 0x1ac   :  { %v11015_v14 = vpop.f32.mrf.mxu0  ;;  %v9248_v35 = vld [vmem:[#allocation8 + $0xb4] ss:$8 sps:$4 sm:$0xff]   ;;  %3250 = vmatprep.subr.bf16.mxu1 %v9278_v37  ;;  %v9251_v59 = vld [vmem:[#allocation8 + $0xa4] ss:$8 sps:$4 sm:$0xff]  }
 0x1ad   :  { %v11017_v15 = vpop.f32.mrf.mxu1  ;;  %v11019_v21 = vadd.f32 %v1918_v24, %v1806_v56  ;;  %v9284_v37 = vld [vmem:[#allocation8 + $0x1f4] ss:$8 sps:$4 sm:$0xff]  }
 0x1ae   :  { %v11021_v6 = vpop.f32.mrf.mxu0  ;;  %3144 = vmatpush2.bf16.msra.mxu0 %v9237_v44  ;;  %v9281_v44 = vld [vmem:[#allocation8 + $0x104] ss:$8 sps:$4 sm:$0xff]  }
 0x1af   :  { %v11023_v36 = vpop.f32.mrf.mxu1  ;;  %3145 = vmatprep.subr.bf16.mxu0 %v9242_v11  ;;  %3251 = vmatpush1.bf16.msra.mxu1 %v9276_v39  ;;  %v9279_v11 = vld [vmem:[#allocation8 + $0x100] ss:$8 sps:$4 sm:$0xff]  }
 0x1b0   :  { %v1813_v8 = vpop.f32.mrf.mxu0  ;;  %2490 = vmatmul.mubr.bf16.gmra.mxu0 %v12039_v58  ;;  %3252 = vmatprep.subr.bf16.mxu1 %v9281_v44  ;;  %v9249_v58 = vld [vmem:[#allocation8 + $0xa0] ss:$8 sps:$4 sm:$0xff]  }
 0x1b1   :  { %v1926_v51 = vpop.f32.mrf.mxu1  ;;  %2603 = vmatmul.mubr.bf16.gmra.mxu1 %v12040_v31  ;;  %v1814_v17 = vadd.f32 %v1813_v8, %v10930_v47  ;;  %2499 = vmatprep.mubr.bf16.mxu0 %v12041_v19 }
 0x1b2   :  { %2612 = vmatprep.mubr.bf16.mxu1 %v12026_v34  ;;  %v1815_v38 = vpop.f32.mrf.mxu0  ;;  %3146 = vmatpush2.bf16.msra.mxu0 %v9240_v9 }
 0x1b3   :  { %v1928_v42 = vpop.f32.mrf.mxu1  ;;  %v11030_v63 = vadd.f32 %v1926_v51, %v1814_v17  ;;  %v1816_v1 = vadd.f32 %v1815_v38, %v10933_v54  ;;  %3147 = vmatprep.subr.bf16.mxu0 %v9245_v10  ;;  %3253 = vmatpush1.bf16.msra.mxu1 %v9279_v11  ;;  %v9282_v10 = vld [vmem:[#allocation8 + $0x1f0] ss:$8 sps:$4 sm:$0xff]   ;;  %v9254_v17 = vld [vmem:[#allocation8 + $0x94] ss:$8 sps:$4 sm:$0xff]   ;;  %v9257_v11 = vld [vmem:[#allocation8 + $0x84] ss:$8 sps:$4 sm:$0xff]  }
 0x1b4   :  { %v11033_v32 = vpop.f32.mrf.mxu0  ;;  %3254 = vmatprep.subr.bf16.mxu1 %v9284_v37  ;;  %v9290_v37 = vld [vmem:[#allocation8 + $0x1d4] ss:$8 sps:$4 sm:$0xff]  }
 0x1b5   :  { %v11035_v24 = vpop.f32.mrf.mxu1  ;;  %v11037_v56 = vadd.f32 %v1928_v42, %v1816_v1 }
 0x1b6   :  { %v11039_v8 = vpop.f32.mrf.mxu0  ;;  %3148 = vmatpush2.bf16.msra.mxu0 %v9243_v13 }
 0x1b7   :  { %v11041_v9 = vpop.f32.mrf.mxu1  ;;  %3149 = vmatprep.subr.bf16.mxu0 %v9248_v35  ;;  %v9287_v35 = vld [vmem:[#allocation8 + $0x1e4] ss:$8 sps:$4 sm:$0xff]   ;;  %3255 = vmatpush2.bf16.msra.mxu1 %v9282_v10 }
 0x1b8   :  { %v1823_v39 = vpop.f32.mrf.mxu0  ;;  %2500 = vmatmul.mubr.bf16.gmra.mxu0 %v10868_v30  ;;  %v9285_v30 = vld [vmem:[#allocation8 + $0x1e0] ss:$8 sps:$4 sm:$0xff]   ;;  %3256 = vmatprep.subr.bf16.mxu1 %v9287_v35 }
 0x1b9   :  { %v1936_v51 = vpop.f32.mrf.mxu1  ;;  %2613 = vmatmul.mubr.bf16.gmra.mxu1 %v10870_v18  ;;  %v1824_v31 = vadd.f32 %v1823_v39, %v10930_v47  ;;  %2509 = vmatprep.mubr.bf16.mxu0 %v10872_v7  ;;  %v9252_v7 = vld [vmem:[#allocation8 + $0x90] ss:$8 sps:$4 sm:$0xff]  }
 0x1ba   :  { %2622 = vmatprep.mubr.bf16.mxu1 %v12026_v34  ;;  %v1825_v19 = vpop.f32.mrf.mxu0  ;;  %3150 = vmatpush2.bf16.msra.mxu0 %v9246_v53 }
 0x1bb   :  { %v1938_v13 = vpop.f32.mrf.mxu1  ;;  %v11048_v38 = vadd.f32 %v1936_v51, %v1824_v31  ;;  %v1826_v42 = vadd.f32 %v1825_v19, %v10933_v54  ;;  %3151 = vmatprep.subr.bf16.mxu0 %v9251_v59  ;;  %3257 = vmatpush2.bf16.msra.mxu1 %v9285_v30  ;;  %v9288_v59 = vld [vmem:[#allocation8 + $0x1d0] ss:$8 sps:$4 sm:$0xff]   ;;  %v9255_v31 = vld [vmem:[#allocation8 + $0x80] ss:$8 sps:$4 sm:$0xff]  }
 0x1bc   :  { %v11051_v18 = vpop.f32.mrf.mxu0  ;;  %3258 = vmatprep.subr.bf16.mxu1 %v9290_v37 }
 0x1bd   :  { %v11053_v44 = vpop.f32.mrf.mxu1  ;;  %v11055_v1 = vadd.f32 %v1938_v13, %v1826_v42  ;;  %v9293_v42 = vld [vmem:[#allocation8 + $0x1c4] ss:$8 sps:$4 sm:$0xff]  }
 0x1be   :  { %v11057_v39 = vpop.f32.mrf.mxu0  ;;  %3152 = vmatpush2.bf16.msra.mxu0 %v9249_v58 }
 0x1bf   :  { %v11059_v53 = vpop.f32.mrf.mxu1  ;;  %3153 = vmatprep.subr.bf16.mxu0 %v9254_v17  ;;  %3259 = vmatpush2.bf16.msra.mxu1 %v9288_v59  ;;  %v9291_v17 = vld [vmem:[#allocation8 + $0x1c0] ss:$8 sps:$4 sm:$0xff]  }
 0x1c0   :  { %v1833_v10 = vpop.f32.mrf.mxu0  ;;  %2510 = vmatmul.mubr.bf16.gmra.mxu0 %v10878_v61  ;;  %3260 = vmatprep.subr.bf16.mxu1 %v9293_v42 }
 0x1c1   :  { %v1946_v51 = vpop.f32.mrf.mxu1  ;;  %2623 = vmatmul.mubr.bf16.gmra.mxu1 %v10880_v26  ;;  %v1834_v19 = vadd.f32 %v1833_v10, %v10930_v47 }
 0x1c2   :  { %v1835_v13 = vpop.f32.mrf.mxu0  ;;  %3154 = vmatpush2.bf16.msra.mxu0 %v9252_v7  ;;  %v9296_v7 = vld [vmem:[#allocation8 + $0x1b4] ss:$8 sps:$4 sm:$0xff]  }
 0x1c3   :  { %v1948_v35 = vpop.f32.mrf.mxu1  ;;  %v11064_v27 = vadd.f32 %v1946_v51, %v1834_v19  ;;  %v1836_v58 = vadd.f32 %v1835_v13, %v10933_v54  ;;  %3155 = vmatprep.subr.bf16.mxu0 %v9257_v11  ;;  %v1768_v51 = vadd.f32 %v10943_v22, %v10930_v47  ;;  %3261 = vmatpush2.bf16.msra.mxu1 %v9291_v17  ;;  %v9294_v11 = vld [vmem:[#allocation8 + $0x1b0] ss:$8 sps:$4 sm:$0xff]  }
 0x1c4   :  { %v11067_v30 = vpop.f32.mrf.mxu0  ;;  %3262 = vmatprep.subr.bf16.mxu1 %v9296_v7  ;;  %v1770_v13 = vadd.f32 %v10949_v20, %v10933_v54 }
 0x1c5   :  { %12042 = vst [vmem:[#allocation31_spill] sm:$0xff] %v11064_v27  ;;  %v11069_v61 = vpop.f32.mrf.mxu1  ;;  %v11071_v26 = vadd.f32 %v1948_v35, %v1836_v58  ;;  %v1881_v34 = vadd.f32 %v10945_v4, %v1768_v51  ;;  %v1780_v51 = vadd.f32 %v10967_v55, %v10933_v54 }
 0x1c6   :  { %12043 = vst [vmem:[#allocation32_spill] sm:$0xff] %v11069_v61  ;;  %v11073_v10 = vpop.f32.mrf.mxu0  ;;  %3156 = vmatpush2.bf16.msra.mxu0 %v9255_v31  ;;  %v1883_v27 = vadd.f32 %v10951_v28, %v1770_v13 }
 0x1c7   :  { %12044 = vst [vmem:[#allocation33_spill] sm:$0xff] %v11071_v26  ;;  %12045 = vst [vmem:[#allocation34_spill] sm:$0xff] %v11073_v10  ;;  %v11075_v37 = vpop.f32.mrf.mxu1  ;;  %3263 = vmatpush2.bf16.msra.mxu1 %v9294_v11 }
 0x1c8   :  { %12046 = vst [vmem:[#allocation35_spill] sm:$0xff] %v11075_v37  ;;  %v1989_v59 = vpop.f32.mrf.mxu0  ;;  %v9297_v37 = vld [vmem:[#allocation8 + $0x1a0] ss:$8 sps:$4 sm:$0xff]   ;;  %3264 = vmatprep.subr.bf16.mxu1 %v9299_v29 }
 0x1c9   :  { %v2102_v19 = vpop.f32.mrf.mxu1  ;;  %v1990_v35 = vadd.f32 %v1989_v59, %v10940_v23  ;;  %v1778_v23 = vadd.f32 %v10961_v60, %v10930_v47 }
 0x1ca   :  { %v1991_v42 = vpop.f32.mrf.mxu0 }
 0x1cb   :  { %v2104_v58 = vpop.f32.mrf.mxu1  ;;  %v1992_v31 = vadd.f32 %v1991_v42, %v10947_v52  ;;  %v2103_v7 = vadd.f32 %v2102_v19, %v1990_v35  ;;  %3265 = vmatpush2.bf16.msra.mxu1 %v9297_v37  ;;  %v9300_v52 = vld [vmem:[#allocation8 + $0x190] ss:$8 sps:$4 sm:$0xff]   ;;  %v1891_v60 = vadd.f32 %v10963_v40, %v1778_v23  ;;  %v9303_v37 = vld [vmem:[#allocation8 + $0x180] ss:$8 sps:$4 sm:$0xff]  }
 0x1cc   :  { %v1993_v22 = vpop.f32.mrf.mxu0  ;;  %3266 = vmatprep.subr.bf16.mxu1 %v9302_v5  ;;  %v1893_v5 = vadd.f32 %v10969_v48, %v1780_v51 }
 0x1cd   :  { %v2106_v17 = vpop.f32.mrf.mxu1  ;;  %v1994_v26 = vadd.f32 %v1993_v22, %v1881_v34  ;;  %v2105_v59 = vadd.f32 %v2104_v58, %v1992_v31  ;;  %v2633_v28 = vmax.f32 %v2103_v7, 0.0  ;;  %v9305_v22 = vld [vmem:[#allocation8 + $0x184] ss:$8 sps:$4 sm:$0xff]  }
 0x1ce   :  { %v1995_v61 = vpop.f32.mrf.mxu0 }
 0x1cf   :  { %v2108_v20 = vpop.f32.mrf.mxu1  ;;  %v2107_v10 = vadd.f32 %v2106_v17, %v1994_v26  ;;  %v1996_v4 = vadd.f32 %v1995_v61, %v1883_v27  ;;  %v2634_v26 = vmax.f32 %v2105_v59, 0.0  ;;  %3267 = vmatpush2.bf16.msra.mxu1 %v9300_v52 }
 0x1d0   :  { %v1999_v11 = vpop.f32.mrf.mxu0  ;;  %3268 = vmatprep.subr.bf16.mxu1 %v9305_v22 }
 0x1d1   :  { %v2112_v29 = vpop.f32.mrf.mxu1  ;;  %v2637_v19 = vmax.f32 %v2107_v10, 0.0  ;;  %v2109_v34 = vadd.f32 %v2108_v20, %v1996_v4  ;;  %v2000_v13 = vadd.f32 %v1999_v11, %v10958_v57  ;;  %v1788_v57 = vadd.f32 %v10979_v16, %v10930_v47 }
 0x1d2   :  { %v2001_v35 = vpop.f32.mrf.mxu0 }
 0x1d3   :  { %v2114_v42 = vpop.f32.mrf.mxu1  ;;  %v2638_v27 = vmax.f32 %v2109_v34, 0.0  ;;  %v2002_v61 = vadd.f32 %v2001_v35, %v10965_v62  ;;  %v2113_v10 = vadd.f32 %v2112_v29, %v2000_v13  ;;  %v2697_v7 = vpack.c.bf16 %v2637_v19, %v2633_v28  ;;  %3269 = vmatpush2.bf16.msra.mxu1 %v9303_v37 }
 0x1d4   :  { %v2003_v55 = vpop.f32.mrf.mxu0  ;;  %v1790_v62 = vadd.f32 %v10985_v25, %v10933_v54  ;;  %v1901_v19 = vadd.f32 %v10981_v3, %v1788_v57 }
 0x1d5   :  { %v2116_v58 = vpop.f32.mrf.mxu1  ;;  %v2004_v31 = vadd.f32 %v2003_v55, %v1891_v60  ;;  %v2698_v17 = vpack.c.bf16 %v2638_v27, %v2634_v26  ;;  %v2115_v23 = vadd.f32 %v2114_v42, %v2002_v61  ;;  %v2641_v48 = vmax.f32 %v2113_v10, 0.0 }
 0x1d6   :  { %v2005_v20 = vpop.f32.mrf.mxu0  ;;  %v1903_v25 = vadd.f32 %v10987_v46, %v1790_v62 }
 0x1d7   :  { %v2118_v40 = vpop.f32.mrf.mxu1  ;;  %v2117_v59 = vadd.f32 %v2116_v58, %v2004_v31  ;;  %v2006_v4 = vadd.f32 %v2005_v20, %v1893_v5  ;;  %3157 = vmatprep.mubr.bf16.mxu0 %v2698_v17  ;;  %v2642_v13 = vmax.f32 %v2115_v23, 0.0 }
 0x1d8   :  { %v2009_v52 = vpop.f32.mrf.mxu0  ;;  %3158 = vmatmul.mubr.bf16.vlgmr.msra.gmra.mxu0 %v2697_v7 }
 0x1d9   :  { %v2122_v11 = vpop.f32.mrf.mxu1  ;;  %v2645_v51 = vmax.f32 %v2117_v59, 0.0  ;;  %v2119_v29 = vadd.f32 %v2118_v40, %v2006_v4  ;;  %v2010_v34 = vadd.f32 %v2009_v52, %v10976_v0  ;;  %v1798_v0 = vadd.f32 %v10997_v33, %v10930_v47 }
 0x1da   :  { %v2011_v16 = vpop.f32.mrf.mxu0 }
 0x1db   :  { %v2124_v28 = vpop.f32.mrf.mxu1  ;;  %v2646_v35 = vmax.f32 %v2119_v29, 0.0  ;;  %v2012_v42 = vadd.f32 %v2011_v16, %v10983_v2  ;;  %v2123_v26 = vadd.f32 %v2122_v11, %v2010_v34  ;;  %v2701_v37 = vpack.c.bf16 %v2645_v51, %v2641_v48 }
 0x1dc   :  { %v2013_v22 = vpop.f32.mrf.mxu0  ;;  %v1800_v2 = vadd.f32 %v11003_v50, %v10933_v54  ;;  %v1911_v23 = vadd.f32 %v10999_v45, %v1798_v0 }
 0x1dd   :  { %v2126_v60 = vpop.f32.mrf.mxu1  ;;  %v2014_v27 = vadd.f32 %v2013_v22, %v1901_v19  ;;  %v2702_v61 = vpack.c.bf16 %v2646_v35, %v2642_v13  ;;  %v2125_v5 = vadd.f32 %v2124_v28, %v2012_v42  ;;  %v2649_v46 = vmax.f32 %v2123_v26, 0.0 }
 0x1de   :  { %v2015_v55 = vpop.f32.mrf.mxu0  ;;  %v1913_v48 = vadd.f32 %v11005_v12, %v1800_v2  ;;  %v1808_v28 = vadd.f32 %v11015_v14, %v10930_v47  ;;  %v1818_v2 = vadd.f32 %v11033_v32, %v10930_v47 }
 0x1df   :  { %v2128_v58 = vpop.f32.mrf.mxu1  ;;  %v2127_v10 = vadd.f32 %v2126_v60, %v2014_v27  ;;  %v2016_v3 = vadd.f32 %v2015_v55, %v1903_v25  ;;  %3167 = vmatprep.mubr.bf16.mxu0 %v2702_v61  ;;  %v2650_v59 = vmax.f32 %v2125_v5, 0.0 }
 0x1e0   :  { %v2019_v31 = vpop.f32.mrf.mxu0  ;;  %3168 = vmatmul.mubr.bf16.gmra.mxu0 %v2701_v37  ;;  %v1921_v26 = vadd.f32 %v11017_v15, %v1808_v28 }
 0x1e1   :  { %v2132_v17 = vpop.f32.mrf.mxu1  ;;  %v2653_v57 = vmax.f32 %v2127_v10, 0.0  ;;  %v2129_v7 = vadd.f32 %v2128_v58, %v2016_v3  ;;  %v2020_v62 = vadd.f32 %v2019_v31, %v10994_v41  ;;  %v1810_v41 = vadd.f32 %v11021_v6, %v10933_v54 }
 0x1e2   :  { %v2021_v20 = vpop.f32.mrf.mxu0 }
 0x1e3   :  { %v2134_v40 = vpop.f32.mrf.mxu1  ;;  %v2654_v4 = vmax.f32 %v2129_v7, 0.0  ;;  %v2022_v33 = vadd.f32 %v2021_v20, %v11001_v43  ;;  %v2705_v50 = vpack.c.bf16 %v2653_v57, %v2649_v46  ;;  %v2133_v35 = vadd.f32 %v2132_v17, %v2020_v62 }
 0x1e4   :  { %v2023_v52 = vpop.f32.mrf.mxu0  ;;  %v1923_v5 = vadd.f32 %v11023_v36, %v1810_v41 }
 0x1e5   :  { %v2136_v11 = vpop.f32.mrf.mxu1  ;;  %v2024_v51 = vadd.f32 %v2023_v52, %v1911_v23  ;;  %v2706_v29 = vpack.c.bf16 %v2654_v4, %v2650_v59  ;;  %v2135_v19 = vadd.f32 %v2134_v40, %v2022_v33  ;;  %v2657_v37 = vmax.f32 %v2133_v35, 0.0 }
 0x1e6   :  { %v2025_v34 = vpop.f32.mrf.mxu0  ;;  %v1931_v4 = vadd.f32 %v11035_v24, %v1818_v2 }
 0x1e7   :  { %v2138_v16 = vpop.f32.mrf.mxu1  ;;  %v2137_v45 = vadd.f32 %v2136_v11, %v2024_v51  ;;  %v2026_v13 = vadd.f32 %v2025_v34, %v1913_v48  ;;  %3177 = vmatprep.mubr.bf16.mxu0 %v2706_v29  ;;  %v2658_v27 = vmax.f32 %v2135_v19, 0.0  ;;  %v1828_v19 = vadd.f32 %v11051_v18, %v10930_v47 }
 0x1e8   :  { %v2029_v43 = vpop.f32.mrf.mxu0  ;;  %3178 = vmatmul.mubr.bf16.gmra.mxu0 %v2705_v50 }
 0x1e9   :  { %v2142_v42 = vpop.f32.mrf.mxu1  ;;  %v2139_v12 = vadd.f32 %v2138_v16, %v2026_v13  ;;  %v2661_v22 = vmax.f32 %v2137_v45, 0.0  ;;  %v2030_v55 = vadd.f32 %v2029_v43, %v11012_v49  ;;  %v1820_v49 = vadd.f32 %v11039_v8, %v10933_v54 }
 0x1ea   :  { %v2031_v60 = vpop.f32.mrf.mxu0 }
 0x1eb   :  { %v2144_v25 = vpop.f32.mrf.mxu1  ;;  %v2662_v61 = vmax.f32 %v2139_v12, 0.0  ;;  %v2032_v14 = vadd.f32 %v2031_v60, %v11019_v21  ;;  %v2709_v6 = vpack.c.bf16 %v2661_v22, %v2657_v37  ;;  %v2143_v21 = vadd.f32 %v2142_v42, %v2030_v55 }
 0x1ec   :  { %v2033_v58 = vpop.f32.mrf.mxu0  ;;  %v1933_v29 = vadd.f32 %v11041_v9, %v1820_v49  ;;  %v1941_v22 = vadd.f32 %v11053_v44, %v1828_v19 }
 0x1ed   :  { %v2146_v0 = vpop.f32.mrf.mxu1  ;;  %v2034_v10 = vadd.f32 %v2033_v58, %v1921_v26  ;;  %v2710_v3 = vpack.c.bf16 %v2662_v61, %v2658_v27  ;;  %v2145_v15 = vadd.f32 %v2144_v25, %v2032_v14  ;;  %v2665_v52 = vmax.f32 %v2143_v21, 0.0 }
 0x1ee   :  { %v2035_v31 = vpop.f32.mrf.mxu0 }
 0x1ef   :  { %v2148_v17 = vpop.f32.mrf.mxu1  ;;  %v2147_v46 = vadd.f32 %v2146_v0, %v2034_v10  ;;  %v2036_v57 = vadd.f32 %v2035_v31, %v1923_v5  ;;  %3187 = vmatprep.mubr.bf16.mxu0 %v2710_v3  ;;  %v2666_v33 = vmax.f32 %v2145_v15, 0.0  ;;  %v1838_v10 = vadd.f32 %v11067_v30, %v10930_v47  ;;  %v12048_v15 = vld [vmem:[#allocation40_spill] sm:$0xff] }
 0x1f0   :  { %v2039_v7 = vpop.f32.mrf.mxu0  ;;  %3188 = vmatmul.mubr.bf16.gmra.mxu0 %v2709_v6  ;;  %v11141_v47 = vsub.s32 3, %v12048_v15  ;;  %v12051_v30 = vld [vmem:[#allocation32_spill] sm:$0xff] }
 0x1f1   :  { %v2152_v20 = vpop.f32.mrf.mxu1  ;;  %v2149_v36 = vadd.f32 %v2148_v17, %v2036_v57  ;;  %v2669_v40 = vmax.f32 %v2147_v46, 0.0  ;;  %v2040_v11 = vadd.f32 %v2039_v7, %v11030_v63  ;;  %v1830_v63 = vadd.f32 %v11057_v39, %v10933_v54 }
 0x1f2   :  { %v2041_v23 = vpop.f32.mrf.mxu0  ;;  %v11138_v46 = vsub.s32 2, %v12048_v15  ;;  %12050 = vst [vmem:[#allocation37_spill] sm:$0xff] %v11141_v47 }
 0x1f3   :  { %v2154_v59 = vpop.f32.mrf.mxu1  ;;  %v2670_v62 = vmax.f32 %v2149_v36, 0.0  ;;  %v2042_v32 = vadd.f32 %v2041_v23, %v11037_v56  ;;  %v2713_v8 = vpack.c.bf16 %v2669_v40, %v2665_v52  ;;  %v2153_v56 = vadd.f32 %v2152_v20, %v2040_v11  ;;  %v12052_v40 = vld [vmem:[#allocation33_spill] sm:$0xff] }
 0x1f4   :  { %v2043_v48 = vpop.f32.mrf.mxu0  ;;  %v1943_v37 = vadd.f32 %v11059_v53, %v1830_v63  ;;  %12049 = vst [vmem:[#allocation36_spill] sm:$0xff] %v11138_v46  ;;  %v1951_v20 = vadd.f32 %v12051_v30, %v1838_v10 }
 0x1f5   :  { %v2156_v51 = vpop.f32.mrf.mxu1  ;;  %v2044_v50 = vadd.f32 %v2043_v48, %v1931_v4  ;;  %v2714_v34 = vpack.c.bf16 %v2670_v62, %v2666_v33  ;;  %v2155_v24 = vadd.f32 %v2154_v59, %v2042_v32  ;;  %v2673_v26 = vmax.f32 %v2153_v56, 0.0  ;;  %v12053_v4 = vld [vmem:[#allocation31_spill] sm:$0xff] }
 0x1f6   :  { %v2045_v16 = vpop.f32.mrf.mxu0  ;;  %v12054_v32 = vld [vmem:[#allocation35_spill] sm:$0xff] }
 0x1f7   :  { %v2158_v28 = vpop.f32.mrf.mxu1  ;;  %v2157_v45 = vadd.f32 %v2156_v51, %v2044_v50  ;;  %v2046_v13 = vadd.f32 %v2045_v16, %v1933_v29  ;;  %3197 = vmatprep.mubr.bf16.mxu0 %v2714_v34  ;;  %v2674_v60 = vmax.f32 %v2155_v24, 0.0  ;;  %v10274_v51 = vld [vmem:[%s11984_s3] sm:$0xf] }
 0x1f8   :  { %v2049_v35 = vpop.f32.mrf.mxu0  ;;  %3198 = vmatmul.mubr.bf16.gmra.mxu0 %v2713_v8  ;;  %v11151_v29 = vrot.slane %v10274_v51, %v11138_v46  ;;  %v11154_v24 = vrot.slane %v10274_v51, %v11141_v47 }
 0x1f9   :  { %v2162_v43 = vpop.f32.mrf.mxu1  ;;  %v2159_v9 = vadd.f32 %v2158_v28, %v2046_v13  ;;  %v2677_v42 = vmax.f32 %v2157_v45, 0.0  ;;  %v2050_v27 = vadd.f32 %v2049_v35, %v11048_v38  ;;  %v12047_v38 = vld [vmem:[#allocation34_spill] sm:$0xff] }
 0x1fa   :  { %v2051_v41 = vpop.f32.mrf.mxu0  ;;  %v1840_v2 = vadd.f32 %v12047_v38, %v10933_v54 }
 0x1fb   :  { %v2164_v12 = vpop.f32.mrf.mxu1  ;;  %v2678_v25 = vmax.f32 %v2159_v9, 0.0  ;;  %v2052_v18 = vadd.f32 %v2051_v41, %v11055_v1  ;;  %v2717_v39 = vpack.c.bf16 %v2677_v42, %v2673_v26  ;;  %v2163_v1 = vadd.f32 %v2162_v43, %v2050_v27 }
 0x1fc   :  { %v2053_v61 = vpop.f32.mrf.mxu0  ;;  %v1953_v52 = vadd.f32 %v12054_v32, %v1840_v2 }
 0x1fd   :  { %v2166_v14 = vpop.f32.mrf.mxu1  ;;  %v2054_v55 = vadd.f32 %v2053_v61, %v1941_v22  ;;  %v2718_v58 = vpack.c.bf16 %v2678_v25, %v2674_v60  ;;  %v2165_v44 = vadd.f32 %v2164_v12, %v2052_v18  ;;  %v2681_v59 = vmax.f32 %v2163_v1, 0.0 }
 0x1fe   :  { %v2055_v0 = vpop.f32.mrf.mxu0 }
 0x1ff   :  { %v2168_v5 = vpop.f32.mrf.mxu1  ;;  %v2167_v3 = vadd.f32 %v2166_v14, %v2054_v55  ;;  %v2056_v6 = vadd.f32 %v2055_v0, %v1943_v37  ;;  %3207 = vmatprep.mubr.bf16.mxu0 %v2718_v58  ;;  %v2682_v49 = vmax.f32 %v2165_v44, 0.0 }
 0x200   :  { %v2059_v31 = vpop.f32.mrf.mxu0  ;;  %3208 = vmatmul.mubr.bf16.gmra.mxu0 %v2717_v39 }
 0x201   :  { %v2172_v17 = vpop.f32.mrf.mxu1  ;;  %v2169_v53 = vadd.f32 %v2168_v5, %v2056_v6  ;;  %v2685_v57 = vmax.f32 %v2167_v3, 0.0  ;;  %v2060_v33 = vadd.f32 %v2059_v31, %v12053_v4 }
 0x202   :  { %v2061_v21 = vpop.f32.mrf.mxu0 }
 0x203   :  { %v2174_v7 = vpop.f32.mrf.mxu1  ;;  %v2686_v36 = vmax.f32 %v2169_v53, 0.0  ;;  %v2062_v23 = vadd.f32 %v2061_v21, %v12052_v40  ;;  %v2721_v50 = vpack.c.bf16 %v2685_v57, %v2681_v59  ;;  %v2173_v45 = vadd.f32 %v2172_v17, %v2060_v33 }
 0x204   :  { %v2063_v54 = vpop.f32.mrf.mxu0 }
 0x205   :  { %v2176_v62 = vpop.f32.mrf.mxu1  ;;  %v2064_v11 = vadd.f32 %v2063_v54, %v1951_v20  ;;  %v2722_v48 = vpack.c.bf16 %v2686_v36, %v2682_v49  ;;  %v2175_v16 = vadd.f32 %v2174_v7, %v2062_v23  ;;  %v2689_v25 = vmax.f32 %v2173_v45, 0.0 }
 0x206   :  { %v2065_v34 = vpop.f32.mrf.mxu0 }
 0x207   :  { %v2178_v8 = vpop.f32.mrf.mxu1  ;;  %v2177_v28 = vadd.f32 %v2176_v62, %v2064_v11  ;;  %v2066_v19 = vadd.f32 %v2065_v34, %v1953_v52  ;;  %3217 = vmatprep.mubr.bf16.mxu0 %v2722_v48  ;;  %v2690_v41 = vmax.f32 %v2175_v16, 0.0 }
 0x208   :  { %v2215_v13 = vpop.f32.mrf.mxu0  ;;  %3218 = vmatmul.mubr.bf16.gmra.mxu0 %v2721_v50 }
 0x209   :  { %v2328_v56 = vpop.f32.mrf.mxu1  ;;  %v2179_v35 = vadd.f32 %v2178_v8, %v2066_v19  ;;  %v2216_v43 = vadd.f32 %v2215_v13, %v11151_v29  ;;  %v2693_v63 = vmax.f32 %v2177_v28, 0.0 }
 0x20a   :  { %v2217_v9 = vpop.f32.mrf.mxu0 }
 0x20b   :  { %v2330_v42 = vpop.f32.mrf.mxu1  ;;  %v2694_v12 = vmax.f32 %v2179_v35, 0.0  ;;  %v11157_v22 = vadd.f32 %v2328_v56, %v2216_v43  ;;  %v2218_v60 = vadd.f32 %v2217_v9, %v11154_v24  ;;  %v2725_v14 = vpack.c.bf16 %v2693_v63, %v2689_v25 }
 0x20c   :  { %v11160_v18 = vpop.f32.mrf.mxu0 }
 0x20d   :  { %v11162_v26 = vpop.f32.mrf.mxu1  ;;  %v11164_v27 = vadd.f32 %v2330_v42, %v2218_v60  ;;  %v2726_v61 = vpack.c.bf16 %v2694_v12, %v2690_v41 }
 0x20e   :  { %v11166_v37 = vpop.f32.mrf.mxu0 }
 0x20f   :  { %v11168_v55 = vpop.f32.mrf.mxu1  ;;  %3227 = vmatprep.mubr.bf16.mxu0 %v2726_v61 }
 0x210   :  { %v2225_v58 = vpop.f32.mrf.mxu0  ;;  %3228 = vmatmul.mubr.bf16.gmra.mxu0 %v2725_v14 }
 0x211   :  { %v2338_v39 = vpop.f32.mrf.mxu1  ;;  %v2226_v0 = vadd.f32 %v2225_v58, %v11151_v29 }
 0x212   :  { %v2227_v5 = vpop.f32.mrf.mxu0 }
 0x213   :  { %v2340_v10 = vpop.f32.mrf.mxu1  ;;  %v11171_v44 = vadd.f32 %v2338_v39, %v2226_v0  ;;  %v2228_v3 = vadd.f32 %v2227_v5, %v11154_v24 }
 0x214   :  { %v11174_v6 = vpop.f32.mrf.mxu0 }
 0x215   :  { %v11176_v1 = vpop.f32.mrf.mxu1  ;;  %v11178_v31 = vadd.f32 %v2340_v10, %v2228_v3 }
 0x216   :  { %v11180_v17 = vpop.f32.mrf.mxu0 }
 0x217   :  { %v11182_v38 = vpop.f32.mrf.mxu1 }
 0x218   :  { %v2235_v2 = vpop.f32.mrf.mxu0 }
 0x219   :  { %v2348_v53 = vpop.f32.mrf.mxu1  ;;  %v2236_v57 = vadd.f32 %v2235_v2, %v11151_v29 }
 0x21a   :  { %v2237_v21 = vpop.f32.mrf.mxu0 }
 0x21b   :  { %v2350_v7 = vpop.f32.mrf.mxu1  ;;  %v11185_v30 = vadd.f32 %v2348_v53, %v2236_v57  ;;  %v2238_v20 = vadd.f32 %v2237_v21, %v11154_v24 }
 0x21c   :  { %v11188_v49 = vpop.f32.mrf.mxu0 }
 0x21d   :  { %v11190_v36 = vpop.f32.mrf.mxu1  ;;  %v11192_v40 = vadd.f32 %v2350_v7, %v2238_v20 }
 0x21e   :  { %v11194_v23 = vpop.f32.mrf.mxu0 }
 0x21f   :  { %v11196_v59 = vpop.f32.mrf.mxu1 }
 0x220   :  { %v2245_v4 = vpop.f32.mrf.mxu0 }
 0x221   :  { %v2358_v33 = vpop.f32.mrf.mxu1  ;;  %v2246_v54 = vadd.f32 %v2245_v4, %v11151_v29 }
 0x222   :  { %v2247_v62 = vpop.f32.mrf.mxu0 }
 0x223   :  { %v2360_v32 = vpop.f32.mrf.mxu1  ;;  %v11199_v52 = vadd.f32 %v2358_v33, %v2246_v54  ;;  %v2248_v11 = vadd.f32 %v2247_v62, %v11154_v24 }
 0x224   :  { %v11202_v48 = vpop.f32.mrf.mxu0 }
 0x225   :  { %v11204_v51 = vpop.f32.mrf.mxu1  ;;  %v11206_v50 = vadd.f32 %v2360_v32, %v2248_v11 }
 0x226   :  { %v11208_v34 = vpop.f32.mrf.mxu0 }
 0x227   :  { %v11210_v8 = vpop.f32.mrf.mxu1 }
 0x228   :  { %v2255_v16 = vpop.f32.mrf.mxu0 }
 0x229   :  { %v2368_v28 = vpop.f32.mrf.mxu1  ;;  %v2256_v19 = vadd.f32 %v2255_v16, %v11151_v29 }
 0x22a   :  { %v2257_v45 = vpop.f32.mrf.mxu0 }
 0x22b   :  { %v2370_v13 = vpop.f32.mrf.mxu1  ;;  %v11213_v56 = vadd.f32 %v2368_v28, %v2256_v19  ;;  %v2258_v35 = vadd.f32 %v2257_v45, %v11154_v24 }
 0x22c   :  { %v11216_v43 = vpop.f32.mrf.mxu0 }
 0x22d   :  { %v11218_v63 = vpop.f32.mrf.mxu1  ;;  %v11220_v9 = vadd.f32 %v2370_v13, %v2258_v35 }
 0x22e   :  { %v11222_v42 = vpop.f32.mrf.mxu0 }
 0x22f   :  { %v11224_v41 = vpop.f32.mrf.mxu1 }
 0x230   :  { %v2265_v12 = vpop.f32.mrf.mxu0 }
 0x231   :  { %v2378_v60 = vpop.f32.mrf.mxu1  ;;  %v2266_v25 = vadd.f32 %v2265_v12, %v11151_v29 }
 0x232   :  { %v2267_v61 = vpop.f32.mrf.mxu0 }
 0x233   :  { %v2380_v14 = vpop.f32.mrf.mxu1  ;;  %v11227_v58 = vadd.f32 %v2378_v60, %v2266_v25  ;;  %v2268_v39 = vadd.f32 %v2267_v61, %v11154_v24 }
 0x234   :  { %v11230_v0 = vpop.f32.mrf.mxu0 }
 0x235   :  { %v11232_v5 = vpop.f32.mrf.mxu1  ;;  %v11234_v10 = vadd.f32 %v2380_v14, %v2268_v39 }
 0x236   :  { %v11236_v3 = vpop.f32.mrf.mxu0 }
 0x237   :  { %v11238_v2 = vpop.f32.mrf.mxu1 }
 0x238   :  { %v2275_v53 = vpop.f32.mrf.mxu0 }
 0x239   :  { %v2388_v57 = vpop.f32.mrf.mxu1  ;;  %v2276_v21 = vadd.f32 %v2275_v53, %v11151_v29 }
 0x23a   :  { %v2277_v7 = vpop.f32.mrf.mxu0 }
 0x23b   :  { %v2390_v20 = vpop.f32.mrf.mxu1  ;;  %v11241_v4 = vadd.f32 %v2388_v57, %v2276_v21  ;;  %v2278_v33 = vadd.f32 %v2277_v7, %v11154_v24  ;;  %v2220_v57 = vadd.f32 %v11160_v18, %v11151_v29 }
 0x23c   :  { %v11244_v54 = vpop.f32.mrf.mxu0 }
 0x23d   :  { %v11246_v62 = vpop.f32.mrf.mxu1  ;;  %v11248_v32 = vadd.f32 %v2390_v20, %v2278_v33  ;;  %v2222_v20 = vadd.f32 %v11166_v37, %v11154_v24 }
 0x23e   :  { %v11250_v11 = vpop.f32.mrf.mxu0 }
 0x23f   :  { %v11252_v16 = vpop.f32.mrf.mxu1  ;;  %v2335_v15 = vadd.f32 %v11168_v55, %v2222_v20 }
 0x240   :  { %v2285_v28 = vpop.f32.mrf.mxu0 }
 0x241   :  { %v2398_v19 = vpop.f32.mrf.mxu1  ;;  %v2286_v45 = vadd.f32 %v2285_v28, %v11151_v29 }
 0x242   :  { %v2287_v13 = vpop.f32.mrf.mxu0 }
 0x243   :  { %v2400_v35 = vpop.f32.mrf.mxu1  ;;  %v11255_v12 = vadd.f32 %v2398_v19, %v2286_v45  ;;  %v2288_v60 = vadd.f32 %v2287_v13, %v11154_v24  ;;  %v2333_v19 = vadd.f32 %v11162_v26, %v2220_v57 }
 0x244   :  { %v11258_v25 = vpop.f32.mrf.mxu0 }
 0x245   :  { %12055 = vst [vmem:[#allocation38_spill] sm:$0xff] %v11255_v12  ;;  %v11260_v61 = vpop.f32.mrf.mxu1  ;;  %v11262_v14 = vadd.f32 %v2400_v35, %v2288_v60 }
 0x246   :  { %12056 = vst [vmem:[#allocation39_spill] sm:$0xff] %v11260_v61  ;;  %v11264_v39 = vpop.f32.mrf.mxu0 }
 0x247   :  { %12057 = vst [vmem:[#allocation34_spill] sm:$0xff] %v11262_v14  ;;  %12058 = vst [vmem:[#allocation32_spill] sm:$0xff] %v11264_v39  ;;  %v11266_v53 = vpop.f32.mrf.mxu1 }
 0x248   :  { %12059 = vst [vmem:[#allocation33_spill] sm:$0xff] %v11266_v53  ;;  %v2441_v21 = vpop.f32.mrf.mxu0  ;;  %v2230_v53 = vadd.f32 %v11174_v6, %v11151_v29 }
 0x249   :  { %v2554_v7 = vpop.f32.mrf.mxu1  ;;  %v2442_v13 = vadd.f32 %v2441_v21, %v11157_v22 }
 0x24a   :  { %v2443_v33 = vpop.f32.mrf.mxu0  ;;  %v2343_v55 = vadd.f32 %v11176_v1, %v2230_v53 }
 0x24b   :  { %v2556_v28 = vpop.f32.mrf.mxu1  ;;  %v2444_v45 = vadd.f32 %v2443_v33, %v11164_v27  ;;  %v2555_v61 = vadd.f32 %v2554_v7, %v2442_v13  ;;  %v2232_v27 = vadd.f32 %v11180_v17, %v11154_v24 }
 0x24c   :  { %v2445_v35 = vpop.f32.mrf.mxu0 }
 0x24d   :  { %v2558_v60 = vpop.f32.mrf.mxu1  ;;  %v2446_v46 = vadd.f32 %v2445_v35, %v2333_v19  ;;  %v2557_v12 = vadd.f32 %v2556_v28, %v2444_v45  ;;  %v2635_v6 = vmax.f32 %v2555_v61, 0.0  ;;  %v2345_v7 = vadd.f32 %v11182_v38, %v2232_v27  ;;  %v9308_v61 = vld [vmem:[#allocation11 + $0x74] ss:$8 sps:$4 sm:$0xff]  }
 0x24e   :  { %v2447_v47 = vpop.f32.mrf.mxu0  ;;  %v2242_v38 = vadd.f32 %v11194_v23, %v11154_v24  ;;  %3603 = vmatprep.subr.bf16.mxu0 %v9308_v61 }
 0x24f   :  { %v2560_v18 = vpop.f32.mrf.mxu1  ;;  %v2559_v37 = vadd.f32 %v2558_v60, %v2446_v46  ;;  %v2448_v14 = vadd.f32 %v2447_v47, %v2335_v15  ;;  %v2636_v20 = vmax.f32 %v2557_v12, 0.0  ;;  %v2240_v60 = vadd.f32 %v11188_v49, %v11151_v29  ;;  %v9309_v49 = vld [vmem:[#allocation11 + $0x60] ss:$8 sps:$4 sm:$0xff]  }
 0x250   :  { %v2451_v39 = vpop.f32.mrf.mxu0 }
 0x251   :  { %v2564_v26 = vpop.f32.mrf.mxu1  ;;  %v2561_v22 = vadd.f32 %v2560_v18, %v2448_v14  ;;  %v2639_v57 = vmax.f32 %v2559_v37, 0.0  ;;  %v2452_v46 = vadd.f32 %v2451_v39, %v11171_v44  ;;  %v9311_v37 = vld [vmem:[#allocation11 + $0x64] ss:$8 sps:$4 sm:$0xff]  }
 0x252   :  { %v2453_v21 = vpop.f32.mrf.mxu0 }
 0x253   :  { %v2566_v33 = vpop.f32.mrf.mxu1  ;;  %v2640_v19 = vmax.f32 %v2561_v22, 0.0  ;;  %v2454_v35 = vadd.f32 %v2453_v21, %v11178_v31  ;;  %v2699_v17 = vpack.c.bf16 %v2639_v57, %v2635_v6  ;;  %v9306_v31 = vld [vmem:[#allocation11 + $0x70] ss:$8 sps:$4 sm:$0xff]   ;;  %v2565_v18 = vadd.f32 %v2564_v26, %v2452_v46 }
 0x254   :  { %v2455_v15 = vpop.f32.mrf.mxu0  ;;  %3604 = vmatpush1.bf16.msra.mxu0 %v9306_v31 }
 0x255   :  { %v2568_v47 = vpop.f32.mrf.mxu1  ;;  %v2456_v28 = vadd.f32 %v2455_v15, %v2343_v55  ;;  %v2700_v45 = vpack.c.bf16 %v2640_v19, %v2636_v20  ;;  %v2567_v1 = vadd.f32 %v2566_v33, %v2454_v35  ;;  %v2353_v33 = vadd.f32 %v11190_v36, %v2240_v60  ;;  %3605 = vmatprep.subr.bf16.mxu0 %v9311_v37  ;;  %v9314_v19 = vld [vmem:[#allocation11 + $0x54] ss:$8 sps:$4 sm:$0xff]  }
 0x256   :  { %v2457_v14 = vpop.f32.mrf.mxu0  ;;  %v2643_v35 = vmax.f32 %v2565_v18, 0.0  ;;  %v2355_v15 = vadd.f32 %v11196_v59, %v2242_v38  ;;  %v2252_v59 = vadd.f32 %v11208_v34, %v11154_v24 }
 0x257   :  { %v2570_v13 = vpop.f32.mrf.mxu1  ;;  %v2569_v12 = vadd.f32 %v2568_v47, %v2456_v28  ;;  %v2458_v53 = vadd.f32 %v2457_v14, %v2345_v7  ;;  %3270 = vmatprep.mubr.bf16.mxu1 %v2700_v45  ;;  %v2644_v55 = vmax.f32 %v2567_v1, 0.0  ;;  %v2250_v28 = vadd.f32 %v11202_v48, %v11151_v29  ;;  %v9312_v14 = vld [vmem:[#allocation11 + $0x50] ss:$8 sps:$4 sm:$0xff]  }
 0x258   :  { %v2461_v44 = vpop.f32.mrf.mxu0  ;;  %3271 = vmatmul.mubr.bf16.vlgmr.msra.gmra.mxu1 %v2699_v17  ;;  %3606 = vmatpush1.bf16.msra.mxu0 %v9309_v49  ;;  %v2365_v34 = vadd.f32 %v11210_v8, %v2252_v59  ;;  %v2262_v8 = vadd.f32 %v11222_v42, %v11154_v24 }
 0x259   :  { %v2574_v39 = vpop.f32.mrf.mxu1  ;;  %v2571_v27 = vadd.f32 %v2570_v13, %v2458_v53  ;;  %v2647_v22 = vmax.f32 %v2569_v12, 0.0  ;;  %v2462_v6 = vadd.f32 %v2461_v44, %v11185_v30  ;;  %3607 = vmatprep.subr.bf16.mxu0 %v9314_v19  ;;  %v9317_v30 = vld [vmem:[#allocation11 + $0x44] ss:$8 sps:$4 sm:$0xff]   ;;  %v9315_v44 = vld [vmem:[#allocation11 + $0x40] ss:$8 sps:$4 sm:$0xff]   ;;  %v2363_v37 = vadd.f32 %v11204_v51, %v2250_v28 }
 0x25a   :  { %v2463_v57 = vpop.f32.mrf.mxu0  ;;  %v2375_v42 = vadd.f32 %v11224_v41, %v2262_v8  ;;  %v2272_v41 = vadd.f32 %v11236_v3, %v11154_v24  ;;  %v9330_v8 = vld [vmem:[#allocation11 + $0xf0] ss:$8 sps:$4 sm:$0xff]  }
 0x25b   :  { %v2576_v21 = vpop.f32.mrf.mxu1  ;;  %v2648_v20 = vmax.f32 %v2571_v27, 0.0  ;;  %v2464_v26 = vadd.f32 %v2463_v57, %v11192_v40  ;;  %v2703_v45 = vpack.c.bf16 %v2647_v22, %v2643_v35  ;;  %v2575_v1 = vadd.f32 %v2574_v39, %v2462_v6  ;;  %v9320_v39 = vld [vmem:[#allocation11 + $0x34] ss:$8 sps:$4 sm:$0xff]   ;;  %v9318_v6 = vld [vmem:[#allocation11 + $0x30] ss:$8 sps:$4 sm:$0xff]  }
 0x25c   :  { %v2465_v46 = vpop.f32.mrf.mxu0  ;;  %3608 = vmatpush1.bf16.msra.mxu0 %v9312_v14  ;;  %v2385_v3 = vadd.f32 %v11238_v2, %v2272_v41  ;;  %v2282_v2 = vadd.f32 %v11250_v11, %v11154_v24 }
 0x25d   :  { %v2578_v23 = vpop.f32.mrf.mxu1  ;;  %v2466_v47 = vadd.f32 %v2465_v46, %v2353_v33  ;;  %v2704_v7 = vpack.c.bf16 %v2648_v20, %v2644_v55  ;;  %v2577_v40 = vadd.f32 %v2576_v21, %v2464_v26  ;;  %3609 = vmatprep.subr.bf16.mxu0 %v9317_v30  ;;  %v2651_v57 = vmax.f32 %v2575_v1, 0.0  ;;  %v9326_v30 = vld [vmem:[#allocation11 + $0x14] ss:$8 sps:$4 sm:$0xff]  }
 0x25e   :  { %v2467_v36 = vpop.f32.mrf.mxu0  ;;  %v2260_v26 = vadd.f32 %v11216_v43, %v11151_v29  ;;  %v2395_v11 = vadd.f32 %v11252_v16, %v2282_v2  ;;  %v12060_v16 = vld [vmem:[#allocation32_spill] sm:$0xff] }
 0x25f   :  { %v2580_v17 = vpop.f32.mrf.mxu1  ;;  %v2579_v13 = vadd.f32 %v2578_v23, %v2466_v47  ;;  %v2468_v60 = vadd.f32 %v2467_v36, %v2355_v15  ;;  %3280 = vmatprep.mubr.bf16.mxu1 %v2704_v7  ;;  %v2652_v38 = vmax.f32 %v2577_v40, 0.0  ;;  %v2292_v41 = vadd.f32 %v12060_v16, %v11154_v24  ;;  %v12064_v24 = vld [vmem:[#allocation33_spill] sm:$0xff] }
 0x260   :  { %v2471_v12 = vpop.f32.mrf.mxu0  ;;  %3281 = vmatmul.mubr.bf16.gmra.mxu1 %v2703_v45  ;;  %3610 = vmatpush1.bf16.msra.mxu0 %v9315_v44  ;;  %v2373_v14 = vadd.f32 %v11218_v63, %v2260_v26 }
 0x261   :  { %v2584_v53 = vpop.f32.mrf.mxu1  ;;  %v2581_v31 = vadd.f32 %v2580_v17, %v2468_v60  ;;  %v2655_v48 = vmax.f32 %v2579_v13, 0.0  ;;  %v2472_v21 = vadd.f32 %v2471_v12, %v11199_v52  ;;  %3611 = vmatprep.subr.bf16.mxu0 %v9320_v39  ;;  %v9323_v52 = vld [vmem:[#allocation11 + $0x24] ss:$8 sps:$4 sm:$0xff]   ;;  %v9321_v17 = vld [vmem:[#allocation11 + $0x20] ss:$8 sps:$4 sm:$0xff]  }
 0x262   :  { %v2473_v61 = vpop.f32.mrf.mxu0 }
 0x263   :  { %v2586_v18 = vpop.f32.mrf.mxu1  ;;  %v2656_v27 = vmax.f32 %v2581_v31, 0.0  ;;  %v2474_v22 = vadd.f32 %v2473_v61, %v11206_v50  ;;  %v2707_v19 = vpack.c.bf16 %v2655_v48, %v2651_v57  ;;  %v2585_v15 = vadd.f32 %v2584_v53, %v2472_v21 }
 0x264   :  { %v2475_v49 = vpop.f32.mrf.mxu0  ;;  %3612 = vmatpush1.bf16.msra.mxu0 %v9318_v6  ;;  %v2270_v61 = vadd.f32 %v11230_v0, %v11151_v29 }
 0x265   :  { %v2588_v33 = vpop.f32.mrf.mxu1  ;;  %v2476_v55 = vadd.f32 %v2475_v49, %v2363_v37  ;;  %v2708_v20 = vpack.c.bf16 %v2656_v27, %v2652_v38  ;;  %v2587_v50 = vadd.f32 %v2586_v18, %v2474_v22  ;;  %3613 = vmatprep.subr.bf16.mxu0 %v9323_v52  ;;  %v2659_v1 = vmax.f32 %v2585_v15, 0.0  ;;  %v9324_v37 = vld [vmem:[#allocation11 + $0x10] ss:$8 sps:$4 sm:$0xff]  }
 0x266   :  { %v2477_v51 = vpop.f32.mrf.mxu0  ;;  %v2280_v15 = vadd.f32 %v11244_v54, %v11151_v29 }
 0x267   :  { %v2590_v35 = vpop.f32.mrf.mxu1  ;;  %v2589_v46 = vadd.f32 %v2588_v33, %v2476_v55  ;;  %v2478_v23 = vadd.f32 %v2477_v51, %v2365_v34  ;;  %3290 = vmatprep.mubr.bf16.mxu1 %v2708_v20  ;;  %v2660_v40 = vmax.f32 %v2587_v50, 0.0  ;;  %v9327_v34 = vld [vmem:[#allocation11] ss:$8 sps:$4 sm:$0xff]   ;;  %v2383_v55 = vadd.f32 %v11232_v5, %v2270_v61  ;;  %v9332_v51 = vld [vmem:[#allocation11 + $0xf4] ss:$8 sps:$4 sm:$0xff]  }
 0x268   :  { %v2481_v47 = vpop.f32.mrf.mxu0  ;;  %3291 = vmatmul.mubr.bf16.gmra.mxu1 %v2707_v19  ;;  %3614 = vmatpush1.bf16.msra.mxu0 %v9321_v17 }
 0x269   :  { %v2594_v7 = vpop.f32.mrf.mxu1  ;;  %v2591_v28 = vadd.f32 %v2590_v35, %v2478_v23  ;;  %v2663_v43 = vmax.f32 %v2589_v46, 0.0  ;;  %v2482_v12 = vadd.f32 %v2481_v47, %v11213_v56  ;;  %3615 = vmatprep.subr.bf16.mxu0 %v9326_v30  ;;  %v9329_v56 = vld [vmem:[#allocation11 + $0x4] ss:$8 sps:$4 sm:$0xff]   ;;  %v2393_v30 = vadd.f32 %v11246_v62, %v2280_v15 }
 0x26a   :  { %v2483_v45 = vpop.f32.mrf.mxu0 }
 0x26b   :  { %v2596_v36 = vpop.f32.mrf.mxu1  ;;  %v2664_v13 = vmax.f32 %v2591_v28, 0.0  ;;  %v2484_v60 = vadd.f32 %v2483_v45, %v11220_v9  ;;  %v2711_v18 = vpack.c.bf16 %v2663_v43, %v2659_v1  ;;  %v2595_v22 = vadd.f32 %v2594_v7, %v2482_v12 }
 0x26c   :  { %v2485_v53 = vpop.f32.mrf.mxu0  ;;  %3616 = vmatpush1.bf16.msra.mxu0 %v9324_v37 }
 0x26d   :  { %v2598_v59 = vpop.f32.mrf.mxu1  ;;  %v2486_v31 = vadd.f32 %v2485_v53, %v2373_v14  ;;  %v2712_v48 = vpack.c.bf16 %v2664_v13, %v2660_v40  ;;  %v2597_v9 = vadd.f32 %v2596_v36, %v2484_v60  ;;  %3617 = vmatprep.subr.bf16.mxu0 %v9329_v56  ;;  %v2667_v35 = vmax.f32 %v2595_v22, 0.0  ;;  %v9333_v60 = vld [vmem:[#allocation11 + $0xe0] ss:$8 sps:$4 sm:$0xff]  }
 0x26e   :  { %v2487_v63 = vpop.f32.mrf.mxu0 }
 0x26f   :  { %v2600_v44 = vpop.f32.mrf.mxu1  ;;  %v2599_v38 = vadd.f32 %v2598_v59, %v2486_v31  ;;  %v2488_v27 = vadd.f32 %v2487_v63, %v2375_v42  ;;  %3300 = vmatprep.mubr.bf16.mxu1 %v2712_v48  ;;  %v2668_v20 = vmax.f32 %v2597_v9, 0.0  ;;  %v9338_v59 = vld [vmem:[#allocation11 + $0xd4] ss:$8 sps:$4 sm:$0xff]  }
 0x270   :  { %v2491_v39 = vpop.f32.mrf.mxu0  ;;  %3301 = vmatmul.mubr.bf16.gmra.mxu1 %v2711_v18  ;;  %3618 = vmatpush1.bf16.msra.mxu0 %v9327_v34 }
 0x271   :  { %v2604_v57 = vpop.f32.mrf.mxu1  ;;  %v2601_v21 = vadd.f32 %v2600_v44, %v2488_v27  ;;  %v2671_v0 = vmax.f32 %v2599_v38, 0.0  ;;  %v2492_v6 = vadd.f32 %v2491_v39, %v11227_v58  ;;  %3619 = vmatprep.subr.bf16.mxu0 %v9332_v51  ;;  %v9335_v58 = vld [vmem:[#allocation11 + $0xe4] ss:$8 sps:$4 sm:$0xff]   ;;  %v2290_v44 = vadd.f32 %v11258_v25, %v11151_v29  ;;  %v9336_v38 = vld [vmem:[#allocation11 + $0xd0] ss:$8 sps:$4 sm:$0xff]  }
 0x272   :  { %v2493_v49 = vpop.f32.mrf.mxu0  ;;  %v9344_v51 = vld [vmem:[#allocation11 + $0xb4] ss:$8 sps:$4 sm:$0xff]  }
 0x273   :  { %v2606_v33 = vpop.f32.mrf.mxu1  ;;  %v2672_v26 = vmax.f32 %v2601_v21, 0.0  ;;  %v2494_v19 = vadd.f32 %v2493_v49, %v11234_v10  ;;  %v2715_v47 = vpack.c.bf16 %v2671_v0, %v2667_v35  ;;  %v2605_v45 = vadd.f32 %v2604_v57, %v2492_v6  ;;  %v9339_v49 = vld [vmem:[#allocation11 + $0xc0] ss:$8 sps:$4 sm:$0xff]  }
 0x274   :  { %v2495_v50 = vpop.f32.mrf.mxu0  ;;  %3620 = vmatpush2.bf16.msra.mxu0 %v9330_v8  ;;  %v12063_v6 = vld [vmem:[#allocation38_spill] sm:$0xff] }
 0x275   :  { %v2608_v46 = vpop.f32.mrf.mxu1  ;;  %v2496_v23 = vadd.f32 %v2495_v50, %v2383_v55  ;;  %v2716_v52 = vpack.c.bf16 %v2672_v26, %v2668_v20  ;;  %v2607_v10 = vadd.f32 %v2606_v33, %v2494_v19  ;;  %3621 = vmatprep.subr.bf16.mxu0 %v9335_v58  ;;  %v2675_v42 = vmax.f32 %v2605_v45, 0.0  ;;  %v12061_v33 = vld [vmem:[#allocation39_spill] sm:$0xff]  ;;  %v12062_v26 = vld [vmem:[#allocation34_spill] sm:$0xff] }
 0x276   :  { %v2497_v5 = vpop.f32.mrf.mxu0  ;;  %v2403_v34 = vadd.f32 %v12061_v33, %v2290_v44  ;;  %v12066_v33 = vld [vmem:[#allocation42_spill] sm:$0xff] }
 0x277   :  { %v2610_v7 = vpop.f32.mrf.mxu1  ;;  %v2609_v28 = vadd.f32 %v2608_v46, %v2496_v23  ;;  %v2498_v43 = vadd.f32 %v2497_v5, %v2385_v3  ;;  %3310 = vmatprep.mubr.bf16.mxu1 %v2716_v52  ;;  %v2676_v1 = vmax.f32 %v2607_v10, 0.0  ;;  %v2405_v23 = vadd.f32 %v12064_v24, %v2292_v41 }
 0x278   :  { %v2501_v36 = vpop.f32.mrf.mxu0  ;;  %3311 = vmatmul.mubr.bf16.gmra.mxu1 %v2715_v47  ;;  %3622 = vmatpush2.bf16.msra.mxu0 %v9333_v60  ;;  %v9347_v60 = vld [vmem:[#allocation11 + $0xa4] ss:$8 sps:$4 sm:$0xff]  }
 0x279   :  { %v2614_v17 = vpop.f32.mrf.mxu1  ;;  %v2611_v14 = vadd.f32 %v2610_v7, %v2498_v43  ;;  %v2679_v54 = vmax.f32 %v2609_v28, 0.0  ;;  %v2502_v31 = vadd.f32 %v2501_v36, %v11241_v4  ;;  %3623 = vmatprep.subr.bf16.mxu0 %v9338_v59  ;;  %v9341_v4 = vld [vmem:[#allocation11 + $0xc4] ss:$8 sps:$4 sm:$0xff]   ;;  %v9342_v7 = vld [vmem:[#allocation11 + $0xb0] ss:$8 sps:$4 sm:$0xff]  }
 0x27a   :  { %v2503_v40 = vpop.f32.mrf.mxu0  ;;  %v9351_v59 = vld [vmem:[#allocation11 + $0x80] ss:$8 sps:$4 sm:$0xff]  }
 0x27b   :  { %v2616_v13 = vpop.f32.mrf.mxu1  ;;  %v2680_v12 = vmax.f32 %v2611_v14, 0.0  ;;  %v2504_v53 = vadd.f32 %v2503_v40, %v11248_v32  ;;  %v2719_v37 = vpack.c.bf16 %v2679_v54, %v2675_v42  ;;  %v2615_v22 = vadd.f32 %v2614_v17, %v2502_v31 }
 0x27c   :  { %v2505_v48 = vpop.f32.mrf.mxu0  ;;  %3624 = vmatpush2.bf16.msra.mxu0 %v9336_v38  ;;  %v9365_v38 = vld [vmem:[#allocation14 + $0x44] ss:$8 sps:$4 sm:$0xff]  }
 0x27d   :  { %v2618_v61 = vpop.f32.mrf.mxu1  ;;  %v2506_v18 = vadd.f32 %v2505_v48, %v2393_v30  ;;  %v2720_v63 = vpack.c.bf16 %v2680_v12, %v2676_v1  ;;  %v2617_v32 = vadd.f32 %v2616_v13, %v2504_v53  ;;  %3625 = vmatprep.subr.bf16.mxu0 %v9341_v4  ;;  %v2683_v35 = vmax.f32 %v2615_v22, 0.0  ;;  %v9345_v30 = vld [vmem:[#allocation11 + $0xa0] ss:$8 sps:$4 sm:$0xff]   ;;  %v9350_v1 = vld [vmem:[#allocation11 + $0x94] ss:$8 sps:$4 sm:$0xff]  }
 0x27e   :  { %v2507_v62 = vpop.f32.mrf.mxu0  ;;  %v12065_v13 = vmov 0   ;;  %v9348_v12 = vld [vmem:[#allocation11 + $0x90] ss:$8 sps:$4 sm:$0xff]   ;;  %v9353_v53 = vld [vmem:[#allocation11 + $0x84] ss:$8 sps:$4 sm:$0xff]  }
 0x27f   :  { %v2620_v9 = vpop.f32.mrf.mxu1  ;;  %v2619_v27 = vadd.f32 %v2618_v61, %v2506_v18  ;;  %v2508_v56 = vadd.f32 %v2507_v62, %v2395_v11  ;;  %3320 = vmatprep.mubr.bf16.mxu1 %v2720_v63  ;;  %v2684_v55 = vmax.f32 %v2617_v32, 0.0  ;;  %v9354_v61 = vld [vmem:[#allocation14 + $0x70] ss:$8 sps:$4 sm:$0xff]   ;;  %v9356_v11 = vld [vmem:[#allocation14 + $0x74] ss:$8 sps:$4 sm:$0xff]  }
 0x280   :  { %v2511_v39 = vpop.f32.mrf.mxu0  ;;  %3321 = vmatmul.mubr.bf16.gmra.mxu1 %v2719_v37  ;;  %3626 = vmatpush2.bf16.msra.mxu0 %v9339_v49  ;;  %v9359_v18 = vld [vmem:[#allocation14 + $0x64] ss:$8 sps:$4 sm:$0xff]   ;;  %v9357_v63 = vld [vmem:[#allocation14 + $0x60] ss:$8 sps:$4 sm:$0xff]   ;;  %v9362_v37 = vld [vmem:[#allocation14 + $0x54] ss:$8 sps:$4 sm:$0xff]  }
 0x281   :  { %v2624_v57 = vpop.f32.mrf.mxu1  ;;  %v2621_v21 = vadd.f32 %v2620_v9, %v2508_v56  ;;  %v2687_v29 = vmax.f32 %v2619_v27, 0.0  ;;  %v2512_v50 = vadd.f32 %v2511_v39, %v12063_v6  ;;  %3627 = vmatprep.subr.bf16.mxu0 %v9344_v51  ;;  %3928 = vmatprep.subr.bf16.mxu1 %v9356_v11  ;;  %v9360_v62 = vld [vmem:[#allocation14 + $0x50] ss:$8 sps:$4 sm:$0xff]   ;;  %v9363_v32 = vld [vmem:[#allocation14 + $0x40] ss:$8 sps:$4 sm:$0xff]  }
 0x282   :  { %v2513_v25 = vpop.f32.mrf.mxu0  ;;  %3929 = vmatpush1.bf16.msra.mxu1 %v9354_v61 }
 0x283   :  { %v2626_v0 = vpop.f32.mrf.mxu1  ;;  %v2688_v20 = vmax.f32 %v2621_v21, 0.0  ;;  %v2514_v19 = vadd.f32 %v2513_v25, %v12062_v26  ;;  %v2723_v47 = vpack.c.bf16 %v2687_v29, %v2683_v35  ;;  %v2625_v43 = vadd.f32 %v2624_v57, %v2512_v50  ;;  %3930 = vmatprep.subr.bf16.mxu1 %v9359_v18 }
 0x284   :  { %v2515_v46 = vpop.f32.mrf.mxu0  ;;  %3628 = vmatpush2.bf16.msra.mxu0 %v9342_v7 }
 0x285   :  { %v2628_v3 = vpop.f32.mrf.mxu1  ;;  %v2516_v52 = vadd.f32 %v2515_v46, %v2403_v34  ;;  %v2724_v15 = vpack.c.bf16 %v2688_v20, %v2684_v55  ;;  %v2627_v8 = vadd.f32 %v2626_v0, %v2514_v19  ;;  %v2691_v14 = vmax.f32 %v2625_v43, 0.0  ;;  %3629 = vmatprep.subr.bf16.mxu0 %v9347_v60  ;;  %v2793_v0 = vld [vmem:[#allocation10] sm:$0x3]  ;;  %v12067_v55 = vld [vmem:[#allocation41_spill] sm:$0xff] }
 0x286   :  { %v2517_v5 = vpop.f32.mrf.mxu0  ;;  %3931 = vmatpush1.bf16.msra.mxu1 %v9357_v63  ;;  %v11344_v34 = vrot.slane %v2793_v0, %v12066_v33  ;;  %v11347_v20 = vrot.slane %v2793_v0, %v12067_v55 }
 0x287   :  { %v2629_v10 = vadd.f32 %v2628_v3, %v2516_v52  ;;  %v2518_v28 = vadd.f32 %v2517_v5, %v2405_v23  ;;  %3330 = vmatprep.mubr.bf16.mxu1 %v2724_v15  ;;  %v2630_v58 = vpop.f32.mrf.mxu1  ;;  %v2692_v17 = vmax.f32 %v2627_v8, 0.0  ;;  %3932 = vmatprep.subr.bf16.mxu1 %v9362_v37 }
 0x288   :  { %3331 = vmatmul.mubr.bf16.gmra.mxu1 %v2723_v47  ;;  %3630 = vmatpush2.bf16.msra.mxu0 %v9345_v30 }
 0x289   :  { %v2631_v45 = vadd.f32 %v2630_v58, %v2518_v28  ;;  %v2695_v36 = vmax.f32 %v2629_v10, 0.0  ;;  %3631 = vmatprep.subr.bf16.mxu0 %v9350_v1 }
 0x28a   :  { %3933 = vmatpush1.bf16.msra.mxu1 %v9360_v62 }
 0x28b   :  { %v2696_v2 = vmax.f32 %v2631_v45, 0.0  ;;  %v2727_v40 = vpack.c.bf16 %v2695_v36, %v2691_v14  ;;  %3934 = vmatprep.subr.bf16.mxu1 %v9365_v38 }
 0x28c   :  { %3632 = vmatpush2.bf16.msra.mxu0 %v9348_v12 }
 0x28d   :  { %v2728_v54 = vpack.c.bf16 %v2696_v2, %v2692_v17  ;;  %3633 = vmatprep.subr.bf16.mxu0 %v9353_v53 }
 0x28e   :  { %3935 = vmatpush1.bf16.msra.mxu1 %v9363_v32 }
 0x28f   :  { %3340 = vmatprep.mubr.bf16.mxu1 %v2728_v54 }
 0x290   :  { %3341 = vmatmul.mubr.bf16.gmra.mxu1 %v2727_v40  ;;  %3634 = vmatpush2.bf16.msra.mxu0 %v9351_v59 }
 0x291   :  { %3960 = vmatprep.mubr.bf16.mxu1 %v12065_v13 }
 0x298   :  { %v3159_v42 = vpop.f32.mrf.mxu0 }
 0x299   :  { %v3160_v50 = vadd.f32 %v3159_v42, %v11347_v20 }
 0x29a   :  { %v3161_v31 = vpop.f32.mrf.mxu0 }
 0x29b   :  { %v3162_v35 = vadd.f32 %v3161_v31, %v11344_v34 }
 0x29c   :  { %v3163_v48 = vpop.f32.mrf.mxu0 }
 0x29d   :  { %v3164_v6 = vadd.f32 %v3163_v48, %v11347_v20 }
 0x29e   :  { %v3165_v44 = vpop.f32.mrf.mxu0 }
 0x29f   :  { %v3166_v3 = vadd.f32 %v3165_v44, %v11344_v34 }
 0x2a0   :  { %v3169_v9 = vpop.f32.mrf.mxu0 }
 0x2a1   :  { %v3170_v14 = vadd.f32 %v3169_v9, %v11347_v20 }
 0x2a2   :  { %v3171_v27 = vpop.f32.mrf.mxu0 }
 0x2a3   :  { %v3172_v36 = vadd.f32 %v3171_v27, %v11344_v34 }
 0x2a4   :  { %v3173_v56 = vpop.f32.mrf.mxu0 }
 0x2a5   :  { %v3174_v17 = vadd.f32 %v3173_v56, %v11347_v20 }
 0x2a6   :  { %v3175_v4 = vpop.f32.mrf.mxu0 }
 0x2a7   :  { %v3176_v60 = vadd.f32 %v3175_v4, %v11344_v34 }
 0x2a8   :  { %v3179_v22 = vpop.f32.mrf.mxu0 }
 0x2a9   :  { %v3180_v38 = vadd.f32 %v3179_v22, %v11347_v20 }
 0x2aa   :  { %v3181_v39 = vpop.f32.mrf.mxu0 }
 0x2ab   :  { %v3182_v37 = vadd.f32 %v3181_v39, %v11344_v34 }
 0x2ac   :  { %v3183_v57 = vpop.f32.mrf.mxu0 }
 0x2ad   :  { %v3184_v62 = vadd.f32 %v3183_v57, %v11347_v20 }
 0x2ae   :  { %v3185_v16 = vpop.f32.mrf.mxu0 }
 0x2af   :  { %v3186_v56 = vadd.f32 %v3185_v16, %v11344_v34 }
 0x2b0   :  { %v11333_v41 = vpop.f32.mrf.mxu0 }
 0x2b2   :  { %v11335_v21 = vpop.f32.mrf.mxu0 }
 0x2b3   :  { %v3192_v22 = vadd.f32 %v11335_v21, %v11344_v34 }
 0x2b4   :  { %v11337_v29 = vpop.f32.mrf.mxu0 }
 0x2b5   :  { %v3194_v16 = vadd.f32 %v11337_v29, %v11347_v20 }
 0x2b6   :  { %v11339_v25 = vpop.f32.mrf.mxu0 }
 0x2b8   :  { %v11341_v49 = vpop.f32.mrf.mxu0 }
 0x2ba   :  { %v11349_v19 = vpop.f32.mrf.mxu0 }
 0x2bc   :  { %v11355_v52 = vpop.f32.mrf.mxu0 }
 0x2be   :  { %v11357_v43 = vpop.f32.mrf.mxu0 }
 0x2c0   :  { %v11363_v12 = vpop.f32.mrf.mxu0 }
 0x2c2   :  { %v11365_v18 = vpop.f32.mrf.mxu0 }
 0x318   :  { %v3272_v26 = vpop.f32.mrf.mxu1 }
 0x319   :  { %v3273_v15 = vadd.f32 %v3272_v26, %v3160_v50  ;;  %v3213_v26 = vpop.f32.mrf.mxu0 }
 0x31a   :  { %v3274_v51 = vpop.f32.mrf.mxu1 }
 0x31b   :  { %v3275_v24 = vadd.f32 %v3274_v51, %v3162_v35  ;;  %v3351_v58 = vmax.f32 %v3273_v15, 0.0  ;;  %v3215_v57 = vpop.f32.mrf.mxu0 }
 0x31c   :  { %v3276_v46 = vpop.f32.mrf.mxu1 }
 0x31d   :  { %v3277_v23 = vadd.f32 %v3276_v46, %v3164_v6  ;;  %v3352_v10 = vmax.f32 %v3275_v24, 0.0 }
 0x31e   :  { %v3278_v47 = vpop.f32.mrf.mxu1 }
 0x31f   :  { %v3279_v5 = vadd.f32 %v3278_v47, %v3166_v3  ;;  %v3353_v7 = vmax.f32 %v3277_v23, 0.0  ;;  %v3190_v47 = vadd.f32 %v11333_v41, %v11347_v20 }
 0x320   :  { %v3282_v8 = vpop.f32.mrf.mxu1 }
 0x321   :  { %v3354_v28 = vmax.f32 %v3279_v5, 0.0  ;;  %v3383_v54 = vpack.c.bf16 %v3353_v7, %v3351_v58  ;;  %v3283_v53 = vadd.f32 %v3282_v8, %v3170_v14  ;;  %v3196_v8 = vadd.f32 %v11339_v25, %v11344_v34  ;;  %v3219_v58 = vpop.f32.mrf.mxu0 }
 0x322   :  { %v3284_v45 = vpop.f32.mrf.mxu1  ;;  %v3204_v25 = vadd.f32 %v11355_v52, %v11347_v20 }
 0x323   :  { %v3384_v2 = vpack.c.bf16 %v3354_v28, %v3352_v10  ;;  %v3285_v30 = vadd.f32 %v3284_v45, %v3172_v36  ;;  %v3355_v63 = vmax.f32 %v3283_v53, 0.0 }
 0x324   :  { %v3286_v40 = vpop.f32.mrf.mxu1 }
 0x325   :  { %v3287_v1 = vadd.f32 %v3286_v40, %v3174_v17  ;;  %3635 = vmatprep.mubr.bf16.mxu0 %v3384_v2  ;;  %v3356_v61 = vmax.f32 %v3285_v30, 0.0 }
 0x326   :  { %v3288_v59 = vpop.f32.mrf.mxu1  ;;  %3636 = vmatmul.mubr.bf16.vlgmr.msra.gmra.mxu0 %v3383_v54  ;;  %v3221_v54 = vpop.f32.mrf.mxu0 }
 0x327   :  { %v3289_v42 = vadd.f32 %v3288_v59, %v3176_v60  ;;  %v3357_v31 = vmax.f32 %v3287_v1, 0.0  ;;  %v3202_v60 = vadd.f32 %v11349_v19, %v11344_v34  ;;  %v3200_v1 = vadd.f32 %v11341_v49, %v11347_v20 }
 0x328   :  { %v3292_v48 = vpop.f32.mrf.mxu1 }
 0x329   :  { %v3358_v11 = vmax.f32 %v3289_v42, 0.0  ;;  %v3385_v32 = vpack.c.bf16 %v3357_v31, %v3355_v63  ;;  %v3293_v51 = vadd.f32 %v3292_v48, %v3180_v38  ;;  %v3206_v42 = vadd.f32 %v11357_v43, %v11344_v34 }
 0x32a   :  { %v3294_v44 = vpop.f32.mrf.mxu1  ;;  %v3214_v43 = vadd.f32 %v3213_v26, %v11347_v20 }
 0x32b   :  { %v3386_v9 = vpack.c.bf16 %v3358_v11, %v3356_v61  ;;  %v3295_v4 = vadd.f32 %v3294_v44, %v3182_v37  ;;  %v3359_v24 = vmax.f32 %v3293_v51, 0.0  ;;  %v3223_v61 = vpop.f32.mrf.mxu0  ;;  %v3216_v51 = vadd.f32 %v3215_v57, %v11344_v34 }
 0x32c   :  { %v3296_v27 = vpop.f32.mrf.mxu1 }
 0x32d   :  { %v3297_v0 = vadd.f32 %v3296_v27, %v3184_v62  ;;  %3645 = vmatprep.mubr.bf16.mxu0 %v3386_v9  ;;  %v3360_v39 = vmax.f32 %v3295_v4, 0.0  ;;  %v3225_v9 = vpop.f32.mrf.mxu0 }
 0x32e   :  { %v3298_v35 = vpop.f32.mrf.mxu1  ;;  %3646 = vmatmul.mubr.bf16.gmra.mxu0 %v3385_v32  ;;  %v3212_v32 = vadd.f32 %v11365_v18, %v11344_v34 }
 0x32f   :  { %v3299_v6 = vadd.f32 %v3298_v35, %v3186_v56  ;;  %v3361_v50 = vmax.f32 %v3297_v0, 0.0  ;;  %v3210_v56 = vadd.f32 %v11363_v12, %v11347_v20  ;;  %v3222_v12 = vadd.f32 %v3221_v54, %v11344_v34 }
 0x330   :  { %v3302_v46 = vpop.f32.mrf.mxu1 }
 0x331   :  { %v3362_v3 = vmax.f32 %v3299_v6, 0.0  ;;  %v3387_v5 = vpack.c.bf16 %v3361_v50, %v3359_v24  ;;  %v3303_v45 = vadd.f32 %v3302_v46, %v3190_v47  ;;  %v3229_v50 = vpop.f32.mrf.mxu0  ;;  %v3224_v47 = vadd.f32 %v3223_v61, %v11347_v20 }
 0x332   :  { %v3304_v23 = vpop.f32.mrf.mxu1 }
 0x333   :  { %v3388_v15 = vpack.c.bf16 %v3362_v3, %v3360_v39  ;;  %v3305_v10 = vadd.f32 %v3304_v23, %v3192_v22  ;;  %v3363_v40 = vmax.f32 %v3303_v45, 0.0  ;;  %v3231_v22 = vpop.f32.mrf.mxu0 }
 0x334   :  { %v3306_v7 = vpop.f32.mrf.mxu1 }
 0x335   :  { %v3307_v28 = vadd.f32 %v3306_v7, %v3194_v16  ;;  %3655 = vmatprep.mubr.bf16.mxu0 %v3388_v15  ;;  %v3364_v29 = vmax.f32 %v3305_v10, 0.0  ;;  %v3226_v10 = vadd.f32 %v3225_v9, %v11344_v34 }
 0x336   :  { %v3308_v36 = vpop.f32.mrf.mxu1  ;;  %3656 = vmatmul.mubr.bf16.gmra.mxu0 %v3387_v5  ;;  %v3220_v5 = vadd.f32 %v3219_v58, %v11347_v20  ;;  %v3232_v58 = vadd.f32 %v3231_v22, %v11344_v34  ;;  %v9408_v22 = vld [vmem:[#allocation17 + $0x40] ss:$16 sps:$4 sm:$0xff]  }
 0x337   :  { %v3309_v21 = vadd.f32 %v3308_v36, %v3196_v8  ;;  %v3365_v17 = vmax.f32 %v3307_v28, 0.0  ;;  %v3233_v36 = vpop.f32.mrf.mxu0 }
 0x338   :  { %v3312_v2 = vpop.f32.mrf.mxu1 }
 0x339   :  { %v3366_v14 = vmax.f32 %v3309_v21, 0.0  ;;  %v3389_v53 = vpack.c.bf16 %v3365_v17, %v3363_v40  ;;  %v3313_v11 = vadd.f32 %v3312_v2, %v3200_v1 }
 0x33a   :  { %v3314_v41 = vpop.f32.mrf.mxu1 }
 0x33b   :  { %v3390_v30 = vpack.c.bf16 %v3366_v14, %v3364_v29  ;;  %v3315_v31 = vadd.f32 %v3314_v41, %v3202_v60  ;;  %v3367_v38 = vmax.f32 %v3313_v11, 0.0  ;;  %v3235_v41 = vpop.f32.mrf.mxu0 }
 0x33c   :  { %v3316_v59 = vpop.f32.mrf.mxu1 }
 0x33d   :  { %v3317_v48 = vadd.f32 %v3316_v59, %v3204_v25  ;;  %3665 = vmatprep.mubr.bf16.mxu0 %v3390_v30  ;;  %v3368_v52 = vmax.f32 %v3315_v31, 0.0  ;;  %v3234_v30 = vadd.f32 %v3233_v36, %v11347_v20  ;;  %v3236_v31 = vadd.f32 %v3235_v41, %v11344_v34  ;;  %v9371_v34 = vld [vmem:[#allocation14 + $0x24] ss:$8 sps:$4 sm:$0xff]  }
 0x33e   :  { %v3318_v63 = vpop.f32.mrf.mxu1  ;;  %3666 = vmatmul.mubr.bf16.gmra.mxu0 %v3389_v53  ;;  %v3230_v53 = vadd.f32 %v3229_v50, %v11347_v20  ;;  %v9366_v20 = vld [vmem:[#allocation14 + $0x30] ss:$8 sps:$4 sm:$0xff]  }
 0x33f   :  { %v3319_v19 = vadd.f32 %v3318_v63, %v3206_v42  ;;  %v3369_v44 = vmax.f32 %v3317_v48, 0.0  ;;  %v9384_v50 = vld [vmem:[#allocation17 + $0xc0] ss:$16 sps:$4 sm:$0xff]  }
 0x340   :  { %v3322_v37 = vpop.f32.mrf.mxu1  ;;  %v9444_v41 = vld [vmem:[#allocation17 + $0x180] ss:$16 sps:$4 sm:$0xff]  }
 0x341   :  { %v3370_v62 = vmax.f32 %v3319_v19, 0.0  ;;  %v3391_v4 = vpack.c.bf16 %v3369_v44, %v3367_v38  ;;  %v3323_v46 = vadd.f32 %v3322_v37, %v3210_v56  ;;  %v9377_v56 = vld [vmem:[#allocation14 + $0x4] ss:$8 sps:$4 sm:$0xff]  }
 0x342   :  { %v3324_v49 = vpop.f32.mrf.mxu1 }
 0x343   :  { %v3392_v27 = vpack.c.bf16 %v3370_v62, %v3368_v52  ;;  %v3325_v35 = vadd.f32 %v3324_v49, %v3212_v32  ;;  %v3371_v16 = vmax.f32 %v3323_v46, 0.0  ;;  %v9368_v49 = vld [vmem:[#allocation14 + $0x34] ss:$8 sps:$4 sm:$0xff]   ;;  %v9369_v32 = vld [vmem:[#allocation14 + $0x20] ss:$8 sps:$4 sm:$0xff]  }
 0x344   :  { %v3326_v0 = vpop.f32.mrf.mxu1  ;;  %3936 = vmatprep.subr.bf16.mxu1 %v9368_v49  ;;  %v9392_v46 = vld [vmem:[#allocation17 + $0xa4] ss:$16 sps:$4 sm:$0xff]  }
 0x345   :  { %v3327_v6 = vadd.f32 %v3326_v0, %v3214_v43  ;;  %3675 = vmatprep.mubr.bf16.mxu0 %v3392_v27  ;;  %v3372_v23 = vmax.f32 %v3325_v35, 0.0  ;;  %3937 = vmatpush1.bf16.msra.mxu1 %v9366_v20  ;;  %v9374_v43 = vld [vmem:[#allocation14 + $0x14] ss:$8 sps:$4 sm:$0xff]   ;;  %v9372_v27 = vld [vmem:[#allocation14 + $0x10] ss:$8 sps:$4 sm:$0xff]  }
 0x346   :  { %v3328_v39 = vpop.f32.mrf.mxu1  ;;  %3676 = vmatmul.mubr.bf16.gmra.mxu0 %v3391_v4  ;;  %3938 = vmatprep.subr.bf16.mxu1 %v9371_v34  ;;  %v9375_v4 = vld [vmem:[#allocation14] ss:$8 sps:$4 sm:$0xff]  }
 0x347   :  { %v3329_v3 = vadd.f32 %v3328_v39, %v3216_v51  ;;  %v3373_v24 = vmax.f32 %v3327_v6, 0.0  ;;  %v9378_v0 = vld [vmem:[#allocation17 + $0xe0] ss:$16 sps:$4 sm:$0xff]   ;;  %v9380_v51 = vld [vmem:[#allocation17 + $0xe4] ss:$16 sps:$4 sm:$0xff]  }
 0x348   :  { %v3332_v18 = vpop.f32.mrf.mxu1  ;;  %v9383_v35 = vld [vmem:[#allocation17 + $0xec] ss:$16 sps:$4 sm:$0xff]   ;;  %v9386_v6 = vld [vmem:[#allocation17 + $0xc4] ss:$16 sps:$4 sm:$0xff]   ;;  %4495 = vmatprep.subr.bf16.mxu0 %v9380_v51  ;;  %v9390_v39 = vld [vmem:[#allocation17 + $0xa0] ss:$16 sps:$4 sm:$0xff]  }
 0x349   :  { %v3374_v26 = vmax.f32 %v3329_v3, 0.0  ;;  %v3393_v7 = vpack.c.bf16 %v3373_v24, %v3371_v16  ;;  %v3333_v21 = vadd.f32 %v3332_v18, %v3220_v5  ;;  %3939 = vmatpush1.bf16.msra.mxu1 %v9369_v32  ;;  %4496 = vmatpush1.bf16.msra.mxu0 %v9378_v0  ;;  %v9398_v3 = vld [vmem:[#allocation17 + $0x84] ss:$16 sps:$4 sm:$0xff]   ;;  %v9396_v24 = vld [vmem:[#allocation17 + $0x80] ss:$16 sps:$4 sm:$0xff]  }
 0x34a   :  { %v3334_v15 = vpop.f32.mrf.mxu1  ;;  %3940 = vmatprep.subr.bf16.mxu1 %v9374_v43  ;;  %4497 = vmatprep.subr.bf16.mxu0 %v9386_v6  ;;  %v9404_v18 = vld [vmem:[#allocation17 + $0x64] ss:$16 sps:$4 sm:$0xff]   ;;  %v9426_v5 = vld [vmem:[#allocation17 + $0x1e0] ss:$16 sps:$4 sm:$0xff]  }
 0x34b   :  { %v3394_v57 = vpack.c.bf16 %v3374_v26, %v3372_v23  ;;  %v3335_v28 = vadd.f32 %v3334_v15, %v3222_v12  ;;  %v3375_v60 = vmax.f32 %v3333_v21, 0.0  ;;  %v9402_v23 = vld [vmem:[#allocation17 + $0x60] ss:$16 sps:$4 sm:$0xff]   ;;  %v9410_v26 = vld [vmem:[#allocation17 + $0x44] ss:$16 sps:$4 sm:$0xff]  }
 0x34c   :  { %v3336_v8 = vpop.f32.mrf.mxu1  ;;  %v9416_v16 = vld [vmem:[#allocation17 + $0x24] ss:$16 sps:$4 sm:$0xff]   ;;  %v9414_v15 = vld [vmem:[#allocation17 + $0x20] ss:$16 sps:$4 sm:$0xff]  }
 0x34d   :  { %v3337_v45 = vadd.f32 %v3336_v8, %v3224_v47  ;;  %3685 = vmatprep.mubr.bf16.mxu0 %v3394_v57  ;;  %v3376_v54 = vmax.f32 %v3335_v28, 0.0  ;;  %3941 = vmatpush1.bf16.msra.mxu1 %v9372_v27  ;;  %v9422_v12 = vld [vmem:[#allocation17 + $0x4] ss:$16 sps:$4 sm:$0xff]   ;;  %v9420_v47 = vld [vmem:[#allocation17] ss:$16 sps:$4 sm:$0xff]  }
 0x34e   :  { %v3338_v17 = vpop.f32.mrf.mxu1  ;;  %3686 = vmatmul.mubr.bf16.gmra.mxu0 %v3393_v7  ;;  %3942 = vmatprep.subr.bf16.mxu1 %v9377_v56  ;;  %v9428_v57 = vld [vmem:[#allocation17 + $0x1e4] ss:$16 sps:$4 sm:$0xff]   ;;  %v3431_v8 = vld [vmem:[#allocation13] sm:$0x3] }
 0x34f   :  { %v3339_v2 = vadd.f32 %v3338_v17, %v3226_v10  ;;  %v3377_v29 = vmax.f32 %v3337_v45, 0.0  ;;  %4498 = vmatpush1.bf16.msra.mxu0 %v9384_v50  ;;  %v9434_v7 = vld [vmem:[#allocation17 + $0x1c4] ss:$16 sps:$4 sm:$0xff]   ;;  %v9432_v10 = vld [vmem:[#allocation17 + $0x1c0] ss:$16 sps:$4 sm:$0xff]   ;;  %v11402_v28 = vrot.slane %v3431_v8, %v12067_v55  ;;  %v11405_v36 = vrot.slane %v3431_v8, %v12066_v33 }
 0x350   :  { %v3342_v14 = vpop.f32.mrf.mxu1  ;;  %4499 = vmatprep.subr.bf16.mxu0 %v9392_v46  ;;  %v9440_v45 = vld [vmem:[#allocation17 + $0x1a4] ss:$16 sps:$4 sm:$0xff]   ;;  %v9438_v17 = vld [vmem:[#allocation17 + $0x1a0] ss:$16 sps:$4 sm:$0xff]  }
 0x351   :  { %v3378_v40 = vmax.f32 %v3339_v2, 0.0  ;;  %v3395_v59 = vpack.c.bf16 %v3377_v29, %v3375_v60  ;;  %v3343_v11 = vadd.f32 %v3342_v14, %v3230_v53  ;;  %3943 = vmatpush1.bf16.msra.mxu1 %v9375_v4  ;;  %v9446_v29 = vld [vmem:[#allocation17 + $0x184] ss:$16 sps:$4 sm:$0xff]   ;;  %v3764_v56 = vld [vmem:[#allocation5] sm:$0xff]  ;;  %v3766_v8 = vld [vmem:[#allocation5 + $0x10] sm:$0xff] }
 0x352   :  { %v3344_v25 = vpop.f32.mrf.mxu1  ;;  %4608 = vmatprep.subr.bf16.mxu1 %v9383_v35 }
 0x353   :  { %v3396_v1 = vpack.c.bf16 %v3378_v40, %v3376_v54  ;;  %v3345_v48 = vadd.f32 %v3344_v25, %v3232_v58  ;;  %v3379_v62 = vmax.f32 %v3343_v11, 0.0  ;;  %4500 = vmatpush1.bf16.msra.mxu0 %v9390_v39  ;;  %v9452_v58 = vld [vmem:[#allocation17 + $0x164] ss:$16 sps:$4 sm:$0xff]  }
 0x354   :  { %v3346_v42 = vpop.f32.mrf.mxu1  ;;  %4501 = vmatprep.subr.bf16.mxu0 %v9398_v3  ;;  %v3765_v39 = vld [vmem:[#allocation5 + $0x8] sm:$0xff] }
 0x355   :  { %v3347_v61 = vadd.f32 %v3346_v42, %v3234_v30  ;;  %3695 = vmatprep.mubr.bf16.mxu0 %v3396_v1  ;;  %v3380_v37 = vmax.f32 %v3345_v48, 0.0  ;;  %v9450_v42 = vld [vmem:[#allocation17 + $0x160] ss:$16 sps:$4 sm:$0xff]  }
 0x356   :  { %v3348_v63 = vpop.f32.mrf.mxu1  ;;  %3696 = vmatmul.mubr.bf16.gmra.mxu0 %v3395_v59 }
 0x357   :  { %v3349_v19 = vadd.f32 %v3348_v63, %v3236_v31  ;;  %v3381_v44 = vmax.f32 %v3347_v61, 0.0  ;;  %4502 = vmatpush1.bf16.msra.mxu0 %v9396_v24 }
 0x358   :  { %4503 = vmatprep.subr.bf16.mxu0 %v9404_v18 }
 0x359   :  { %v3382_v52 = vmax.f32 %v3349_v19, 0.0  ;;  %v3397_v38 = vpack.c.bf16 %v3381_v44, %v3379_v62 }
 0x35b   :  { %v3398_v9 = vpack.c.bf16 %v3382_v52, %v3380_v37  ;;  %4504 = vmatpush1.bf16.msra.mxu0 %v9402_v23 }
 0x35c   :  { %4505 = vmatprep.subr.bf16.mxu0 %v9410_v26 }
 0x35d   :  { %3705 = vmatprep.mubr.bf16.mxu0 %v3398_v9 }
 0x35e   :  { %3706 = vmatmul.mubr.bf16.gmra.mxu0 %v3397_v38 }
 0x35f   :  { %4506 = vmatpush1.bf16.msra.mxu0 %v9408_v22 }
 0x360   :  { %4507 = vmatprep.subr.bf16.mxu0 %v9416_v16 }
 0x363   :  { %4508 = vmatpush1.bf16.msra.mxu0 %v9414_v15 }
 0x364   :  { %4509 = vmatprep.subr.bf16.mxu0 %v9422_v12 }
 0x367   :  { %4510 = vmatpush1.bf16.msra.mxu0 %v9420_v47 }
 0x368   :  { %4511 = vmatprep.subr.bf16.mxu0 %v9428_v57 }
 0x36b   :  { %4512 = vmatpush2.bf16.msra.mxu0 %v9426_v5 }
 0x36c   :  { %4513 = vmatprep.subr.bf16.mxu0 %v9434_v7 }
 0x36f   :  { %4514 = vmatpush2.bf16.msra.mxu0 %v9432_v10 }
 0x370   :  { %4515 = vmatprep.subr.bf16.mxu0 %v9440_v45 }
 0x373   :  { %4516 = vmatpush2.bf16.msra.mxu0 %v9438_v17 }
 0x374   :  { %4517 = vmatprep.subr.bf16.mxu0 %v9446_v29 }
 0x377   :  { %4518 = vmatpush2.bf16.msra.mxu0 %v9444_v41 }
 0x378   :  { %4519 = vmatprep.subr.bf16.mxu0 %v9452_v58 }
 0x37b   :  { %4520 = vmatpush2.bf16.msra.mxu0 %v9450_v42 }
 0x3e6   :  { %v3637_v21 = vpop.f32.mrf.mxu0 }
 0x3e7   :  { %v11408_v2 = vadd.f32 %v3637_v21, %v11402_v28  ;;  %v9381_v21 = vld [vmem:[#allocation17 + $0xe8] ss:$16 sps:$4 sm:$0xff]  }
 0x3e8   :  { %v3639_v14 = vpop.f32.mrf.mxu0 }
 0x3e9   :  { %7918 = vst [vmem:[#allocation21] sm:$0xff] %v11408_v2  ;;  %v3640_v54 = vadd.f32 %v3639_v14, %v11405_v36 }
 0x3ea   :  { %v3641_v40 = vpop.f32.mrf.mxu0 }
 0x3eb   :  { %v3716_v60 = vmul.f32 0.5, %v3640_v54  ;;  %7919 = vst [vmem:[#allocation21 + $0x8] sm:$0xff] %v3640_v54  ;;  %v11413_v25 = vadd.f32 %v3641_v40, %v11402_v28  ;;  %v9389_v54 = vld [vmem:[#allocation17 + $0xcc] ss:$16 sps:$4 sm:$0xff]   ;;  %v3767_v40 = vld [vmem:[#allocation5 + $0x18] sm:$0xff] }
 0x3ec   :  { %v3643_v30 = vpop.f32.mrf.mxu0 }
 0x3ed   :  { %v3732_v1 = vmul.f32 1.442695, %v3716_v60  ;;  %7920 = vst [vmem:[#allocation21 + $0x10] sm:$0xff] %v11413_v25  ;;  %v3644_v53 = vadd.f32 %v3643_v30, %v11405_v36 }
 0x3ee   :  { %v3647_v59 = vpop.f32.mrf.mxu0 }
 0x3ef   :  { %9794 = vpow2.f32 %v3732_v1  ;;  %v3717_v31 = vmul.f32 0.5, %v3644_v53  ;;  %7921 = vst [vmem:[#allocation21 + $0x18] sm:$0xff] %v3644_v53  ;;  %v11418_v48 = vadd.f32 %v3647_v59, %v11402_v28  ;;  %v9387_v1 = vld [vmem:[#allocation17 + $0xc8] ss:$16 sps:$4 sm:$0xff]  }
 0x3f0   :  { %v3649_v61 = vpop.f32.mrf.mxu0 }
 0x3f1   :  { %v3734_v11 = vmul.f32 1.442695, %v3717_v31  ;;  %7922 = vst [vmem:[#allocation21 + $0x20] sm:$0xff] %v11418_v48  ;;  %v3650_v63 = vadd.f32 %v3649_v61, %v11405_v36  ;;  %v9395_v31 = vld [vmem:[#allocation17 + $0xac] ss:$16 sps:$4 sm:$0xff]  }
 0x3f2   :  { %v3651_v19 = vpop.f32.mrf.mxu0 }
 0x3f3   :  { %9796 = vpow2.f32 %v3734_v11  ;;  %v3718_v44 = vmul.f32 0.5, %v3650_v63  ;;  %7923 = vst [vmem:[#allocation21 + $0x28] sm:$0xff] %v3650_v63  ;;  %v11423_v37 = vadd.f32 %v3651_v19, %v11402_v28 }
 0x3f4   :  { %v3653_v52 = vpop.f32.mrf.mxu0 }
 0x3f5   :  { %v3736_v62 = vmul.f32 1.442695, %v3718_v44  ;;  %7924 = vst [vmem:[#allocation21 + $0x30] sm:$0xff] %v11423_v37  ;;  %v3654_v9 = vadd.f32 %v3653_v52, %v11405_v36  ;;  %v3768_v52 = vld [vmem:[#allocation5 + $0x20] sm:$0xff] }
 0x3f6   :  { %v3657_v38 = vpop.f32.mrf.mxu0 }
 0x3f7   :  { %9798 = vpow2.f32 %v3736_v62  ;;  %v3719_v20 = vmul.f32 0.5, %v3654_v9  ;;  %7925 = vst [vmem:[#allocation21 + $0x38] sm:$0xff] %v3654_v9  ;;  %v11428_v49 = vadd.f32 %v3657_v38, %v11402_v28  ;;  %v9393_v38 = vld [vmem:[#allocation17 + $0xa8] ss:$16 sps:$4 sm:$0xff]  }
 0x3f8   :  { %v3659_v34 = vpop.f32.mrf.mxu0 }
 0x3f9   :  { %v3738_v32 = vmul.f32 1.442695, %v3719_v20  ;;  %7926 = vst [vmem:[#allocation21 + $0x40] sm:$0xff] %v11428_v49  ;;  %v3660_v43 = vadd.f32 %v3659_v34, %v11405_v36 }
 0x3fa   :  { %v3661_v27 = vpop.f32.mrf.mxu0 }
 0x3fb   :  { %9800 = vpow2.f32 %v3738_v32  ;;  %v3720_v4 = vmul.f32 0.5, %v3660_v43  ;;  %7927 = vst [vmem:[#allocation21 + $0x48] sm:$0xff] %v3660_v43  ;;  %v11433_v0 = vadd.f32 %v3661_v27, %v11402_v28  ;;  %v3769_v27 = vld [vmem:[#allocation5 + $0x28] sm:$0xff] }
 0x3fc   :  { %v9795_v51 = vpop.eup %9794  ;;  %v3663_v35 = vpop.f32.mrf.mxu0 }
 0x3fd   :  { %v3740_v6 = vmul.f32 1.442695, %v3720_v4  ;;  %7928 = vst [vmem:[#allocation21 + $0x50] sm:$0xff] %v11433_v0  ;;  %v3664_v50 = vadd.f32 %v3663_v35, %v11405_v36  ;;  %v3780_v46 = vmul.f32 %v9795_v51, %v3764_v56 }
 0x3fe   :  { %v3667_v3 = vpop.f32.mrf.mxu0 }
 0x3ff   :  { %9802 = vpow2.f32 %v3740_v6  ;;  %v3721_v24 = vmul.f32 0.5, %v3664_v50  ;;  %7929 = vst [vmem:[#allocation21 + $0x58] sm:$0xff] %v3664_v50  ;;  %v11438_v18 = vadd.f32 %v3667_v3, %v11402_v28  ;;  %v3796_v47 = vadd.f32 %v3780_v46, %v11408_v2  ;;  %v9399_v6 = vld [vmem:[#allocation17 + $0x88] ss:$16 sps:$4 sm:$0xff]   ;;  %v9407_v3 = vld [vmem:[#allocation17 + $0x6c] ss:$16 sps:$4 sm:$0xff]  }
 0x400   :  { %v9797_v23 = vpop.eup %9796  ;;  %v3669_v26 = vpop.f32.mrf.mxu0 }
 0x401   :  { %v3781_v22 = vmul.f32 %v9797_v23, %v3765_v39  ;;  %v3742_v16 = vmul.f32 1.442695, %v3721_v24  ;;  %7930 = vst [vmem:[#allocation21 + $0x60] sm:$0xff] %v11438_v18  ;;  %v3670_v15 = vadd.f32 %v3669_v26, %v11405_v36 }
 0x402   :  { %v3671_v12 = vpop.f32.mrf.mxu0 }
 0x403   :  { %9804 = vpow2.f32 %v3742_v16  ;;  %v3722_v57 = vmul.f32 0.5, %v3670_v15  ;;  %7931 = vst [vmem:[#allocation21 + $0x68] sm:$0xff] %v3670_v15  ;;  %v11444_v5 = vadd.f32 %v3671_v12, %v11402_v28  ;;  %v3797_v7 = vadd.f32 %v3781_v22, %v11413_v25  ;;  %v3770_v15 = vld [vmem:[#allocation5 + $0x30] sm:$0xff] }
 0x404   :  { %v9799_v10 = vpop.eup %9798  ;;  %v3673_v45 = vpop.f32.mrf.mxu0 }
 0x405   :  { %v3744_v17 = vmul.f32 1.442695, %v3722_v57  ;;  %7932 = vst [vmem:[#allocation21 + $0x70] sm:$0xff] %v11444_v5  ;;  %v3674_v29 = vadd.f32 %v3673_v45, %v11405_v36  ;;  %v3812_v14 = vpack.c.bf16 %v3797_v7, %v3796_v47  ;;  %v3782_v41 = vmul.f32 %v9799_v10, %v3766_v8  ;;  %v9405_v57 = vld [vmem:[#allocation17 + $0x68] ss:$16 sps:$4 sm:$0xff]  }
 0x406   :  { %v3677_v2 = vpop.f32.mrf.mxu0 }
 0x407   :  { %9806 = vpow2.f32 %v3744_v17  ;;  %v3723_v60 = vmul.f32 0.5, %v3674_v29  ;;  %7933 = vst [vmem:[#allocation21 + $0x78] sm:$0xff] %v3674_v29  ;;  %v11450_v58 = vadd.f32 %v3677_v2, %v11402_v28  ;;  %3961 = vmatmul.mubr.bf16.vlgmr.msra.gmra.mxu1 %v3812_v14  ;;  %v3798_v11 = vadd.f32 %v3782_v41, %v11418_v48  ;;  %v9401_v48 = vld [vmem:[#allocation17 + $0x8c] ss:$16 sps:$4 sm:$0xff]   ;;  %v9411_v2 = vld [vmem:[#allocation17 + $0x48] ss:$16 sps:$4 sm:$0xff]  }
 0x408   :  { %v9801_v25 = vpop.eup %9800  ;;  %v3679_v30 = vpop.f32.mrf.mxu0  ;;  %3970 = vmatprep.mubr.bf16.mxu1 %v12065_v13  ;;  %4609 = vmatpush1.bf16.msra.mxu1 %v9381_v21  ;;  %v3771_v21 = vld [vmem:[#allocation5 + $0x38] sm:$0xff] }
 0x409   :  { %v3746_v53 = vmul.f32 1.442695, %v3723_v60  ;;  %7934 = vst [vmem:[#allocation21 + $0x80] sm:$0xff] %v11450_v58  ;;  %v3680_v59 = vadd.f32 %v3679_v30, %v11405_v36  ;;  %v3783_v42 = vmul.f32 %v9801_v25, %v3767_v40  ;;  %4610 = vmatprep.subr.bf16.mxu1 %v9389_v54  ;;  %v9419_v25 = vld [vmem:[#allocation17 + $0x2c] ss:$16 sps:$4 sm:$0xff]  }
 0x40a   :  { %v3681_v61 = vpop.f32.mrf.mxu0 }
 0x40b   :  { %9808 = vpow2.f32 %v3746_v53  ;;  %v3724_v63 = vmul.f32 0.5, %v3680_v59  ;;  %7935 = vst [vmem:[#allocation21 + $0x88] sm:$0xff] %v3680_v59  ;;  %v11457_v19 = vadd.f32 %v3681_v61, %v11402_v28  ;;  %v3799_v44 = vadd.f32 %v3783_v42, %v11423_v37 }
 0x40c   :  { %v9803_v62 = vpop.eup %9802  ;;  %v3683_v9 = vpop.f32.mrf.mxu0  ;;  %4611 = vmatpush1.bf16.msra.mxu1 %v9387_v1 }
 0x40d   :  { %v3748_v20 = vmul.f32 1.442695, %v3724_v63  ;;  %7936 = vst [vmem:[#allocation21 + $0x90] sm:$0xff] %v11457_v19  ;;  %v3684_v34 = vadd.f32 %v3683_v9, %v11405_v36  ;;  %v3813_v32 = vpack.c.bf16 %v3799_v44, %v3798_v11  ;;  %4612 = vmatprep.subr.bf16.mxu1 %v9395_v31  ;;  %v3784_v56 = vmul.f32 %v9803_v62, %v3768_v52  ;;  %v3772_v31 = vld [vmem:[#allocation5 + $0x40] sm:$0xff] }
 0x40e   :  { %v3687_v43 = vpop.f32.mrf.mxu0  ;;  %v9417_v63 = vld [vmem:[#allocation17 + $0x28] ss:$16 sps:$4 sm:$0xff]  }
 0x40f   :  { %9810 = vpow2.f32 %v3748_v20  ;;  %v3725_v4 = vmul.f32 0.5, %v3684_v34  ;;  %7937 = vst [vmem:[#allocation21 + $0x98] sm:$0xff] %v3684_v34  ;;  %v11463_v37 = vadd.f32 %v3687_v43, %v11402_v28  ;;  %3971 = vmatmul.mubr.bf16.gmra.mxu1 %v3813_v32  ;;  %v3800_v23 = vadd.f32 %v3784_v56, %v11428_v49  ;;  %v9413_v49 = vld [vmem:[#allocation17 + $0x4c] ss:$16 sps:$4 sm:$0xff]   ;;  %v9423_v43 = vld [vmem:[#allocation17 + $0x8] ss:$16 sps:$4 sm:$0xff]  }
 0x410   :  { %v9805_v51 = vpop.eup %9804  ;;  %v3689_v35 = vpop.f32.mrf.mxu0  ;;  %3980 = vmatprep.mubr.bf16.mxu1 %v12065_v13  ;;  %4613 = vmatpush1.bf16.msra.mxu1 %v9393_v38  ;;  %v3773_v38 = vld [vmem:[#allocation5 + $0x48] sm:$0xff] }
 0x411   :  { %v3750_v50 = vmul.f32 1.442695, %v3725_v4  ;;  %7938 = vst [vmem:[#allocation21 + $0xa0] sm:$0xff] %v11463_v37  ;;  %v3690_v46 = vadd.f32 %v3689_v35, %v11405_v36  ;;  %v3785_v39 = vmul.f32 %v9805_v51, %v3769_v27  ;;  %4614 = vmatprep.subr.bf16.mxu1 %v9401_v48  ;;  %v9431_v51 = vld [vmem:[#allocation17 + $0x1ec] ss:$16 sps:$4 sm:$0xff]  }
 0x412   :  { %v3691_v24 = vpop.f32.mrf.mxu0 }
 0x413   :  { %9812 = vpow2.f32 %v3750_v50  ;;  %v3726_v26 = vmul.f32 0.5, %v3690_v46  ;;  %7939 = vst [vmem:[#allocation21 + $0xa8] sm:$0xff] %v3690_v46  ;;  %v11470_v22 = vadd.f32 %v3691_v24, %v11402_v28  ;;  %v3801_v16 = vadd.f32 %v3785_v39, %v11433_v0 }
 0x414   :  { %v9807_v12 = vpop.eup %9806  ;;  %v3693_v47 = vpop.f32.mrf.mxu0  ;;  %4615 = vmatpush1.bf16.msra.mxu1 %v9399_v6 }
 0x415   :  { %v3752_v7 = vmul.f32 1.442695, %v3726_v26  ;;  %7940 = vst [vmem:[#allocation21 + $0xb0] sm:$0xff] %v11470_v22  ;;  %v3694_v8 = vadd.f32 %v3693_v47, %v11405_v36  ;;  %v3814_v10 = vpack.c.bf16 %v3801_v16, %v3800_v23  ;;  %4616 = vmatprep.subr.bf16.mxu1 %v9407_v3  ;;  %v3786_v17 = vmul.f32 %v9807_v12, %v3770_v15  ;;  %v3774_v23 = vld [vmem:[#allocation5 + $0x50] sm:$0xff]  ;;  %v3775_v47 = vld [vmem:[#allocation5 + $0x58] sm:$0xff] }
 0x416   :  { %v3697_v45 = vpop.f32.mrf.mxu0  ;;  %v9429_v26 = vld [vmem:[#allocation17 + $0x1e8] ss:$16 sps:$4 sm:$0xff]  }
 0x417   :  { %9814 = vpow2.f32 %v3752_v7  ;;  %v3727_v29 = vmul.f32 0.5, %v3694_v8  ;;  %7941 = vst [vmem:[#allocation21 + $0xb8] sm:$0xff] %v3694_v8  ;;  %v11476_v0 = vadd.f32 %v3697_v45, %v11402_v28  ;;  %3981 = vmatmul.mubr.bf16.gmra.mxu1 %v3814_v10  ;;  %v3802_v1 = vadd.f32 %v3786_v17, %v11438_v18  ;;  %v9425_v18 = vld [vmem:[#allocation17 + $0xc] ss:$16 sps:$4 sm:$0xff]   ;;  %v9435_v7 = vld [vmem:[#allocation17 + $0x1c8] ss:$16 sps:$4 sm:$0xff]  }
 0x418   :  { %v9809_v14 = vpop.eup %9808  ;;  %v3699_v54 = vpop.f32.mrf.mxu0  ;;  %3990 = vmatprep.mubr.bf16.mxu1 %v12065_v13  ;;  %4617 = vmatpush1.bf16.msra.mxu1 %v9405_v57  ;;  %v3776_v17 = vld [vmem:[#allocation5 + $0x60] sm:$0xff] }
 0x419   :  { %v3754_v40 = vmul.f32 1.442695, %v3727_v29  ;;  %7942 = vst [vmem:[#allocation21 + $0xc0] sm:$0xff] %v11476_v0  ;;  %v3700_v41 = vadd.f32 %v3699_v54, %v11405_v36  ;;  %v3787_v60 = vmul.f32 %v9809_v14, %v3771_v21  ;;  %4618 = vmatprep.subr.bf16.mxu1 %v9413_v49  ;;  %v9443_v49 = vld [vmem:[#allocation17 + $0x1ac] ss:$16 sps:$4 sm:$0xff]  }
 0x41a   :  { %v3701_v30 = vpop.f32.mrf.mxu0  ;;  %v9441_v29 = vld [vmem:[#allocation17 + $0x1a8] ss:$16 sps:$4 sm:$0xff]   ;;  %v9449_v54 = vld [vmem:[#allocation17 + $0x18c] ss:$16 sps:$4 sm:$0xff]  }
 0x41b   :  { %9816 = vpow2.f32 %v3754_v40  ;;  %v3728_v53 = vmul.f32 0.5, %v3700_v41  ;;  %7943 = vst [vmem:[#allocation21 + $0xc8] sm:$0xff] %v3700_v41  ;;  %v11483_v59 = vadd.f32 %v3701_v30, %v11402_v28  ;;  %v3803_v42 = vadd.f32 %v3787_v60, %v11444_v5  ;;  %v9447_v60 = vld [vmem:[#allocation17 + $0x188] ss:$16 sps:$4 sm:$0xff]  }
 0x41c   :  { %v9811_v61 = vpop.eup %9810  ;;  %v3703_v11 = vpop.f32.mrf.mxu0  ;;  %4619 = vmatpush1.bf16.msra.mxu1 %v9411_v2  ;;  %v3777_v2 = vld [vmem:[#allocation5 + $0x68] sm:$0xff] }
 0x41d   :  { %v3756_v44 = vmul.f32 1.442695, %v3728_v53  ;;  %7944 = vst [vmem:[#allocation21 + $0xd0] sm:$0xff] %v11483_v59  ;;  %v3704_v52 = vadd.f32 %v3703_v11, %v11405_v36  ;;  %v3815_v62 = vpack.c.bf16 %v3803_v42, %v3802_v1  ;;  %4620 = vmatprep.subr.bf16.mxu1 %v9419_v25  ;;  %v3788_v20 = vmul.f32 %v9811_v61, %v3772_v31  ;;  %v3778_v53 = vld [vmem:[#allocation5 + $0x70] sm:$0xff]  ;;  %v3779_v61 = vld [vmem:[#allocation5 + $0x78] sm:$0xff] }
 0x41e   :  { %v3707_v9 = vpop.f32.mrf.mxu0  ;;  %v9453_v42 = vld [vmem:[#allocation17 + $0x168] ss:$16 sps:$4 sm:$0xff]  }
 0x41f   :  { %9818 = vpow2.f32 %v3756_v44  ;;  %v3729_v34 = vmul.f32 0.5, %v3704_v52  ;;  %7945 = vst [vmem:[#allocation21 + $0xd8] sm:$0xff] %v3704_v52  ;;  %v11489_v5 = vadd.f32 %v3707_v9, %v11402_v28  ;;  %3991 = vmatmul.mubr.bf16.gmra.mxu1 %v3815_v62  ;;  %v3804_v6 = vadd.f32 %v3788_v20, %v11450_v58  ;;  %v9437_v58 = vld [vmem:[#allocation17 + $0x1cc] ss:$16 sps:$4 sm:$0xff]   ;;  %v9456_v9 = vld [vmem:[#allocation17 + $0x140] ss:$16 sps:$4 sm:$0xff]  }
 0x420   :  { %v9813_v32 = vpop.eup %9812  ;;  %v3709_v48 = vpop.f32.mrf.mxu0  ;;  %4000 = vmatprep.mubr.bf16.mxu1 %v12065_v13  ;;  %4621 = vmatpush1.bf16.msra.mxu1 %v9417_v63  ;;  %v9464_v20 = vld [vmem:[#allocation17 + $0x124] ss:$16 sps:$4 sm:$0xff]  }
 0x421   :  { %v3758_v27 = vmul.f32 1.442695, %v3729_v34  ;;  %7946 = vst [vmem:[#allocation21 + $0xe0] sm:$0xff] %v11489_v5  ;;  %v3710_v56 = vadd.f32 %v3709_v48, %v11405_v36  ;;  %v3789_v4 = vmul.f32 %v9813_v32, %v3773_v38  ;;  %4622 = vmatprep.subr.bf16.mxu1 %v9425_v18  ;;  %v9461_v18 = vld [vmem:[#allocation17 + $0x14c] ss:$16 sps:$4 sm:$0xff]  }
 0x422   :  { %v3711_v35 = vpop.f32.mrf.mxu0  ;;  %v9459_v38 = vld [vmem:[#allocation17 + $0x148] ss:$16 sps:$4 sm:$0xff]   ;;  %v9467_v34 = vld [vmem:[#allocation17 + $0x12c] ss:$16 sps:$4 sm:$0xff]   ;;  %v9462_v32 = vld [vmem:[#allocation17 + $0x120] ss:$16 sps:$4 sm:$0xff]  }
 0x423   :  { %9820 = vpow2.f32 %v3758_v27  ;;  %v3730_v50 = vmul.f32 0.5, %v3710_v56  ;;  %7947 = vst [vmem:[#allocation21 + $0xe8] sm:$0xff] %v3710_v56  ;;  %v11496_v46 = vadd.f32 %v3711_v35, %v11402_v28  ;;  %v3805_v39 = vadd.f32 %v3789_v4, %v11457_v19  ;;  %v9473_v48 = vld [vmem:[#allocation17 + $0x10c] ss:$16 sps:$4 sm:$0xff]   ;;  %v9471_v27 = vld [vmem:[#allocation17 + $0x108] ss:$16 sps:$4 sm:$0xff]  }
 0x424   :  { %v9815_v3 = vpop.eup %9814  ;;  %v3713_v24 = vpop.f32.mrf.mxu0  ;;  %4623 = vmatpush1.bf16.msra.mxu1 %v9423_v43  ;;  %v9468_v43 = vld [vmem:[#allocation17 + $0x100] ss:$16 sps:$4 sm:$0xff]   ;;  %v9476_v56 = vld [vmem:[#allocation19 + $0x18c] ss:$28 sps:$4 sm:$0xff]  }
 0x425   :  { %v3760_v16 = vmul.f32 1.442695, %v3730_v50  ;;  %7948 = vst [vmem:[#allocation21 + $0xf0] sm:$0xff] %v11496_v46  ;;  %v3714_v15 = vadd.f32 %v3713_v24, %v11405_v36  ;;  %v3816_v12 = vpack.c.bf16 %v3805_v39, %v3804_v6  ;;  %4624 = vmatprep.subr.bf16.mxu1 %v9431_v51  ;;  %v3790_v28 = vmul.f32 %v9815_v3, %v3774_v23  ;;  %v9479_v4 = vld [vmem:[#allocation19 + $0x50c] ss:$28 sps:$4 sm:$0xff]  }
 0x426   :  { %v3836_v51 = vld [vmem:[#allocation16] sm:$0x3] }
 0x427   :  { %9822 = vpow2.f32 %v3760_v16  ;;  %v3731_v57 = vmul.f32 0.5, %v3714_v15  ;;  %7949 = vst [vmem:[#allocation21 + $0xf8] sm:$0xff] %v3714_v15  ;;  %4001 = vmatmul.mubr.bf16.gmra.mxu1 %v3816_v12  ;;  %v3806_v36 = vadd.f32 %v3790_v28, %v11463_v37  ;;  %v9455_v37 = vld [vmem:[#allocation17 + $0x16c] ss:$16 sps:$4 sm:$0xff]   ;;  %v11511_v6 = vrot.slane %v3836_v51, %v12066_v33 }
 0x428   :  { %v9817_v19 = vpop.eup %9816  ;;  %4010 = vmatprep.mubr.bf16.mxu1 %v12065_v13  ;;  %4625 = vmatpush2.bf16.msra.mxu1 %v9429_v26  ;;  %v11514_v50 = vrot.slane %v3836_v51, %v12067_v55  ;;  %v9498_v51 = vld [vmem:[#allocation19 + $0xa8] ss:$28 sps:$4 sm:$0xff]  }
 0x429   :  { %v3762_v8 = vmul.f32 1.442695, %v3731_v57  ;;  %v3791_v10 = vmul.f32 %v9817_v19, %v3775_v47  ;;  %4626 = vmatprep.subr.bf16.mxu1 %v9437_v58 }
 0x42b   :  { %9824 = vpow2.f32 %v3762_v8  ;;  %v3807_v45 = vadd.f32 %v3791_v10, %v11470_v22  ;;  %v9477_v8 = vld [vmem:[#allocation19 + $0x508] ss:$28 sps:$4 sm:$0xff]  }
 0x42c   :  { %v9819_v21 = vpop.eup %9818  ;;  %4627 = vmatpush2.bf16.msra.mxu1 %v9435_v7  ;;  %v9474_v7 = vld [vmem:[#allocation19 + $0x188] ss:$28 sps:$4 sm:$0xff]  }
 0x42d   :  { %v3817_v14 = vpack.c.bf16 %v3807_v45, %v3806_v36  ;;  %4628 = vmatprep.subr.bf16.mxu1 %v9443_v49  ;;  %v3792_v40 = vmul.f32 %v9819_v21, %v3776_v17  ;;  %v9482_v36 = vld [vmem:[#allocation19 + $0x154] ss:$28 sps:$4 sm:$0xff]  }
 0x42e   :  { %v9485_v45 = vld [vmem:[#allocation19 + $0x4d4] ss:$28 sps:$4 sm:$0xff]  }
 0x42f   :  { %4011 = vmatmul.mubr.bf16.gmra.mxu1 %v3817_v14  ;;  %v3808_v22 = vadd.f32 %v3792_v40, %v11476_v0  ;;  %v9483_v40 = vld [vmem:[#allocation19 + $0x4d0] ss:$28 sps:$4 sm:$0xff]  }
 0x430   :  { %v9821_v41 = vpop.eup %9820  ;;  %4020 = vmatprep.mubr.bf16.mxu1 %v12065_v13  ;;  %4629 = vmatpush2.bf16.msra.mxu1 %v9441_v29 }
 0x431   :  { %v3793_v25 = vmul.f32 %v9821_v41, %v3777_v2  ;;  %4630 = vmatprep.subr.bf16.mxu1 %v9449_v54  ;;  %v9480_v2 = vld [vmem:[#allocation19 + $0x150] ss:$28 sps:$4 sm:$0xff]  }
 0x433   :  { %v3809_v30 = vadd.f32 %v3793_v25, %v11483_v59  ;;  %v9458_v59 = vld [vmem:[#allocation17 + $0x144] ss:$16 sps:$4 sm:$0xff]   ;;  %v9488_v25 = vld [vmem:[#allocation19 + $0x11c] ss:$28 sps:$4 sm:$0xff]  }
 0x434   :  { %v9823_v1 = vpop.eup %9822  ;;  %4631 = vmatpush2.bf16.msra.mxu1 %v9447_v60  ;;  %4521 = vmatprep.subr.bf16.mxu0 %v9458_v59 }
 0x435   :  { %v3818_v31 = vpack.c.bf16 %v3809_v30, %v3808_v22  ;;  %4632 = vmatprep.subr.bf16.mxu1 %v9455_v37  ;;  %v3794_v11 = vmul.f32 %v9823_v1, %v3778_v53  ;;  %4522 = vmatpush2.bf16.msra.mxu0 %v9456_v9  ;;  %v9491_v37 = vld [vmem:[#allocation19 + $0x49c] ss:$28 sps:$4 sm:$0xff]  }
 0x436   :  { %4523 = vmatprep.subr.bf16.mxu0 %v9464_v20  ;;  %v9495_v20 = vld [vmem:[#allocation19 + $0x460] ss:$28 sps:$4 sm:$0xff]  }
 0x437   :  { %4021 = vmatmul.mubr.bf16.gmra.mxu1 %v3818_v31  ;;  %v3810_v52 = vadd.f32 %v3794_v11, %v11489_v5  ;;  %v9470_v5 = vld [vmem:[#allocation17 + $0x104] ss:$16 sps:$4 sm:$0xff]  }
 0x438   :  { %v9825_v63 = vpop.eup %9824  ;;  %4030 = vmatprep.mubr.bf16.mxu1 %v12065_v13  ;;  %4633 = vmatpush2.bf16.msra.mxu1 %v9453_v42  ;;  %v9465_v13 = vld [vmem:[#allocation17 + $0x128] ss:$16 sps:$4 sm:$0xff]  }
 0x439   :  { %v3795_v44 = vmul.f32 %v9825_v63, %v3779_v61  ;;  %4634 = vmatprep.subr.bf16.mxu1 %v9461_v18  ;;  %4524 = vmatpush2.bf16.msra.mxu0 %v9462_v32  ;;  %v9486_v31 = vld [vmem:[#allocation19 + $0x118] ss:$28 sps:$4 sm:$0xff]  }
 0x43a   :  { %4525 = vmatprep.subr.bf16.mxu0 %v9470_v5  ;;  %v9489_v61 = vld [vmem:[#allocation19 + $0x498] ss:$28 sps:$4 sm:$0xff]   ;;  %v9503_v5 = vld [vmem:[#allocation19 + $0x42c] ss:$28 sps:$4 sm:$0xff]  }
 0x43b   :  { %v3811_v0 = vadd.f32 %v3795_v44, %v11496_v46  ;;  %v9494_v44 = vld [vmem:[#allocation19 + $0xe4] ss:$28 sps:$4 sm:$0xff]  }
 0x43c   :  { %4635 = vmatpush2.bf16.msra.mxu1 %v9459_v38  ;;  %v9492_v38 = vld [vmem:[#allocation19 + $0xe0] ss:$28 sps:$4 sm:$0xff]  }
 0x43d   :  { %v3819_v62 = vpack.c.bf16 %v3811_v0, %v3810_v52  ;;  %4636 = vmatprep.subr.bf16.mxu1 %v9467_v34  ;;  %4526 = vmatpush2.bf16.msra.mxu0 %v9468_v43  ;;  %v9497_v52 = vld [vmem:[#allocation19 + $0x464] ss:$28 sps:$4 sm:$0xff]  }
 0x43e   :  { %6262 = vmatprep.subr.bf16.mxu0 %v9476_v56 }
 0x43f   :  { %4031 = vmatmul.mubr.bf16.gmra.mxu1 %v3819_v62 }
 0x440   :  { %4637 = vmatpush2.bf16.msra.mxu1 %v9465_v13  ;;  %v9500_v13 = vld [vmem:[#allocation19 + $0xac] ss:$28 sps:$4 sm:$0xff]  }
 0x441   :  { %4638 = vmatprep.subr.bf16.mxu1 %v9473_v48 }
 0x444   :  { %4639 = vmatpush2.bf16.msra.mxu1 %v9471_v27 }
 0x445   :  { %6375 = vmatprep.subr.bf16.mxu1 %v9479_v4 }
 0x4c7   :  { %v3962_v35 = vpop.f32.mrf.mxu1 }
 0x4c8   :  { %v3963_v23 = vadd.f32 %v3962_v35, %v11514_v50  ;;  %v9501_v35 = vld [vmem:[#allocation19 + $0x428] ss:$28 sps:$4 sm:$0xff]  }
 0x4c9   :  { %v3964_v46 = vpop.f32.mrf.mxu1 }
 0x4ca   :  { %v3965_v3 = vadd.f32 %v3964_v46, %v11511_v6  ;;  %v4041_v57 = vmax.f32 %v3963_v23, 0.0 }
 0x4cb   :  { %v3966_v39 = vpop.f32.mrf.mxu1 }
 0x4cc   :  { %v3967_v24 = vadd.f32 %v3966_v39, %v11514_v50  ;;  %v4042_v58 = vmax.f32 %v3965_v3, 0.0  ;;  %v9506_v3 = vld [vmem:[#allocation19 + $0x74] ss:$28 sps:$4 sm:$0xff]  }
 0x4cd   :  { %v3968_v26 = vpop.f32.mrf.mxu1 }
 0x4ce   :  { %v3969_v16 = vadd.f32 %v3968_v26, %v11511_v6  ;;  %v4043_v15 = vmax.f32 %v3967_v24, 0.0  ;;  %v9509_v24 = vld [vmem:[#allocation19 + $0x3f4] ss:$28 sps:$4 sm:$0xff]  }
 0x4cf   :  { %v3972_v12 = vpop.f32.mrf.mxu1 }
 0x4d0   :  { %v4044_v47 = vmax.f32 %v3969_v16, 0.0  ;;  %v4073_v10 = vpack.c.bf16 %v4043_v15, %v4041_v57  ;;  %v3973_v29 = vadd.f32 %v3972_v12, %v11514_v50 }
 0x4d1   :  { %v3974_v28 = vpop.f32.mrf.mxu1 }
 0x4d2   :  { %v4074_v19 = vpack.c.bf16 %v4044_v47, %v4042_v58  ;;  %v3975_v21 = vadd.f32 %v3974_v28, %v11511_v6  ;;  %v4045_v1 = vmax.f32 %v3973_v29, 0.0  ;;  %v9504_v58 = vld [vmem:[#allocation19 + $0x70] ss:$28 sps:$4 sm:$0xff]  }
 0x4d3   :  { %v3976_v49 = vpop.f32.mrf.mxu1  ;;  %v9507_v47 = vld [vmem:[#allocation19 + $0x3f0] ss:$28 sps:$4 sm:$0xff]  }
 0x4d4   :  { %v3977_v17 = vadd.f32 %v3976_v49, %v11514_v50  ;;  %4527 = vmatprep.mubr.bf16.mxu0 %v4074_v19  ;;  %4640 = vmatprep.mubr.bf16.mxu1 %v4074_v19  ;;  %v4046_v22 = vmax.f32 %v3975_v21, 0.0  ;;  %v9512_v19 = vld [vmem:[#allocation19 + $0x3c] ss:$28 sps:$4 sm:$0xff]  }
 0x4d5   :  { %v3978_v14 = vpop.f32.mrf.mxu1  ;;  %4528 = vmatmul.mubr.bf16.vlgmr.msra.gmra.mxu0 %v4073_v10  ;;  %4641 = vmatmul.mubr.bf16.vlgmr.msra.gmra.mxu1 %v4073_v10  ;;  %v9510_v21 = vld [vmem:[#allocation19 + $0x38] ss:$28 sps:$4 sm:$0xff]  }
 0x4d6   :  { %v3979_v54 = vadd.f32 %v3978_v14, %v11511_v6  ;;  %6263 = vmatpush1.bf16.msra.mxu0 %v9474_v7  ;;  %6376 = vmatpush1.bf16.msra.mxu1 %v9477_v8  ;;  %v4047_v41 = vmax.f32 %v3977_v17, 0.0  ;;  %v9515_v7 = vld [vmem:[#allocation19 + $0x3bc] ss:$28 sps:$4 sm:$0xff]  }
 0x4d7   :  { %v3982_v60 = vpop.f32.mrf.mxu1  ;;  %6264 = vmatprep.subr.bf16.mxu0 %v9482_v36  ;;  %6377 = vmatprep.subr.bf16.mxu1 %v9485_v45  ;;  %v9513_v17 = vld [vmem:[#allocation19 + $0x3b8] ss:$28 sps:$4 sm:$0xff]  }
 0x4d8   :  { %v4048_v30 = vmax.f32 %v3979_v54, 0.0  ;;  %v4075_v11 = vpack.c.bf16 %v4047_v41, %v4045_v1  ;;  %v3983_v59 = vadd.f32 %v3982_v60, %v11514_v50  ;;  %v9518_v54 = vld [vmem:[#allocation19 + $0x4] ss:$28 sps:$4 sm:$0xff]  }
 0x4d9   :  { %v3984_v53 = vpop.f32.mrf.mxu1 }
 0x4da   :  { %v4076_v42 = vpack.c.bf16 %v4048_v30, %v4046_v22  ;;  %6265 = vmatpush1.bf16.msra.mxu0 %v9480_v2  ;;  %6378 = vmatpush1.bf16.msra.mxu1 %v9483_v40  ;;  %v3985_v0 = vadd.f32 %v3984_v53, %v11511_v6  ;;  %v4049_v27 = vmax.f32 %v3983_v59, 0.0  ;;  %v9521_v2 = vld [vmem:[#allocation19 + $0x384] ss:$28 sps:$4 sm:$0xff]  }
 0x4db   :  { %v3986_v63 = vpop.f32.mrf.mxu1  ;;  %6266 = vmatprep.subr.bf16.mxu0 %v9488_v25  ;;  %6379 = vmatprep.subr.bf16.mxu1 %v9491_v37  ;;  %v9516_v22 = vld [vmem:[#allocation19] ss:$28 sps:$4 sm:$0xff]  }
 0x4dc   :  { %v3987_v62 = vadd.f32 %v3986_v63, %v11514_v50  ;;  %4537 = vmatprep.mubr.bf16.mxu0 %v4076_v42  ;;  %4650 = vmatprep.mubr.bf16.mxu1 %v4076_v42  ;;  %v4050_v48 = vmax.f32 %v3985_v0, 0.0  ;;  %v9519_v30 = vld [vmem:[#allocation19 + $0x380] ss:$28 sps:$4 sm:$0xff]   ;;  %v9524_v42 = vld [vmem:[#allocation19 + $0x34c] ss:$28 sps:$4 sm:$0xff]  }
 0x4dd   :  { %v3988_v18 = vpop.f32.mrf.mxu1  ;;  %4538 = vmatmul.mubr.bf16.gmra.mxu0 %v4075_v11  ;;  %4651 = vmatmul.mubr.bf16.gmra.mxu1 %v4075_v11  ;;  %v9522_v0 = vld [vmem:[#allocation19 + $0x348] ss:$28 sps:$4 sm:$0xff]  }
 0x4de   :  { %v3989_v9 = vadd.f32 %v3988_v18, %v11511_v6  ;;  %6267 = vmatpush1.bf16.msra.mxu0 %v9486_v31  ;;  %6380 = vmatpush1.bf16.msra.mxu1 %v9489_v61  ;;  %v4051_v34 = vmax.f32 %v3987_v62, 0.0  ;;  %v9527_v31 = vld [vmem:[#allocation19 + $0x6cc] ss:$28 sps:$4 sm:$0xff]  }
 0x4df   :  { %v3992_v32 = vpop.f32.mrf.mxu1  ;;  %6268 = vmatprep.subr.bf16.mxu0 %v9494_v44  ;;  %6381 = vmatprep.subr.bf16.mxu1 %v9497_v52  ;;  %v9525_v62 = vld [vmem:[#allocation19 + $0x6c8] ss:$28 sps:$4 sm:$0xff]  }
 0x4e0   :  { %v4052_v43 = vmax.f32 %v3989_v9, 0.0  ;;  %v4077_v46 = vpack.c.bf16 %v4051_v34, %v4049_v27  ;;  %v3993_v16 = vadd.f32 %v3992_v32, %v11514_v50  ;;  %v9530_v9 = vld [vmem:[#allocation19 + $0x314] ss:$28 sps:$4 sm:$0xff]  }
 0x4e1   :  { %v3994_v56 = vpop.f32.mrf.mxu1 }
 0x4e2   :  { %v4078_v4 = vpack.c.bf16 %v4052_v43, %v4050_v48  ;;  %6269 = vmatpush1.bf16.msra.mxu0 %v9492_v38  ;;  %6382 = vmatpush1.bf16.msra.mxu1 %v9495_v20  ;;  %v3995_v23 = vadd.f32 %v3994_v56, %v11511_v6  ;;  %v4053_v49 = vmax.f32 %v3993_v16, 0.0  ;;  %v9533_v38 = vld [vmem:[#allocation19 + $0x694] ss:$28 sps:$4 sm:$0xff]  }
 0x4e3   :  { %v3996_v39 = vpop.f32.mrf.mxu1  ;;  %6270 = vmatprep.subr.bf16.mxu0 %v9500_v13  ;;  %6383 = vmatprep.subr.bf16.mxu1 %v9503_v5  ;;  %v9528_v48 = vld [vmem:[#allocation19 + $0x310] ss:$28 sps:$4 sm:$0xff]  }
 0x4e4   :  { %v3997_v26 = vadd.f32 %v3996_v39, %v11514_v50  ;;  %4547 = vmatprep.mubr.bf16.mxu0 %v4078_v4  ;;  %4660 = vmatprep.mubr.bf16.mxu1 %v4078_v4  ;;  %v4054_v8 = vmax.f32 %v3995_v23, 0.0  ;;  %v9531_v43 = vld [vmem:[#allocation19 + $0x690] ss:$28 sps:$4 sm:$0xff]   ;;  %v9536_v4 = vld [vmem:[#allocation19 + $0x2dc] ss:$28 sps:$4 sm:$0xff]  }
 0x4e5   :  { %v3998_v15 = vpop.f32.mrf.mxu1  ;;  %4548 = vmatmul.mubr.bf16.gmra.mxu0 %v4077_v46  ;;  %4661 = vmatmul.mubr.bf16.gmra.mxu1 %v4077_v46  ;;  %v9534_v23 = vld [vmem:[#allocation19 + $0x2d8] ss:$28 sps:$4 sm:$0xff]  }
 0x4e6   :  { %v3999_v12 = vadd.f32 %v3998_v15, %v11511_v6  ;;  %6271 = vmatpush1.bf16.msra.mxu0 %v9498_v51  ;;  %6384 = vmatpush1.bf16.msra.mxu1 %v9501_v35  ;;  %v4055_v57 = vmax.f32 %v3997_v26, 0.0  ;;  %v9539_v51 = vld [vmem:[#allocation19 + $0x65c] ss:$28 sps:$4 sm:$0xff]  }
 0x4e7   :  { %v4002_v28 = vpop.f32.mrf.mxu1  ;;  %6272 = vmatprep.subr.bf16.mxu0 %v9506_v3  ;;  %6385 = vmatprep.subr.bf16.mxu1 %v9509_v24  ;;  %v9537_v26 = vld [vmem:[#allocation19 + $0x658] ss:$28 sps:$4 sm:$0xff]  }
 0x4e8   :  { %v4056_v10 = vmax.f32 %v3999_v12, 0.0  ;;  %v4079_v29 = vpack.c.bf16 %v4055_v57, %v4053_v49  ;;  %v4003_v60 = vadd.f32 %v4002_v28, %v11514_v50  ;;  %v9542_v12 = vld [vmem:[#allocation19 + $0x2a4] ss:$28 sps:$4 sm:$0xff]  }
 0x4e9   :  { %v4004_v36 = vpop.f32.mrf.mxu1 }
 0x4ea   :  { %v4080_v45 = vpack.c.bf16 %v4056_v10, %v4054_v8  ;;  %6273 = vmatpush1.bf16.msra.mxu0 %v9504_v58  ;;  %6386 = vmatpush1.bf16.msra.mxu1 %v9507_v47  ;;  %v4005_v40 = vadd.f32 %v4004_v36, %v11511_v6  ;;  %v4057_v63 = vmax.f32 %v4003_v60, 0.0  ;;  %v9545_v58 = vld [vmem:[#allocation19 + $0x624] ss:$28 sps:$4 sm:$0xff]  }
 0x4eb   :  { %v4006_v14 = vpop.f32.mrf.mxu1  ;;  %6274 = vmatprep.subr.bf16.mxu0 %v9512_v19  ;;  %6387 = vmatprep.subr.bf16.mxu1 %v9515_v7  ;;  %v9540_v8 = vld [vmem:[#allocation19 + $0x2a0] ss:$28 sps:$4 sm:$0xff]  }
 0x4ec   :  { %v4007_v41 = vadd.f32 %v4006_v14, %v11514_v50  ;;  %4557 = vmatprep.mubr.bf16.mxu0 %v4080_v45  ;;  %4670 = vmatprep.mubr.bf16.mxu1 %v4080_v45  ;;  %v4058_v61 = vmax.f32 %v4005_v40, 0.0  ;;  %v9543_v10 = vld [vmem:[#allocation19 + $0x620] ss:$28 sps:$4 sm:$0xff]   ;;  %v9548_v45 = vld [vmem:[#allocation19 + $0x26c] ss:$28 sps:$4 sm:$0xff]  }
 0x4ed   :  { %v4008_v25 = vpop.f32.mrf.mxu1  ;;  %4558 = vmatmul.mubr.bf16.gmra.mxu0 %v4079_v29  ;;  %4671 = vmatmul.mubr.bf16.gmra.mxu1 %v4079_v29  ;;  %v9546_v40 = vld [vmem:[#allocation19 + $0x268] ss:$28 sps:$4 sm:$0xff]  }
 0x4ee   :  { %v4009_v37 = vadd.f32 %v4008_v25, %v11511_v6  ;;  %6275 = vmatpush1.bf16.msra.mxu0 %v9510_v21  ;;  %6388 = vmatpush1.bf16.msra.mxu1 %v9513_v17  ;;  %v4059_v1 = vmax.f32 %v4007_v41, 0.0  ;;  %v9551_v21 = vld [vmem:[#allocation19 + $0x5ec] ss:$28 sps:$4 sm:$0xff]  }
 0x4ef   :  { %v4012_v53 = vpop.f32.mrf.mxu1  ;;  %6276 = vmatprep.subr.bf16.mxu0 %v9518_v54  ;;  %6389 = vmatprep.subr.bf16.mxu1 %v9521_v2  ;;  %v9549_v41 = vld [vmem:[#allocation19 + $0x5e8] ss:$28 sps:$4 sm:$0xff]  }
 0x4f0   :  { %v4060_v11 = vmax.f32 %v4009_v37, 0.0  ;;  %v4081_v59 = vpack.c.bf16 %v4059_v1, %v4057_v63  ;;  %v4013_v32 = vadd.f32 %v4012_v53, %v11514_v50 }
 0x4f1   :  { %v4014_v44 = vpop.f32.mrf.mxu1 }
 0x4f2   :  { %v4082_v52 = vpack.c.bf16 %v4060_v11, %v4058_v61  ;;  %6277 = vmatpush1.bf16.msra.mxu0 %v9516_v22  ;;  %6390 = vmatpush1.bf16.msra.mxu1 %v9519_v30  ;;  %v4015_v20 = vadd.f32 %v4014_v44, %v11511_v6  ;;  %v4061_v39 = vmax.f32 %v4013_v32, 0.0  ;;  %v9567_v32 = vld [vmem:[#allocation19 + $0x540] ss:$28 sps:$4 sm:$0xff]  }
 0x4f3   :  { %v4016_v18 = vpop.f32.mrf.mxu1  ;;  %6278 = vmatprep.subr.bf16.mxu0 %v9524_v42  ;;  %6391 = vmatprep.subr.bf16.mxu1 %v9527_v31 }
 0x4f4   :  { %v4017_v34 = vadd.f32 %v4016_v18, %v11514_v50  ;;  %4567 = vmatprep.mubr.bf16.mxu0 %v4082_v52  ;;  %4680 = vmatprep.mubr.bf16.mxu1 %v4082_v52  ;;  %v4062_v35 = vmax.f32 %v4015_v20, 0.0  ;;  %v9554_v52 = vld [vmem:[#allocation19 + $0x234] ss:$28 sps:$4 sm:$0xff]   ;;  %v9569_v20 = vld [vmem:[#allocation19 + $0x544] ss:$28 sps:$4 sm:$0xff]  }
 0x4f5   :  { %v4018_v13 = vpop.f32.mrf.mxu1  ;;  %4568 = vmatmul.mubr.bf16.gmra.mxu0 %v4081_v59  ;;  %4681 = vmatmul.mubr.bf16.gmra.mxu1 %v4081_v59  ;;  %v9563_v59 = vld [vmem:[#allocation19 + $0x57c] ss:$28 sps:$4 sm:$0xff]  }
 0x4f6   :  { %v4019_v5 = vadd.f32 %v4018_v13, %v11511_v6  ;;  %6279 = vmatpush2.bf16.msra.mxu0 %v9522_v0  ;;  %6392 = vmatpush2.bf16.msra.mxu1 %v9525_v62  ;;  %v4063_v27 = vmax.f32 %v4017_v34, 0.0  ;;  %v9557_v0 = vld [vmem:[#allocation19 + $0x5b4] ss:$28 sps:$4 sm:$0xff]   ;;  %v9564_v34 = vld [vmem:[#allocation19 + $0x1c0] ss:$28 sps:$4 sm:$0xff]  }
 0x4f7   :  { %v4022_v56 = vpop.f32.mrf.mxu1  ;;  %6280 = vmatprep.subr.bf16.mxu0 %v9530_v9  ;;  %6393 = vmatprep.subr.bf16.mxu1 %v9533_v38  ;;  %v9555_v62 = vld [vmem:[#allocation19 + $0x5b0] ss:$28 sps:$4 sm:$0xff]   ;;  %v9558_v18 = vld [vmem:[#allocation19 + $0x1f8] ss:$28 sps:$4 sm:$0xff]   ;;  %v9566_v38 = vld [vmem:[#allocation19 + $0x1c4] ss:$28 sps:$4 sm:$0xff]  }
 0x4f8   :  { %v4064_v46 = vmax.f32 %v4019_v5, 0.0  ;;  %v4083_v16 = vpack.c.bf16 %v4063_v27, %v4061_v39  ;;  %v4023_v28 = vadd.f32 %v4022_v56, %v11514_v50  ;;  %v9561_v9 = vld [vmem:[#allocation19 + $0x578] ss:$28 sps:$4 sm:$0xff]  }
 0x4f9   :  { %v4024_v3 = vpop.f32.mrf.mxu1  ;;  %v9572_v13 = vld [vmem:[#allocation19 + $0x194] ss:$28 sps:$4 sm:$0xff]  }
 0x4fa   :  { %v4084_v24 = vpack.c.bf16 %v4064_v46, %v4062_v35  ;;  %6281 = vmatpush2.bf16.msra.mxu0 %v9528_v48  ;;  %6394 = vmatpush2.bf16.msra.mxu1 %v9531_v43  ;;  %v4025_v47 = vadd.f32 %v4024_v3, %v11511_v6  ;;  %v4065_v14 = vmax.f32 %v4023_v28, 0.0  ;;  %v9575_v5 = vld [vmem:[#allocation19 + $0x514] ss:$28 sps:$4 sm:$0xff]   ;;  %v4153_v48 = vld [vmem:[%s11992_s11] sm:$0xf]  ;;  %v12069_v46 = vld [vmem:[#allocation36_spill] sm:$0xff] }
 0x4fb   :  { %v4026_v15 = vpop.f32.mrf.mxu1  ;;  %6282 = vmatprep.subr.bf16.mxu0 %v9536_v4  ;;  %6395 = vmatprep.subr.bf16.mxu1 %v9539_v51  ;;  %v11552_v56 = vrot.slane %v4153_v48, %v12066_v33  ;;  %v12068_v4 = vld [vmem:[#allocation37_spill] sm:$0xff]  ;;  %v11558_v35 = vrot.slane %v4153_v48, %v12067_v55  ;;  %v11561_v39 = vrot.slane %v4153_v48, %v12069_v46 }
 0x4fc   :  { %v4027_v57 = vadd.f32 %v4026_v15, %v11514_v50  ;;  %4577 = vmatprep.mubr.bf16.mxu0 %v4084_v24  ;;  %4690 = vmatprep.mubr.bf16.mxu1 %v4084_v24  ;;  %v4066_v17 = vmax.f32 %v4025_v47, 0.0  ;;  %v11555_v51 = vrot.slane %v4153_v48, %v12068_v4 }
 0x4fd   :  { %v4028_v19 = vpop.f32.mrf.mxu1  ;;  %4578 = vmatmul.mubr.bf16.gmra.mxu0 %v4083_v16  ;;  %4691 = vmatmul.mubr.bf16.gmra.mxu1 %v4083_v16 }
 0x4fe   :  { %v4029_v7 = vadd.f32 %v4028_v19, %v11511_v6  ;;  %6283 = vmatpush2.bf16.msra.mxu0 %v9534_v23  ;;  %6396 = vmatpush2.bf16.msra.mxu1 %v9537_v26  ;;  %v4067_v49 = vmax.f32 %v4027_v57, 0.0 }
 0x4ff   :  { %v4032_v36 = vpop.f32.mrf.mxu1  ;;  %6284 = vmatprep.subr.bf16.mxu0 %v9542_v12  ;;  %6397 = vmatprep.subr.bf16.mxu1 %v9545_v58 }
 0x500   :  { %v4068_v29 = vmax.f32 %v4029_v7, 0.0  ;;  %v4085_v60 = vpack.c.bf16 %v4067_v49, %v4065_v14  ;;  %v4033_v30 = vadd.f32 %v4032_v36, %v11514_v50 }
 0x501   :  { %v4034_v54 = vpop.f32.mrf.mxu1 }
 0x502   :  { %v4086_v2 = vpack.c.bf16 %v4068_v29, %v4066_v17  ;;  %6285 = vmatpush2.bf16.msra.mxu0 %v9540_v8  ;;  %6398 = vmatpush2.bf16.msra.mxu1 %v9543_v10  ;;  %v4035_v37 = vadd.f32 %v4034_v54, %v11511_v6  ;;  %v4069_v11 = vmax.f32 %v4033_v30, 0.0 }
 0x503   :  { %v4036_v25 = vpop.f32.mrf.mxu1  ;;  %6286 = vmatprep.subr.bf16.mxu0 %v9548_v45  ;;  %6399 = vmatprep.subr.bf16.mxu1 %v9551_v21 }
 0x504   :  { %v4037_v22 = vadd.f32 %v4036_v25, %v11514_v50  ;;  %4587 = vmatprep.mubr.bf16.mxu0 %v4086_v2  ;;  %4700 = vmatprep.mubr.bf16.mxu1 %v4086_v2  ;;  %v4070_v31 = vmax.f32 %v4035_v37, 0.0  ;;  %v9552_v50 = vld [vmem:[#allocation19 + $0x230] ss:$28 sps:$4 sm:$0xff]  }
 0x505   :  { %v4038_v1 = vpop.f32.mrf.mxu1  ;;  %4588 = vmatmul.mubr.bf16.gmra.mxu0 %v4085_v60  ;;  %4701 = vmatmul.mubr.bf16.gmra.mxu1 %v4085_v60  ;;  %v9570_v37 = vld [vmem:[#allocation19 + $0x190] ss:$28 sps:$4 sm:$0xff]  }
 0x506   :  { %v4039_v53 = vadd.f32 %v4038_v1, %v11511_v6  ;;  %6287 = vmatpush2.bf16.msra.mxu0 %v9546_v40  ;;  %6400 = vmatpush2.bf16.msra.mxu1 %v9549_v41  ;;  %v4071_v42 = vmax.f32 %v4037_v22, 0.0  ;;  %v9560_v6 = vld [vmem:[#allocation19 + $0x1fc] ss:$28 sps:$4 sm:$0xff]   ;;  %v9573_v22 = vld [vmem:[#allocation19 + $0x510] ss:$28 sps:$4 sm:$0xff]  }
 0x507   :  { %6288 = vmatprep.subr.bf16.mxu0 %v9554_v52  ;;  %6401 = vmatprep.subr.bf16.mxu1 %v9557_v0 }
 0x508   :  { %v4072_v61 = vmax.f32 %v4039_v53, 0.0  ;;  %v4087_v44 = vpack.c.bf16 %v4071_v42, %v4069_v11  ;;  %v9581_v11 = vld [vmem:[#allocation19 + $0x4dc] ss:$28 sps:$4 sm:$0xff]  }
 0x50a   :  { %v4088_v63 = vpack.c.bf16 %v4072_v61, %v4070_v31  ;;  %6289 = vmatpush2.bf16.msra.mxu0 %v9552_v50  ;;  %6402 = vmatpush2.bf16.msra.mxu1 %v9555_v62  ;;  %v9578_v61 = vld [vmem:[#allocation19 + $0x15c] ss:$28 sps:$4 sm:$0xff]  }
 0x50b   :  { %6290 = vmatprep.subr.bf16.mxu0 %v9560_v6  ;;  %6403 = vmatprep.subr.bf16.mxu1 %v9563_v59 }
 0x50c   :  { %4597 = vmatprep.mubr.bf16.mxu0 %v4088_v63  ;;  %4710 = vmatprep.mubr.bf16.mxu1 %v4088_v63 }
 0x50d   :  { %4598 = vmatmul.mubr.bf16.gmra.mxu0 %v4087_v44  ;;  %4711 = vmatmul.mubr.bf16.gmra.mxu1 %v4087_v44 }
 0x50e   :  { %6291 = vmatpush2.bf16.msra.mxu0 %v9558_v18  ;;  %6404 = vmatpush2.bf16.msra.mxu1 %v9561_v9  ;;  %v9576_v9 = vld [vmem:[#allocation19 + $0x158] ss:$28 sps:$4 sm:$0xff]  }
 0x50f   :  { %6292 = vmatprep.subr.bf16.mxu0 %v9566_v38  ;;  %6405 = vmatprep.subr.bf16.mxu1 %v9569_v20 }
 0x512   :  { %6293 = vmatpush2.bf16.msra.mxu0 %v9564_v34  ;;  %6406 = vmatpush2.bf16.msra.mxu1 %v9567_v32 }
 0x513   :  { %6488 = vmatprep.subr.bf16.mxu0 %v9572_v13  ;;  %6601 = vmatprep.subr.bf16.mxu1 %v9575_v5  ;;  %v9579_v13 = vld [vmem:[#allocation19 + $0x4d8] ss:$28 sps:$4 sm:$0xff]   ;;  %v9584_v5 = vld [vmem:[#allocation19 + $0x124] ss:$28 sps:$4 sm:$0xff]  }
 0x595   :  { %v4529_v43 = vpop.f32.mrf.mxu0  ;;  %v4642_v27 = vpop.f32.mrf.mxu1 }
 0x596   :  { %v4530_v47 = vadd.f32 %v4529_v43, %v11558_v35  ;;  %v4643_v57 = vadd.f32 %v4642_v27, %v11561_v39 }
 0x597   :  { %v4531_v3 = vpop.f32.mrf.mxu0  ;;  %v4644_v24 = vpop.f32.mrf.mxu1 }
 0x598   :  { %v4532_v16 = vadd.f32 %v4531_v3, %v11552_v56  ;;  %v4645_v15 = vadd.f32 %v4644_v24, %v11555_v51  ;;  %v4721_v54 = vmax.f32 %v4530_v47, 0.0  ;;  %v4723_v2 = vmax.f32 %v4643_v57, 0.0  ;;  %v9587_v47 = vld [vmem:[#allocation19 + $0x4a4] ss:$28 sps:$4 sm:$0xff]  }
 0x599   :  { %v4533_v23 = vpop.f32.mrf.mxu0  ;;  %v4646_v26 = vpop.f32.mrf.mxu1 }
 0x59a   :  { %v4534_v12 = vadd.f32 %v4533_v23, %v11558_v35  ;;  %v4647_v58 = vadd.f32 %v4646_v26, %v11561_v39  ;;  %v4722_v21 = vmax.f32 %v4532_v16, 0.0  ;;  %v4724_v17 = vmax.f32 %v4645_v15, 0.0 }
 0x59b   :  { %v4535_v28 = vpop.f32.mrf.mxu0  ;;  %v4648_v19 = vpop.f32.mrf.mxu1 }
 0x59c   :  { %v4536_v7 = vadd.f32 %v4535_v28, %v11552_v56  ;;  %v4649_v8 = vadd.f32 %v4648_v19, %v11555_v51  ;;  %v4725_v10 = vmax.f32 %v4534_v12, 0.0  ;;  %v4727_v49 = vmax.f32 %v4647_v58, 0.0  ;;  %v9582_v58 = vld [vmem:[#allocation19 + $0x120] ss:$28 sps:$4 sm:$0xff]  }
 0x59d   :  { %v4539_v36 = vpop.f32.mrf.mxu0  ;;  %v4652_v45 = vpop.f32.mrf.mxu1 }
 0x59e   :  { %v4726_v29 = vmax.f32 %v4536_v7, 0.0  ;;  %v4728_v14 = vmax.f32 %v4649_v8, 0.0  ;;  %v11575_v30 = vpack.c.bf16 %v4725_v10, %v4721_v54  ;;  %v11577_v1 = vpack.c.bf16 %v4727_v49, %v4723_v2  ;;  %v9585_v10 = vld [vmem:[#allocation19 + $0x4a0] ss:$28 sps:$4 sm:$0xff]   ;;  %v9590_v49 = vld [vmem:[#allocation19 + $0xec] ss:$28 sps:$4 sm:$0xff]  }
 0x59f   :  { %v4541_v40 = vpop.f32.mrf.mxu0  ;;  %v4654_v41 = vpop.f32.mrf.mxu1  ;;  %v4540_v0 = vadd.f32 %v4539_v36, %v11558_v35  ;;  %v4653_v50 = vadd.f32 %v4652_v45, %v11561_v39 }
 0x5a0   :  { %v11571_v60 = vpack.c.bf16 %v4726_v29, %v4722_v21  ;;  %v11573_v25 = vpack.c.bf16 %v4728_v14, %v4724_v17  ;;  %v4542_v53 = vadd.f32 %v4541_v40, %v11552_v56  ;;  %v4655_v63 = vadd.f32 %v4654_v41, %v11555_v51  ;;  %v9593_v17 = vld [vmem:[#allocation19 + $0x46c] ss:$28 sps:$4 sm:$0xff]  }
 0x5a1   :  { %v4543_v42 = vpop.f32.mrf.mxu0  ;;  %v4656_v31 = vpop.f32.mrf.mxu1  ;;  %v4729_v24 = vmax.f32 %v4540_v0, 0.0  ;;  %v4731_v23 = vmax.f32 %v4653_v50, 0.0 }
 0x5a2   :  { %v4544_v44 = vadd.f32 %v4543_v42, %v11558_v35  ;;  %v4657_v52 = vadd.f32 %v4656_v31, %v11561_v39  ;;  %6294 = vmatprep.mubr.bf16.mxu0 %v11571_v60  ;;  %6407 = vmatprep.mubr.bf16.mxu1 %v11573_v25  ;;  %v4730_v48 = vmax.f32 %v4542_v53, 0.0  ;;  %v4732_v43 = vmax.f32 %v4655_v63, 0.0 }
 0x5a3   :  { %v4545_v62 = vpop.f32.mrf.mxu0  ;;  %v4658_v6 = vpop.f32.mrf.mxu1  ;;  %6295 = vmatmul.mubr.bf16.vlgmr.msra.gmra.mxu0 %v11575_v30  ;;  %6408 = vmatmul.mubr.bf16.vlgmr.msra.gmra.mxu1 %v11577_v1 }
 0x5a4   :  { %v4546_v59 = vadd.f32 %v4545_v62, %v11552_v56  ;;  %v4659_v18 = vadd.f32 %v4658_v6, %v11555_v51  ;;  %6489 = vmatpush1.bf16.msra.mxu0 %v9570_v37  ;;  %6602 = vmatpush1.bf16.msra.mxu1 %v9573_v22  ;;  %v4733_v38 = vmax.f32 %v4544_v44, 0.0  ;;  %v4735_v20 = vmax.f32 %v4657_v52, 0.0  ;;  %v9588_v37 = vld [vmem:[#allocation19 + $0xe8] ss:$28 sps:$4 sm:$0xff]  }
 0x5a5   :  { %v4549_v34 = vpop.f32.mrf.mxu0  ;;  %v4662_v32 = vpop.f32.mrf.mxu1  ;;  %6490 = vmatprep.subr.bf16.mxu0 %v9578_v61  ;;  %6603 = vmatprep.subr.bf16.mxu1 %v9581_v11  ;;  %v9591_v61 = vld [vmem:[#allocation19 + $0x468] ss:$28 sps:$4 sm:$0xff]   ;;  %v9596_v11 = vld [vmem:[#allocation19 + $0xb4] ss:$28 sps:$4 sm:$0xff]  }
 0x5a6   :  { %v4734_v27 = vmax.f32 %v4546_v59, 0.0  ;;  %v4736_v3 = vmax.f32 %v4659_v18, 0.0  ;;  %v11595_v57 = vpack.c.bf16 %v4733_v38, %v4729_v24  ;;  %v11597_v28 = vpack.c.bf16 %v4735_v20, %v4731_v23  ;;  %v9594_v38 = vld [vmem:[#allocation19 + $0xb0] ss:$28 sps:$4 sm:$0xff]  }
 0x5a7   :  { %v4551_v26 = vpop.f32.mrf.mxu0  ;;  %v4664_v16 = vpop.f32.mrf.mxu1  ;;  %v4550_v29 = vadd.f32 %v4549_v34, %v11558_v35  ;;  %v4663_v14 = vadd.f32 %v4662_v32, %v11561_v39  ;;  %v9599_v20 = vld [vmem:[#allocation19 + $0x434] ss:$28 sps:$4 sm:$0xff]  }
 0x5a8   :  { %v11591_v15 = vpack.c.bf16 %v4734_v27, %v4730_v48  ;;  %v11593_v12 = vpack.c.bf16 %v4736_v3, %v4732_v43  ;;  %6491 = vmatpush1.bf16.msra.mxu0 %v9576_v9  ;;  %v4552_v19 = vadd.f32 %v4551_v26, %v11552_v56  ;;  %6604 = vmatpush1.bf16.msra.mxu1 %v9579_v13  ;;  %v9597_v43 = vld [vmem:[#allocation19 + $0x430] ss:$28 sps:$4 sm:$0xff]   ;;  %v9602_v27 = vld [vmem:[#allocation19 + $0x7c] ss:$28 sps:$4 sm:$0xff]  }
 0x5a9   :  { %v4553_v7 = vpop.f32.mrf.mxu0  ;;  %v4666_v8 = vpop.f32.mrf.mxu1  ;;  %6492 = vmatprep.subr.bf16.mxu0 %v9584_v5  ;;  %v4665_v36 = vadd.f32 %v4664_v16, %v11555_v51  ;;  %6605 = vmatprep.subr.bf16.mxu1 %v9587_v47  ;;  %v4737_v50 = vmax.f32 %v4550_v29, 0.0  ;;  %v4739_v62 = vmax.f32 %v4663_v14, 0.0  ;;  %v9605_v26 = vld [vmem:[#allocation19 + $0x3fc] ss:$28 sps:$4 sm:$0xff]   ;;  %v9608_v29 = vld [vmem:[#allocation19 + $0x44] ss:$28 sps:$4 sm:$0xff]  }
 0x5aa   :  { %v4554_v45 = vadd.f32 %v4553_v7, %v11558_v35  ;;  %v4667_v21 = vadd.f32 %v4666_v8, %v11561_v39  ;;  %6304 = vmatprep.mubr.bf16.mxu0 %v11591_v15  ;;  %6417 = vmatprep.mubr.bf16.mxu1 %v11593_v12  ;;  %v4738_v63 = vmax.f32 %v4552_v19, 0.0 }
 0x5ab   :  { %v4555_v54 = vpop.f32.mrf.mxu0  ;;  %v4668_v2 = vpop.f32.mrf.mxu1  ;;  %6305 = vmatmul.mubr.bf16.gmra.mxu0 %v11595_v57  ;;  %6418 = vmatmul.mubr.bf16.gmra.mxu1 %v11597_v28  ;;  %v4740_v44 = vmax.f32 %v4665_v36, 0.0 }
 0x5ac   :  { %v4556_v40 = vadd.f32 %v4555_v54, %v11552_v56  ;;  %v4669_v41 = vadd.f32 %v4668_v2, %v11555_v51  ;;  %6493 = vmatpush1.bf16.msra.mxu0 %v9582_v58  ;;  %v4741_v22 = vmax.f32 %v4554_v45, 0.0  ;;  %v4743_v53 = vmax.f32 %v4667_v21, 0.0  ;;  %6606 = vmatpush1.bf16.msra.mxu1 %v9585_v10  ;;  %v9600_v10 = vld [vmem:[#allocation19 + $0x78] ss:$28 sps:$4 sm:$0xff]  }
 0x5ad   :  { %v4559_v42 = vpop.f32.mrf.mxu0  ;;  %v4672_v31 = vpop.f32.mrf.mxu1  ;;  %6494 = vmatprep.subr.bf16.mxu0 %v9590_v49  ;;  %6607 = vmatprep.subr.bf16.mxu1 %v9593_v17  ;;  %v9603_v17 = vld [vmem:[#allocation19 + $0x3f8] ss:$28 sps:$4 sm:$0xff]  }
 0x5ae   :  { %v4742_v52 = vmax.f32 %v4556_v40, 0.0  ;;  %v4744_v0 = vmax.f32 %v4669_v41, 0.0  ;;  %v11615_v34 = vpack.c.bf16 %v4741_v22, %v4737_v50  ;;  %v11617_v32 = vpack.c.bf16 %v4743_v53, %v4739_v62  ;;  %v9609_v62 = vld [vmem:[#allocation19 + $0x3c0] ss:$28 sps:$4 sm:$0xff]  }
 0x5af   :  { %v4561_v6 = vpop.f32.mrf.mxu0  ;;  %v4674_v59 = vpop.f32.mrf.mxu1  ;;  %v4560_v16 = vadd.f32 %v4559_v42, %v11558_v35  ;;  %v4673_v58 = vadd.f32 %v4672_v31, %v11561_v39 }
 0x5b0   :  { %v11611_v18 = vpack.c.bf16 %v4742_v52, %v4738_v63  ;;  %v11613_v9 = vpack.c.bf16 %v4744_v0, %v4740_v44  ;;  %6495 = vmatpush1.bf16.msra.mxu0 %v9588_v37  ;;  %v4562_v13 = vadd.f32 %v4561_v6, %v11552_v56  ;;  %6608 = vmatpush1.bf16.msra.mxu1 %v9591_v61  ;;  %v9606_v61 = vld [vmem:[#allocation19 + $0x40] ss:$28 sps:$4 sm:$0xff]   ;;  %v9614_v6 = vld [vmem:[#allocation19 + $0xc] ss:$28 sps:$4 sm:$0xff]  }
 0x5b1   :  { %v4563_v5 = vpop.f32.mrf.mxu0  ;;  %v4676_v48 = vpop.f32.mrf.mxu1  ;;  %6496 = vmatprep.subr.bf16.mxu0 %v9596_v11  ;;  %v4675_v3 = vadd.f32 %v4674_v59, %v11555_v51  ;;  %6609 = vmatprep.subr.bf16.mxu1 %v9599_v20  ;;  %v4745_v41 = vmax.f32 %v4560_v16, 0.0  ;;  %v4747_v37 = vmax.f32 %v4673_v58, 0.0  ;;  %v9611_v11 = vld [vmem:[#allocation19 + $0x3c4] ss:$28 sps:$4 sm:$0xff]  }
 0x5b2   :  { %v4564_v24 = vadd.f32 %v4563_v5, %v11558_v35  ;;  %v4677_v23 = vadd.f32 %v4676_v48, %v11561_v39  ;;  %6314 = vmatprep.mubr.bf16.mxu0 %v11611_v18  ;;  %6427 = vmatprep.mubr.bf16.mxu1 %v11613_v9  ;;  %v4746_v14 = vmax.f32 %v4562_v13, 0.0  ;;  %v9617_v13 = vld [vmem:[#allocation19 + $0x38c] ss:$28 sps:$4 sm:$0xff]  }
 0x5b3   :  { %v4565_v47 = vpop.f32.mrf.mxu0  ;;  %v4678_v19 = vpop.f32.mrf.mxu1  ;;  %6315 = vmatmul.mubr.bf16.gmra.mxu0 %v11615_v34  ;;  %6428 = vmatmul.mubr.bf16.gmra.mxu1 %v11617_v32  ;;  %v4748_v54 = vmax.f32 %v4675_v3, 0.0 }
 0x5b4   :  { %v4566_v7 = vadd.f32 %v4565_v47, %v11552_v56  ;;  %v4679_v8 = vadd.f32 %v4678_v19, %v11555_v51  ;;  %6497 = vmatpush1.bf16.msra.mxu0 %v9594_v38  ;;  %v4749_v49 = vmax.f32 %v4564_v24, 0.0  ;;  %v4751_v36 = vmax.f32 %v4677_v23, 0.0  ;;  %6610 = vmatpush1.bf16.msra.mxu1 %v9597_v43  ;;  %v9612_v23 = vld [vmem:[#allocation19 + $0x8] ss:$28 sps:$4 sm:$0xff]  }
 0x5b5   :  { %v4569_v45 = vpop.f32.mrf.mxu0  ;;  %v4682_v21 = vpop.f32.mrf.mxu1  ;;  %6498 = vmatprep.subr.bf16.mxu0 %v9602_v27  ;;  %6611 = vmatprep.subr.bf16.mxu1 %v9605_v26  ;;  %v9615_v19 = vld [vmem:[#allocation19 + $0x388] ss:$28 sps:$4 sm:$0xff]  }
 0x5b6   :  { %v4750_v2 = vmax.f32 %v4566_v7, 0.0  ;;  %v4752_v40 = vmax.f32 %v4679_v8, 0.0  ;;  %v11635_v63 = vpack.c.bf16 %v4749_v49, %v4745_v41  ;;  %v11637_v44 = vpack.c.bf16 %v4751_v36, %v4747_v37  ;;  %v9620_v7 = vld [vmem:[#allocation19 + $0x354] ss:$28 sps:$4 sm:$0xff]  }
 0x5b7   :  { %v4571_v22 = vpop.f32.mrf.mxu0  ;;  %v4684_v53 = vpop.f32.mrf.mxu1  ;;  %v4570_v5 = vadd.f32 %v4569_v45, %v11558_v35  ;;  %v4683_v48 = vadd.f32 %v4682_v21, %v11561_v39 }
 0x5b8   :  { %v11631_v42 = vpack.c.bf16 %v4750_v2, %v4746_v14  ;;  %v11633_v31 = vpack.c.bf16 %v4752_v40, %v4748_v54  ;;  %6499 = vmatpush1.bf16.msra.mxu0 %v9600_v10  ;;  %v4572_v52 = vadd.f32 %v4571_v22, %v11552_v56  ;;  %6612 = vmatpush1.bf16.msra.mxu1 %v9603_v17  ;;  %v9618_v2 = vld [vmem:[#allocation19 + $0x350] ss:$28 sps:$4 sm:$0xff]  }
 0x5b9   :  { %v4573_v0 = vpop.f32.mrf.mxu0  ;;  %v4686_v50 = vpop.f32.mrf.mxu1  ;;  %6500 = vmatprep.subr.bf16.mxu0 %v9608_v29  ;;  %v4685_v59 = vadd.f32 %v4684_v53, %v11555_v51  ;;  %6613 = vmatprep.subr.bf16.mxu1 %v9611_v11  ;;  %v4753_v45 = vmax.f32 %v4570_v5, 0.0  ;;  %v4755_v21 = vmax.f32 %v4683_v48, 0.0  ;;  %v9623_v40 = vld [vmem:[#allocation19 + $0x6d4] ss:$28 sps:$4 sm:$0xff]  }
 0x5ba   :  { %v4574_v38 = vadd.f32 %v4573_v0, %v11558_v35  ;;  %v4687_v20 = vadd.f32 %v4686_v50, %v11561_v39  ;;  %6324 = vmatprep.mubr.bf16.mxu0 %v11631_v42  ;;  %6437 = vmatprep.mubr.bf16.mxu1 %v11633_v31  ;;  %v4754_v8 = vmax.f32 %v4572_v52, 0.0  ;;  %v9621_v11 = vld [vmem:[#allocation19 + $0x6d0] ss:$28 sps:$4 sm:$0xff]   ;;  %v9626_v52 = vld [vmem:[#allocation19 + $0x31c] ss:$28 sps:$4 sm:$0xff]  }
 0x5bb   :  { %v4575_v43 = vpop.f32.mrf.mxu0  ;;  %v4688_v27 = vpop.f32.mrf.mxu1  ;;  %6325 = vmatmul.mubr.bf16.gmra.mxu0 %v11635_v63  ;;  %6438 = vmatmul.mubr.bf16.gmra.mxu1 %v11637_v44  ;;  %v4756_v10 = vmax.f32 %v4685_v59, 0.0 }
 0x5bc   :  { %v4576_v3 = vadd.f32 %v4575_v43, %v11552_v56  ;;  %v4689_v24 = vadd.f32 %v4688_v27, %v11555_v51  ;;  %6501 = vmatpush1.bf16.msra.mxu0 %v9606_v61  ;;  %v4757_v26 = vmax.f32 %v4574_v38, 0.0  ;;  %v4759_v16 = vmax.f32 %v4687_v20, 0.0  ;;  %6614 = vmatpush1.bf16.msra.mxu1 %v9609_v62  ;;  %v9624_v43 = vld [vmem:[#allocation19 + $0x318] ss:$28 sps:$4 sm:$0xff]  }
 0x5bd   :  { %v4579_v58 = vpop.f32.mrf.mxu0  ;;  %v4692_v47 = vpop.f32.mrf.mxu1  ;;  %6502 = vmatprep.subr.bf16.mxu0 %v9614_v6  ;;  %6615 = vmatprep.subr.bf16.mxu1 %v9617_v13  ;;  %v9629_v6 = vld [vmem:[#allocation19 + $0x69c] ss:$28 sps:$4 sm:$0xff]  }
 0x5be   :  { %v4758_v49 = vmax.f32 %v4576_v3, 0.0  ;;  %v4760_v36 = vmax.f32 %v4689_v24, 0.0  ;;  %v11655_v41 = vpack.c.bf16 %v4757_v26, %v4753_v45  ;;  %v11657_v37 = vpack.c.bf16 %v4759_v16, %v4755_v21  ;;  %v9627_v26 = vld [vmem:[#allocation19 + $0x698] ss:$28 sps:$4 sm:$0xff]   ;;  %v9632_v16 = vld [vmem:[#allocation19 + $0x2e4] ss:$28 sps:$4 sm:$0xff]  }
 0x5bf   :  { %v4581_v17 = vpop.f32.mrf.mxu0  ;;  %v4694_v29 = vpop.f32.mrf.mxu1  ;;  %v4580_v59 = vadd.f32 %v4579_v58, %v11558_v35  ;;  %v4693_v38 = vadd.f32 %v4692_v47, %v11561_v39 }
 0x5c0   :  { %v11651_v14 = vpack.c.bf16 %v4758_v49, %v4754_v8  ;;  %v11653_v54 = vpack.c.bf16 %v4760_v36, %v4756_v10  ;;  %6503 = vmatpush1.bf16.msra.mxu0 %v9612_v23  ;;  %v4582_v22 = vadd.f32 %v4581_v17, %v11552_v56  ;;  %6616 = vmatpush1.bf16.msra.mxu1 %v9615_v19  ;;  %v9630_v17 = vld [vmem:[#allocation19 + $0x2e0] ss:$28 sps:$4 sm:$0xff]  }
 0x5c1   :  { %v4583_v53 = vpop.f32.mrf.mxu0  ;;  %v4696_v61 = vpop.f32.mrf.mxu1  ;;  %6504 = vmatprep.subr.bf16.mxu0 %v9620_v7  ;;  %v4695_v0 = vadd.f32 %v4694_v29, %v11555_v51  ;;  %6617 = vmatprep.subr.bf16.mxu1 %v9623_v40  ;;  %v4761_v8 = vmax.f32 %v4580_v59, 0.0  ;;  %v4763_v10 = vmax.f32 %v4693_v38, 0.0  ;;  %v9635_v29 = vld [vmem:[#allocation19 + $0x664] ss:$28 sps:$4 sm:$0xff]  }
 0x5c2   :  { %v4584_v50 = vadd.f32 %v4583_v53, %v11558_v35  ;;  %v4697_v62 = vadd.f32 %v4696_v61, %v11561_v39  ;;  %6334 = vmatprep.mubr.bf16.mxu0 %v11651_v14  ;;  %6447 = vmatprep.mubr.bf16.mxu1 %v11653_v54  ;;  %v4762_v58 = vmax.f32 %v4582_v22, 0.0 }
 0x5c3   :  { %v4585_v20 = vpop.f32.mrf.mxu0  ;;  %v4698_v13 = vpop.f32.mrf.mxu1  ;;  %6335 = vmatmul.mubr.bf16.gmra.mxu0 %v11655_v41  ;;  %6448 = vmatmul.mubr.bf16.gmra.mxu1 %v11657_v37  ;;  %v4764_v47 = vmax.f32 %v4695_v0, 0.0 }
 0x5c4   :  { %v4586_v5 = vadd.f32 %v4585_v20, %v11552_v56  ;;  %v4699_v48 = vadd.f32 %v4698_v13, %v11555_v51  ;;  %6505 = vmatpush2.bf16.msra.mxu0 %v9618_v2  ;;  %v4765_v27 = vmax.f32 %v4584_v50, 0.0  ;;  %v4767_v3 = vmax.f32 %v4697_v62, 0.0  ;;  %6618 = vmatpush2.bf16.msra.mxu1 %v9621_v11  ;;  %v9633_v11 = vld [vmem:[#allocation19 + $0x660] ss:$28 sps:$4 sm:$0xff]  }
 0x5c5   :  { %v4589_v24 = vpop.f32.mrf.mxu0  ;;  %v4702_v23 = vpop.f32.mrf.mxu1  ;;  %6506 = vmatprep.subr.bf16.mxu0 %v9626_v52  ;;  %6619 = vmatprep.subr.bf16.mxu1 %v9629_v6  ;;  %v9638_v52 = vld [vmem:[#allocation19 + $0x2ac] ss:$28 sps:$4 sm:$0xff]  }
 0x5c6   :  { %v4766_v19 = vmax.f32 %v4586_v5, 0.0  ;;  %v4768_v7 = vmax.f32 %v4699_v48, 0.0  ;;  %v11675_v2 = vpack.c.bf16 %v4765_v27, %v4761_v8  ;;  %v11677_v40 = vpack.c.bf16 %v4767_v3, %v4763_v10  ;;  %v9641_v6 = vld [vmem:[#allocation19 + $0x62c] ss:$28 sps:$4 sm:$0xff]  }
 0x5c7   :  { %v4591_v49 = vpop.f32.mrf.mxu0  ;;  %v4704_v36 = vpop.f32.mrf.mxu1  ;;  %v4590_v59 = vadd.f32 %v4589_v24, %v11558_v35  ;;  %v4703_v38 = vadd.f32 %v4702_v23, %v11561_v39  ;;  %v9639_v23 = vld [vmem:[#allocation19 + $0x628] ss:$28 sps:$4 sm:$0xff]  }
 0x5c8   :  { %v11671_v45 = vpack.c.bf16 %v4766_v19, %v4762_v58  ;;  %v11673_v21 = vpack.c.bf16 %v4768_v7, %v4764_v47  ;;  %6507 = vmatpush2.bf16.msra.mxu0 %v9624_v43  ;;  %v4592_v22 = vadd.f32 %v4591_v49, %v11552_v56  ;;  %6620 = vmatpush2.bf16.msra.mxu1 %v9627_v26  ;;  %v9636_v43 = vld [vmem:[#allocation19 + $0x2a8] ss:$28 sps:$4 sm:$0xff]  }
 0x5c9   :  { %v4593_v53 = vpop.f32.mrf.mxu0  ;;  %v4706_v61 = vpop.f32.mrf.mxu1  ;;  %6508 = vmatprep.subr.bf16.mxu0 %v9632_v16  ;;  %v4705_v0 = vadd.f32 %v4704_v36, %v11555_v51  ;;  %6621 = vmatprep.subr.bf16.mxu1 %v9635_v29  ;;  %v9644_v16 = vld [vmem:[#allocation19 + $0x274] ss:$28 sps:$4 sm:$0xff]   ;;  %v4769_v8 = vmax.f32 %v4590_v59, 0.0  ;;  %v4771_v10 = vmax.f32 %v4703_v38, 0.0 }
 0x5ca   :  { %v4594_v50 = vadd.f32 %v4593_v53, %v11558_v35  ;;  %v4707_v62 = vadd.f32 %v4706_v61, %v11561_v39  ;;  %6344 = vmatprep.mubr.bf16.mxu0 %v11671_v45  ;;  %6457 = vmatprep.mubr.bf16.mxu1 %v11673_v21  ;;  %v4770_v58 = vmax.f32 %v4592_v22, 0.0  ;;  %v9642_v53 = vld [vmem:[#allocation19 + $0x270] ss:$28 sps:$4 sm:$0xff]  }
 0x5cb   :  { %v4595_v20 = vpop.f32.mrf.mxu0  ;;  %v4708_v13 = vpop.f32.mrf.mxu1  ;;  %6345 = vmatmul.mubr.bf16.gmra.mxu0 %v11675_v2  ;;  %6458 = vmatmul.mubr.bf16.gmra.mxu1 %v11677_v40  ;;  %v4772_v47 = vmax.f32 %v4705_v0, 0.0  ;;  %v9647_v61 = vld [vmem:[#allocation19 + $0x5f4] ss:$28 sps:$4 sm:$0xff]  }
 0x5cc   :  { %v4596_v5 = vadd.f32 %v4595_v20, %v11552_v56  ;;  %v4709_v48 = vadd.f32 %v4708_v13, %v11555_v51  ;;  %6509 = vmatpush2.bf16.msra.mxu0 %v9630_v17  ;;  %v4773_v27 = vmax.f32 %v4594_v50, 0.0  ;;  %v4775_v3 = vmax.f32 %v4707_v62, 0.0  ;;  %6622 = vmatpush2.bf16.msra.mxu1 %v9633_v11  ;;  %v9645_v62 = vld [vmem:[#allocation19 + $0x5f0] ss:$28 sps:$4 sm:$0xff]   ;;  %v9653_v13 = vld [vmem:[#allocation19 + $0x5bc] ss:$28 sps:$4 sm:$0xff]  }
 0x5cd   :  { %v4599_v26 = vpop.f32.mrf.mxu0  ;;  %v4712_v24 = vpop.f32.mrf.mxu1  ;;  %6510 = vmatprep.subr.bf16.mxu0 %v9638_v52  ;;  %6623 = vmatprep.subr.bf16.mxu1 %v9641_v6  ;;  %v9650_v6 = vld [vmem:[#allocation19 + $0x23c] ss:$28 sps:$4 sm:$0xff]  }
 0x5ce   :  { %v4774_v19 = vmax.f32 %v4596_v5, 0.0  ;;  %v4776_v7 = vmax.f32 %v4709_v48, 0.0  ;;  %v11695_v11 = vpack.c.bf16 %v4773_v27, %v4769_v8  ;;  %v11697_v52 = vpack.c.bf16 %v4775_v3, %v4771_v10 }
 0x5cf   :  { %v4601_v49 = vpop.f32.mrf.mxu0  ;;  %v4714_v36 = vpop.f32.mrf.mxu1  ;;  %v4600_v5 = vadd.f32 %v4599_v26, %v11558_v35  ;;  %v4713_v48 = vadd.f32 %v4712_v24, %v11561_v39  ;;  %v9656_v26 = vld [vmem:[#allocation19 + $0x204] ss:$28 sps:$4 sm:$0xff]  }
 0x5d0   :  { %v11691_v29 = vpack.c.bf16 %v4774_v19, %v4770_v58  ;;  %v11693_v17 = vpack.c.bf16 %v4776_v7, %v4772_v47  ;;  %6511 = vmatpush2.bf16.msra.mxu0 %v9636_v43  ;;  %v4602_v22 = vadd.f32 %v4601_v49, %v11552_v56  ;;  %6624 = vmatpush2.bf16.msra.mxu1 %v9639_v23 }
 0x5d1   :  { %v4603_v0 = vpop.f32.mrf.mxu0  ;;  %v4716_v50 = vpop.f32.mrf.mxu1  ;;  %6512 = vmatprep.subr.bf16.mxu0 %v9644_v16  ;;  %v4715_v59 = vadd.f32 %v4714_v36, %v11555_v51  ;;  %6625 = vmatprep.subr.bf16.mxu1 %v9647_v61  ;;  %v9648_v16 = vld [vmem:[#allocation19 + $0x238] ss:$28 sps:$4 sm:$0xff]   ;;  %v4777_v8 = vmax.f32 %v4600_v5, 0.0  ;;  %v4779_v10 = vmax.f32 %v4713_v48, 0.0  ;;  %v9659_v36 = vld [vmem:[#allocation19 + $0x584] ss:$28 sps:$4 sm:$0xff]  }
 0x5d2   :  { %v4604_v38 = vadd.f32 %v4603_v0, %v11558_v35  ;;  %v4717_v20 = vadd.f32 %v4716_v50, %v11561_v39  ;;  %6354 = vmatprep.mubr.bf16.mxu0 %v11691_v29  ;;  %6467 = vmatprep.mubr.bf16.mxu1 %v11693_v17  ;;  %v9651_v35 = vld [vmem:[#allocation19 + $0x5b8] ss:$28 sps:$4 sm:$0xff]   ;;  %v4778_v39 = vmax.f32 %v4602_v22, 0.0  ;;  %v9657_v22 = vld [vmem:[#allocation19 + $0x580] ss:$28 sps:$4 sm:$0xff]  }
 0x5d3   :  { %v4605_v43 = vpop.f32.mrf.mxu0  ;;  %v4718_v27 = vpop.f32.mrf.mxu1  ;;  %6355 = vmatmul.mubr.bf16.gmra.mxu0 %v11695_v11  ;;  %6468 = vmatmul.mubr.bf16.gmra.mxu1 %v11697_v52  ;;  %v4780_v24 = vmax.f32 %v4715_v59, 0.0  ;;  %v9662_v0 = vld [vmem:[#allocation19 + $0x1cc] ss:$28 sps:$4 sm:$0xff]   ;;  %v9668_v59 = vld [vmem:[#allocation19 + $0x19c] ss:$28 sps:$4 sm:$0xff]  }
 0x5d4   :  { %v4606_v3 = vadd.f32 %v4605_v43, %v11552_v56  ;;  %v4719_v23 = vadd.f32 %v4718_v27, %v11555_v51  ;;  %6513 = vmatpush2.bf16.msra.mxu0 %v9642_v53  ;;  %v4781_v58 = vmax.f32 %v4604_v38, 0.0  ;;  %v4783_v47 = vmax.f32 %v4717_v20, 0.0  ;;  %6626 = vmatpush2.bf16.msra.mxu1 %v9645_v62  ;;  %v9654_v51 = vld [vmem:[#allocation19 + $0x200] ss:$28 sps:$4 sm:$0xff]   ;;  %v9665_v50 = vld [vmem:[#allocation19 + $0x54c] ss:$28 sps:$4 sm:$0xff]  }
 0x5d5   :  { %6514 = vmatprep.subr.bf16.mxu0 %v9650_v6  ;;  %6627 = vmatprep.subr.bf16.mxu1 %v9653_v13  ;;  %v9660_v62 = vld [vmem:[#allocation19 + $0x1c8] ss:$28 sps:$4 sm:$0xff]   ;;  %v9671_v38 = vld [vmem:[#allocation19 + $0x51c] ss:$28 sps:$4 sm:$0xff]  }
 0x5d6   :  { %v4782_v19 = vmax.f32 %v4606_v3, 0.0  ;;  %v4784_v7 = vmax.f32 %v4719_v23, 0.0  ;;  %v11715_v53 = vpack.c.bf16 %v4781_v58, %v4777_v8  ;;  %v11717_v61 = vpack.c.bf16 %v4783_v47, %v4779_v10  ;;  %v9663_v6 = vld [vmem:[#allocation19 + $0x548] ss:$28 sps:$4 sm:$0xff]   ;;  %v9666_v20 = vld [vmem:[#allocation19 + $0x198] ss:$28 sps:$4 sm:$0xff]  }
 0x5d7   :  { %v9669_v13 = vld [vmem:[#allocation19 + $0x518] ss:$28 sps:$4 sm:$0xff]   ;;  %v9674_v5 = vld [vmem:[#allocation19 + $0x164] ss:$28 sps:$4 sm:$0xff]   ;;  %v9680_v3 = vld [vmem:[#allocation19 + $0x12c] ss:$28 sps:$4 sm:$0xff]  }
 0x5d8   :  { %v11711_v49 = vpack.c.bf16 %v4782_v19, %v4778_v39  ;;  %v11713_v56 = vpack.c.bf16 %v4784_v7, %v4780_v24  ;;  %6515 = vmatpush2.bf16.msra.mxu0 %v9648_v16  ;;  %6628 = vmatpush2.bf16.msra.mxu1 %v9651_v35  ;;  %v9677_v48 = vld [vmem:[#allocation19 + $0x4e4] ss:$28 sps:$4 sm:$0xff]   ;;  %v9683_v23 = vld [vmem:[#allocation19 + $0x4ac] ss:$28 sps:$4 sm:$0xff]   ;;  %v9686_v47 = vld [vmem:[#allocation19 + $0xf4] ss:$28 sps:$4 sm:$0xff]  }
 0x5d9   :  { %6516 = vmatprep.subr.bf16.mxu0 %v9656_v26  ;;  %6629 = vmatprep.subr.bf16.mxu1 %v9659_v36  ;;  %v9672_v43 = vld [vmem:[#allocation19 + $0x160] ss:$28 sps:$4 sm:$0xff]   ;;  %v9678_v16 = vld [vmem:[#allocation19 + $0x128] ss:$28 sps:$4 sm:$0xff]   ;;  %v9689_v35 = vld [vmem:[#allocation19 + $0x474] ss:$28 sps:$4 sm:$0xff]  }
 0x5da   :  { %6364 = vmatprep.mubr.bf16.mxu0 %v11711_v49  ;;  %6477 = vmatprep.mubr.bf16.mxu1 %v11713_v56  ;;  %v9675_v27 = vld [vmem:[#allocation19 + $0x4e0] ss:$28 sps:$4 sm:$0xff]   ;;  %v9681_v58 = vld [vmem:[#allocation19 + $0x4a8] ss:$28 sps:$4 sm:$0xff]   ;;  %v9684_v26 = vld [vmem:[#allocation19 + $0xf0] ss:$28 sps:$4 sm:$0xff]  }
 0x5db   :  { %6365 = vmatmul.mubr.bf16.gmra.mxu0 %v11715_v53  ;;  %6478 = vmatmul.mubr.bf16.gmra.mxu1 %v11717_v61  ;;  %v9687_v39 = vld [vmem:[#allocation19 + $0x470] ss:$28 sps:$4 sm:$0xff]   ;;  %v9692_v24 = vld [vmem:[#allocation19 + $0xbc] ss:$28 sps:$4 sm:$0xff]   ;;  %v9698_v10 = vld [vmem:[#allocation19 + $0x84] ss:$28 sps:$4 sm:$0xff]  }
 0x5dc   :  { %6517 = vmatpush2.bf16.msra.mxu0 %v9654_v51  ;;  %6520 = vmatprep.mubr.bf16.mxu0 %v11571_v60  ;;  %v9695_v19 = vld [vmem:[#allocation19 + $0x43c] ss:$28 sps:$4 sm:$0xff]   ;;  %v9701_v51 = vld [vmem:[#allocation19 + $0x404] ss:$28 sps:$4 sm:$0xff]  }
 0x5dd   :  { %6630 = vmatpush2.bf16.msra.mxu1 %v9657_v22  ;;  %6633 = vmatprep.mubr.bf16.mxu1 %v11573_v25  ;;  %v9690_v7 = vld [vmem:[#allocation19 + $0xb8] ss:$28 sps:$4 sm:$0xff]   ;;  %v9696_v36 = vld [vmem:[#allocation19 + $0x80] ss:$28 sps:$4 sm:$0xff]  }
 0x5de   :  { %6518 = vmatprep.subr.bf16.mxu0 %v9662_v0  ;;  %6631 = vmatprep.subr.bf16.mxu1 %v9665_v50  ;;  %v9693_v8 = vld [vmem:[#allocation19 + $0x438] ss:$28 sps:$4 sm:$0xff]   ;;  %v9699_v22 = vld [vmem:[#allocation19 + $0x400] ss:$28 sps:$4 sm:$0xff]   ;;  %v9704_v0 = vld [vmem:[#allocation19 + $0x4c] ss:$28 sps:$4 sm:$0xff]  }
 0x5df   :  { %v9707_v50 = vld [vmem:[#allocation19 + $0x3cc] ss:$28 sps:$4 sm:$0xff]  }
 0x5e0   :  { %6519 = vmatpush2.bf16.msra.mxu0 %v9660_v62  ;;  %v9702_v62 = vld [vmem:[#allocation19 + $0x48] ss:$28 sps:$4 sm:$0xff]  }
 0x5e1   :  { %6632 = vmatpush2.bf16.msra.mxu1 %v9663_v6  ;;  %6714 = vmatprep.subr.bf16.mxu0 %v9668_v59  ;;  %v9705_v6 = vld [vmem:[#allocation19 + $0x3c8] ss:$28 sps:$4 sm:$0xff]   ;;  %v9710_v59 = vld [vmem:[#allocation19 + $0x14] ss:$28 sps:$4 sm:$0xff]  }
 0x5e2   :  { %6827 = vmatprep.subr.bf16.mxu1 %v9671_v38  ;;  %v9713_v38 = vld [vmem:[#allocation19 + $0x394] ss:$28 sps:$4 sm:$0xff]  }
 0x5e3   :  { %6521 = vmatmul.mubr.bf16.vlgmr.msra.gmra.mxu0 %v11575_v30 }
 0x5e4   :  { %6634 = vmatmul.mubr.bf16.vlgmr.msra.gmra.mxu1 %v11577_v1  ;;  %6530 = vmatprep.mubr.bf16.mxu0 %v11591_v15 }
 0x5e5   :  { %6643 = vmatprep.mubr.bf16.mxu1 %v11593_v12  ;;  %6715 = vmatpush1.bf16.msra.mxu0 %v9666_v20  ;;  %v9708_v20 = vld [vmem:[#allocation19 + $0x10] ss:$28 sps:$4 sm:$0xff]  }
 0x5e6   :  { %6828 = vmatpush1.bf16.msra.mxu1 %v9669_v13  ;;  %6716 = vmatprep.subr.bf16.mxu0 %v9674_v5  ;;  %v9711_v13 = vld [vmem:[#allocation19 + $0x390] ss:$28 sps:$4 sm:$0xff]   ;;  %v9716_v5 = vld [vmem:[#allocation19 + $0x35c] ss:$28 sps:$4 sm:$0xff]  }
 0x5e7   :  { %6829 = vmatprep.subr.bf16.mxu1 %v9677_v48  ;;  %v9719_v48 = vld [vmem:[#allocation19 + $0x6dc] ss:$28 sps:$4 sm:$0xff]  }
 0x5e9   :  { %6717 = vmatpush1.bf16.msra.mxu0 %v9672_v43  ;;  %v9714_v43 = vld [vmem:[#allocation19 + $0x358] ss:$28 sps:$4 sm:$0xff]  }
 0x5ea   :  { %6830 = vmatpush1.bf16.msra.mxu1 %v9675_v27  ;;  %6718 = vmatprep.subr.bf16.mxu0 %v9680_v3  ;;  %v9717_v27 = vld [vmem:[#allocation19 + $0x6d8] ss:$28 sps:$4 sm:$0xff]   ;;  %v9722_v3 = vld [vmem:[#allocation19 + $0x324] ss:$28 sps:$4 sm:$0xff]  }
 0x5eb   :  { %6531 = vmatmul.mubr.bf16.gmra.mxu0 %v11595_v57  ;;  %6831 = vmatprep.subr.bf16.mxu1 %v9683_v23  ;;  %v9725_v23 = vld [vmem:[#allocation19 + $0x6a4] ss:$28 sps:$4 sm:$0xff]  }
 0x5ec   :  { %6644 = vmatmul.mubr.bf16.gmra.mxu1 %v11597_v28  ;;  %6540 = vmatprep.mubr.bf16.mxu0 %v11611_v18 }
 0x5ed   :  { %6653 = vmatprep.mubr.bf16.mxu1 %v11613_v9  ;;  %6719 = vmatpush1.bf16.msra.mxu0 %v9678_v16  ;;  %v9720_v16 = vld [vmem:[#allocation19 + $0x320] ss:$28 sps:$4 sm:$0xff]  }
 0x5ee   :  { %6832 = vmatpush1.bf16.msra.mxu1 %v9681_v58  ;;  %6720 = vmatprep.subr.bf16.mxu0 %v9686_v47  ;;  %v9723_v58 = vld [vmem:[#allocation19 + $0x6a0] ss:$28 sps:$4 sm:$0xff]   ;;  %v9728_v47 = vld [vmem:[#allocation19 + $0x2ec] ss:$28 sps:$4 sm:$0xff]  }
 0x5ef   :  { %6833 = vmatprep.subr.bf16.mxu1 %v9689_v35  ;;  %v9731_v35 = vld [vmem:[#allocation19 + $0x66c] ss:$28 sps:$4 sm:$0xff]  }
 0x5f1   :  { %6721 = vmatpush1.bf16.msra.mxu0 %v9684_v26  ;;  %v9726_v26 = vld [vmem:[#allocation19 + $0x2e8] ss:$28 sps:$4 sm:$0xff]  }
 0x5f2   :  { %6834 = vmatpush1.bf16.msra.mxu1 %v9687_v39  ;;  %6722 = vmatprep.subr.bf16.mxu0 %v9692_v24  ;;  %v9729_v39 = vld [vmem:[#allocation19 + $0x668] ss:$28 sps:$4 sm:$0xff]   ;;  %v9734_v24 = vld [vmem:[#allocation19 + $0x2b4] ss:$28 sps:$4 sm:$0xff]  }
 0x5f3   :  { %6541 = vmatmul.mubr.bf16.gmra.mxu0 %v11615_v34  ;;  %6835 = vmatprep.subr.bf16.mxu1 %v9695_v19  ;;  %v9737_v19 = vld [vmem:[#allocation19 + $0x634] ss:$28 sps:$4 sm:$0xff]  }
 0x5f4   :  { %6654 = vmatmul.mubr.bf16.gmra.mxu1 %v11617_v32  ;;  %6550 = vmatprep.mubr.bf16.mxu0 %v11631_v42 }
 0x5f5   :  { %6663 = vmatprep.mubr.bf16.mxu1 %v11633_v31  ;;  %6723 = vmatpush1.bf16.msra.mxu0 %v9690_v7  ;;  %v9732_v7 = vld [vmem:[#allocation19 + $0x2b0] ss:$28 sps:$4 sm:$0xff]  }
 0x5f6   :  { %6836 = vmatpush1.bf16.msra.mxu1 %v9693_v8  ;;  %6724 = vmatprep.subr.bf16.mxu0 %v9698_v10  ;;  %v9735_v8 = vld [vmem:[#allocation19 + $0x630] ss:$28 sps:$4 sm:$0xff]   ;;  %v9740_v10 = vld [vmem:[#allocation19 + $0x27c] ss:$28 sps:$4 sm:$0xff]  }
 0x5f7   :  { %6837 = vmatprep.subr.bf16.mxu1 %v9701_v51  ;;  %v9743_v51 = vld [vmem:[#allocation19 + $0x5fc] ss:$28 sps:$4 sm:$0xff]  }
 0x5f9   :  { %6725 = vmatpush1.bf16.msra.mxu0 %v9696_v36  ;;  %v9738_v36 = vld [vmem:[#allocation19 + $0x278] ss:$28 sps:$4 sm:$0xff]  }
 0x5fa   :  { %6838 = vmatpush1.bf16.msra.mxu1 %v9699_v22  ;;  %6726 = vmatprep.subr.bf16.mxu0 %v9704_v0  ;;  %v9741_v22 = vld [vmem:[#allocation19 + $0x5f8] ss:$28 sps:$4 sm:$0xff]   ;;  %v9746_v0 = vld [vmem:[#allocation19 + $0x244] ss:$28 sps:$4 sm:$0xff]  }
 0x5fb   :  { %6551 = vmatmul.mubr.bf16.gmra.mxu0 %v11635_v63  ;;  %6839 = vmatprep.subr.bf16.mxu1 %v9707_v50  ;;  %v9749_v50 = vld [vmem:[#allocation19 + $0x5c4] ss:$28 sps:$4 sm:$0xff]  }
 0x5fc   :  { %6664 = vmatmul.mubr.bf16.gmra.mxu1 %v11637_v44  ;;  %6560 = vmatprep.mubr.bf16.mxu0 %v11651_v14 }
 0x5fd   :  { %6673 = vmatprep.mubr.bf16.mxu1 %v11653_v54  ;;  %6727 = vmatpush1.bf16.msra.mxu0 %v9702_v62  ;;  %v9744_v62 = vld [vmem:[#allocation19 + $0x240] ss:$28 sps:$4 sm:$0xff]  }
 0x5fe   :  { %6840 = vmatpush1.bf16.msra.mxu1 %v9705_v6  ;;  %6728 = vmatprep.subr.bf16.mxu0 %v9710_v59  ;;  %v9747_v6 = vld [vmem:[#allocation19 + $0x5c0] ss:$28 sps:$4 sm:$0xff]   ;;  %v9752_v59 = vld [vmem:[#allocation19 + $0x20c] ss:$28 sps:$4 sm:$0xff]  }
 0x5ff   :  { %6841 = vmatprep.subr.bf16.mxu1 %v9713_v38  ;;  %v9755_v38 = vld [vmem:[#allocation19 + $0x58c] ss:$28 sps:$4 sm:$0xff]  }
 0x601   :  { %6729 = vmatpush1.bf16.msra.mxu0 %v9708_v20  ;;  %v9750_v20 = vld [vmem:[#allocation19 + $0x208] ss:$28 sps:$4 sm:$0xff]  }
 0x602   :  { %6842 = vmatpush1.bf16.msra.mxu1 %v9711_v13  ;;  %6730 = vmatprep.subr.bf16.mxu0 %v9716_v5  ;;  %v9753_v13 = vld [vmem:[#allocation19 + $0x588] ss:$28 sps:$4 sm:$0xff]   ;;  %v9758_v5 = vld [vmem:[#allocation19 + $0x1d4] ss:$28 sps:$4 sm:$0xff]  }
 0x603   :  { %6561 = vmatmul.mubr.bf16.gmra.mxu0 %v11655_v41  ;;  %6843 = vmatprep.subr.bf16.mxu1 %v9719_v48  ;;  %v9761_v48 = vld [vmem:[#allocation19 + $0x554] ss:$28 sps:$4 sm:$0xff]  }
 0x604   :  { %6674 = vmatmul.mubr.bf16.gmra.mxu1 %v11657_v37  ;;  %6570 = vmatprep.mubr.bf16.mxu0 %v11671_v45 }
 0x605   :  { %6683 = vmatprep.mubr.bf16.mxu1 %v11673_v21  ;;  %6731 = vmatpush2.bf16.msra.mxu0 %v9714_v43  ;;  %v9756_v43 = vld [vmem:[#allocation19 + $0x1d0] ss:$28 sps:$4 sm:$0xff]  }
 0x606   :  { %6844 = vmatpush2.bf16.msra.mxu1 %v9717_v27  ;;  %6732 = vmatprep.subr.bf16.mxu0 %v9722_v3  ;;  %v9759_v27 = vld [vmem:[#allocation19 + $0x550] ss:$28 sps:$4 sm:$0xff]   ;;  %v9762_v3 = vld [vmem:[#allocation19 + $0x360] ss:$28 sps:$4 sm:$0xff]  }
 0x607   :  { %6845 = vmatprep.subr.bf16.mxu1 %v9725_v23  ;;  %v9764_v23 = vld [vmem:[#allocation19 + $0x6e0] ss:$28 sps:$4 sm:$0xff]  }
 0x609   :  { %6733 = vmatpush2.bf16.msra.mxu0 %v9720_v16  ;;  %v9763_v16 = vld [vmem:[#allocation19 + $0x1a0] ss:$28 sps:$4 sm:$0xff]  }
 0x60a   :  { %6846 = vmatpush2.bf16.msra.mxu1 %v9723_v58  ;;  %6734 = vmatprep.subr.bf16.mxu0 %v9728_v47  ;;  %v9765_v58 = vld [vmem:[#allocation19 + $0x520] ss:$28 sps:$4 sm:$0xff]   ;;  %v9766_v47 = vld [vmem:[#allocation19 + $0x328] ss:$28 sps:$4 sm:$0xff]  }
 0x60b   :  { %6571 = vmatmul.mubr.bf16.gmra.mxu0 %v11675_v2  ;;  %6847 = vmatprep.subr.bf16.mxu1 %v9731_v35  ;;  %v9768_v35 = vld [vmem:[#allocation19 + $0x6a8] ss:$28 sps:$4 sm:$0xff]  }
 0x60c   :  { %6684 = vmatmul.mubr.bf16.gmra.mxu1 %v11677_v40  ;;  %6580 = vmatprep.mubr.bf16.mxu0 %v11691_v29 }
 0x60d   :  { %6693 = vmatprep.mubr.bf16.mxu1 %v11693_v17  ;;  %6735 = vmatpush2.bf16.msra.mxu0 %v9726_v26  ;;  %v9767_v26 = vld [vmem:[#allocation19 + $0x168] ss:$28 sps:$4 sm:$0xff]  }
 0x60e   :  { %6848 = vmatpush2.bf16.msra.mxu1 %v9729_v39  ;;  %6736 = vmatprep.subr.bf16.mxu0 %v9734_v24  ;;  %v9769_v39 = vld [vmem:[#allocation19 + $0x4e8] ss:$28 sps:$4 sm:$0xff]   ;;  %v9770_v24 = vld [vmem:[#allocation19 + $0x2f0] ss:$28 sps:$4 sm:$0xff]  }
 0x60f   :  { %6849 = vmatprep.subr.bf16.mxu1 %v9737_v19  ;;  %v9772_v19 = vld [vmem:[#allocation19 + $0x670] ss:$28 sps:$4 sm:$0xff]  }
 0x611   :  { %6737 = vmatpush2.bf16.msra.mxu0 %v9732_v7  ;;  %v9771_v7 = vld [vmem:[#allocation19 + $0x130] ss:$28 sps:$4 sm:$0xff]  }
 0x612   :  { %6850 = vmatpush2.bf16.msra.mxu1 %v9735_v8  ;;  %6738 = vmatprep.subr.bf16.mxu0 %v9740_v10  ;;  %v9773_v8 = vld [vmem:[#allocation19 + $0x4b0] ss:$28 sps:$4 sm:$0xff]   ;;  %v9774_v10 = vld [vmem:[#allocation19 + $0x2b8] ss:$28 sps:$4 sm:$0xff]  }
 0x613   :  { %6581 = vmatmul.mubr.bf16.gmra.mxu0 %v11695_v11  ;;  %6851 = vmatprep.subr.bf16.mxu1 %v9743_v51  ;;  %v9776_v51 = vld [vmem:[#allocation19 + $0x638] ss:$28 sps:$4 sm:$0xff]  }
 0x614   :  { %6694 = vmatmul.mubr.bf16.gmra.mxu1 %v11697_v52  ;;  %6590 = vmatprep.mubr.bf16.mxu0 %v11711_v49 }
 0x615   :  { %6703 = vmatprep.mubr.bf16.mxu1 %v11713_v56  ;;  %6739 = vmatpush2.bf16.msra.mxu0 %v9738_v36  ;;  %v9775_v36 = vld [vmem:[#allocation19 + $0xf8] ss:$28 sps:$4 sm:$0xff]  }
 0x616   :  { %6852 = vmatpush2.bf16.msra.mxu1 %v9741_v22  ;;  %6740 = vmatprep.subr.bf16.mxu0 %v9746_v0  ;;  %v9777_v22 = vld [vmem:[#allocation19 + $0x478] ss:$28 sps:$4 sm:$0xff]   ;;  %v9778_v0 = vld [vmem:[#allocation19 + $0x280] ss:$28 sps:$4 sm:$0xff]  }
 0x617   :  { %6853 = vmatprep.subr.bf16.mxu1 %v9749_v50  ;;  %v9780_v50 = vld [vmem:[#allocation19 + $0x600] ss:$28 sps:$4 sm:$0xff]  }
 0x619   :  { %6741 = vmatpush2.bf16.msra.mxu0 %v9744_v62  ;;  %v9779_v62 = vld [vmem:[#allocation19 + $0xc0] ss:$28 sps:$4 sm:$0xff]  }
 0x61a   :  { %6854 = vmatpush2.bf16.msra.mxu1 %v9747_v6  ;;  %6742 = vmatprep.subr.bf16.mxu0 %v9752_v59  ;;  %v9781_v6 = vld [vmem:[#allocation19 + $0x440] ss:$28 sps:$4 sm:$0xff]   ;;  %v9782_v59 = vld [vmem:[#allocation19 + $0x248] ss:$28 sps:$4 sm:$0xff]  }
 0x61b   :  { %6591 = vmatmul.mubr.bf16.gmra.mxu0 %v11715_v53  ;;  %6855 = vmatprep.subr.bf16.mxu1 %v9755_v38  ;;  %v9784_v38 = vld [vmem:[#allocation19 + $0x5c8] ss:$28 sps:$4 sm:$0xff]  }
 0x61c   :  { %6704 = vmatmul.mubr.bf16.gmra.mxu1 %v11717_v61  ;;  %6746 = vmatprep.mubr.bf16.mxu0 %v11571_v60 }
 0x61d   :  { %6743 = vmatpush2.bf16.msra.mxu0 %v9750_v20  ;;  %6859 = vmatprep.mubr.bf16.mxu1 %v11573_v25  ;;  %v9783_v20 = vld [vmem:[#allocation19 + $0x88] ss:$28 sps:$4 sm:$0xff]  }
 0x61e   :  { %6856 = vmatpush2.bf16.msra.mxu1 %v9753_v13  ;;  %6744 = vmatprep.subr.bf16.mxu0 %v9758_v5  ;;  %v9785_v13 = vld [vmem:[#allocation19 + $0x408] ss:$28 sps:$4 sm:$0xff]   ;;  %v9786_v5 = vld [vmem:[#allocation19 + $0x210] ss:$28 sps:$4 sm:$0xff]  }
 0x61f   :  { %6857 = vmatprep.subr.bf16.mxu1 %v9761_v48  ;;  %v9788_v48 = vld [vmem:[#allocation19 + $0x590] ss:$28 sps:$4 sm:$0xff]  }
 0x621   :  { %6745 = vmatpush2.bf16.msra.mxu0 %v9756_v43  ;;  %v9787_v43 = vld [vmem:[#allocation19 + $0x50] ss:$28 sps:$4 sm:$0xff]  }
 0x622   :  { %6858 = vmatpush2.bf16.msra.mxu1 %v9759_v27  ;;  %8724 = vmatprep.subr.bf16.mxu0 %v9762_v3  ;;  %v9789_v27 = vld [vmem:[#allocation19 + $0x3d0] ss:$28 sps:$4 sm:$0xff]   ;;  %v9790_v3 = vld [vmem:[#allocation19 + $0x1d8] ss:$28 sps:$4 sm:$0xff]  }
 0x623   :  { %8788 = vmatprep.subr.bf16.mxu1 %v9764_v23  ;;  %v9792_v23 = vld [vmem:[#allocation19 + $0x558] ss:$28 sps:$4 sm:$0xff]  }
 0x624   :  { %6747 = vmatmul.mubr.bf16.vlgmr.msra.gmra.mxu0 %v11575_v30 }
 0x625   :  { %6860 = vmatmul.mubr.bf16.vlgmr.msra.gmra.mxu1 %v11577_v1  ;;  %6756 = vmatprep.mubr.bf16.mxu0 %v11591_v15 }
 0x626   :  { %6869 = vmatprep.mubr.bf16.mxu1 %v11593_v12  ;;  %8725 = vmatpush3.bf16.msra.mxu0 %v9763_v16  ;;  %v9791_v16 = vld [vmem:[#allocation19 + $0x18] ss:$28 sps:$4 sm:$0xff]  }
 0x627   :  { %8789 = vmatpush3.bf16.msra.mxu1 %v9765_v58  ;;  %8726 = vmatprep.subr.bf16.mxu0 %v9766_v47  ;;  %v9793_v58 = vld [vmem:[#allocation19 + $0x398] ss:$28 sps:$4 sm:$0xff]  }
 0x628   :  { %8790 = vmatprep.subr.bf16.mxu1 %v9768_v35  ;;  %v11791_v47 = vld [vmem:[%s11994_s13] sm:$0xff] }
 0x629   :  { %v11796_v35 = vrot.slane %v11791_v47, %v12067_v55 }
 0x62a   :  { %8727 = vmatpush3.bf16.msra.mxu0 %v9767_v26  ;;  %v11800_v26 = vrot.slane %v11791_v47, %v12066_v33 }
 0x62b   :  { %8791 = vmatpush3.bf16.msra.mxu1 %v9769_v39  ;;  %8728 = vmatprep.subr.bf16.mxu0 %v9770_v24 }
 0x62c   :  { %6757 = vmatmul.mubr.bf16.gmra.mxu0 %v11595_v57  ;;  %8792 = vmatprep.subr.bf16.mxu1 %v9772_v19 }
 0x62d   :  { %6870 = vmatmul.mubr.bf16.gmra.mxu1 %v11597_v28  ;;  %6766 = vmatprep.mubr.bf16.mxu0 %v11611_v18 }
 0x62e   :  { %6879 = vmatprep.mubr.bf16.mxu1 %v11613_v9  ;;  %8729 = vmatpush3.bf16.msra.mxu0 %v9771_v7 }
 0x62f   :  { %8793 = vmatpush3.bf16.msra.mxu1 %v9773_v8  ;;  %8730 = vmatprep.subr.bf16.mxu0 %v9774_v10 }
 0x630   :  { %8794 = vmatprep.subr.bf16.mxu1 %v9776_v51 }
 0x632   :  { %8731 = vmatpush3.bf16.msra.mxu0 %v9775_v36 }
 0x633   :  { %8795 = vmatpush3.bf16.msra.mxu1 %v9777_v22  ;;  %8732 = vmatprep.subr.bf16.mxu0 %v9778_v0 }
 0x634   :  { %6767 = vmatmul.mubr.bf16.gmra.mxu0 %v11615_v34  ;;  %8796 = vmatprep.subr.bf16.mxu1 %v9780_v50 }
 0x635   :  { %6880 = vmatmul.mubr.bf16.gmra.mxu1 %v11617_v32  ;;  %6776 = vmatprep.mubr.bf16.mxu0 %v11631_v42 }
 0x636   :  { %6889 = vmatprep.mubr.bf16.mxu1 %v11633_v31  ;;  %8733 = vmatpush3.bf16.msra.mxu0 %v9779_v62 }
 0x637   :  { %8797 = vmatpush3.bf16.msra.mxu1 %v9781_v6  ;;  %8734 = vmatprep.subr.bf16.mxu0 %v9782_v59 }
 0x638   :  { %8798 = vmatprep.subr.bf16.mxu1 %v9784_v38 }
 0x63a   :  { %8735 = vmatpush3.bf16.msra.mxu0 %v9783_v20 }
 0x63b   :  { %8799 = vmatpush3.bf16.msra.mxu1 %v9785_v13  ;;  %8736 = vmatprep.subr.bf16.mxu0 %v9786_v5 }
 0x63c   :  { %6777 = vmatmul.mubr.bf16.gmra.mxu0 %v11635_v63  ;;  %8800 = vmatprep.subr.bf16.mxu1 %v9788_v48 }
 0x63d   :  { %6890 = vmatmul.mubr.bf16.gmra.mxu1 %v11637_v44  ;;  %6786 = vmatprep.mubr.bf16.mxu0 %v11651_v14 }
 0x63e   :  { %6899 = vmatprep.mubr.bf16.mxu1 %v11653_v54  ;;  %8737 = vmatpush3.bf16.msra.mxu0 %v9787_v43 }
 0x63f   :  { %8801 = vmatpush3.bf16.msra.mxu1 %v9789_v27  ;;  %8738 = vmatprep.subr.bf16.mxu0 %v9790_v3 }
 0x640   :  { %8802 = vmatprep.subr.bf16.mxu1 %v9792_v23 }
 0x642   :  { %8739 = vmatpush3.bf16.msra.mxu0 %v9791_v16 }
 0x643   :  { %8803 = vmatpush3.bf16.msra.mxu1 %v9793_v58 }
 0x644   :  { %6787 = vmatmul.mubr.bf16.gmra.mxu0 %v11655_v41 }
 0x645   :  { %6900 = vmatmul.mubr.bf16.gmra.mxu1 %v11657_v37  ;;  %6796 = vmatprep.mubr.bf16.mxu0 %v11671_v45 }
 0x646   :  { %6909 = vmatprep.mubr.bf16.mxu1 %v11673_v21 }
 0x64c   :  { %6797 = vmatmul.mubr.bf16.gmra.mxu0 %v11675_v2 }
 0x64d   :  { %6910 = vmatmul.mubr.bf16.gmra.mxu1 %v11677_v40  ;;  %6806 = vmatprep.mubr.bf16.mxu0 %v11691_v29 }
 0x64e   :  { %6919 = vmatprep.mubr.bf16.mxu1 %v11693_v17 }
 0x654   :  { %6807 = vmatmul.mubr.bf16.gmra.mxu0 %v11695_v11 }
 0x655   :  { %6920 = vmatmul.mubr.bf16.gmra.mxu1 %v11697_v52  ;;  %6816 = vmatprep.mubr.bf16.mxu0 %v11711_v49 }
 0x656   :  { %6929 = vmatprep.mubr.bf16.mxu1 %v11713_v56 }
 0x65c   :  { %6817 = vmatmul.mubr.bf16.gmra.mxu0 %v11715_v53 }
 0x65d   :  { %6930 = vmatmul.mubr.bf16.gmra.mxu1 %v11717_v61  ;;  %6972 = vmatprep.mubr.bf16.mxu0 %v11571_v60 }
 0x65e   :  { %7069 = vmatprep.mubr.bf16.mxu1 %v11573_v25 }
 0x663   :  { %v6296_v39 = vpop.f32.mrf.mxu0  ;;  %v6409_v24 = vpop.f32.mrf.mxu1 }
 0x664   :  { %v6297_v19 = vadd.f32 %v6296_v39, %v11796_v35  ;;  %6973 = vmatmul.mubr.bf16.vlgmr.msra.gmra.mxu0 %v11575_v30 }
 0x665   :  { %7070 = vmatmul.mubr.bf16.vlgmr.msra.gmra.mxu1 %v11577_v1  ;;  %6980 = vmatprep.mubr.bf16.mxu0 %v11591_v15  ;;  %v6298_v60 = vpop.f32.mrf.mxu0  ;;  %v6411_v25 = vpop.f32.mrf.mxu1 }
 0x666   :  { %v6410_v7 = vadd.f32 %v6409_v24, %v6297_v19  ;;  %7077 = vmatprep.mubr.bf16.mxu1 %v11593_v12  ;;  %v6299_v55 = vadd.f32 %v6298_v60, %v11800_v26 }
 0x667   :  { %v6300_v8 = vpop.f32.mrf.mxu0  ;;  %v6413_v33 = vpop.f32.mrf.mxu1 }
 0x668   :  { %v8612_v10 = vmul.f32 -1.442695, %v6410_v7  ;;  %v6412_v51 = vadd.f32 %v6411_v25, %v6299_v55  ;;  %v6301_v36 = vadd.f32 %v6300_v8, %v11796_v35 }
 0x669   :  { %v6302_v22 = vpop.f32.mrf.mxu0  ;;  %v6415_v0 = vpop.f32.mrf.mxu1 }
 0x66a   :  { %9826 = vpow2.f32 %v8612_v10  ;;  %v8613_v30 = vmul.f32 -1.442695, %v6412_v51  ;;  %v6414_v1 = vadd.f32 %v6413_v33, %v6301_v36  ;;  %v6303_v15 = vadd.f32 %v6302_v22, %v11800_v26 }
 0x66b   :  { %v6306_v50 = vpop.f32.mrf.mxu0  ;;  %v6419_v62 = vpop.f32.mrf.mxu1 }
 0x66c   :  { %9828 = vpow2.f32 %v8613_v30  ;;  %v8619_v6 = vmul.f32 -1.442695, %v6414_v1  ;;  %v6416_v12 = vadd.f32 %v6415_v0, %v6303_v15  ;;  %v6307_v59 = vadd.f32 %v6306_v50, %v11796_v35  ;;  %6981 = vmatmul.mubr.bf16.gmra.mxu0 %v11595_v57 }
 0x66d   :  { %7078 = vmatmul.mubr.bf16.gmra.mxu1 %v11597_v28  ;;  %6988 = vmatprep.mubr.bf16.mxu0 %v11611_v18  ;;  %v6308_v38 = vpop.f32.mrf.mxu0  ;;  %v6421_v20 = vpop.f32.mrf.mxu1 }
 0x66e   :  { %9830 = vpow2.f32 %v8619_v6  ;;  %v8620_v13 = vmul.f32 -1.442695, %v6416_v12  ;;  %v6420_v5 = vadd.f32 %v6419_v62, %v6307_v59  ;;  %7085 = vmatprep.mubr.bf16.mxu1 %v11613_v9  ;;  %v6309_v48 = vadd.f32 %v6308_v38, %v11800_v26 }
 0x66f   :  { %v6310_v43 = vpop.f32.mrf.mxu0  ;;  %v6423_v27 = vpop.f32.mrf.mxu1 }
 0x670   :  { %9832 = vpow2.f32 %v8620_v13  ;;  %v8626_v3 = vmul.f32 -1.442695, %v6420_v5  ;;  %v6422_v23 = vadd.f32 %v6421_v20, %v6309_v48  ;;  %v6311_v57 = vadd.f32 %v6310_v43, %v11796_v35 }
 0x671   :  { %v6312_v16 = vpop.f32.mrf.mxu0  ;;  %v6425_v28 = vpop.f32.mrf.mxu1 }
 0x672   :  { %9834 = vpow2.f32 %v8626_v3  ;;  %v8627_v18 = vmul.f32 -1.442695, %v6422_v23  ;;  %v6424_v58 = vadd.f32 %v6423_v27, %v6311_v57  ;;  %v6313_v39 = vadd.f32 %v6312_v16, %v11800_v26 }
 0x673   :  { %v6316_v24 = vpop.f32.mrf.mxu0  ;;  %v6429_v19 = vpop.f32.mrf.mxu1 }
 0x674   :  { %9836 = vpow2.f32 %v8627_v18  ;;  %v8633_v9 = vmul.f32 -1.442695, %v6424_v58  ;;  %v6426_v60 = vadd.f32 %v6425_v28, %v6313_v39  ;;  %v6317_v25 = vadd.f32 %v6316_v24, %v11796_v35  ;;  %6989 = vmatmul.mubr.bf16.gmra.mxu0 %v11615_v34 }
 0x675   :  { %7086 = vmatmul.mubr.bf16.gmra.mxu1 %v11617_v32  ;;  %6996 = vmatprep.mubr.bf16.mxu0 %v11631_v42  ;;  %v6318_v7 = vpop.f32.mrf.mxu0  ;;  %v6431_v55 = vpop.f32.mrf.mxu1 }
 0x676   :  { %9838 = vpow2.f32 %v8633_v9  ;;  %v8634_v8 = vmul.f32 -1.442695, %v6426_v60  ;;  %v6430_v33 = vadd.f32 %v6429_v19, %v6317_v25  ;;  %7093 = vmatprep.mubr.bf16.mxu1 %v11633_v31  ;;  %v6319_v10 = vadd.f32 %v6318_v7, %v11800_v26 }
 0x677   :  { %v9827_v51 = vpop.eup %9826  ;;  %v6320_v36 = vpop.f32.mrf.mxu0 }
 0x678   :  { %v6433_v22 = vpop.f32.mrf.mxu1  ;;  %v7470_v0 = vadd.f32 1.0, %v9827_v51  ;;  %9840 = vpow2.f32 %v8634_v8  ;;  %v8640_v30 = vmul.f32 -1.442695, %v6430_v33  ;;  %v6432_v34 = vadd.f32 %v6431_v55, %v6319_v10 }
 0x679   :  { %v9829_v1 = vpop.eup %9828  ;;  %v6321_v32 = vadd.f32 %v6320_v36, %v11796_v35  ;;  %v6322_v42 = vpop.f32.mrf.mxu0 }
 0x67a   :  { %v6435_v15 = vpop.f32.mrf.mxu1  ;;  %9842 = vrcp.f32 %v7470_v0  ;;  %v7471_v50 = vadd.f32 1.0, %v9829_v1  ;;  %v8641_v62 = vmul.f32 -1.442695, %v6432_v34  ;;  %v6323_v6 = vadd.f32 %v6322_v42, %v11800_v26 }
 0x67b   :  { %v9831_v31 = vpop.eup %9830  ;;  %9844 = vpow2.f32 %v8640_v30  ;;  %v6434_v12 = vadd.f32 %v6433_v22, %v6321_v32  ;;  %v6326_v59 = vpop.f32.mrf.mxu0 }
 0x67c   :  { %v6439_v38 = vpop.f32.mrf.mxu1  ;;  %9846 = vrcp.f32 %v7471_v50  ;;  %v7477_v20 = vadd.f32 1.0, %v9831_v31  ;;  %v6436_v13 = vadd.f32 %v6435_v15, %v6323_v6  ;;  %v6327_v5 = vadd.f32 %v6326_v59, %v11796_v35  ;;  %6997 = vmatmul.mubr.bf16.gmra.mxu0 %v11635_v63 }
 0x67d   :  { %v9833_v48 = vpop.eup %9832  ;;  %9848 = vpow2.f32 %v8641_v62  ;;  %v8647_v43 = vmul.f32 -1.442695, %v6434_v12  ;;  %7094 = vmatmul.mubr.bf16.gmra.mxu1 %v11637_v44  ;;  %7004 = vmatprep.mubr.bf16.mxu0 %v11651_v14  ;;  %v6328_v27 = vpop.f32.mrf.mxu0 }
 0x67e   :  { %v6441_v3 = vpop.f32.mrf.mxu1  ;;  %9850 = vrcp.f32 %v7477_v20  ;;  %v7478_v23 = vadd.f32 1.0, %v9833_v48  ;;  %v8648_v57 = vmul.f32 -1.442695, %v6436_v13  ;;  %v6440_v16 = vadd.f32 %v6439_v38, %v6327_v5  ;;  %7101 = vmatprep.mubr.bf16.mxu1 %v11653_v54 }
 0x67f   :  { %v9835_v28 = vpop.eup %9834  ;;  %9852 = vpow2.f32 %v8647_v43  ;;  %v6329_v18 = vadd.f32 %v6328_v27, %v11800_v26  ;;  %v6330_v63 = vpop.f32.mrf.mxu0 }
 0x680   :  { %v6443_v58 = vpop.f32.mrf.mxu1  ;;  %9854 = vrcp.f32 %v7478_v23  ;;  %v7484_v39 = vadd.f32 1.0, %v9835_v28  ;;  %v8654_v24 = vmul.f32 -1.442695, %v6440_v16  ;;  %v6331_v44 = vadd.f32 %v6330_v63, %v11796_v35 }
 0x681   :  { %v9837_v14 = vpop.eup %9836  ;;  %9856 = vpow2.f32 %v8648_v57  ;;  %v6442_v19 = vadd.f32 %v6441_v3, %v6329_v18  ;;  %v6332_v9 = vpop.f32.mrf.mxu0 }
 0x682   :  { %v6445_v60 = vpop.f32.mrf.mxu1  ;;  %9858 = vrcp.f32 %v7484_v39  ;;  %v7485_v25 = vadd.f32 1.0, %v9837_v14  ;;  %v6444_v7 = vadd.f32 %v6443_v58, %v6331_v44  ;;  %v6333_v54 = vadd.f32 %v6332_v9, %v11800_v26 }
 0x683   :  { %v9839_v55 = vpop.eup %9838  ;;  %9860 = vpow2.f32 %v8654_v24  ;;  %v8655_v8 = vmul.f32 -1.442695, %v6442_v19  ;;  %v6336_v33 = vpop.f32.mrf.mxu0 }
 0x684   :  { %v6449_v10 = vpop.f32.mrf.mxu1  ;;  %9862 = vrcp.f32 %v7485_v25  ;;  %v7491_v51 = vadd.f32 1.0, %v9839_v55  ;;  %v8661_v36 = vmul.f32 -1.442695, %v6444_v7  ;;  %v6446_v22 = vadd.f32 %v6445_v60, %v6333_v54  ;;  %7005 = vmatmul.mubr.bf16.gmra.mxu0 %v11655_v41 }
 0x685   :  { %v9841_v0 = vpop.eup %9840  ;;  %9864 = vpow2.f32 %v8655_v8  ;;  %v6337_v30 = vadd.f32 %v6336_v33, %v11796_v35  ;;  %7102 = vmatmul.mubr.bf16.gmra.mxu1 %v11657_v37  ;;  %7012 = vmatprep.mubr.bf16.mxu0 %v11671_v45  ;;  %v6338_v34 = vpop.f32.mrf.mxu0 }
 0x686   :  { %v6451_v1 = vpop.f32.mrf.mxu1  ;;  %9866 = vrcp.f32 %v7491_v51  ;;  %v7492_v32 = vadd.f32 1.0, %v9841_v0  ;;  %v8662_v42 = vmul.f32 -1.442695, %v6446_v22  ;;  %7109 = vmatprep.mubr.bf16.mxu1 %v11673_v21  ;;  %v6339_v15 = vadd.f32 %v6338_v34, %v11800_v26 }
 0x687   :  { %v9843_v50 = vpop.eup %9842  ;;  %9868 = vpow2.f32 %v8661_v36  ;;  %v6450_v41 = vadd.f32 %v6449_v10, %v6337_v30  ;;  %v6340_v62 = vpop.f32.mrf.mxu0 }
 0x688   :  { %v6453_v6 = vpop.f32.mrf.mxu1  ;;  %v9845_v31 = vpop.eup %9844  ;;  %7806 = vst [vmem:[#allocation20] sm:$0xff] %v9843_v50  ;;  %9870 = vrcp.f32 %v7492_v32  ;;  %v6452_v37 = vadd.f32 %v6451_v1, %v6339_v15  ;;  %v6341_v45 = vadd.f32 %v6340_v62, %v11796_v35 }
 0x689   :  { %v9847_v12 = vpop.eup %9846  ;;  %v7498_v59 = vadd.f32 1.0, %v9845_v31  ;;  %9872 = vpow2.f32 %v8662_v42  ;;  %v8668_v38 = vmul.f32 -1.442695, %v6450_v41  ;;  %v6342_v20 = vpop.f32.mrf.mxu0 }
 0x68a   :  { %v6455_v13 = vpop.f32.mrf.mxu1  ;;  %v9849_v21 = vpop.eup %9848  ;;  %7807 = vst [vmem:[#allocation20 + $0x8] sm:$0xff] %v9847_v12  ;;  %v8669_v5 = vmul.f32 -1.442695, %v6452_v37  ;;  %v6454_v48 = vadd.f32 %v6453_v6, %v6341_v45  ;;  %v6343_v43 = vadd.f32 %v6342_v20, %v11800_v26 }
 0x68b   :  { %v9851_v27 = vpop.eup %9850  ;;  %9874 = vrcp.f32 %v7498_v59  ;;  %v7499_v3 = vadd.f32 1.0, %v9849_v21  ;;  %v6346_v23 = vpop.f32.mrf.mxu0 }
 0x68c   :  { %v6459_v57 = vpop.f32.mrf.mxu1  ;;  %v9853_v16 = vpop.eup %9852  ;;  %7813 = vst [vmem:[#allocation20 + $0x38] sm:$0xff] %v9851_v27  ;;  %9876 = vpow2.f32 %v8668_v38  ;;  %v8675_v28 = vmul.f32 -1.442695, %v6454_v48  ;;  %v6456_v18 = vadd.f32 %v6455_v13, %v6343_v43  ;;  %v6347_v63 = vadd.f32 %v6346_v23, %v11796_v35  ;;  %7013 = vmatmul.mubr.bf16.gmra.mxu0 %v11675_v2 }
 0x68d   :  { %v9855_v58 = vpop.eup %9854  ;;  %9878 = vrcp.f32 %v7499_v3  ;;  %v7505_v39 = vadd.f32 1.0, %v9853_v16  ;;  %7110 = vmatmul.mubr.bf16.gmra.mxu1 %v11677_v40  ;;  %7020 = vmatprep.mubr.bf16.mxu0 %v11691_v29  ;;  %v6348_v24 = vpop.f32.mrf.mxu0 }
 0x68e   :  { %v6461_v44 = vpop.f32.mrf.mxu1  ;;  %v9857_v14 = vpop.eup %9856  ;;  %7814 = vst [vmem:[#allocation20 + $0x40] sm:$0xff] %v9855_v58  ;;  %9880 = vpow2.f32 %v8669_v5  ;;  %v8676_v19 = vmul.f32 -1.442695, %v6456_v18  ;;  %v6460_v9 = vadd.f32 %v6459_v57, %v6347_v63  ;;  %7117 = vmatprep.mubr.bf16.mxu1 %v11693_v17  ;;  %v6349_v60 = vadd.f32 %v6348_v24, %v11800_v26 }
 0x68f   :  { %v9859_v25 = vpop.eup %9858  ;;  %9882 = vrcp.f32 %v7505_v39  ;;  %v7506_v2 = vadd.f32 1.0, %v9857_v14  ;;  %v6350_v7 = vpop.f32.mrf.mxu0 }
 0x690   :  { %v6463_v54 = vpop.f32.mrf.mxu1  ;;  %v9861_v55 = vpop.eup %9860  ;;  %7820 = vst [vmem:[#allocation20 + $0x70] sm:$0xff] %v9859_v25  ;;  %9884 = vpow2.f32 %v8675_v28  ;;  %v8682_v40 = vmul.f32 -1.442695, %v6460_v9  ;;  %v6462_v29 = vadd.f32 %v6461_v44, %v6349_v60  ;;  %v6351_v8 = vadd.f32 %v6350_v7, %v11796_v35 }
 0x691   :  { %v9863_v33 = vpop.eup %9862  ;;  %9886 = vrcp.f32 %v7506_v2  ;;  %v7512_v10 = vadd.f32 1.0, %v9861_v55  ;;  %v6352_v51 = vpop.f32.mrf.mxu0 }
 0x692   :  { %v6465_v36 = vpop.f32.mrf.mxu1  ;;  %v9865_v17 = vpop.eup %9864  ;;  %7821 = vst [vmem:[#allocation20 + $0x78] sm:$0xff] %v9863_v33  ;;  %9888 = vpow2.f32 %v8676_v19  ;;  %v8683_v22 = vmul.f32 -1.442695, %v6462_v29  ;;  %v6464_v0 = vadd.f32 %v6463_v54, %v6351_v8  ;;  %v6353_v30 = vadd.f32 %v6352_v51, %v11800_v26 }
 0x693   :  { %v9867_v34 = vpop.eup %9866  ;;  %9890 = vrcp.f32 %v7512_v10  ;;  %v7513_v1 = vadd.f32 1.0, %v9865_v17  ;;  %v6356_v32 = vpop.f32.mrf.mxu0  ;;  %v11864_v33 = vrot.slane %v11791_v47, %v12069_v46 }
 0x694   :  { %v6469_v42 = vpop.f32.mrf.mxu1  ;;  %v9869_v15 = vpop.eup %9868  ;;  %7827 = vst [vmem:[#allocation20 + $0xa8] sm:$0xff] %v9867_v34  ;;  %9892 = vpow2.f32 %v8682_v40  ;;  %v8689_v50 = vmul.f32 -1.442695, %v6464_v0  ;;  %v6466_v41 = vadd.f32 %v6465_v36, %v6353_v30  ;;  %v6357_v62 = vadd.f32 %v6356_v32, %v11796_v35  ;;  %7021 = vmatmul.mubr.bf16.gmra.mxu0 %v11695_v11 }
 0x695   :  { %v9871_v6 = vpop.eup %9870  ;;  %9894 = vrcp.f32 %v7513_v1  ;;  %v7519_v31 = vadd.f32 1.0, %v9869_v15  ;;  %7118 = vmatmul.mubr.bf16.gmra.mxu1 %v11697_v52  ;;  %7028 = vmatprep.mubr.bf16.mxu0 %v11711_v49  ;;  %v6358_v37 = vpop.f32.mrf.mxu0 }
 0x696   :  { %v6471_v45 = vpop.f32.mrf.mxu1  ;;  %v9873_v12 = vpop.eup %9872  ;;  %7828 = vst [vmem:[#allocation20 + $0xb0] sm:$0xff] %v9871_v6  ;;  %9896 = vpow2.f32 %v8683_v22  ;;  %v8690_v59 = vmul.f32 -1.442695, %v6466_v41  ;;  %v6470_v38 = vadd.f32 %v6469_v42, %v6357_v62  ;;  %7125 = vmatprep.mubr.bf16.mxu1 %v11713_v56  ;;  %v6359_v20 = vadd.f32 %v6358_v37, %v11800_v26 }
 0x697   :  { %9898 = vrcp.f32 %v7519_v31  ;;  %v7520_v11 = vadd.f32 1.0, %v9873_v12  ;;  %v6360_v13 = vpop.f32.mrf.mxu0  ;;  %v11870_v41 = vrot.slane %v11791_v47, %v12068_v4 }
 0x698   :  { %v6473_v21 = vpop.f32.mrf.mxu1  ;;  %v9875_v5 = vpop.eup %9874  ;;  %9900 = vpow2.f32 %v8689_v50  ;;  %v8696_v52 = vmul.f32 -1.442695, %v6470_v38  ;;  %v6472_v48 = vadd.f32 %v6471_v45, %v6359_v20  ;;  %v6361_v49 = vadd.f32 %v6360_v13, %v11796_v35 }
 0x699   :  { %v9877_v43 = vpop.eup %9876  ;;  %7834 = vst [vmem:[#allocation20 + $0xe0] sm:$0xff] %v9875_v5  ;;  %9902 = vrcp.f32 %v7520_v11  ;;  %v6362_v27 = vpop.f32.mrf.mxu0 }
 0x69a   :  { %v6475_v3 = vpop.f32.mrf.mxu1  ;;  %v9879_v23 = vpop.eup %9878  ;;  %v7526_v57 = vadd.f32 1.0, %v9877_v43  ;;  %9904 = vpow2.f32 %v8690_v59  ;;  %v8697_v56 = vmul.f32 -1.442695, %v6472_v48  ;;  %v6474_v16 = vadd.f32 %v6473_v21, %v6361_v49 }
 0x69b   :  { %v9881_v28 = vpop.eup %9880  ;;  %7835 = vst [vmem:[#allocation20 + $0xe8] sm:$0xff] %v9879_v23  ;;  %9906 = vpow2.f32 %v8696_v52  ;;  %v6363_v18 = vadd.f32 %v6362_v27, %v11800_v26  ;;  %v6366_v63 = vpop.f32.mrf.mxu0 }
 0x69c   :  { %v6479_v58 = vpop.f32.mrf.mxu1  ;;  %v9883_v39 = vpop.eup %9882  ;;  %9908 = vrcp.f32 %v7526_v57  ;;  %v7527_v24 = vadd.f32 1.0, %v9881_v28  ;;  %v8703_v44 = vmul.f32 -1.442695, %v6474_v16  ;;  %v6367_v14 = vadd.f32 %v6366_v63, %v11796_v35  ;;  %7029 = vmatmul.mubr.bf16.gmra.mxu0 %v11715_v53 }
 0x69d   :  { %v9885_v19 = vpop.eup %9884  ;;  %7841 = vst [vmem:[#allocation20 + $0x118] sm:$0xff] %v9883_v39  ;;  %9910 = vpow2.f32 %v8697_v56  ;;  %v6476_v9 = vadd.f32 %v6475_v3, %v6363_v18  ;;  %7126 = vmatmul.mubr.bf16.gmra.mxu1 %v11717_v61  ;;  %v6368_v60 = vpop.f32.mrf.mxu0 }
 0x69e   :  { %v6481_v25 = vpop.f32.mrf.mxu1  ;;  %v9887_v2 = vpop.eup %9886  ;;  %9912 = vrcp.f32 %v7527_v24  ;;  %v7533_v7 = vadd.f32 1.0, %v9885_v19  ;;  %v6480_v54 = vadd.f32 %v6479_v58, %v6367_v14  ;;  %v6369_v55 = vadd.f32 %v6368_v60, %v11800_v26 }
 0x69f   :  { %v9889_v40 = vpop.eup %9888  ;;  %7842 = vst [vmem:[#allocation20 + $0x120] sm:$0xff] %v9887_v2  ;;  %9914 = vpow2.f32 %v8703_v44  ;;  %v8704_v29 = vmul.f32 -1.442695, %v6476_v9  ;;  %v6370_v8 = vpop.f32.mrf.mxu0 }
 0x6a0   :  { %v6483_v53 = vpop.f32.mrf.mxu1  ;;  %v9891_v10 = vpop.eup %9890  ;;  %9916 = vrcp.f32 %v7533_v7  ;;  %v7534_v61 = vadd.f32 1.0, %v9889_v40  ;;  %v8710_v51 = vmul.f32 -1.442695, %v6480_v54  ;;  %v6482_v36 = vadd.f32 %v6481_v25, %v6369_v55 }
 0x6a1   :  { %v9893_v17 = vpop.eup %9892  ;;  %7848 = vst [vmem:[#allocation20 + $0x150] sm:$0xff] %v9891_v10  ;;  %9918 = vpow2.f32 %v8704_v29  ;;  %v6371_v22 = vadd.f32 %v6370_v8, %v11796_v35  ;;  %v6372_v0 = vpop.f32.mrf.mxu0 }
 0x6a2   :  { %v6485_v30 = vpop.f32.mrf.mxu1  ;;  %v9895_v34 = vpop.eup %9894  ;;  %9920 = vrcp.f32 %v7534_v61  ;;  %v7540_v1 = vadd.f32 1.0, %v9893_v17  ;;  %v8711_v32 = vmul.f32 -1.442695, %v6482_v36  ;;  %v6373_v42 = vadd.f32 %v6372_v0, %v11800_v26 }
 0x6a3   :  { %v9897_v46 = vpop.eup %9896  ;;  %7849 = vst [vmem:[#allocation20 + $0x158] sm:$0xff] %v9895_v34  ;;  %9922 = vpow2.f32 %v8710_v51  ;;  %v6484_v15 = vadd.f32 %v6483_v53, %v6371_v22  ;;  %v6522_v50 = vpop.f32.mrf.mxu0 }
 0x6a4   :  { %v9899_v62 = vpop.eup %9898  ;;  %9924 = vrcp.f32 %v7540_v1  ;;  %v7541_v35 = vadd.f32 1.0, %v9897_v46  ;;  %v6486_v6 = vadd.f32 %v6485_v30, %v6373_v42  ;;  %v6523_v31 = vadd.f32 %v6522_v50, %v11864_v33  ;;  %v6635_v37 = vpop.f32.mrf.mxu1 }
 0x6a5   :  { %v9901_v45 = vpop.eup %9900  ;;  %7855 = vst [vmem:[#allocation20 + $0x188] sm:$0xff] %v9899_v62  ;;  %9926 = vpow2.f32 %v8711_v32  ;;  %v8717_v26 = vmul.f32 -1.442695, %v6484_v15  ;;  %v6524_v12 = vpop.f32.mrf.mxu0 }
 0x6a6   :  { %v9903_v59 = vpop.eup %9902  ;;  %9928 = vrcp.f32 %v7541_v35  ;;  %v7547_v38 = vadd.f32 1.0, %v9901_v45  ;;  %v8718_v20 = vmul.f32 -1.442695, %v6486_v6  ;;  %v6636_v11 = vadd.f32 %v6635_v37, %v6523_v31  ;;  %v6637_v13 = vpop.f32.mrf.mxu1 }
 0x6a7   :  { %v9905_v4 = vpop.eup %9904  ;;  %7856 = vst [vmem:[#allocation20 + $0x190] sm:$0xff] %v9903_v59  ;;  %9930 = vpow2.f32 %v8717_v26  ;;  %v6525_v47 = vadd.f32 %v6524_v12, %v11870_v41  ;;  %v6526_v21 = vpop.f32.mrf.mxu0 }
 0x6a8   :  { %v9907_v5 = vpop.eup %9906  ;;  %9932 = vrcp.f32 %v7547_v38  ;;  %v7548_v52 = vadd.f32 1.0, %v9905_v4  ;;  %v8614_v48 = vmul.f32 -1.442695, %v6636_v11  ;;  %v6527_v49 = vadd.f32 %v6526_v21, %v11864_v33  ;;  %v6639_v43 = vpop.f32.mrf.mxu1 }
 0x6a9   :  { %v9909_v27 = vpop.eup %9908  ;;  %v7554_v3 = vadd.f32 1.0, %v9907_v5  ;;  %9934 = vpow2.f32 %v8718_v20  ;;  %v6638_v23 = vadd.f32 %v6637_v13, %v6525_v47  ;;  %v6528_v57 = vpop.f32.mrf.mxu0 }
 0x6aa   :  { %v9911_v56 = vpop.eup %9910  ;;  %7862 = vst [vmem:[#allocation20 + $0x1c0] sm:$0xff] %v9909_v27  ;;  %9936 = vrcp.f32 %v7548_v52  ;;  %v6640_v16 = vadd.f32 %v6639_v43, %v6527_v49  ;;  %v6529_v28 = vadd.f32 %v6528_v57, %v11870_v41  ;;  %v6641_v18 = vpop.f32.mrf.mxu1 }
 0x6ab   :  { %v9913_v63 = vpop.eup %9912  ;;  %9938 = vrcp.f32 %v7554_v3  ;;  %v7555_v58 = vadd.f32 1.0, %v9911_v56  ;;  %v8615_v39 = vmul.f32 -1.442695, %v6638_v23  ;;  %v6532_v24 = vpop.f32.mrf.mxu0 }
 0x6ac   :  { %v9915_v44 = vpop.eup %9914  ;;  %7863 = vst [vmem:[#allocation20 + $0x1c8] sm:$0xff] %v9913_v63  ;;  %9940 = vpow2.f32 %v8614_v48  ;;  %v8621_v14 = vmul.f32 -1.442695, %v6640_v16  ;;  %v6642_v19 = vadd.f32 %v6641_v18, %v6529_v28  ;;  %v6533_v9 = vadd.f32 %v6532_v24, %v11864_v33  ;;  %v6645_v60 = vpop.f32.mrf.mxu1 }
 0x6ad   :  { %v9917_v25 = vpop.eup %9916  ;;  %9942 = vrcp.f32 %v7555_v58  ;;  %v7561_v2 = vadd.f32 1.0, %v9915_v44  ;;  %v6534_v7 = vpop.f32.mrf.mxu0 }
 0x6ae   :  { %v9919_v54 = vpop.eup %9918  ;;  %7869 = vst [vmem:[#allocation20 + $0x1f8] sm:$0xff] %v9917_v25  ;;  %9944 = vpow2.f32 %v8615_v39  ;;  %v8622_v55 = vmul.f32 -1.442695, %v6642_v19  ;;  %v6646_v40 = vadd.f32 %v6645_v60, %v6533_v9  ;;  %v6535_v29 = vadd.f32 %v6534_v7, %v11870_v41  ;;  %v6647_v8 = vpop.f32.mrf.mxu1 }
 0x6af   :  { %v9921_v53 = vpop.eup %9920  ;;  %9946 = vrcp.f32 %v7561_v2  ;;  %v7562_v10 = vadd.f32 1.0, %v9919_v54  ;;  %v6536_v61 = vpop.f32.mrf.mxu0 }
 0x6b0   :  { %v9923_v51 = vpop.eup %9922  ;;  %7870 = vst [vmem:[#allocation20 + $0x200] sm:$0xff] %v9921_v53  ;;  %9948 = vpow2.f32 %v8621_v14  ;;  %v8628_v36 = vmul.f32 -1.442695, %v6646_v40  ;;  %v6648_v17 = vadd.f32 %v6647_v8, %v6535_v29  ;;  %v6537_v22 = vadd.f32 %v6536_v61, %v11864_v33  ;;  %v6649_v0 = vpop.f32.mrf.mxu1 }
 0x6b1   :  { %v9925_v30 = vpop.eup %9924  ;;  %9950 = vrcp.f32 %v7562_v10  ;;  %v7568_v34 = vadd.f32 1.0, %v9923_v51  ;;  %v6538_v1 = vpop.f32.mrf.mxu0 }
 0x6b2   :  { %v9927_v32 = vpop.eup %9926  ;;  %7876 = vst [vmem:[#allocation20 + $0x230] sm:$0xff] %v9925_v30  ;;  %9952 = vpow2.f32 %v8622_v55  ;;  %v8629_v42 = vmul.f32 -1.442695, %v6648_v17  ;;  %v6650_v46 = vadd.f32 %v6649_v0, %v6537_v22  ;;  %v6539_v15 = vadd.f32 %v6538_v1, %v11870_v41  ;;  %v6651_v50 = vpop.f32.mrf.mxu1 }
 0x6b3   :  { %v9929_v62 = vpop.eup %9928  ;;  %9954 = vrcp.f32 %v7568_v34  ;;  %v7569_v35 = vadd.f32 1.0, %v9927_v32  ;;  %v6542_v6 = vpop.f32.mrf.mxu0 }
 0x6b4   :  { %v9931_v31 = vpop.eup %9930  ;;  %7877 = vst [vmem:[#allocation20 + $0x238] sm:$0xff] %v9929_v62  ;;  %9956 = vpow2.f32 %v8628_v36  ;;  %v8635_v37 = vmul.f32 -1.442695, %v6650_v46  ;;  %v6652_v45 = vadd.f32 %v6651_v50, %v6539_v15  ;;  %v6543_v26 = vadd.f32 %v6542_v6, %v11864_v33  ;;  %v6655_v12 = vpop.f32.mrf.mxu1 }
 0x6b5   :  { %v9933_v59 = vpop.eup %9932  ;;  %9958 = vrcp.f32 %v7569_v35  ;;  %v7575_v38 = vadd.f32 1.0, %v9931_v31  ;;  %v6544_v20 = vpop.f32.mrf.mxu0 }
 0x6b6   :  { %v9935_v11 = vpop.eup %9934  ;;  %7883 = vst [vmem:[#allocation20 + $0x268] sm:$0xff] %v9933_v59  ;;  %9960 = vpow2.f32 %v8629_v42  ;;  %v8636_v13 = vmul.f32 -1.442695, %v6652_v45  ;;  %v6656_v4 = vadd.f32 %v6655_v12, %v6543_v26  ;;  %v6545_v47 = vadd.f32 %v6544_v20, %v11870_v41  ;;  %v6657_v21 = vpop.f32.mrf.mxu1 }
 0x6b7   :  { %v9937_v5 = vpop.eup %9936  ;;  %9962 = vrcp.f32 %v7575_v38  ;;  %v7576_v52 = vadd.f32 1.0, %v9935_v11  ;;  %v6546_v48 = vpop.f32.mrf.mxu0 }
 0x6b8   :  { %v9939_v49 = vpop.eup %9938  ;;  %7884 = vst [vmem:[#allocation20 + $0x270] sm:$0xff] %v9937_v5  ;;  %9964 = vpow2.f32 %v8635_v37  ;;  %v8642_v43 = vmul.f32 -1.442695, %v6656_v4  ;;  %v6658_v27 = vadd.f32 %v6657_v21, %v6545_v47  ;;  %v6547_v3 = vadd.f32 %v6546_v48, %v11864_v33  ;;  %v6659_v23 = vpop.f32.mrf.mxu1 }
 0x6b9   :  { %v9941_v57 = vpop.eup %9940  ;;  %7890 = vst [vmem:[#allocation20 + $0x2a0] sm:$0xff] %v9939_v49  ;;  %9966 = vrcp.f32 %v7576_v52  ;;  %v6548_v56 = vpop.f32.mrf.mxu0 }
 0x6ba   :  { %v9943_v16 = vpop.eup %9942  ;;  %v7472_v28 = vadd.f32 1.0, %v9941_v57  ;;  %9968 = vpow2.f32 %v8636_v13  ;;  %v8643_v18 = vmul.f32 -1.442695, %v6658_v27  ;;  %v6660_v63 = vadd.f32 %v6659_v23, %v6547_v3  ;;  %v6661_v58 = vpop.f32.mrf.mxu1 }
 0x6bb   :  { %v9945_v39 = vpop.eup %9944  ;;  %7891 = vst [vmem:[#allocation20 + $0x2a8] sm:$0xff] %v9943_v16  ;;  %9970 = vpow2.f32 %v8642_v43  ;;  %v6549_v24 = vadd.f32 %v6548_v56, %v11870_v41  ;;  %v6552_v44 = vpop.f32.mrf.mxu0 }
 0x6bc   :  { %v9947_v14 = vpop.eup %9946  ;;  %9972 = vrcp.f32 %v7472_v28  ;;  %v7473_v19 = vadd.f32 1.0, %v9945_v39  ;;  %v8649_v9 = vmul.f32 -1.442695, %v6660_v63  ;;  %v6553_v60 = vadd.f32 %v6552_v44, %v11864_v33  ;;  %v6665_v25 = vpop.f32.mrf.mxu1 }
 0x6bd   :  { %v9949_v2 = vpop.eup %9948  ;;  %7897 = vst [vmem:[#allocation20 + $0x2d8] sm:$0xff] %v9947_v14  ;;  %9974 = vpow2.f32 %v8643_v18  ;;  %v6662_v7 = vadd.f32 %v6661_v58, %v6549_v24  ;;  %v6554_v54 = vpop.f32.mrf.mxu0 }
 0x6be   :  { %v9951_v55 = vpop.eup %9950  ;;  %9976 = vrcp.f32 %v7473_v19  ;;  %v7479_v40 = vadd.f32 1.0, %v9949_v2  ;;  %v6666_v29 = vadd.f32 %v6665_v25, %v6553_v60  ;;  %v6555_v8 = vadd.f32 %v6554_v54, %v11870_v41  ;;  %v6667_v53 = vpop.f32.mrf.mxu1 }
 0x6bf   :  { %v9953_v10 = vpop.eup %9952  ;;  %7898 = vst [vmem:[#allocation20 + $0x2e0] sm:$0xff] %v9951_v55  ;;  %9978 = vpow2.f32 %v8649_v9  ;;  %v8650_v61 = vmul.f32 -1.442695, %v6662_v7  ;;  %v6556_v51 = vpop.f32.mrf.mxu0 }
 0x6c0   :  { %v9955_v36 = vpop.eup %9954  ;;  %9980 = vrcp.f32 %v7479_v40  ;;  %v7480_v17 = vadd.f32 1.0, %v9953_v10  ;;  %v8656_v22 = vmul.f32 -1.442695, %v6666_v29  ;;  %v6668_v0 = vadd.f32 %v6667_v53, %v6555_v8  ;;  %v6669_v30 = vpop.f32.mrf.mxu1 }
 0x6c1   :  { %v9957_v34 = vpop.eup %9956  ;;  %7904 = vst [vmem:[#allocation20 + $0x310] sm:$0xff] %v9955_v36  ;;  %9982 = vpow2.f32 %v8650_v61  ;;  %v6557_v1 = vadd.f32 %v6556_v51, %v11864_v33  ;;  %v6558_v32 = vpop.f32.mrf.mxu0 }
 0x6c2   :  { %v9959_v42 = vpop.eup %9958  ;;  %9984 = vrcp.f32 %v7480_v17  ;;  %v7486_v46 = vadd.f32 1.0, %v9957_v34  ;;  %v8657_v15 = vmul.f32 -1.442695, %v6668_v0  ;;  %v6559_v50 = vadd.f32 %v6558_v32, %v11870_v41  ;;  %v6671_v62 = vpop.f32.mrf.mxu1 }
 0x6c3   :  { %v9961_v35 = vpop.eup %9960  ;;  %7905 = vst [vmem:[#allocation20 + $0x318] sm:$0xff] %v9959_v42  ;;  %9986 = vpow2.f32 %v8656_v22  ;;  %v6670_v6 = vadd.f32 %v6669_v30, %v6557_v1  ;;  %v6562_v31 = vpop.f32.mrf.mxu0 }
 0x6c4   :  { %v9963_v37 = vpop.eup %9962  ;;  %9988 = vrcp.f32 %v7486_v46  ;;  %v7487_v45 = vadd.f32 1.0, %v9961_v35  ;;  %v6672_v26 = vadd.f32 %v6671_v62, %v6559_v50  ;;  %v6563_v12 = vadd.f32 %v6562_v31, %v11864_v33  ;;  %v6675_v59 = vpop.f32.mrf.mxu1 }
 0x6c5   :  { %v9965_v38 = vpop.eup %9964  ;;  %7911 = vst [vmem:[#allocation20 + $0x348] sm:$0xff] %v9963_v37  ;;  %9990 = vpow2.f32 %v8657_v15  ;;  %v8663_v20 = vmul.f32 -1.442695, %v6670_v6  ;;  %v6564_v11 = vpop.f32.mrf.mxu0 }
 0x6c6   :  { %v9967_v13 = vpop.eup %9966  ;;  %9992 = vrcp.f32 %v7487_v45  ;;  %v7493_v4 = vadd.f32 1.0, %v9965_v38  ;;  %v8664_v47 = vmul.f32 -1.442695, %v6672_v26  ;;  %v6676_v21 = vadd.f32 %v6675_v59, %v6563_v12  ;;  %v6677_v5 = vpop.f32.mrf.mxu1 }
 0x6c7   :  { %v9969_v52 = vpop.eup %9968  ;;  %7912 = vst [vmem:[#allocation20 + $0x350] sm:$0xff] %v9967_v13  ;;  %9994 = vpow2.f32 %v8663_v20  ;;  %v6565_v48 = vadd.f32 %v6564_v11, %v11870_v41  ;;  %v6566_v49 = vpop.f32.mrf.mxu0 }
 0x6c8   :  { %v9971_v43 = vpop.eup %9970  ;;  %9996 = vrcp.f32 %v7493_v4  ;;  %v7494_v27 = vadd.f32 1.0, %v9969_v52  ;;  %v8670_v3 = vmul.f32 -1.442695, %v6676_v21  ;;  %v6567_v23 = vadd.f32 %v6566_v49, %v11864_v33  ;;  %v6679_v57 = vpop.f32.mrf.mxu1 }
 0x6c9   :  { %v9973_v56 = vpop.eup %9972  ;;  %v7500_v16 = vadd.f32 1.0, %v9971_v43  ;;  %9998 = vpow2.f32 %v8664_v47  ;;  %v6678_v28 = vadd.f32 %v6677_v5, %v6565_v48  ;;  %v6568_v18 = vpop.f32.mrf.mxu0 }
 0x6ca   :  { %v9975_v63 = vpop.eup %9974  ;;  %7808 = vst [vmem:[#allocation20 + $0x10] sm:$0xff] %v9973_v56  ;;  %10000 = vrcp.f32 %v7494_v27  ;;  %v6680_v58 = vadd.f32 %v6679_v57, %v6567_v23  ;;  %v6569_v39 = vadd.f32 %v6568_v18, %v11870_v41  ;;  %v6681_v24 = vpop.f32.mrf.mxu1 }
 0x6cb   :  { %v9977_v44 = vpop.eup %9976  ;;  %10002 = vrcp.f32 %v7500_v16  ;;  %v7501_v14 = vadd.f32 1.0, %v9975_v63  ;;  %v8671_v19 = vmul.f32 -1.442695, %v6678_v28  ;;  %v6572_v9 = vpop.f32.mrf.mxu0 }
 0x6cc   :  { %v9979_v60 = vpop.eup %9978  ;;  %7809 = vst [vmem:[#allocation20 + $0x18] sm:$0xff] %v9977_v44  ;;  %10004 = vpow2.f32 %v8670_v3  ;;  %v8677_v25 = vmul.f32 -1.442695, %v6680_v58  ;;  %v6682_v2 = vadd.f32 %v6681_v24, %v6569_v39  ;;  %v6573_v7 = vadd.f32 %v6572_v9, %v11864_v33  ;;  %v6685_v54 = vpop.f32.mrf.mxu1 }
 0x6cd   :  { %v9981_v55 = vpop.eup %9980  ;;  %10006 = vrcp.f32 %v7501_v14  ;;  %v7507_v40 = vadd.f32 1.0, %v9979_v60  ;;  %v6574_v29 = vpop.f32.mrf.mxu0 }
 0x6ce   :  { %v9983_v8 = vpop.eup %9982  ;;  %7815 = vst [vmem:[#allocation20 + $0x48] sm:$0xff] %v9981_v55  ;;  %10008 = vpow2.f32 %v8671_v19  ;;  %v8678_v53 = vmul.f32 -1.442695, %v6682_v2  ;;  %v6686_v10 = vadd.f32 %v6685_v54, %v6573_v7  ;;  %v6575_v61 = vadd.f32 %v6574_v29, %v11870_v41  ;;  %v6687_v51 = vpop.f32.mrf.mxu1 }
 0x6cf   :  { %v9985_v36 = vpop.eup %9984  ;;  %10010 = vrcp.f32 %v7507_v40  ;;  %v7508_v17 = vadd.f32 1.0, %v9983_v8  ;;  %v6576_v22 = vpop.f32.mrf.mxu0 }
 0x6d0   :  { %v9987_v0 = vpop.eup %9986  ;;  %7816 = vst [vmem:[#allocation20 + $0x50] sm:$0xff] %v9985_v36  ;;  %10012 = vpow2.f32 %v8677_v25  ;;  %v8684_v30 = vmul.f32 -1.442695, %v6686_v10  ;;  %v6688_v34 = vadd.f32 %v6687_v51, %v6575_v61  ;;  %v6577_v1 = vadd.f32 %v6576_v22, %v11864_v33  ;;  %v6689_v32 = vpop.f32.mrf.mxu1 }
 0x6d1   :  { %v9989_v42 = vpop.eup %9988  ;;  %10014 = vrcp.f32 %v7508_v17  ;;  %v7514_v46 = vadd.f32 1.0, %v9987_v0  ;;  %v6578_v15 = vpop.f32.mrf.mxu0 }
 0x6d2   :  { %v9991_v50 = vpop.eup %9990  ;;  %7822 = vst [vmem:[#allocation20 + $0x80] sm:$0xff] %v9989_v42  ;;  %10016 = vpow2.f32 %v8678_v53  ;;  %v8685_v62 = vmul.f32 -1.442695, %v6688_v34  ;;  %v6690_v35 = vadd.f32 %v6689_v32, %v6577_v1  ;;  %v6579_v6 = vadd.f32 %v6578_v15, %v11870_v41  ;;  %v6691_v31 = vpop.f32.mrf.mxu1  ;;  %v12070_v53 = vld [vmem:[#allocation40_spill] sm:$0xff] }
 0x6d3   :  { %v9993_v37 = vpop.eup %9992  ;;  %10018 = vrcp.f32 %v7514_v46  ;;  %v7515_v45 = vadd.f32 1.0, %v9991_v50  ;;  %v6582_v26 = vpop.f32.mrf.mxu0  ;;  %v5093_v10 = vsub.s32 4, %v12070_v53  ;;  %v5097_v1 = vsub.s32 5, %v12070_v53 }
 0x6d4   :  { %v9995_v12 = vpop.eup %9994  ;;  %7823 = vst [vmem:[#allocation20 + $0x88] sm:$0xff] %v9993_v37  ;;  %10020 = vpow2.f32 %v8684_v30  ;;  %v8691_v59 = vmul.f32 -1.442695, %v6690_v35  ;;  %v6692_v38 = vadd.f32 %v6691_v31, %v6579_v6  ;;  %v6583_v20 = vadd.f32 %v6582_v26, %v11864_v33  ;;  %v6695_v11 = vpop.f32.mrf.mxu1  ;;  %v11908_v31 = vld [vmem:[%s11994_s13] sm:$0xff]  ;;  %s10572_s13 = smov [#allocation21]  }
 0x6d5   :  { %v9997_v13 = vpop.eup %9996  ;;  %10022 = vrcp.f32 %v7515_v45  ;;  %v7521_v4 = vadd.f32 1.0, %v9995_v12  ;;  %v6584_v47 = vpop.f32.mrf.mxu0  ;;  %v11911_v37 = vrot.slane %v11908_v31, %v5093_v10  ;;  %s7967_s8 = sshll.u32 %s10572_s13, 4  ;;  %s7968_s8 = int_to_ptr.vmem [resolvable:$true] %s7967_s8 }
 0x6d6   :  { %v9999_v21 = vpop.eup %9998  ;;  %7829 = vst [vmem:[#allocation20 + $0xb8] sm:$0xff] %v9997_v13  ;;  %10024 = vpow2.f32 %v8685_v62  ;;  %v8692_v5 = vmul.f32 -1.442695, %v6692_v38  ;;  %v6696_v52 = vadd.f32 %v6695_v11, %v6583_v20  ;;  %v6585_v48 = vadd.f32 %v6584_v47, %v11870_v41  ;;  %v6697_v49 = vpop.f32.mrf.mxu1  ;;  %s10496_s21 = scalar_lea.vmem %s7968_s8, 4096  ;;  %p10501_p0 = scmp.lt.s32.totalorder %s7968_s8, %s7968_s8 }
 0x6d7   :  { %v10001_v43 = vpop.eup %10000  ;;  %10026 = vrcp.f32 %v7521_v4  ;;  %v7522_v27 = vadd.f32 1.0, %v9999_v21  ;;  %v6586_v3 = vpop.f32.mrf.mxu0  ;;  %v11915_v11 = vrot.slane %v11908_v31, %v5097_v1  ;;  %p10497_p13 = scmp.ne.s32.totalorder %s7968_s8, %s10496_s21  ;;  %p10502_p1 = scmp.lt.s32.totalorder %s10496_s21, %s10496_s21 }
 0x6d8   :  { %v10003_v23 = vpop.eup %10002  ;;  %7830 = vst [vmem:[#allocation20 + $0xc0] sm:$0xff] %v10001_v43  ;;  %10028 = vpow2.f32 %v8691_v59  ;;  %v8698_v57 = vmul.f32 -1.442695, %v6696_v52  ;;  %v6698_v56 = vadd.f32 %v6697_v49, %v6585_v48  ;;  %v6587_v16 = vadd.f32 %v6586_v3, %v11864_v33  ;;  %v6699_v28 = vpop.f32.mrf.mxu1 }
 0x6d9   :  { %v10005_v18 = vpop.eup %10004  ;;  %7836 = vst [vmem:[#allocation20 + $0xf0] sm:$0xff] %v10003_v23  ;;  %10030 = vrcp.f32 %v7522_v27  ;;  %v6588_v63 = vpop.f32.mrf.mxu0  ;;  %p10503_p2 = por %p10502_p1, %p10501_p0 }
 0x6da   :  { %v10007_v58 = vpop.eup %10006  ;;  %v7528_v39 = vadd.f32 1.0, %v10005_v18  ;;  %10032 = vpow2.f32 %v8692_v5  ;;  %v8699_v24 = vmul.f32 -1.442695, %v6698_v56  ;;  %v6700_v44 = vadd.f32 %v6699_v28, %v6587_v16  ;;  %v6701_v14 = vpop.f32.mrf.mxu1 }
 0x6db   :  { %v10009_v19 = vpop.eup %10008  ;;  %7837 = vst [vmem:[#allocation20 + $0xf8] sm:$0xff] %v10007_v58  ;;  %10034 = vpow2.f32 %v8698_v57  ;;  %v6589_v9 = vadd.f32 %v6588_v63, %v11870_v41  ;;  %v6592_v60 = vpop.f32.mrf.mxu0  ;;  %p10504_p3 = pnand %p10503_p2, %p10497_p13 }
 0x6dc   :  { %v10011_v25 = vpop.eup %10010  ;;  %10036 = vrcp.f32 %v7528_v39  ;;  %v7529_v2 = vadd.f32 1.0, %v10009_v19  ;;  %v8705_v7 = vmul.f32 -1.442695, %v6700_v44  ;;  %v6593_v54 = vadd.f32 %v6592_v60, %v11864_v33  ;;  %v6705_v55 = vpop.f32.mrf.mxu1 }
 0x6dd   :  { %v10013_v40 = vpop.eup %10012  ;;  %7843 = vst [vmem:[#allocation20 + $0x128] sm:$0xff] %v10011_v25  ;;  %10038 = vpow2.f32 %v8699_v24  ;;  %v6702_v29 = vadd.f32 %v6701_v14, %v6589_v9  ;;  %v6594_v8 = vpop.f32.mrf.mxu0 }
 0x6de   :  { %v10015_v61 = vpop.eup %10014  ;;  %10040 = vrcp.f32 %v7529_v2  ;;  %v7535_v51 = vadd.f32 1.0, %v10013_v40  ;;  %v6706_v36 = vadd.f32 %v6705_v55, %v6593_v54  ;;  %v6595_v17 = vadd.f32 %v6594_v8, %v11870_v41  ;;  %v6707_v22 = vpop.f32.mrf.mxu1 }
 0x6df   :  { %v10017_v0 = vpop.eup %10016  ;;  %7844 = vst [vmem:[#allocation20 + $0x130] sm:$0xff] %v10015_v61  ;;  %10042 = vpow2.f32 %v8705_v7  ;;  %v8706_v30 = vmul.f32 -1.442695, %v6702_v29  ;;  %v6596_v34 = vpop.f32.mrf.mxu0 }
 0x6e0   :  { %v10019_v32 = vpop.eup %10018  ;;  %10044 = vrcp.f32 %v7535_v51  ;;  %v7536_v42 = vadd.f32 1.0, %v10017_v0  ;;  %v8712_v46 = vmul.f32 -1.442695, %v6706_v36  ;;  %v6708_v15 = vadd.f32 %v6707_v22, %v6595_v17  ;;  %v6709_v50 = vpop.f32.mrf.mxu1 }
 0x6e1   :  { %v10021_v62 = vpop.eup %10020  ;;  %7850 = vst [vmem:[#allocation20 + $0x160] sm:$0xff] %v10019_v32  ;;  %10046 = vpow2.f32 %v8706_v30  ;;  %v6597_v35 = vadd.f32 %v6596_v34, %v11864_v33  ;;  %v6598_v6 = vpop.f32.mrf.mxu0 }
 0x6e2   :  { %v10023_v45 = vpop.eup %10022  ;;  %10048 = vrcp.f32 %v7536_v42  ;;  %v7542_v26 = vadd.f32 1.0, %v10021_v62  ;;  %v8713_v12 = vmul.f32 -1.442695, %v6708_v15  ;;  %v6599_v59 = vadd.f32 %v6598_v6, %v11870_v41  ;;  %v6711_v38 = vpop.f32.mrf.mxu1 }
 0x6e3   :  { %v10025_v20 = vpop.eup %10024  ;;  %7851 = vst [vmem:[#allocation20 + $0x168] sm:$0xff] %v10023_v45  ;;  %10050 = vpow2.f32 %v8712_v46  ;;  %v6710_v33 = vadd.f32 %v6709_v50, %v6597_v35 }
 0x6e4   :  { %v10027_v13 = vpop.eup %10026  ;;  %10052 = vrcp.f32 %v7542_v26  ;;  %v7543_v4 = vadd.f32 1.0, %v10025_v20  ;;  %v6712_v47 = vadd.f32 %v6711_v38, %v6599_v59  ;;  %v6748_v21 = vpop.f32.mrf.mxu0 }
 0x6e5   :  { %v10029_v5 = vpop.eup %10028  ;;  %7857 = vst [vmem:[#allocation20 + $0x198] sm:$0xff] %v10027_v13  ;;  %10054 = vpow2.f32 %v8713_v12  ;;  %v8719_v52 = vmul.f32 -1.442695, %v6710_v33  ;;  %v6749_v48 = vadd.f32 %v6748_v21, %v11911_v37  ;;  %v6861_v41 = vpop.f32.mrf.mxu1 }
 0x6e6   :  { %v10031_v49 = vpop.eup %10030  ;;  %10056 = vrcp.f32 %v7543_v4  ;;  %v7549_v43 = vadd.f32 1.0, %v10029_v5  ;;  %v8720_v27 = vmul.f32 -1.442695, %v6712_v47  ;;  %v6750_v3 = vpop.f32.mrf.mxu0 }
 0x6e7   :  { %v10033_v23 = vpop.eup %10032  ;;  %7858 = vst [vmem:[#allocation20 + $0x1a0] sm:$0xff] %v10031_v49  ;;  %10058 = vpow2.f32 %v8719_v52  ;;  %v6862_v57 = vadd.f32 %v6861_v41, %v6749_v48  ;;  %v6751_v56 = vadd.f32 %v6750_v3, %v11915_v11  ;;  %v6863_v16 = vpop.f32.mrf.mxu1 }
 0x6e8   :  { %v10035_v28 = vpop.eup %10034  ;;  %10060 = vrcp.f32 %v7549_v43  ;;  %v7550_v18 = vadd.f32 1.0, %v10033_v23  ;;  %v6752_v63 = vpop.f32.mrf.mxu0 }
 0x6e9   :  { %v10037_v58 = vpop.eup %10036  ;;  %v7556_v39 = vadd.f32 1.0, %v10035_v28  ;;  %10062 = vpow2.f32 %v8720_v27  ;;  %v8616_v24 = vmul.f32 -1.442695, %v6862_v57  ;;  %v6864_v44 = vadd.f32 %v6863_v16, %v6751_v56  ;;  %v6865_v14 = vpop.f32.mrf.mxu1 }
 0x6ea   :  { %v10039_v19 = vpop.eup %10038  ;;  %7864 = vst [vmem:[#allocation20 + $0x1d0] sm:$0xff] %v10037_v58  ;;  %10064 = vrcp.f32 %v7550_v18  ;;  %v6753_v9 = vadd.f32 %v6752_v63, %v11911_v37  ;;  %v6754_v60 = vpop.f32.mrf.mxu0 }
 0x6eb   :  { %v10041_v25 = vpop.eup %10040  ;;  %10066 = vrcp.f32 %v7556_v39  ;;  %v7557_v2 = vadd.f32 1.0, %v10039_v19  ;;  %v8617_v7 = vmul.f32 -1.442695, %v6864_v44  ;;  %v6755_v54 = vadd.f32 %v6754_v60, %v11915_v11  ;;  %v6867_v55 = vpop.f32.mrf.mxu1 }
 0x6ec   :  { %v10043_v40 = vpop.eup %10042  ;;  %7865 = vst [vmem:[#allocation20 + $0x1d8] sm:$0xff] %v10041_v25  ;;  %10068 = vpow2.f32 %v8616_v24  ;;  %v6866_v29 = vadd.f32 %v6865_v14, %v6753_v9  ;;  %v6758_v8 = vpop.f32.mrf.mxu0 }
 0x6ed   :  { %v10045_v10 = vpop.eup %10044  ;;  %10070 = vrcp.f32 %v7557_v2  ;;  %v7563_v61 = vadd.f32 1.0, %v10043_v40  ;;  %v6868_v51 = vadd.f32 %v6867_v55, %v6755_v54  ;;  %v6759_v36 = vadd.f32 %v6758_v8, %v11911_v37  ;;  %v6871_v17 = vpop.f32.mrf.mxu1 }
 0x6ee   :  { %v10047_v22 = vpop.eup %10046  ;;  %7871 = vst [vmem:[#allocation20 + $0x208] sm:$0xff] %v10045_v10  ;;  %10072 = vpow2.f32 %v8617_v7  ;;  %v8623_v0 = vmul.f32 -1.442695, %v6866_v29  ;;  %v6760_v30 = vpop.f32.mrf.mxu0 }
 0x6ef   :  { %v10049_v34 = vpop.eup %10048  ;;  %10074 = vrcp.f32 %v7563_v61  ;;  %v7564_v1 = vadd.f32 1.0, %v10047_v22  ;;  %v8624_v32 = vmul.f32 -1.442695, %v6868_v51  ;;  %v6872_v42 = vadd.f32 %v6871_v17, %v6759_v36  ;;  %v6873_v46 = vpop.f32.mrf.mxu1 }
 0x6f0   :  { %v10051_v15 = vpop.eup %10050  ;;  %7872 = vst [vmem:[#allocation20 + $0x210] sm:$0xff] %v10049_v34  ;;  %10076 = vpow2.f32 %v8623_v0  ;;  %v6761_v50 = vadd.f32 %v6760_v30, %v11915_v11  ;;  %v6762_v62 = vpop.f32.mrf.mxu0 }
 0x6f1   :  { %v10053_v35 = vpop.eup %10052  ;;  %10078 = vrcp.f32 %v7564_v1  ;;  %v7570_v6 = vadd.f32 1.0, %v10051_v15  ;;  %v8630_v45 = vmul.f32 -1.442695, %v6872_v42  ;;  %v6763_v26 = vadd.f32 %v6762_v62, %v11911_v37  ;;  %v6875_v12 = vpop.f32.mrf.mxu1 }
 0x6f2   :  { %v10055_v59 = vpop.eup %10054  ;;  %7878 = vst [vmem:[#allocation20 + $0x240] sm:$0xff] %v10053_v35  ;;  %10080 = vpow2.f32 %v8624_v32  ;;  %v6874_v38 = vadd.f32 %v6873_v46, %v6761_v50  ;;  %v6764_v20 = vpop.f32.mrf.mxu0 }
 0x6f3   :  { %v10057_v33 = vpop.eup %10056  ;;  %10082 = vrcp.f32 %v7570_v6  ;;  %v7571_v13 = vadd.f32 1.0, %v10055_v59  ;;  %v6876_v4 = vadd.f32 %v6875_v12, %v6763_v26  ;;  %v6765_v47 = vadd.f32 %v6764_v20, %v11915_v11  ;;  %v6877_v21 = vpop.f32.mrf.mxu1 }
 0x6f4   :  { %v10059_v5 = vpop.eup %10058  ;;  %7879 = vst [vmem:[#allocation20 + $0x248] sm:$0xff] %v10057_v33  ;;  %10084 = vpow2.f32 %v8630_v45  ;;  %v8631_v52 = vmul.f32 -1.442695, %v6874_v38  ;;  %v6768_v48 = vpop.f32.mrf.mxu0 }
 0x6f5   :  { %v10061_v41 = vpop.eup %10060  ;;  %10086 = vrcp.f32 %v7571_v13  ;;  %v7577_v49 = vadd.f32 1.0, %v10059_v5  ;;  %v8637_v43 = vmul.f32 -1.442695, %v6876_v4  ;;  %v6878_v27 = vadd.f32 %v6877_v21, %v6765_v47  ;;  %v6881_v3 = vpop.f32.mrf.mxu1 }
 0x6f6   :  { %v10063_v23 = vpop.eup %10062  ;;  %7885 = vst [vmem:[#allocation20 + $0x278] sm:$0xff] %v10061_v41  ;;  %10088 = vpow2.f32 %v8631_v52  ;;  %v6769_v57 = vadd.f32 %v6768_v48, %v11911_v37  ;;  %v6770_v56 = vpop.f32.mrf.mxu0 }
 0x6f7   :  { %v10065_v16 = vpop.eup %10064  ;;  %10090 = vrcp.f32 %v7577_v49  ;;  %v7578_v28 = vadd.f32 1.0, %v10063_v23  ;;  %v8638_v18 = vmul.f32 -1.442695, %v6878_v27  ;;  %v6771_v63 = vadd.f32 %v6770_v56, %v11915_v11  ;;  %v6883_v58 = vpop.f32.mrf.mxu1 }
 0x6f8   :  { %v10067_v39 = vpop.eup %10066  ;;  %7886 = vst [vmem:[#allocation20 + $0x280] sm:$0xff] %v10065_v16  ;;  %10092 = vpow2.f32 %v8637_v43  ;;  %v6882_v24 = vadd.f32 %v6881_v3, %v6769_v57  ;;  %v6772_v44 = vpop.f32.mrf.mxu0 }
 0x6f9   :  { %v10069_v14 = vpop.eup %10068  ;;  %7892 = vst [vmem:[#allocation20 + $0x2b0] sm:$0xff] %v10067_v39  ;;  %10094 = vrcp.f32 %v7578_v28  ;;  %v6884_v19 = vadd.f32 %v6883_v58, %v6771_v63  ;;  %v6773_v9 = vadd.f32 %v6772_v44, %v11911_v37  ;;  %v6885_v60 = vpop.f32.mrf.mxu1 }
 0x6fa   :  { %v10071_v25 = vpop.eup %10070  ;;  %v7474_v2 = vadd.f32 1.0, %v10069_v14  ;;  %10096 = vpow2.f32 %v8638_v18  ;;  %v8644_v7 = vmul.f32 -1.442695, %v6882_v24  ;;  %v6774_v54 = vpop.f32.mrf.mxu0 }
 0x6fb   :  { %v10073_v55 = vpop.eup %10072  ;;  %7893 = vst [vmem:[#allocation20 + $0x2b8] sm:$0xff] %v10071_v25  ;;  %v8645_v40 = vmul.f32 -1.442695, %v6884_v19  ;;  %v6886_v29 = vadd.f32 %v6885_v60, %v6773_v9  ;;  %v6775_v8 = vadd.f32 %v6774_v54, %v11915_v11  ;;  %v6887_v10 = vpop.f32.mrf.mxu1 }
 0x6fc   :  { %v10075_v61 = vpop.eup %10074  ;;  %10098 = vrcp.f32 %v7474_v2  ;;  %v7475_v51 = vadd.f32 1.0, %v10073_v55  ;;  %v6778_v36 = vpop.f32.mrf.mxu0 }
 0x6fd   :  { %v10077_v17 = vpop.eup %10076  ;;  %7899 = vst [vmem:[#allocation20 + $0x2e8] sm:$0xff] %v10075_v61  ;;  %10100 = vpow2.f32 %v8644_v7  ;;  %v8651_v22 = vmul.f32 -1.442695, %v6886_v29  ;;  %v6888_v0 = vadd.f32 %v6887_v10, %v6775_v8  ;;  %v6779_v30 = vadd.f32 %v6778_v36, %v11911_v37  ;;  %v6891_v34 = vpop.f32.mrf.mxu1 }
 0x6fe   :  { %v10079_v1 = vpop.eup %10078  ;;  %10102 = vrcp.f32 %v7475_v51  ;;  %v7481_v32 = vadd.f32 1.0, %v10077_v17  ;;  %v6780_v42 = vpop.f32.mrf.mxu0 }
 0x6ff   :  { %v10081_v46 = vpop.eup %10080  ;;  %7900 = vst [vmem:[#allocation20 + $0x2f0] sm:$0xff] %v10079_v1  ;;  %10104 = vpow2.f32 %v8645_v40  ;;  %v8652_v15 = vmul.f32 -1.442695, %v6888_v0  ;;  %v6892_v50 = vadd.f32 %v6891_v34, %v6779_v30  ;;  %v6781_v62 = vadd.f32 %v6780_v42, %v11915_v11  ;;  %v6893_v35 = vpop.f32.mrf.mxu1 }
 0x700   :  { %v10083_v6 = vpop.eup %10082  ;;  %10106 = vrcp.f32 %v7481_v32  ;;  %v7482_v45 = vadd.f32 1.0, %v10081_v46  ;;  %v6782_v26 = vpop.f32.mrf.mxu0 }
 0x701   :  { %v10085_v12 = vpop.eup %10084  ;;  %7906 = vst [vmem:[#allocation20 + $0x320] sm:$0xff] %v10083_v6  ;;  %10108 = vpow2.f32 %v8651_v22  ;;  %v8658_v59 = vmul.f32 -1.442695, %v6892_v50  ;;  %v6894_v38 = vadd.f32 %v6893_v35, %v6781_v62  ;;  %v6783_v20 = vadd.f32 %v6782_v26, %v11911_v37  ;;  %v6895_v33 = vpop.f32.mrf.mxu1 }
 0x702   :  { %v10087_v13 = vpop.eup %10086  ;;  %10110 = vrcp.f32 %v7482_v45  ;;  %v7488_v4 = vadd.f32 1.0, %v10085_v12  ;;  %v6784_v47 = vpop.f32.mrf.mxu0 }
 0x703   :  { %v10089_v21 = vpop.eup %10088  ;;  %7907 = vst [vmem:[#allocation20 + $0x328] sm:$0xff] %v10087_v13  ;;  %10112 = vpow2.f32 %v8652_v15  ;;  %v8659_v5 = vmul.f32 -1.442695, %v6894_v38  ;;  %v6896_v52 = vadd.f32 %v6895_v33, %v6783_v20  ;;  %v6785_v48 = vadd.f32 %v6784_v47, %v11915_v11  ;;  %v6897_v41 = vpop.f32.mrf.mxu1 }
 0x704   :  { %v10091_v49 = vpop.eup %10090  ;;  %10114 = vrcp.f32 %v7488_v4  ;;  %v7489_v43 = vadd.f32 1.0, %v10089_v21  ;;  %v6788_v27 = vpop.f32.mrf.mxu0 }
 0x705   :  { %v10093_v3 = vpop.eup %10092  ;;  %7913 = vst [vmem:[#allocation20 + $0x358] sm:$0xff] %v10091_v49  ;;  %10116 = vpow2.f32 %v8658_v59  ;;  %v8665_v23 = vmul.f32 -1.442695, %v6896_v52  ;;  %v6898_v57 = vadd.f32 %v6897_v41, %v6785_v48  ;;  %v6789_v56 = vadd.f32 %v6788_v27, %v11911_v37  ;;  %v6901_v16 = vpop.f32.mrf.mxu1 }
 0x706   :  { %v10095_v28 = vpop.eup %10094  ;;  %10118 = vrcp.f32 %v7489_v43  ;;  %v7495_v18 = vadd.f32 1.0, %v10093_v3  ;;  %v6790_v63 = vpop.f32.mrf.mxu0 }
 0x707   :  { %v10097_v58 = vpop.eup %10096  ;;  %7914 = vst [vmem:[#allocation20 + $0x360] sm:$0xff] %v10095_v28  ;;  %10120 = vpow2.f32 %v8659_v5  ;;  %v8666_v39 = vmul.f32 -1.442695, %v6898_v57  ;;  %v6902_v24 = vadd.f32 %v6901_v16, %v6789_v56  ;;  %v6791_v44 = vadd.f32 %v6790_v63, %v11915_v11  ;;  %v6903_v14 = vpop.f32.mrf.mxu1 }
 0x708   :  { %10122 = vrcp.f32 %v7495_v18  ;;  %v7496_v19 = vadd.f32 1.0, %v10097_v58  ;;  %v6792_v9 = vpop.f32.mrf.mxu0 }
 0x709   :  { %v10099_v60 = vpop.eup %10098  ;;  %10124 = vpow2.f32 %v8665_v23  ;;  %v8672_v25 = vmul.f32 -1.442695, %v6902_v24  ;;  %v6904_v2 = vadd.f32 %v6903_v14, %v6791_v44  ;;  %v6793_v7 = vadd.f32 %v6792_v9, %v11911_v37  ;;  %v6905_v54 = vpop.f32.mrf.mxu1 }
 0x70a   :  { %v10101_v55 = vpop.eup %10100  ;;  %7810 = vst [vmem:[#allocation20 + $0x20] sm:$0xff] %v10099_v60  ;;  %10126 = vrcp.f32 %v7496_v19  ;;  %v6794_v40 = vpop.f32.mrf.mxu0 }
 0x70b   :  { %v10103_v29 = vpop.eup %10102  ;;  %v7502_v8 = vadd.f32 1.0, %v10101_v55  ;;  %10128 = vpow2.f32 %v8666_v39  ;;  %v8673_v10 = vmul.f32 -1.442695, %v6904_v2  ;;  %v6906_v61 = vadd.f32 %v6905_v54, %v6793_v7  ;;  %v6907_v51 = vpop.f32.mrf.mxu1 }
 0x70c   :  { %v10105_v36 = vpop.eup %10104  ;;  %7811 = vst [vmem:[#allocation20 + $0x28] sm:$0xff] %v10103_v29  ;;  %10130 = vpow2.f32 %v8672_v25  ;;  %v6795_v17 = vadd.f32 %v6794_v40, %v11915_v11  ;;  %v6798_v22 = vpop.f32.mrf.mxu0 }
 0x70d   :  { %10507 = shalt.err (!%p10504_p3)
}
 0x70e   :  { %7973 = dma.vmem_to_hbm [thread:$0]  %s7968_s8, 4096, %s11996_s15, [#allocation22], %s10560_s29, %s10560_s29, %s10561_s30   ;;  %v10107_v0 = vpop.eup %10106  ;;  %10132 = vrcp.f32 %v7502_v8  ;;  %v7503_v30 = vadd.f32 1.0, %v10105_v36  ;;  %v8679_v34 = vmul.f32 -1.442695, %v6906_v61  ;;  %v6799_v1 = vadd.f32 %v6798_v22, %v11911_v37  ;;  %v6911_v32 = vpop.f32.mrf.mxu1 }
 0x70f   :  { %v10109_v42 = vpop.eup %10108  ;;  %7817 = vst [vmem:[#allocation20 + $0x58] sm:$0xff] %v10107_v0  ;;  %10134 = vpow2.f32 %v8673_v10  ;;  %v6908_v46 = vadd.f32 %v6907_v51, %v6795_v17  ;;  %v6800_v15 = vpop.f32.mrf.mxu0  ;;  %s10573_s15 = smov [#allocation20]  }
 0x710   :  { %v10111_v50 = vpop.eup %10110  ;;  %10136 = vrcp.f32 %v7503_v30  ;;  %v7509_v62 = vadd.f32 1.0, %v10109_v42  ;;  %v6912_v35 = vadd.f32 %v6911_v32, %v6799_v1  ;;  %v6801_v6 = vadd.f32 %v6800_v15, %v11915_v11  ;;  %v6913_v45 = vpop.f32.mrf.mxu1  ;;  %s7955_s29 = sshll.u32 %s10573_s15, 4  ;;  %s7956_s29 = int_to_ptr.vmem [resolvable:$true] %s7955_s29 }
 0x711   :  { %v10113_v26 = vpop.eup %10112  ;;  %7818 = vst [vmem:[#allocation20 + $0x60] sm:$0xff] %v10111_v50  ;;  %10138 = vpow2.f32 %v8679_v34  ;;  %v8680_v12 = vmul.f32 -1.442695, %v6908_v46  ;;  %v6802_v59 = vpop.f32.mrf.mxu0  ;;  %s10516_s30 = scalar_lea.vmem %s7956_s29, 14336  ;;  %p10521_p5 = scmp.lt.s32.totalorder %s7956_s29, %s7956_s29 }
 0x712   :  { %v10115_v38 = vpop.eup %10114  ;;  %10140 = vrcp.f32 %v7509_v62  ;;  %v7510_v20 = vadd.f32 1.0, %v10113_v26  ;;  %v8686_v33 = vmul.f32 -1.442695, %v6912_v35  ;;  %v6914_v13 = vadd.f32 %v6913_v45, %v6801_v6  ;;  %v6915_v4 = vpop.f32.mrf.mxu1  ;;  %p10517_p4 = scmp.ne.s32.totalorder %s7956_s29, %s10516_s30  ;;  %p10522_p6 = scmp.lt.s32.totalorder %s10516_s30, %s10516_s30 }
 0x713   :  { %v10117_v47 = vpop.eup %10116  ;;  %7824 = vst [vmem:[#allocation20 + $0x90] sm:$0xff] %v10115_v38  ;;  %10142 = vpow2.f32 %v8680_v12  ;;  %v6803_v21 = vadd.f32 %v6802_v59, %v11911_v37  ;;  %v6804_v5 = vpop.f32.mrf.mxu0 }
 0x714   :  { %v10119_v52 = vpop.eup %10118  ;;  %10144 = vrcp.f32 %v7510_v20  ;;  %v7516_v48 = vadd.f32 1.0, %v10117_v47  ;;  %v8687_v41 = vmul.f32 -1.442695, %v6914_v13  ;;  %v6805_v49 = vadd.f32 %v6804_v5, %v11915_v11  ;;  %v6917_v43 = vpop.f32.mrf.mxu1  ;;  %p10523_p7 = por %p10522_p6, %p10521_p5 }
 0x715   :  { %v10121_v27 = vpop.eup %10120  ;;  %7825 = vst [vmem:[#allocation20 + $0x98] sm:$0xff] %v10119_v52  ;;  %10146 = vpow2.f32 %v8686_v33  ;;  %v6916_v3 = vadd.f32 %v6915_v4, %v6803_v21  ;;  %v6808_v23 = vpop.f32.mrf.mxu0  ;;  %v5101_v47 = vsub.s32 6, %v12070_v53 }
 0x716   :  { %v10123_v57 = vpop.eup %10122  ;;  %10148 = vrcp.f32 %v7516_v48  ;;  %v7517_v56 = vadd.f32 1.0, %v10121_v27  ;;  %v6918_v16 = vadd.f32 %v6917_v43, %v6805_v49  ;;  %v6809_v28 = vadd.f32 %v6808_v23, %v11911_v37  ;;  %v6921_v18 = vpop.f32.mrf.mxu1  ;;  %p10524_p8 = pnand %p10523_p7, %p10517_p4 }
 0x717   :  { %v10125_v63 = vpop.eup %10124  ;;  %7831 = vst [vmem:[#allocation20 + $0xc8] sm:$0xff] %v10123_v57  ;;  %10150 = vpow2.f32 %v8687_v41  ;;  %v8693_v58 = vmul.f32 -1.442695, %v6916_v3  ;;  %v6810_v39 = vpop.f32.mrf.mxu0 }
 0x718   :  { %v10127_v24 = vpop.eup %10126  ;;  %10152 = vrcp.f32 %v7517_v56  ;;  %v7523_v44 = vadd.f32 1.0, %v10125_v63  ;;  %v8694_v14 = vmul.f32 -1.442695, %v6918_v16  ;;  %v6922_v19 = vadd.f32 %v6921_v18, %v6809_v28  ;;  %v6923_v9 = vpop.f32.mrf.mxu1 }
 0x719   :  { %v10129_v60 = vpop.eup %10128  ;;  %7832 = vst [vmem:[#allocation20 + $0xd0] sm:$0xff] %v10127_v24  ;;  %10154 = vpow2.f32 %v8693_v58  ;;  %v6811_v25 = vadd.f32 %v6810_v39, %v11915_v11  ;;  %v6812_v2 = vpop.f32.mrf.mxu0  ;;  %v11957_v24 = vrot.slane %v11908_v31, %v5101_v47 }
 0x71a   :  { %v10131_v7 = vpop.eup %10130  ;;  %10156 = vrcp.f32 %v7523_v44  ;;  %v7524_v54 = vadd.f32 1.0, %v10129_v60  ;;  %v8700_v55 = vmul.f32 -1.442695, %v6922_v19  ;;  %v6813_v40 = vadd.f32 %v6812_v2, %v11911_v37  ;;  %v6925_v29 = vpop.f32.mrf.mxu1 }
 0x71b   :  { %v10133_v8 = vpop.eup %10132  ;;  %v7530_v10 = vadd.f32 1.0, %v10131_v7  ;;  %10158 = vpow2.f32 %v8694_v14  ;;  %v6924_v61 = vadd.f32 %v6923_v9, %v6811_v25  ;;  %v6814_v51 = vpop.f32.mrf.mxu0 }
 0x71c   :  { %v10135_v36 = vpop.eup %10134  ;;  %7838 = vst [vmem:[#allocation20 + $0x100] sm:$0xff] %v10133_v8  ;;  %10160 = vrcp.f32 %v7524_v54  ;;  %v6926_v17 = vadd.f32 %v6925_v29, %v6813_v40  ;;  %v6815_v22 = vadd.f32 %v6814_v51, %v11915_v11  ;;  %v6927_v0 = vpop.f32.mrf.mxu1 }
 0x71d   :  { %v10137_v30 = vpop.eup %10136  ;;  %10162 = vrcp.f32 %v7530_v10  ;;  %v7531_v34 = vadd.f32 1.0, %v10135_v36  ;;  %v8701_v1 = vmul.f32 -1.442695, %v6924_v61  ;;  %v6818_v32 = vpop.f32.mrf.mxu0 }
 0x71e   :  { %v10139_v42 = vpop.eup %10138  ;;  %7839 = vst [vmem:[#allocation20 + $0x108] sm:$0xff] %v10137_v30  ;;  %10164 = vpow2.f32 %v8700_v55  ;;  %v8707_v46 = vmul.f32 -1.442695, %v6926_v17  ;;  %v6928_v15 = vadd.f32 %v6927_v0, %v6815_v22  ;;  %v6819_v50 = vadd.f32 %v6818_v32, %v11911_v37  ;;  %v6931_v62 = vpop.f32.mrf.mxu1 }
 0x71f   :  { %v10141_v35 = vpop.eup %10140  ;;  %10166 = vrcp.f32 %v7531_v34  ;;  %v7537_v6 = vadd.f32 1.0, %v10139_v42  ;;  %v6820_v45 = vpop.f32.mrf.mxu0 }
 0x720   :  { %v10143_v26 = vpop.eup %10142  ;;  %7845 = vst [vmem:[#allocation20 + $0x138] sm:$0xff] %v10141_v35  ;;  %10168 = vpow2.f32 %v8701_v1  ;;  %v8708_v12 = vmul.f32 -1.442695, %v6928_v15  ;;  %v6932_v59 = vadd.f32 %v6931_v62, %v6819_v50  ;;  %v6821_v38 = vadd.f32 %v6820_v45, %v11915_v11  ;;  %v6933_v20 = vpop.f32.mrf.mxu1 }
 0x721   :  { %v10145_v33 = vpop.eup %10144  ;;  %10170 = vrcp.f32 %v7537_v6  ;;  %v7538_v13 = vadd.f32 1.0, %v10143_v26  ;;  %v6822_v4 = vpop.f32.mrf.mxu0 }
 0x722   :  { %v10147_v21 = vpop.eup %10146  ;;  %7846 = vst [vmem:[#allocation20 + $0x140] sm:$0xff] %v10145_v33  ;;  %10172 = vpow2.f32 %v8707_v46  ;;  %v8714_v5 = vmul.f32 -1.442695, %v6932_v59  ;;  %v6934_v52 = vadd.f32 %v6933_v20, %v6821_v38  ;;  %v6823_v48 = vadd.f32 %v6822_v4, %v11911_v37  ;;  %v6935_v41 = vpop.f32.mrf.mxu1 }
 0x723   :  { %v10149_v49 = vpop.eup %10148  ;;  %10174 = vrcp.f32 %v7538_v13  ;;  %v7544_v43 = vadd.f32 1.0, %v10147_v21  ;;  %v6824_v27 = vpop.f32.mrf.mxu0 }
 0x724   :  { %v10151_v3 = vpop.eup %10150  ;;  %7852 = vst [vmem:[#allocation20 + $0x170] sm:$0xff] %v10149_v49  ;;  %10176 = vpow2.f32 %v8708_v12  ;;  %v8715_v23 = vmul.f32 -1.442695, %v6934_v52  ;;  %v6936_v57 = vadd.f32 %v6935_v41, %v6823_v48  ;;  %v6825_v56 = vadd.f32 %v6824_v27, %v11915_v11  ;;  %v6937_v53 = vpop.f32.mrf.mxu1 }
 0x725   :  { %v10153_v16 = vpop.eup %10152  ;;  %10178 = vrcp.f32 %v7544_v43  ;;  %v7545_v28 = vadd.f32 1.0, %v10151_v3  ;;  %v8740_v18 = vpop.f32.mrf.mxu0 }
 0x726   :  { %v10155_v63 = vpop.eup %10154  ;;  %7853 = vst [vmem:[#allocation20 + $0x178] sm:$0xff] %v10153_v16  ;;  %10180 = vpow2.f32 %v8714_v5  ;;  %v8721_v37 = vmul.f32 -1.442695, %v6936_v57  ;;  %v6938_v58 = vadd.f32 %v6937_v53, %v6825_v56  ;;  %v8804_v39 = vpop.f32.mrf.mxu1 }
 0x727   :  { %v10157_v44 = vpop.eup %10156  ;;  %10182 = vrcp.f32 %v7545_v28  ;;  %v7551_v14 = vadd.f32 1.0, %v10155_v63  ;;  %v8741_v19 = vpop.f32.mrf.mxu0 }
 0x728   :  { %v10159_v9 = vpop.eup %10158  ;;  %7859 = vst [vmem:[#allocation20 + $0x1a8] sm:$0xff] %v10157_v44  ;;  %10184 = vpow2.f32 %v8715_v23  ;;  %v8722_v11 = vmul.f32 -1.442695, %v6938_v58  ;;  %v8742_v60 = vadd.f32 %v8741_v19, %v8740_v18  ;;  %v8805_v25 = vpop.f32.mrf.mxu1 }
 0x729   :  { %v10161_v2 = vpop.eup %10160  ;;  %10186 = vrcp.f32 %v7551_v14  ;;  %v7552_v7 = vadd.f32 1.0, %v10159_v9  ;;  %v8743_v54 = vpop.f32.mrf.mxu0  ;;  %v8806_v40 = vadd.f32 %v8805_v25, %v8804_v39 }
 0x72a   :  { %v10163_v55 = vpop.eup %10162  ;;  %7860 = vst [vmem:[#allocation20 + $0x1b0] sm:$0xff] %v10161_v2  ;;  %10188 = vpow2.f32 %v8721_v37  ;;  %v6975_v31 = vadd.f32 %v8742_v60, %v11957_v24  ;;  %v8807_v29 = vpop.f32.mrf.mxu1 }
 0x72b   :  { %v10165_v8 = vpop.eup %10164  ;;  %7866 = vst [vmem:[#allocation20 + $0x1e0] sm:$0xff] %v10163_v55  ;;  %10190 = vrcp.f32 %v7552_v7  ;;  %v8744_v10 = vpop.f32.mrf.mxu0 }
 0x72c   :  { %v10167_v61 = vpop.eup %10166  ;;  %v7558_v51 = vadd.f32 1.0, %v10165_v8  ;;  %10192 = vpow2.f32 %v8722_v11  ;;  %v7072_v36 = vadd.f32 %v8806_v40, %v6975_v31  ;;  %v8745_v17 = vadd.f32 %v8744_v10, %v8743_v54  ;;  %v8808_v22 = vpop.f32.mrf.mxu1 }
 0x72d   :  { %v10169_v0 = vpop.eup %10168  ;;  %7867 = vst [vmem:[#allocation20 + $0x1e8] sm:$0xff] %v10167_v61  ;;  %v8809_v30 = vadd.f32 %v8808_v22, %v8807_v29  ;;  %v8746_v34 = vpop.f32.mrf.mxu0 }
 0x72e   :  { %v10171_v1 = vpop.eup %10170  ;;  %10194 = vrcp.f32 %v7558_v51  ;;  %v7559_v32 = vadd.f32 1.0, %v10169_v0  ;;  %v8618_v42 = vmul.f32 -1.442695, %v7072_v36  ;;  %v6978_v46 = vadd.f32 %v8745_v17, %v11957_v24  ;;  %v8810_v15 = vpop.f32.mrf.mxu1 }
 0x72f   :  { %v10173_v50 = vpop.eup %10172  ;;  %7873 = vst [vmem:[#allocation20 + $0x218] sm:$0xff] %v10171_v1  ;;  %v8747_v62 = vpop.f32.mrf.mxu0 }
 0x730   :  { %v10175_v35 = vpop.eup %10174  ;;  %10196 = vrcp.f32 %v7559_v32  ;;  %v7565_v6 = vadd.f32 1.0, %v10173_v50  ;;  %v7075_v45 = vadd.f32 %v8809_v30, %v6978_v46  ;;  %v8748_v26 = vadd.f32 %v8747_v62, %v8746_v34  ;;  %v8811_v12 = vpop.f32.mrf.mxu1 }
 0x731   :  { %v10177_v59 = vpop.eup %10176  ;;  %7874 = vst [vmem:[#allocation20 + $0x220] sm:$0xff] %v10175_v35  ;;  %10198 = vpow2.f32 %v8618_v42  ;;  %v8812_v38 = vadd.f32 %v8811_v12, %v8810_v15  ;;  %v8749_v20 = vpop.f32.mrf.mxu0 }
 0x732   :  { %v10179_v33 = vpop.eup %10178  ;;  %10200 = vrcp.f32 %v7565_v6  ;;  %v7566_v13 = vadd.f32 1.0, %v10177_v59  ;;  %v8625_v4 = vmul.f32 -1.442695, %v7075_v45  ;;  %v6983_v47 = vadd.f32 %v8748_v26, %v11957_v24  ;;  %v8813_v21 = vpop.f32.mrf.mxu1 }
 0x733   :  { %v10181_v5 = vpop.eup %10180  ;;  %7880 = vst [vmem:[#allocation20 + $0x250] sm:$0xff] %v10179_v33  ;;  %v8750_v52 = vpop.f32.mrf.mxu0 }
 0x734   :  { %v10183_v48 = vpop.eup %10182  ;;  %10202 = vrcp.f32 %v7566_v13  ;;  %v7572_v41 = vadd.f32 1.0, %v10181_v5  ;;  %v7080_v49 = vadd.f32 %v8812_v38, %v6983_v47  ;;  %v8751_v43 = vadd.f32 %v8750_v52, %v8749_v20  ;;  %v8814_v27 = vpop.f32.mrf.mxu1 }
 0x735   :  { %v10185_v3 = vpop.eup %10184  ;;  %7881 = vst [vmem:[#allocation20 + $0x258] sm:$0xff] %v10183_v48  ;;  %10204 = vpow2.f32 %v8625_v4  ;;  %v8815_v23 = vadd.f32 %v8814_v27, %v8813_v21  ;;  %v8752_v57 = vpop.f32.mrf.mxu0 }
 0x736   :  { %v10187_v56 = vpop.eup %10186  ;;  %10206 = vrcp.f32 %v7572_v41  ;;  %v7573_v53 = vadd.f32 1.0, %v10185_v3  ;;  %v8632_v16 = vmul.f32 -1.442695, %v7080_v49  ;;  %v6986_v28 = vadd.f32 %v8751_v43, %v11957_v24  ;;  %v8816_v18 = vpop.f32.mrf.mxu1 }
 0x737   :  { %v10189_v63 = vpop.eup %10188  ;;  %7887 = vst [vmem:[#allocation20 + $0x288] sm:$0xff] %v10187_v56  ;;  %v8753_v37 = vpop.f32.mrf.mxu0 }
 0x738   :  { %v10191_v58 = vpop.eup %10190  ;;  %10208 = vrcp.f32 %v7573_v53  ;;  %v7579_v39 = vadd.f32 1.0, %v10189_v63  ;;  %v7083_v44 = vadd.f32 %v8815_v23, %v6986_v28  ;;  %v8754_v14 = vadd.f32 %v8753_v37, %v8752_v57  ;;  %v8817_v19 = vpop.f32.mrf.mxu1 }
 0x739   :  { %v10193_v9 = vpop.eup %10192  ;;  %7888 = vst [vmem:[#allocation20 + $0x290] sm:$0xff] %v10191_v58  ;;  %10210 = vpow2.f32 %v8632_v16  ;;  %v8818_v11 = vadd.f32 %v8817_v19, %v8816_v18  ;;  %v8755_v60 = vpop.f32.mrf.mxu0 }
 0x73a   :  { %10212 = vrcp.f32 %v7579_v39  ;;  %v7580_v25 = vadd.f32 1.0, %v10193_v9  ;;  %v8639_v2 = vmul.f32 -1.442695, %v7083_v44  ;;  %v6991_v7 = vadd.f32 %v8754_v14, %v11957_v24  ;;  %v8819_v54 = vpop.f32.mrf.mxu1 }
 0x73b   :  { %v10195_v55 = vpop.eup %10194  ;;  %v8756_v31 = vpop.f32.mrf.mxu0 }
 0x73c   :  { %7894 = vst [vmem:[#allocation20 + $0x2c0] sm:$0xff] %v10195_v55  ;;  %10214 = vrcp.f32 %v7580_v25  ;;  %v7088_v40 = vadd.f32 %v8818_v11, %v6991_v7  ;;  %v8757_v29 = vadd.f32 %v8756_v31, %v8755_v60  ;;  %v8820_v8 = vpop.f32.mrf.mxu1 }
 0x73d   :  { %v10197_v10 = vpop.eup %10196  ;;  %10216 = vpow2.f32 %v8639_v2  ;;  %v8758_v61 = vpop.f32.mrf.mxu0  ;;  %v8821_v22 = vadd.f32 %v8820_v8, %v8819_v54 }
 0x73e   :  { %v10199_v51 = vpop.eup %10198  ;;  %7895 = vst [vmem:[#allocation20 + $0x2c8] sm:$0xff] %v10197_v10  ;;  %v8646_v36 = vmul.f32 -1.442695, %v7088_v40  ;;  %v6994_v17 = vadd.f32 %v8757_v29, %v11957_v24  ;;  %v8822_v0 = vpop.f32.mrf.mxu1 }
 0x73f   :  { %v10201_v30 = vpop.eup %10200  ;;  %v7476_v34 = vadd.f32 1.0, %v10199_v51  ;;  %v8759_v1 = vpop.f32.mrf.mxu0 }
 0x740   :  { %7901 = vst [vmem:[#allocation20 + $0x2f8] sm:$0xff] %v10201_v30  ;;  %10218 = vpow2.f32 %v8646_v36  ;;  %v7091_v32 = vadd.f32 %v8821_v22, %v6994_v17  ;;  %v8760_v42 = vadd.f32 %v8759_v1, %v8758_v61  ;;  %v8823_v46 = vpop.f32.mrf.mxu1 }
 0x741   :  { %v10203_v15 = vpop.eup %10202  ;;  %10220 = vrcp.f32 %v7476_v34  ;;  %v8761_v50 = vpop.f32.mrf.mxu0  ;;  %v8824_v45 = vadd.f32 %v8823_v46, %v8822_v0 }
 0x742   :  { %v10205_v62 = vpop.eup %10204  ;;  %7902 = vst [vmem:[#allocation20 + $0x300] sm:$0xff] %v10203_v15  ;;  %v8653_v35 = vmul.f32 -1.442695, %v7091_v32  ;;  %v6999_v6 = vadd.f32 %v8760_v42, %v11957_v24  ;;  %v8825_v26 = vpop.f32.mrf.mxu1 }
 0x743   :  { %v10207_v12 = vpop.eup %10206  ;;  %v7483_v59 = vadd.f32 1.0, %v10205_v62  ;;  %v8762_v38 = vpop.f32.mrf.mxu0 }
 0x744   :  { %7908 = vst [vmem:[#allocation20 + $0x330] sm:$0xff] %v10207_v12  ;;  %10222 = vpow2.f32 %v8653_v35  ;;  %v7096_v20 = vadd.f32 %v8824_v45, %v6999_v6  ;;  %v8763_v33 = vadd.f32 %v8762_v38, %v8761_v50  ;;  %v8826_v13 = vpop.f32.mrf.mxu1 }
 0x745   :  { %v10209_v4 = vpop.eup %10208  ;;  %10224 = vrcp.f32 %v7483_v59  ;;  %v8764_v47 = vpop.f32.mrf.mxu0  ;;  %v8827_v48 = vadd.f32 %v8826_v13, %v8825_v26 }
 0x746   :  { %v10211_v21 = vpop.eup %10210  ;;  %7909 = vst [vmem:[#allocation20 + $0x338] sm:$0xff] %v10209_v4  ;;  %v8660_v5 = vmul.f32 -1.442695, %v7096_v20  ;;  %v7002_v52 = vadd.f32 %v8763_v33, %v11957_v24  ;;  %v8828_v41 = vpop.f32.mrf.mxu1 }
 0x747   :  { %v10213_v49 = vpop.eup %10212  ;;  %v7490_v43 = vadd.f32 1.0, %v10211_v21  ;;  %v8765_v27 = vpop.f32.mrf.mxu0 }
 0x748   :  { %7915 = vst [vmem:[#allocation20 + $0x368] sm:$0xff] %v10213_v49  ;;  %10226 = vpow2.f32 %v8660_v5  ;;  %v7099_v3 = vadd.f32 %v8827_v48, %v7002_v52  ;;  %v8766_v23 = vadd.f32 %v8765_v27, %v8764_v47  ;;  %v8829_v57 = vpop.f32.mrf.mxu1 }
 0x749   :  { %v10215_v56 = vpop.eup %10214  ;;  %10228 = vrcp.f32 %v7490_v43  ;;  %v8767_v53 = vpop.f32.mrf.mxu0  ;;  %v8830_v63 = vadd.f32 %v8829_v57, %v8828_v41 }
 0x74a   :  { %v10217_v16 = vpop.eup %10216  ;;  %7916 = vst [vmem:[#allocation20 + $0x370] sm:$0xff] %v10215_v56  ;;  %v8667_v28 = vmul.f32 -1.442695, %v7099_v3  ;;  %v7007_v18 = vadd.f32 %v8766_v23, %v11957_v24  ;;  %v8831_v37 = vpop.f32.mrf.mxu1 }
 0x74b   :  { %v7497_v58 = vadd.f32 1.0, %v10217_v16  ;;  %v8768_v39 = vpop.f32.mrf.mxu0 }
 0x74c   :  { %10230 = vpow2.f32 %v8667_v28  ;;  %v7104_v44 = vadd.f32 %v8830_v63, %v7007_v18  ;;  %v8769_v14 = vadd.f32 %v8768_v39, %v8767_v53  ;;  %v8832_v19 = vpop.f32.mrf.mxu1 }
 0x74d   :  { %v10219_v9 = vpop.eup %10218  ;;  %10232 = vrcp.f32 %v7497_v58  ;;  %v8770_v11 = vpop.f32.mrf.mxu0  ;;  %v8833_v54 = vadd.f32 %v8832_v19, %v8831_v37 }
 0x74e   :  { %v10221_v60 = vpop.eup %10220  ;;  %v7504_v25 = vadd.f32 1.0, %v10219_v9  ;;  %v8674_v2 = vmul.f32 -1.442695, %v7104_v44  ;;  %v7010_v7 = vadd.f32 %v8769_v14, %v11957_v24  ;;  %v8834_v55 = vpop.f32.mrf.mxu1 }
 0x74f   :  { %7812 = vst [vmem:[#allocation20 + $0x30] sm:$0xff] %v10221_v60  ;;  %v8771_v31 = vpop.f32.mrf.mxu0 }
 0x750   :  { %10234 = vrcp.f32 %v7504_v25  ;;  %v7107_v40 = vadd.f32 %v8833_v54, %v7010_v7  ;;  %v8772_v29 = vadd.f32 %v8771_v31, %v8770_v11  ;;  %v8835_v8 = vpop.f32.mrf.mxu1 }
 0x751   :  { %v10223_v10 = vpop.eup %10222  ;;  %10236 = vpow2.f32 %v8674_v2  ;;  %v8773_v61 = vpop.f32.mrf.mxu0  ;;  %v8836_v0 = vadd.f32 %v8835_v8, %v8834_v55 }
 0x752   :  { %v10225_v51 = vpop.eup %10224  ;;  %v7511_v36 = vadd.f32 1.0, %v10223_v10  ;;  %v8681_v17 = vmul.f32 -1.442695, %v7107_v40  ;;  %v7015_v22 = vadd.f32 %v8772_v29, %v11957_v24  ;;  %v8837_v30 = vpop.f32.mrf.mxu1 }
 0x753   :  { %7819 = vst [vmem:[#allocation20 + $0x68] sm:$0xff] %v10225_v51  ;;  %v8774_v34 = vpop.f32.mrf.mxu0 }
 0x754   :  { %10238 = vrcp.f32 %v7511_v36  ;;  %v7112_v1 = vadd.f32 %v8836_v0, %v7015_v22  ;;  %v8775_v32 = vadd.f32 %v8774_v34, %v8773_v61  ;;  %v8838_v42 = vpop.f32.mrf.mxu1 }
 0x755   :  { %v10227_v46 = vpop.eup %10226  ;;  %10240 = vpow2.f32 %v8681_v17  ;;  %v8776_v15 = vpop.f32.mrf.mxu0  ;;  %v8839_v45 = vadd.f32 %v8838_v42, %v8837_v30 }
 0x756   :  { %v10229_v50 = vpop.eup %10228  ;;  %v7518_v62 = vadd.f32 1.0, %v10227_v46  ;;  %v8688_v35 = vmul.f32 -1.442695, %v7112_v1  ;;  %v7018_v6 = vadd.f32 %v8775_v32, %v11957_v24  ;;  %v8840_v26 = vpop.f32.mrf.mxu1 }
 0x757   :  { %7826 = vst [vmem:[#allocation20 + $0xa0] sm:$0xff] %v10229_v50  ;;  %v8777_v12 = vpop.f32.mrf.mxu0 }
 0x758   :  { %10242 = vrcp.f32 %v7518_v62  ;;  %v7115_v59 = vadd.f32 %v8839_v45, %v7018_v6  ;;  %v8778_v38 = vadd.f32 %v8777_v12, %v8776_v15  ;;  %v8841_v20 = vpop.f32.mrf.mxu1 }
 0x759   :  { %v10231_v33 = vpop.eup %10230  ;;  %10244 = vpow2.f32 %v8688_v35  ;;  %v8779_v13 = vpop.f32.mrf.mxu0  ;;  %v8842_v52 = vadd.f32 %v8841_v20, %v8840_v26 }
 0x75a   :  { %v10233_v4 = vpop.eup %10232  ;;  %v7525_v47 = vadd.f32 1.0, %v10231_v33  ;;  %v8695_v21 = vmul.f32 -1.442695, %v7115_v59  ;;  %v7023_v5 = vadd.f32 %v8778_v38, %v11957_v24  ;;  %v8843_v48 = vpop.f32.mrf.mxu1 }
 0x75b   :  { %7833 = vst [vmem:[#allocation20 + $0xd8] sm:$0xff] %v10233_v4  ;;  %v8780_v41 = vpop.f32.mrf.mxu0 }
 0x75c   :  { %10246 = vrcp.f32 %v7525_v47  ;;  %v7120_v49 = vadd.f32 %v8842_v52, %v7023_v5  ;;  %v8781_v43 = vadd.f32 %v8780_v41, %v8779_v13  ;;  %v8844_v27 = vpop.f32.mrf.mxu1 }
 0x75d   :  { %v10235_v3 = vpop.eup %10234  ;;  %10248 = vpow2.f32 %v8695_v21  ;;  %v8782_v23 = vpop.f32.mrf.mxu0  ;;  %v8845_v16 = vadd.f32 %v8844_v27, %v8843_v48 }
 0x75e   :  { %v10237_v57 = vpop.eup %10236  ;;  %7840 = vst [vmem:[#allocation20 + $0x110] sm:$0xff] %v10235_v3  ;;  %v8702_v56 = vmul.f32 -1.442695, %v7120_v49  ;;  %v7026_v53 = vadd.f32 %v8781_v43, %v11957_v24  ;;  %v8846_v28 = vpop.f32.mrf.mxu1 }
 0x75f   :  { %v7532_v18 = vadd.f32 1.0, %v10237_v57  ;;  %v8783_v63 = vpop.f32.mrf.mxu0 }
 0x760   :  { %10250 = vpow2.f32 %v8702_v56  ;;  %v7123_v37 = vadd.f32 %v8845_v16, %v7026_v53  ;;  %v8784_v58 = vadd.f32 %v8783_v63, %v8782_v23  ;;  %v8847_v39 = vpop.f32.mrf.mxu1 }
 0x761   :  { %v10239_v44 = vpop.eup %10238  ;;  %10252 = vrcp.f32 %v7532_v18  ;;  %v8785_v14 = vpop.f32.mrf.mxu0  ;;  %v8848_v60 = vadd.f32 %v8847_v39, %v8846_v28 }
 0x762   :  { %v10241_v19 = vpop.eup %10240  ;;  %7847 = vst [vmem:[#allocation20 + $0x148] sm:$0xff] %v10239_v44  ;;  %v8709_v9 = vmul.f32 -1.442695, %v7123_v37  ;;  %v7031_v11 = vadd.f32 %v8784_v58, %v11957_v24  ;;  %v8849_v25 = vpop.f32.mrf.mxu1 }
 0x763   :  { %v7539_v2 = vadd.f32 1.0, %v10241_v19  ;;  %v8786_v7 = vpop.f32.mrf.mxu0 }
 0x764   :  { %10254 = vpow2.f32 %v8709_v9  ;;  %v7128_v54 = vadd.f32 %v8848_v60, %v7031_v11  ;;  %v8787_v55 = vadd.f32 %v8786_v7, %v8785_v14  ;;  %v8850_v31 = vpop.f32.mrf.mxu1 }
 0x765   :  { %v10243_v40 = vpop.eup %10242  ;;  %10256 = vrcp.f32 %v7539_v2  ;;  %v8851_v61 = vadd.f32 %v8850_v31, %v8849_v25 }
 0x766   :  { %v10245_v29 = vpop.eup %10244  ;;  %7854 = vst [vmem:[#allocation20 + $0x180] sm:$0xff] %v10243_v40  ;;  %v8716_v8 = vmul.f32 -1.442695, %v7128_v54  ;;  %v7034_v10 = vadd.f32 %v8787_v55, %v11957_v24 }
 0x767   :  { %v7546_v51 = vadd.f32 1.0, %v10245_v29 }
 0x768   :  { %10258 = vpow2.f32 %v8716_v8  ;;  %v7131_v36 = vadd.f32 %v8851_v61, %v7034_v10 }
 0x769   :  { %v10247_v17 = vpop.eup %10246  ;;  %10260 = vrcp.f32 %v7546_v51 }
 0x76a   :  { %v10249_v22 = vpop.eup %10248  ;;  %7861 = vst [vmem:[#allocation20 + $0x1b8] sm:$0xff] %v10247_v17  ;;  %v8723_v0 = vmul.f32 -1.442695, %v7131_v36 }
 0x76b   :  { %v7553_v30 = vadd.f32 1.0, %v10249_v22 }
 0x76c   :  { %10262 = vpow2.f32 %v8723_v0 }
 0x76d   :  { %v10251_v34 = vpop.eup %10250  ;;  %10264 = vrcp.f32 %v7553_v30 }
 0x76e   :  { %v10253_v1 = vpop.eup %10252  ;;  %v7560_v32 = vadd.f32 1.0, %v10251_v34 }
 0x76f   :  { %7868 = vst [vmem:[#allocation20 + $0x1f0] sm:$0xff] %v10253_v1 }
 0x770   :  { %10266 = vrcp.f32 %v7560_v32 }
 0x771   :  { %v10255_v42 = vpop.eup %10254 }
 0x772   :  { %v10257_v46 = vpop.eup %10256  ;;  %v7567_v24 = vadd.f32 1.0, %v10255_v42 }
 0x773   :  { %7875 = vst [vmem:[#allocation20 + $0x228] sm:$0xff] %v10257_v46 }
 0x774   :  { %10268 = vrcp.f32 %v7567_v24 }
 0x775   :  { %v10259_v15 = vpop.eup %10258 }
 0x776   :  { %v10261_v50 = vpop.eup %10260  ;;  %v7574_v62 = vadd.f32 1.0, %v10259_v15 }
 0x777   :  { %7882 = vst [vmem:[#allocation20 + $0x260] sm:$0xff] %v10261_v50 }
 0x778   :  { %10270 = vrcp.f32 %v7574_v62 }
 0x779   :  { %v10263_v35 = vpop.eup %10262 }
 0x77a   :  { %v10265_v6 = vpop.eup %10264  ;;  %v7581_v45 = vadd.f32 1.0, %v10263_v35 }
 0x77b   :  { %7889 = vst [vmem:[#allocation20 + $0x298] sm:$0xff] %v10265_v6 }
 0x77c   :  { %10272 = vrcp.f32 %v7581_v45 }
 0x77d   :  { %v10267_v26 = vpop.eup %10266 }
 0x77e   :  { %7896 = vst [vmem:[#allocation20 + $0x2d0] sm:$0xff] %v10267_v26 }
 0x781   :  { %v10269_v12 = vpop.eup %10268 }
 0x782   :  { %7903 = vst [vmem:[#allocation20 + $0x308] sm:$0xff] %v10269_v12 }
 0x785   :  { %v10271_v59 = vpop.eup %10270 }
 0x786   :  { %7910 = vst [vmem:[#allocation20 + $0x340] sm:$0xff] %v10271_v59 }
 0x789   :  { %v10273_v38 = vpop.eup %10272 }
 0x78a   :  { %7917 = vst [vmem:[#allocation20 + $0x378] sm:$0xff] %v10273_v38 }
 0x78b   :  { %10527 = shalt.err (!%p10524_p8)
}
 0x78c   :  { %7961 = dma.vmem_to_hbm [thread:$0]  %s7956_s29, 14336, %s11995_s14, [#allocation4], %s10562_s22, %s10562_s22, %s10563_s1  }
 0x78d   :  { %10548 = dma.done.wait [#allocation4], 14336  }
 0x78e   :  { %10549 = vsyncadd [#allocation4], 4294952960 }
 0x78f   :  { %10550 = dma.done.wait [#allocation22], 4096  }
 0x790   :  { %10551 = vsyncadd [#allocation22], 4294963200 }
 0x791   :  { %7980 = vsyncpa [#allocation3], 1 }
 0x792   :  { %7981 = vsyncpa [#allocation6], 1 }
 0x793   :  { %7982 = vsyncpa [#allocation9], 1 }
 0x794   :  { %7983 = vsyncpa [#allocation12], 1 }
 0x795   :  { %7984 = vsyncpa [#allocation15], 1 }
 0x796   :  { %7985 = vsyncpa [#allocation18], 1 }
 0x797   :  { %7986 = vsyncpa [#allocation4], 1 }
 0x798   :  { %7987 = vsyncpa [#allocation22], 1 }

</bundles_post_ra>
